<compile_context>
chip_gen: v7x
topology: tpu7x:2x2x1
jax: 0.10.0
libtpu: 0.0.40
codegen_flags: <defaults>
</compile_context>

<pallas_src>
import jax
import jax.numpy as jnp
from jax import lax
from jax.experimental import pallas as pl
from jax.experimental.pallas import tpu as pltpu

# ---- static per-image layout (input 3x30x30; fc1 in=1024 = 256*2*2) ----------
#   conv1 : 30-wide grid, 864 rows computed (3 chunks x 288), 32 ch
#   pool1 : compact 14x14 grid = 196 rows, 32 ch   (+ zero tail to 200)
#   conv2 : 14-wide grid, 168 rows computed, 64 ch
#   pool2 : compact 6x6 grid = 36 rows, 64 ch      (+ zero tail to 40)
#   conv3 : 6-wide grid, 24 rows computed, 128 ch
#   conv4 : 6-wide grid, 8 rows computed, 256 ch
_G0, _G1, _G2 = 30, 14, 6
_R1, _CK1 = 864, 288
_P1_ROWS = 200
_R2 = 168
_P2_ROWS = 40
_R3 = 24
_R4 = 8
_X_ROWS = 904            # im2col rows per image (900 valid, padded to mult of 8)


# --------------------------- in-kernel building blocks ------------------------

def _stride2_select(n):
    """(n, 2n) 0/1 matrix: sel @ blk == blk[0::2] (exact, even in bf16)."""
    r = lax.broadcasted_iota(jnp.int32, (n, 2 * n), 0)
    c = lax.broadcasted_iota(jnp.int32, (n, 2 * n), 1)
    return jnp.where(c == 2 * r, 1.0, 0.0).astype(jnp.bfloat16)


def _conv3x3_relu(in_ref, w_ref, b_ref, out_ref, *, grid_w, rows):
    """out[r] = relu(b + sum_{i,j} in[r + i*grid_w + j] @ w[3i+j]), r in [0, rows)."""
    cout = out_ref.shape[-1]
    acc = jnp.zeros((rows, cout), jnp.float32)
    for t in range(9):
        i, j = divmod(t, 3)
        xs = in_ref[pl.ds(i * grid_w + j, rows), :]              # (rows, cin) bf16
        acc = acc + jnp.dot(xs, w_ref[t], preferred_element_type=jnp.float32)
    out_ref[...] = jnp.maximum(acc + b_ref[...], 0.0).astype(out_ref.dtype)


def _maxpool2x2_compact(in_ref, out_ref, *, in_w, out_h, out_w):
    """2x2/stride-2 max-pool with grid compaction: in_w-wide grid -> out_h x out_w."""
    sel = _stride2_select(out_w)
    for yo in range(out_h):                                      # static unroll
        base = 2 * yo * in_w
        blk = in_ref[pl.ds(base, 2 * out_w), :]
        for t in (1, in_w, in_w + 1):
            blk = jnp.maximum(blk, in_ref[pl.ds(base + t, 2 * out_w), :])
        out_ref[pl.ds(yo * out_w, out_w), :] = jnp.dot(
            sel, blk, preferred_element_type=jnp.float32).astype(out_ref.dtype)


# ----------------------------------- kernel -----------------------------------

def _net_kernel(x_ref,
                w1_ref, b1_ref, w2_ref, b2_ref, w3_ref, b3_ref, w4_ref, b4_ref,
                wf1_ref, bf1_ref, wf2_ref, bf2_ref, wf4_ref, bf4_ref,
                o_ref,
                a1_ref, p1_ref, a2_ref, p2_ref, a3_ref, a4_ref):
    # Zero the partially-written pool buffers so the few padding rows read by the
    # conv row-chunk tails are finite zeros (fixes the stale-VMEM NaN failure).
    p1_ref[...] = jnp.zeros_like(p1_ref)
    p2_ref[...] = jnp.zeros_like(p2_ref)

    # conv1 + relu: im2col'd input, a single K=32 MXU dot per 288-row chunk.
    w1 = w1_ref[...]
    b1 = b1_ref[...]
    for c in range(_R1 // _CK1):                                 # 3 chunks, unrolled
        base = c * _CK1
        acc = jnp.dot(x_ref[pl.ds(base, _CK1), :], w1,
                      preferred_element_type=jnp.float32)
        a1_ref[pl.ds(base, _CK1), :] = jnp.maximum(acc + b1, 0.0).astype(a1_ref.dtype)

    # pool1 (2x2/2) + compaction: 30-wide grid -> compact 14x14.
    _maxpool2x2_compact(a1_ref, p1_ref, in_w=_G0, out_h=14, out_w=14)
    # conv2 + relu on the compact 14-wide grid (single 168-row chunk).
    _conv3x3_relu(p1_ref, w2_ref, b2_ref, a2_ref, grid_w=_G1, rows=_R2)
    # pool2 + compaction: 14-wide grid -> compact 6x6.
    _maxpool2x2_compact(a2_ref, p2_ref, in_w=_G1, out_h=6, out_w=6)
    # conv3 / conv4 + relu on the compact 6-wide grid.
    _conv3x3_relu(p2_ref, w3_ref, b3_ref, a3_ref, grid_w=_G2, rows=_R3)
    _conv3x3_relu(a3_ref, w4_ref, b4_ref, a4_ref, grid_w=_G2, rows=_R4)

    # fc1 -> fc2 -> fc4 -> log_softmax head (per image).  conv4's 2x2 output
    # lives at a4 rows {0, 1, G2, G2+1}; fc1 weights were regrouped per position.
    h1 = bf1_ref[...]                                            # (1, 128) f32
    for p, off in enumerate((0, 1, _G2, _G2 + 1)):
        h1 = h1 + jnp.dot(a4_ref[pl.ds(off, 1), :], wf1_ref[p],
                          preferred_element_type=jnp.float32)
    h1 = jnp.maximum(h1, 0.0).astype(jnp.bfloat16)
    h2 = jnp.maximum(
        jnp.dot(h1, wf2_ref[...], preferred_element_type=jnp.float32) + bf2_ref[...],
        0.0).astype(jnp.bfloat16)
    logits = jnp.dot(h2, wf4_ref[...], preferred_element_type=jnp.float32) + bf4_ref[...]
    z = logits - jnp.max(logits, axis=-1, keepdims=True)
    o_ref[...] = (z - jnp.log(jnp.sum(jnp.exp(z), axis=-1, keepdims=True))
                  ).astype(o_ref.dtype)


# ----------------------------------- wrapper ----------------------------------

def _im2col_conv1(x_nchw):
    """NCHW f32 -> (B, 904, 32) bf16 im2col rows for conv1; feature = (3i+j)*3 + c."""
    B = x_nchw.shape[0]
    xg = jnp.transpose(x_nchw, (0, 2, 3, 1))                     # (B, 30, 30, 3)
    xp = jnp.pad(xg, ((0, 0), (0, 2), (0, 2), (0, 0)))           # (B, 32, 32, 3)
    taps = [xp[:, i:i + 30, j:j + 30, :] for i in range(3) for j in range(3)]
    x2 = jnp.stack(taps, axis=3).reshape(B, 900, 27)
    x2 = jnp.pad(x2, ((0, 0), (0, _X_ROWS - 900), (0, 32 - 27)))
    return x2.astype(jnp.bfloat16)


def _whole_array_spec(arr):
    nd = arr.ndim
    return pl.BlockSpec(arr.shape, lambda b, _n=nd: (0,) * _n)


def net_forward(params, x_nchw):
    """Forward pass of `Net` as one fused Pallas kernel per image (grid over batch)."""
    B, C, H, W = x_nchw.shape
    assert (C, H, W) == (3, 30, 30), (
        "Net.fc1 (in_features=1024=256*2*2) implies 3x30x30 inputs")

    x2col = _im2col_conv1(x_nchw)
    weights = (
        params["conv1"][0], params["conv1"][1],
        params["conv2"][0], params["conv2"][1],
        params["conv3"][0], params["conv3"][1],
        params["conv4"][0], params["conv4"][1],
        params["fc1"][0], params["fc1"][1],
        params["fc2"][0], params["fc2"][1],
        params["fc4"][0], params["fc4"][1],
    )

    out = pl.pallas_call(
        _net_kernel,
        out_shape=jax.ShapeDtypeStruct((B, 1, 10), jnp.float32),
        grid=(B,),
        in_specs=[pl.BlockSpec((None, _X_ROWS, 32), lambda b: (b, 0, 0))]
                 + [_whole_array_spec(w) for w in weights],
        out_specs=pl.BlockSpec((None, 1, 10), lambda b: (b, 0, 0)),
        scratch_shapes=[
            pltpu.VMEM((_R1, 32), jnp.bfloat16),        # a1  (conv1 out, 30-wide grid)
            pltpu.VMEM((_P1_ROWS, 32), jnp.bfloat16),   # p1  (compact 14x14 + zero tail)
            pltpu.VMEM((_R2, 64), jnp.bfloat16),        # a2  (conv2 out, 14-wide grid)
            pltpu.VMEM((_P2_ROWS, 64), jnp.bfloat16),   # p2  (compact 6x6 + zero tail)
            pltpu.VMEM((_R3, 128), jnp.bfloat16),       # a3  (conv3 out, 6-wide grid)
            pltpu.VMEM((_R4, 256), jnp.bfloat16),       # a4  (conv4 out, 6-wide grid)
        ],
        compiler_params=pltpu.CompilerParams(
            dimension_semantics=("parallel",)),
    )(x2col, *weights)
    return out.reshape(B, 10)


# --------------------------------- parameters ---------------------------------

def init_params(key):
    """Deterministic synthetic parameters with the exact torch layouts of Net."""
    def conv_p(k, co, ci, ks):
        k1, k2 = jax.random.split(k)
        fan_in = ci * ks * ks
        w = jax.random.normal(k1, (co, ci, ks, ks), jnp.float32) * (2.0 / fan_in) ** 0.5
        b = jax.random.normal(k2, (co,), jnp.float32) * 0.01
        return w, b

    def fc_p(k, nout, nin):
        k1, k2 = jax.random.split(k)
        w = jax.random.normal(k1, (nout, nin), jnp.float32) * (2.0 / nin) ** 0.5
        b = jax.random.normal(k2, (nout,), jnp.float32) * 0.01
        return w, b

    ks = jax.random.split(key, 7)
    return {
        "conv1": conv_p(ks[0], 32, 3, 3),
        "conv2": conv_p(ks[1], 64, 32, 3),
        "conv3": conv_p(ks[2], 128, 64, 3),
        "conv4": conv_p(ks[3], 256, 128, 3),
        "fc1": fc_p(ks[4], 128, 1024),
        "fc2": fc_p(ks[5], 64, 128),
        "fc4": fc_p(ks[6], 10, 64),
    }


def prepare_params(torch_params):
    """One-time re-layout into kernel-friendly matrices (no per-call transposes)."""
    out = {}
    # conv1: im2col weight (27, 32) -> K zero-padded to (32, 32); feature order (3i+j)*3+c.
    w1, b1 = torch_params["conv1"]
    w1c = jnp.pad(jnp.transpose(w1, (2, 3, 1, 0)).reshape(27, 32), ((0, 5), (0, 0)))
    out["conv1"] = (w1c.astype(jnp.bfloat16), b1.reshape(1, 32).astype(jnp.float32))
    # conv2..4: per-tap (9, cin, cout) matrices.
    for name in ("conv2", "conv3", "conv4"):
        w, b = torch_params[name]
        co, ci, kh, kw = w.shape
        wt = jnp.transpose(w, (2, 3, 1, 0)).reshape(kh * kw, ci, co)
        out[name] = (wt.astype(jnp.bfloat16), b.reshape(1, co).astype(jnp.float32))
    # fc1: torch flattens conv4's (256, 2, 2) output c-major; regroup per (h, w) position.
    wf1, bf1 = torch_params["fc1"]
    wf1 = jnp.transpose(wf1.reshape(128, 256, 2, 2), (2, 3, 1, 0)).reshape(4, 256, 128)
    out["fc1"] = (wf1.astype(jnp.bfloat16), bf1.reshape(1, 128).astype(jnp.float32))
    wf2, bf2 = torch_params["fc2"]
    out["fc2"] = (wf2.T.astype(jnp.bfloat16), bf2.reshape(1, 64).astype(jnp.float32))
    wf4, bf4 = torch_params["fc4"]
    out["fc4"] = (wf4.T.astype(jnp.bfloat16), bf4.reshape(1, 10).astype(jnp.float32))
    return out


# ------------------------- pure-JAX reference (checking) -----------------------

def net_forward_reference(torch_params, x_nchw):
    x = jnp.transpose(x_nchw, (0, 2, 3, 1))

    def conv(x, w, b):
        w_hwio = jnp.transpose(w, (2, 3, 1, 0))
        y = lax.conv_general_dilated(x, w_hwio, (1, 1), "VALID",
                                     dimension_numbers=("NHWC", "HWIO", "NHWC"))
        return jax.nn.relu(y + b)

    def pool(x):
        return lax.reduce_window(x, -jnp.inf, lax.max,
                                 (1, 2, 2, 1), (1, 2, 2, 1), "VALID")

    x = pool(conv(x, *torch_params["conv1"]))
    x = pool(conv(x, *torch_params["conv2"]))
    x = conv(x, *torch_params["conv3"])
    x = conv(x, *torch_params["conv4"])
    x = jnp.transpose(x, (0, 3, 1, 2)).reshape(x.shape[0], -1)   # torch flatten order
    w1, b1 = torch_params["fc1"]
    x = jax.nn.relu(x @ w1.T + b1)
    w2, b2 = torch_params["fc2"]
    x = jax.nn.relu(x @ w2.T + b2)
    w4, b4 = torch_params["fc4"]
    return jax.nn.log_softmax(x @ w4.T + b4, axis=-1)


# ------------------------------------ main -------------------------------------

if __name__ == "__main__":
    key = jax.random.PRNGKey(0)
    pkey, xkey = jax.random.split(key)
    raw_params = init_params(pkey)
    params = prepare_params(raw_params)

    x = jax.random.normal(xkey, (2, 3, 30, 30), jnp.float32)

    fwd = jax.jit(net_forward)
    out = jax.block_until_ready(fwd(params, x))

    assert out.shape == (2, 10)
    assert bool(jnp.all(jnp.isfinite(out)))
    # log_softmax sanity: per-row probabilities sum to 1 (normalization is f32 in-kernel).
    assert bool(jnp.allclose(jnp.sum(jnp.exp(out), axis=1), 1.0, atol=1e-3))
    # Loose check against the f32 XLA reference (kernel uses bf16 MXU operands).
    ref = jax.block_until_ready(jax.jit(net_forward_reference)(raw_params, x))
    assert bool(jnp.allclose(out, ref, atol=2e-1, rtol=5e-2)), (
        "max abs err vs reference: %f" % float(jnp.max(jnp.abs(out - ref))))
    print("KERNEL_OK")
</pallas_src>

<mosaic_0001>
module attributes {stable_mosaic.version = 11 : i64} {
  func.func @_net_kernel(%arg0: i32, %arg1: memref<1x904x32xbf16, #tpu.memory_space<vmem>>, %arg2: memref<32x32xbf16, #tpu.memory_space<vmem>>, %arg3: memref<1x32xf32, #tpu.memory_space<vmem>>, %arg4: memref<9x32x64xbf16, #tpu.memory_space<vmem>>, %arg5: memref<1x64xf32, #tpu.memory_space<vmem>>, %arg6: memref<9x64x128xbf16, #tpu.memory_space<vmem>>, %arg7: memref<1x128xf32, #tpu.memory_space<vmem>>, %arg8: memref<9x128x256xbf16, #tpu.memory_space<vmem>>, %arg9: memref<1x256xf32, #tpu.memory_space<vmem>>, %arg10: memref<4x256x128xbf16, #tpu.memory_space<vmem>>, %arg11: memref<1x128xf32, #tpu.memory_space<vmem>>, %arg12: memref<128x64xbf16, #tpu.memory_space<vmem>>, %arg13: memref<1x64xf32, #tpu.memory_space<vmem>>, %arg14: memref<64x10xbf16, #tpu.memory_space<vmem>>, %arg15: memref<1x10xf32, #tpu.memory_space<vmem>>, %arg16: memref<1x1x10xf32, #tpu.memory_space<vmem>>, %arg17: memref<864x32xbf16, #tpu.memory_space<vmem>>, %arg18: memref<200x32xbf16, #tpu.memory_space<vmem>>, %arg19: memref<168x64xbf16, #tpu.memory_space<vmem>>, %arg20: memref<40x64xbf16, #tpu.memory_space<vmem>>, %arg21: memref<24x128xbf16, #tpu.memory_space<vmem>>, %arg22: memref<8x256xbf16, #tpu.memory_space<vmem>>) attributes {dimension_semantics = [#tpu.dimension_semantics<parallel>], iteration_bounds = array<i64: 2>, scalar_prefetch = 0 : i64, scratch_operands = 6 : i64, tpu.core_type = #tpu.core_type<tc>, window_params = [{transform_indices = @transform_0, window_bounds = array<i64: 1, 904, 32>}, {pipeline_mode = #tpu.pipeline_mode<synchronous>, transform_indices = @transform_1, window_bounds = array<i64: 32, 32>}, {pipeline_mode = #tpu.pipeline_mode<synchronous>, transform_indices = @transform_2, window_bounds = array<i64: 1, 32>}, {pipeline_mode = #tpu.pipeline_mode<synchronous>, transform_indices = @transform_3, window_bounds = array<i64: 9, 32, 64>}, {pipeline_mode = #tpu.pipeline_mode<synchronous>, transform_indices = @transform_4, window_bounds = array<i64: 1, 64>}, {pipeline_mode = #tpu.pipeline_mode<synchronous>, transform_indices = @transform_5, window_bounds = array<i64: 9, 64, 128>}, {pipeline_mode = #tpu.pipeline_mode<synchronous>, transform_indices = @transform_6, window_bounds = array<i64: 1, 128>}, {pipeline_mode = #tpu.pipeline_mode<synchronous>, transform_indices = @transform_7, window_bounds = array<i64: 9, 128, 256>}, {pipeline_mode = #tpu.pipeline_mode<synchronous>, transform_indices = @transform_8, window_bounds = array<i64: 1, 256>}, {pipeline_mode = #tpu.pipeline_mode<synchronous>, transform_indices = @transform_9, window_bounds = array<i64: 4, 256, 128>}, {pipeline_mode = #tpu.pipeline_mode<synchronous>, transform_indices = @transform_10, window_bounds = array<i64: 1, 128>}, {pipeline_mode = #tpu.pipeline_mode<synchronous>, transform_indices = @transform_11, window_bounds = array<i64: 128, 64>}, {pipeline_mode = #tpu.pipeline_mode<synchronous>, transform_indices = @transform_12, window_bounds = array<i64: 1, 64>}, {pipeline_mode = #tpu.pipeline_mode<synchronous>, transform_indices = @transform_13, window_bounds = array<i64: 64, 10>}, {pipeline_mode = #tpu.pipeline_mode<synchronous>, transform_indices = @transform_14, window_bounds = array<i64: 1, 10>}, {transform_indices = @transform_15, window_bounds = array<i64: 1, 1, 10>}]} {
    %cst = arith.constant 0.000000e+00 : bf16
    %0 = vector.broadcast %cst : bf16 to vector<200x32xbf16>
    %c0 = arith.constant 0 : index
    %c0_0 = arith.constant 0 : index
    %1 = vector.load %arg18[%c0, %c0_0] : memref<200x32xbf16, #tpu.memory_space<vmem>>, vector<200x32xbf16>
    tpu.vector_store %arg18[%c0, %c0_0], %0 {strides = array<i32>} : memref<200x32xbf16, #tpu.memory_space<vmem>>, vector<200x32xbf16>,
    %cst_1 = arith.constant 0.000000e+00 : bf16
    %2 = vector.broadcast %cst_1 : bf16 to vector<40x64xbf16>
    %c0_2 = arith.constant 0 : index
    %c0_3 = arith.constant 0 : index
    %3 = vector.load %arg20[%c0_2, %c0_3] : memref<40x64xbf16, #tpu.memory_space<vmem>>, vector<40x64xbf16>
    tpu.vector_store %arg20[%c0_2, %c0_3], %2 {strides = array<i32>} : memref<40x64xbf16, #tpu.memory_space<vmem>>, vector<40x64xbf16>,
    %c0_4 = arith.constant 0 : index
    %c0_5 = arith.constant 0 : index
    %4 = vector.load %arg2[%c0_4, %c0_5] : memref<32x32xbf16, #tpu.memory_space<vmem>>, vector<32x32xbf16>
    %c0_6 = arith.constant 0 : index
    %c0_7 = arith.constant 0 : index
    %5 = vector.load %arg3[%c0_6, %c0_7] : memref<1x32xf32, #tpu.memory_space<vmem>>, vector<1x32xf32>
    %c0_8 = arith.constant 0 : index
    %c0_9 = arith.constant 0 : index
    %c0_10 = arith.constant 0 : index
    %6 = vector.load %arg1[%c0_8, %c0_9, %c0_10] : memref<1x904x32xbf16, #tpu.memory_space<vmem>>, vector<1x288x32xbf16>
    %7 = vector.shape_cast %6 : vector<1x288x32xbf16> to vector<288x32xbf16>
    %cst_11 = arith.constant dense<0.000000e+00> : vector<288x32xf32>
    %8 = tpu.matmul %7, %4, %cst_11 {dimension_numbers = #tpu.dot_dimension_numbers<[1], [0], [0], [1], [0, 0, 1, 1], [], []>} : vector<288x32xbf16>, vector<32x32xbf16>, vector<288x32xf32> -> vector<288x32xf32>
    %9 = vector.broadcast %5 : vector<1x32xf32> to vector<288x32xf32>
    %10 = arith.addf %8, %9 : vector<288x32xf32>
    %cst_12 = arith.constant 0.000000e+00 : f32
    %11 = vector.broadcast %cst_12 : f32 to vector<288x32xf32>
    %12 = arith.maximumf %10, %11 : vector<288x32xf32>
    %13 = arith.truncf %12 : vector<288x32xf32> to vector<288x32xbf16>
    %c0_13 = arith.constant 0 : index
    %c0_14 = arith.constant 0 : index
    %14 = vector.load %arg17[%c0_13, %c0_14] : memref<864x32xbf16, #tpu.memory_space<vmem>>, vector<288x32xbf16>
    tpu.vector_store %arg17[%c0_13, %c0_14], %13 {strides = array<i32>} : memref<864x32xbf16, #tpu.memory_space<vmem>>, vector<288x32xbf16>,
    %c0_15 = arith.constant 0 : index
    %c288 = arith.constant 288 : index
    %c0_16 = arith.constant 0 : index
    %15 = vector.load %arg1[%c0_15, %c288, %c0_16] : memref<1x904x32xbf16, #tpu.memory_space<vmem>>, vector<1x288x32xbf16>
    %16 = vector.shape_cast %15 : vector<1x288x32xbf16> to vector<288x32xbf16>
    %cst_17 = arith.constant dense<0.000000e+00> : vector<288x32xf32>
    %17 = tpu.matmul %16, %4, %cst_17 {dimension_numbers = #tpu.dot_dimension_numbers<[1], [0], [0], [1], [0, 0, 1, 1], [], []>} : vector<288x32xbf16>, vector<32x32xbf16>, vector<288x32xf32> -> vector<288x32xf32>
    %18 = vector.broadcast %5 : vector<1x32xf32> to vector<288x32xf32>
    %19 = arith.addf %17, %18 : vector<288x32xf32>
    %cst_18 = arith.constant 0.000000e+00 : f32
    %20 = vector.broadcast %cst_18 : f32 to vector<288x32xf32>
    %21 = arith.maximumf %19, %20 : vector<288x32xf32>
    %22 = arith.truncf %21 : vector<288x32xf32> to vector<288x32xbf16>
    %c288_19 = arith.constant 288 : index
    %c0_20 = arith.constant 0 : index
    %23 = vector.load %arg17[%c288_19, %c0_20] : memref<864x32xbf16, #tpu.memory_space<vmem>>, vector<288x32xbf16>
    tpu.vector_store %arg17[%c288_19, %c0_20], %22 {strides = array<i32>} : memref<864x32xbf16, #tpu.memory_space<vmem>>, vector<288x32xbf16>,
    %c0_21 = arith.constant 0 : index
    %c576 = arith.constant 576 : index
    %c0_22 = arith.constant 0 : index
    %24 = vector.load %arg1[%c0_21, %c576, %c0_22] : memref<1x904x32xbf16, #tpu.memory_space<vmem>>, vector<1x288x32xbf16>
    %25 = vector.shape_cast %24 : vector<1x288x32xbf16> to vector<288x32xbf16>
    %cst_23 = arith.constant dense<0.000000e+00> : vector<288x32xf32>
    %26 = tpu.matmul %25, %4, %cst_23 {dimension_numbers = #tpu.dot_dimension_numbers<[1], [0], [0], [1], [0, 0, 1, 1], [], []>} : vector<288x32xbf16>, vector<32x32xbf16>, vector<288x32xf32> -> vector<288x32xf32>
    %27 = vector.broadcast %5 : vector<1x32xf32> to vector<288x32xf32>
    %28 = arith.addf %26, %27 : vector<288x32xf32>
    %cst_24 = arith.constant 0.000000e+00 : f32
    %29 = vector.broadcast %cst_24 : f32 to vector<288x32xf32>
    %30 = arith.maximumf %28, %29 : vector<288x32xf32>
    %31 = arith.truncf %30 : vector<288x32xf32> to vector<288x32xbf16>
    %c576_25 = arith.constant 576 : index
    %c0_26 = arith.constant 0 : index
    %32 = vector.load %arg17[%c576_25, %c0_26] : memref<864x32xbf16, #tpu.memory_space<vmem>>, vector<288x32xbf16>
    tpu.vector_store %arg17[%c576_25, %c0_26], %31 {strides = array<i32>} : memref<864x32xbf16, #tpu.memory_space<vmem>>, vector<288x32xbf16>,
    %33 = tpu.iota {dimensions = array<i32: 0>} : vector<14x28xi32>
    %34 = tpu.iota {dimensions = array<i32: 1>} : vector<14x28xi32>
    %c2_i32 = arith.constant 2 : i32
    %35 = vector.broadcast %c2_i32 : i32 to vector<14x28xi32>
    %36 = arith.muli %35, %33 : vector<14x28xi32>
    %37 = arith.cmpi eq, %34, %36 : vector<14x28xi32>
    %cst_27 = arith.constant 1.000000e+00 : f32
    %cst_28 = arith.constant 0.000000e+00 : f32
    %38 = vector.broadcast %cst_27 : f32 to vector<14x28xf32>
    %39 = vector.broadcast %cst_28 : f32 to vector<14x28xf32>
    %40 = arith.select %37, %38, %39 : vector<14x28xi1>, vector<14x28xf32>
    %41 = arith.truncf %40 : vector<14x28xf32> to vector<14x28xbf16>
    %c0_29 = arith.constant 0 : index
    %c0_30 = arith.constant 0 : index
    %42 = vector.load %arg17[%c0_29, %c0_30] : memref<864x32xbf16, #tpu.memory_space<vmem>>, vector<28x32xbf16>
    %c1 = arith.constant 1 : index
    %c0_31 = arith.constant 0 : index
    %43 = vector.load %arg17[%c1, %c0_31] : memref<864x32xbf16, #tpu.memory_space<vmem>>, vector<28x32xbf16>
    %44 = arith.maximumf %42, %43 : vector<28x32xbf16>
    %c30 = arith.constant 30 : index
    %c0_32 = arith.constant 0 : index
    %45 = vector.load %arg17[%c30, %c0_32] : memref<864x32xbf16, #tpu.memory_space<vmem>>, vector<28x32xbf16>
    %46 = arith.maximumf %44, %45 : vector<28x32xbf16>
    %c31 = arith.constant 31 : index
    %c0_33 = arith.constant 0 : index
    %47 = vector.load %arg17[%c31, %c0_33] : memref<864x32xbf16, #tpu.memory_space<vmem>>, vector<28x32xbf16>
    %48 = arith.maximumf %46, %47 : vector<28x32xbf16>
    %cst_34 = arith.constant dense<0.000000e+00> : vector<14x32xf32>
    %49 = tpu.matmul %41, %48, %cst_34 {dimension_numbers = #tpu.dot_dimension_numbers<[1], [0], [0], [1], [0, 0, 1, 1], [], []>} : vector<14x28xbf16>, vector<28x32xbf16>, vector<14x32xf32> -> vector<14x32xf32>
    %50 = arith.truncf %49 : vector<14x32xf32> to vector<14x32xbf16>
    %c0_35 = arith.constant 0 : index
    %c0_36 = arith.constant 0 : index
    %51 = vector.load %arg18[%c0_35, %c0_36] : memref<200x32xbf16, #tpu.memory_space<vmem>>, vector<14x32xbf16>
    tpu.vector_store %arg18[%c0_35, %c0_36], %50 {strides = array<i32>} : memref<200x32xbf16, #tpu.memory_space<vmem>>, vector<14x32xbf16>,
    %c60 = arith.constant 60 : index
    %c0_37 = arith.constant 0 : index
    %52 = vector.load %arg17[%c60, %c0_37] : memref<864x32xbf16, #tpu.memory_space<vmem>>, vector<28x32xbf16>
    %c61 = arith.constant 61 : index
    %c0_38 = arith.constant 0 : index
    %53 = vector.load %arg17[%c61, %c0_38] : memref<864x32xbf16, #tpu.memory_space<vmem>>, vector<28x32xbf16>
    %54 = arith.maximumf %52, %53 : vector<28x32xbf16>
    %c90 = arith.constant 90 : index
    %c0_39 = arith.constant 0 : index
    %55 = vector.load %arg17[%c90, %c0_39] : memref<864x32xbf16, #tpu.memory_space<vmem>>, vector<28x32xbf16>
    %56 = arith.maximumf %54, %55 : vector<28x32xbf16>
    %c91 = arith.constant 91 : index
    %c0_40 = arith.constant 0 : index
    %57 = vector.load %arg17[%c91, %c0_40] : memref<864x32xbf16, #tpu.memory_space<vmem>>, vector<28x32xbf16>
    %58 = arith.maximumf %56, %57 : vector<28x32xbf16>
    %cst_41 = arith.constant dense<0.000000e+00> : vector<14x32xf32>
    %59 = tpu.matmul %41, %58, %cst_41 {dimension_numbers = #tpu.dot_dimension_numbers<[1], [0], [0], [1], [0, 0, 1, 1], [], []>} : vector<14x28xbf16>, vector<28x32xbf16>, vector<14x32xf32> -> vector<14x32xf32>
    %60 = arith.truncf %59 : vector<14x32xf32> to vector<14x32xbf16>
    %c14 = arith.constant 14 : index
    %c0_42 = arith.constant 0 : index
    %61 = vector.load %arg18[%c14, %c0_42] : memref<200x32xbf16, #tpu.memory_space<vmem>>, vector<14x32xbf16>
    tpu.vector_store %arg18[%c14, %c0_42], %60 {strides = array<i32>} : memref<200x32xbf16, #tpu.memory_space<vmem>>, vector<14x32xbf16>,
    %c120 = arith.constant 120 : index
    %c0_43 = arith.constant 0 : index
    %62 = vector.load %arg17[%c120, %c0_43] : memref<864x32xbf16, #tpu.memory_space<vmem>>, vector<28x32xbf16>
    %c121 = arith.constant 121 : index
    %c0_44 = arith.constant 0 : index
    %63 = vector.load %arg17[%c121, %c0_44] : memref<864x32xbf16, #tpu.memory_space<vmem>>, vector<28x32xbf16>
    %64 = arith.maximumf %62, %63 : vector<28x32xbf16>
    %c150 = arith.constant 150 : index
    %c0_45 = arith.constant 0 : index
    %65 = vector.load %arg17[%c150, %c0_45] : memref<864x32xbf16, #tpu.memory_space<vmem>>, vector<28x32xbf16>
    %66 = arith.maximumf %64, %65 : vector<28x32xbf16>
    %c151 = arith.constant 151 : index
    %c0_46 = arith.constant 0 : index
    %67 = vector.load %arg17[%c151, %c0_46] : memref<864x32xbf16, #tpu.memory_space<vmem>>, vector<28x32xbf16>
    %68 = arith.maximumf %66, %67 : vector<28x32xbf16>
    %cst_47 = arith.constant dense<0.000000e+00> : vector<14x32xf32>
    %69 = tpu.matmul %41, %68, %cst_47 {dimension_numbers = #tpu.dot_dimension_numbers<[1], [0], [0], [1], [0, 0, 1, 1], [], []>} : vector<14x28xbf16>, vector<28x32xbf16>, vector<14x32xf32> -> vector<14x32xf32>
    %70 = arith.truncf %69 : vector<14x32xf32> to vector<14x32xbf16>
    %c28 = arith.constant 28 : index
    %c0_48 = arith.constant 0 : index
    %71 = vector.load %arg18[%c28, %c0_48] : memref<200x32xbf16, #tpu.memory_space<vmem>>, vector<14x32xbf16>
    tpu.vector_store %arg18[%c28, %c0_48], %70 {strides = array<i32>} : memref<200x32xbf16, #tpu.memory_space<vmem>>, vector<14x32xbf16>,
    %c180 = arith.constant 180 : index
    %c0_49 = arith.constant 0 : index
    %72 = vector.load %arg17[%c180, %c0_49] : memref<864x32xbf16, #tpu.memory_space<vmem>>, vector<28x32xbf16>
    %c181 = arith.constant 181 : index
    %c0_50 = arith.constant 0 : index
    %73 = vector.load %arg17[%c181, %c0_50] : memref<864x32xbf16, #tpu.memory_space<vmem>>, vector<28x32xbf16>
    %74 = arith.maximumf %72, %73 : vector<28x32xbf16>
    %c210 = arith.constant 210 : index
    %c0_51 = arith.constant 0 : index
    %75 = vector.load %arg17[%c210, %c0_51] : memref<864x32xbf16, #tpu.memory_space<vmem>>, vector<28x32xbf16>
    %76 = arith.maximumf %74, %75 : vector<28x32xbf16>
    %c211 = arith.constant 211 : index
    %c0_52 = arith.constant 0 : index
    %77 = vector.load %arg17[%c211, %c0_52] : memref<864x32xbf16, #tpu.memory_space<vmem>>, vector<28x32xbf16>
    %78 = arith.maximumf %76, %77 : vector<28x32xbf16>
    %cst_53 = arith.constant dense<0.000000e+00> : vector<14x32xf32>
    %79 = tpu.matmul %41, %78, %cst_53 {dimension_numbers = #tpu.dot_dimension_numbers<[1], [0], [0], [1], [0, 0, 1, 1], [], []>} : vector<14x28xbf16>, vector<28x32xbf16>, vector<14x32xf32> -> vector<14x32xf32>
    %80 = arith.truncf %79 : vector<14x32xf32> to vector<14x32xbf16>
    %c42 = arith.constant 42 : index
    %c0_54 = arith.constant 0 : index
    %81 = vector.load %arg18[%c42, %c0_54] : memref<200x32xbf16, #tpu.memory_space<vmem>>, vector<14x32xbf16>
    tpu.vector_store %arg18[%c42, %c0_54], %80 {strides = array<i32>} : memref<200x32xbf16, #tpu.memory_space<vmem>>, vector<14x32xbf16>,
    %c240 = arith.constant 240 : index
    %c0_55 = arith.constant 0 : index
    %82 = vector.load %arg17[%c240, %c0_55] : memref<864x32xbf16, #tpu.memory_space<vmem>>, vector<28x32xbf16>
    %c241 = arith.constant 241 : index
    %c0_56 = arith.constant 0 : index
    %83 = vector.load %arg17[%c241, %c0_56] : memref<864x32xbf16, #tpu.memory_space<vmem>>, vector<28x32xbf16>
    %84 = arith.maximumf %82, %83 : vector<28x32xbf16>
    %c270 = arith.constant 270 : index
    %c0_57 = arith.constant 0 : index
    %85 = vector.load %arg17[%c270, %c0_57] : memref<864x32xbf16, #tpu.memory_space<vmem>>, vector<28x32xbf16>
    %86 = arith.maximumf %84, %85 : vector<28x32xbf16>
    %c271 = arith.constant 271 : index
    %c0_58 = arith.constant 0 : index
    %87 = vector.load %arg17[%c271, %c0_58] : memref<864x32xbf16, #tpu.memory_space<vmem>>, vector<28x32xbf16>
    %88 = arith.maximumf %86, %87 : vector<28x32xbf16>
    %cst_59 = arith.constant dense<0.000000e+00> : vector<14x32xf32>
    %89 = tpu.matmul %41, %88, %cst_59 {dimension_numbers = #tpu.dot_dimension_numbers<[1], [0], [0], [1], [0, 0, 1, 1], [], []>} : vector<14x28xbf16>, vector<28x32xbf16>, vector<14x32xf32> -> vector<14x32xf32>
    %90 = arith.truncf %89 : vector<14x32xf32> to vector<14x32xbf16>
    %c56 = arith.constant 56 : index
    %c0_60 = arith.constant 0 : index
    %91 = vector.load %arg18[%c56, %c0_60] : memref<200x32xbf16, #tpu.memory_space<vmem>>, vector<14x32xbf16>
    tpu.vector_store %arg18[%c56, %c0_60], %90 {strides = array<i32>} : memref<200x32xbf16, #tpu.memory_space<vmem>>, vector<14x32xbf16>,
    %c300 = arith.constant 300 : index
    %c0_61 = arith.constant 0 : index
    %92 = vector.load %arg17[%c300, %c0_61] : memref<864x32xbf16, #tpu.memory_space<vmem>>, vector<28x32xbf16>
    %c301 = arith.constant 301 : index
    %c0_62 = arith.constant 0 : index
    %93 = vector.load %arg17[%c301, %c0_62] : memref<864x32xbf16, #tpu.memory_space<vmem>>, vector<28x32xbf16>
    %94 = arith.maximumf %92, %93 : vector<28x32xbf16>
    %c330 = arith.constant 330 : index
    %c0_63 = arith.constant 0 : index
    %95 = vector.load %arg17[%c330, %c0_63] : memref<864x32xbf16, #tpu.memory_space<vmem>>, vector<28x32xbf16>
    %96 = arith.maximumf %94, %95 : vector<28x32xbf16>
    %c331 = arith.constant 331 : index
    %c0_64 = arith.constant 0 : index
    %97 = vector.load %arg17[%c331, %c0_64] : memref<864x32xbf16, #tpu.memory_space<vmem>>, vector<28x32xbf16>
    %98 = arith.maximumf %96, %97 : vector<28x32xbf16>
    %cst_65 = arith.constant dense<0.000000e+00> : vector<14x32xf32>
    %99 = tpu.matmul %41, %98, %cst_65 {dimension_numbers = #tpu.dot_dimension_numbers<[1], [0], [0], [1], [0, 0, 1, 1], [], []>} : vector<14x28xbf16>, vector<28x32xbf16>, vector<14x32xf32> -> vector<14x32xf32>
    %100 = arith.truncf %99 : vector<14x32xf32> to vector<14x32xbf16>
    %c70 = arith.constant 70 : index
    %c0_66 = arith.constant 0 : index
    %101 = vector.load %arg18[%c70, %c0_66] : memref<200x32xbf16, #tpu.memory_space<vmem>>, vector<14x32xbf16>
    tpu.vector_store %arg18[%c70, %c0_66], %100 {strides = array<i32>} : memref<200x32xbf16, #tpu.memory_space<vmem>>, vector<14x32xbf16>,
    %c360 = arith.constant 360 : index
    %c0_67 = arith.constant 0 : index
    %102 = vector.load %arg17[%c360, %c0_67] : memref<864x32xbf16, #tpu.memory_space<vmem>>, vector<28x32xbf16>
    %c361 = arith.constant 361 : index
    %c0_68 = arith.constant 0 : index
    %103 = vector.load %arg17[%c361, %c0_68] : memref<864x32xbf16, #tpu.memory_space<vmem>>, vector<28x32xbf16>
    %104 = arith.maximumf %102, %103 : vector<28x32xbf16>
    %c390 = arith.constant 390 : index
    %c0_69 = arith.constant 0 : index
    %105 = vector.load %arg17[%c390, %c0_69] : memref<864x32xbf16, #tpu.memory_space<vmem>>, vector<28x32xbf16>
    %106 = arith.maximumf %104, %105 : vector<28x32xbf16>
    %c391 = arith.constant 391 : index
    %c0_70 = arith.constant 0 : index
    %107 = vector.load %arg17[%c391, %c0_70] : memref<864x32xbf16, #tpu.memory_space<vmem>>, vector<28x32xbf16>
    %108 = arith.maximumf %106, %107 : vector<28x32xbf16>
    %cst_71 = arith.constant dense<0.000000e+00> : vector<14x32xf32>
    %109 = tpu.matmul %41, %108, %cst_71 {dimension_numbers = #tpu.dot_dimension_numbers<[1], [0], [0], [1], [0, 0, 1, 1], [], []>} : vector<14x28xbf16>, vector<28x32xbf16>, vector<14x32xf32> -> vector<14x32xf32>
    %110 = arith.truncf %109 : vector<14x32xf32> to vector<14x32xbf16>
    %c84 = arith.constant 84 : index
    %c0_72 = arith.constant 0 : index
    %111 = vector.load %arg18[%c84, %c0_72] : memref<200x32xbf16, #tpu.memory_space<vmem>>, vector<14x32xbf16>
    tpu.vector_store %arg18[%c84, %c0_72], %110 {strides = array<i32>} : memref<200x32xbf16, #tpu.memory_space<vmem>>, vector<14x32xbf16>,
    %c420 = arith.constant 420 : index
    %c0_73 = arith.constant 0 : index
    %112 = vector.load %arg17[%c420, %c0_73] : memref<864x32xbf16, #tpu.memory_space<vmem>>, vector<28x32xbf16>
    %c421 = arith.constant 421 : index
    %c0_74 = arith.constant 0 : index
    %113 = vector.load %arg17[%c421, %c0_74] : memref<864x32xbf16, #tpu.memory_space<vmem>>, vector<28x32xbf16>
    %114 = arith.maximumf %112, %113 : vector<28x32xbf16>
    %c450 = arith.constant 450 : index
    %c0_75 = arith.constant 0 : index
    %115 = vector.load %arg17[%c450, %c0_75] : memref<864x32xbf16, #tpu.memory_space<vmem>>, vector<28x32xbf16>
    %116 = arith.maximumf %114, %115 : vector<28x32xbf16>
    %c451 = arith.constant 451 : index
    %c0_76 = arith.constant 0 : index
    %117 = vector.load %arg17[%c451, %c0_76] : memref<864x32xbf16, #tpu.memory_space<vmem>>, vector<28x32xbf16>
    %118 = arith.maximumf %116, %117 : vector<28x32xbf16>
    %cst_77 = arith.constant dense<0.000000e+00> : vector<14x32xf32>
    %119 = tpu.matmul %41, %118, %cst_77 {dimension_numbers = #tpu.dot_dimension_numbers<[1], [0], [0], [1], [0, 0, 1, 1], [], []>} : vector<14x28xbf16>, vector<28x32xbf16>, vector<14x32xf32> -> vector<14x32xf32>
    %120 = arith.truncf %119 : vector<14x32xf32> to vector<14x32xbf16>
    %c98 = arith.constant 98 : index
    %c0_78 = arith.constant 0 : index
    %121 = vector.load %arg18[%c98, %c0_78] : memref<200x32xbf16, #tpu.memory_space<vmem>>, vector<14x32xbf16>
    tpu.vector_store %arg18[%c98, %c0_78], %120 {strides = array<i32>} : memref<200x32xbf16, #tpu.memory_space<vmem>>, vector<14x32xbf16>,
    %c480 = arith.constant 480 : index
    %c0_79 = arith.constant 0 : index
    %122 = vector.load %arg17[%c480, %c0_79] : memref<864x32xbf16, #tpu.memory_space<vmem>>, vector<28x32xbf16>
    %c481 = arith.constant 481 : index
    %c0_80 = arith.constant 0 : index
    %123 = vector.load %arg17[%c481, %c0_80] : memref<864x32xbf16, #tpu.memory_space<vmem>>, vector<28x32xbf16>
    %124 = arith.maximumf %122, %123 : vector<28x32xbf16>
    %c510 = arith.constant 510 : index
    %c0_81 = arith.constant 0 : index
    %125 = vector.load %arg17[%c510, %c0_81] : memref<864x32xbf16, #tpu.memory_space<vmem>>, vector<28x32xbf16>
    %126 = arith.maximumf %124, %125 : vector<28x32xbf16>
    %c511 = arith.constant 511 : index
    %c0_82 = arith.constant 0 : index
    %127 = vector.load %arg17[%c511, %c0_82] : memref<864x32xbf16, #tpu.memory_space<vmem>>, vector<28x32xbf16>
    %128 = arith.maximumf %126, %127 : vector<28x32xbf16>
    %cst_83 = arith.constant dense<0.000000e+00> : vector<14x32xf32>
    %129 = tpu.matmul %41, %128, %cst_83 {dimension_numbers = #tpu.dot_dimension_numbers<[1], [0], [0], [1], [0, 0, 1, 1], [], []>} : vector<14x28xbf16>, vector<28x32xbf16>, vector<14x32xf32> -> vector<14x32xf32>
    %130 = arith.truncf %129 : vector<14x32xf32> to vector<14x32xbf16>
    %c112 = arith.constant 112 : index
    %c0_84 = arith.constant 0 : index
    %131 = vector.load %arg18[%c112, %c0_84] : memref<200x32xbf16, #tpu.memory_space<vmem>>, vector<14x32xbf16>
    tpu.vector_store %arg18[%c112, %c0_84], %130 {strides = array<i32>} : memref<200x32xbf16, #tpu.memory_space<vmem>>, vector<14x32xbf16>,
    %c540 = arith.constant 540 : index
    %c0_85 = arith.constant 0 : index
    %132 = vector.load %arg17[%c540, %c0_85] : memref<864x32xbf16, #tpu.memory_space<vmem>>, vector<28x32xbf16>
    %c541 = arith.constant 541 : index
    %c0_86 = arith.constant 0 : index
    %133 = vector.load %arg17[%c541, %c0_86] : memref<864x32xbf16, #tpu.memory_space<vmem>>, vector<28x32xbf16>
    %134 = arith.maximumf %132, %133 : vector<28x32xbf16>
    %c570 = arith.constant 570 : index
    %c0_87 = arith.constant 0 : index
    %135 = vector.load %arg17[%c570, %c0_87] : memref<864x32xbf16, #tpu.memory_space<vmem>>, vector<28x32xbf16>
    %136 = arith.maximumf %134, %135 : vector<28x32xbf16>
    %c571 = arith.constant 571 : index
    %c0_88 = arith.constant 0 : index
    %137 = vector.load %arg17[%c571, %c0_88] : memref<864x32xbf16, #tpu.memory_space<vmem>>, vector<28x32xbf16>
    %138 = arith.maximumf %136, %137 : vector<28x32xbf16>
    %cst_89 = arith.constant dense<0.000000e+00> : vector<14x32xf32>
    %139 = tpu.matmul %41, %138, %cst_89 {dimension_numbers = #tpu.dot_dimension_numbers<[1], [0], [0], [1], [0, 0, 1, 1], [], []>} : vector<14x28xbf16>, vector<28x32xbf16>, vector<14x32xf32> -> vector<14x32xf32>
    %140 = arith.truncf %139 : vector<14x32xf32> to vector<14x32xbf16>
    %c126 = arith.constant 126 : index
    %c0_90 = arith.constant 0 : index
    %141 = vector.load %arg18[%c126, %c0_90] : memref<200x32xbf16, #tpu.memory_space<vmem>>, vector<14x32xbf16>
    tpu.vector_store %arg18[%c126, %c0_90], %140 {strides = array<i32>} : memref<200x32xbf16, #tpu.memory_space<vmem>>, vector<14x32xbf16>,
    %c600 = arith.constant 600 : index
    %c0_91 = arith.constant 0 : index
    %142 = vector.load %arg17[%c600, %c0_91] : memref<864x32xbf16, #tpu.memory_space<vmem>>, vector<28x32xbf16>
    %c601 = arith.constant 601 : index
    %c0_92 = arith.constant 0 : index
    %143 = vector.load %arg17[%c601, %c0_92] : memref<864x32xbf16, #tpu.memory_space<vmem>>, vector<28x32xbf16>
    %144 = arith.maximumf %142, %143 : vector<28x32xbf16>
    %c630 = arith.constant 630 : index
    %c0_93 = arith.constant 0 : index
    %145 = vector.load %arg17[%c630, %c0_93] : memref<864x32xbf16, #tpu.memory_space<vmem>>, vector<28x32xbf16>
    %146 = arith.maximumf %144, %145 : vector<28x32xbf16>
    %c631 = arith.constant 631 : index
    %c0_94 = arith.constant 0 : index
    %147 = vector.load %arg17[%c631, %c0_94] : memref<864x32xbf16, #tpu.memory_space<vmem>>, vector<28x32xbf16>
    %148 = arith.maximumf %146, %147 : vector<28x32xbf16>
    %cst_95 = arith.constant dense<0.000000e+00> : vector<14x32xf32>
    %149 = tpu.matmul %41, %148, %cst_95 {dimension_numbers = #tpu.dot_dimension_numbers<[1], [0], [0], [1], [0, 0, 1, 1], [], []>} : vector<14x28xbf16>, vector<28x32xbf16>, vector<14x32xf32> -> vector<14x32xf32>
    %150 = arith.truncf %149 : vector<14x32xf32> to vector<14x32xbf16>
    %c140 = arith.constant 140 : index
    %c0_96 = arith.constant 0 : index
    %151 = vector.load %arg18[%c140, %c0_96] : memref<200x32xbf16, #tpu.memory_space<vmem>>, vector<14x32xbf16>
    tpu.vector_store %arg18[%c140, %c0_96], %150 {strides = array<i32>} : memref<200x32xbf16, #tpu.memory_space<vmem>>, vector<14x32xbf16>,
    %c660 = arith.constant 660 : index
    %c0_97 = arith.constant 0 : index
    %152 = vector.load %arg17[%c660, %c0_97] : memref<864x32xbf16, #tpu.memory_space<vmem>>, vector<28x32xbf16>
    %c661 = arith.constant 661 : index
    %c0_98 = arith.constant 0 : index
    %153 = vector.load %arg17[%c661, %c0_98] : memref<864x32xbf16, #tpu.memory_space<vmem>>, vector<28x32xbf16>
    %154 = arith.maximumf %152, %153 : vector<28x32xbf16>
    %c690 = arith.constant 690 : index
    %c0_99 = arith.constant 0 : index
    %155 = vector.load %arg17[%c690, %c0_99] : memref<864x32xbf16, #tpu.memory_space<vmem>>, vector<28x32xbf16>
    %156 = arith.maximumf %154, %155 : vector<28x32xbf16>
    %c691 = arith.constant 691 : index
    %c0_100 = arith.constant 0 : index
    %157 = vector.load %arg17[%c691, %c0_100] : memref<864x32xbf16, #tpu.memory_space<vmem>>, vector<28x32xbf16>
    %158 = arith.maximumf %156, %157 : vector<28x32xbf16>
    %cst_101 = arith.constant dense<0.000000e+00> : vector<14x32xf32>
    %159 = tpu.matmul %41, %158, %cst_101 {dimension_numbers = #tpu.dot_dimension_numbers<[1], [0], [0], [1], [0, 0, 1, 1], [], []>} : vector<14x28xbf16>, vector<28x32xbf16>, vector<14x32xf32> -> vector<14x32xf32>
    %160 = arith.truncf %159 : vector<14x32xf32> to vector<14x32xbf16>
    %c154 = arith.constant 154 : index
    %c0_102 = arith.constant 0 : index
    %161 = vector.load %arg18[%c154, %c0_102] : memref<200x32xbf16, #tpu.memory_space<vmem>>, vector<14x32xbf16>
    tpu.vector_store %arg18[%c154, %c0_102], %160 {strides = array<i32>} : memref<200x32xbf16, #tpu.memory_space<vmem>>, vector<14x32xbf16>,
    %c720 = arith.constant 720 : index
    %c0_103 = arith.constant 0 : index
    %162 = vector.load %arg17[%c720, %c0_103] : memref<864x32xbf16, #tpu.memory_space<vmem>>, vector<28x32xbf16>
    %c721 = arith.constant 721 : index
    %c0_104 = arith.constant 0 : index
    %163 = vector.load %arg17[%c721, %c0_104] : memref<864x32xbf16, #tpu.memory_space<vmem>>, vector<28x32xbf16>
    %164 = arith.maximumf %162, %163 : vector<28x32xbf16>
    %c750 = arith.constant 750 : index
    %c0_105 = arith.constant 0 : index
    %165 = vector.load %arg17[%c750, %c0_105] : memref<864x32xbf16, #tpu.memory_space<vmem>>, vector<28x32xbf16>
    %166 = arith.maximumf %164, %165 : vector<28x32xbf16>
    %c751 = arith.constant 751 : index
    %c0_106 = arith.constant 0 : index
    %167 = vector.load %arg17[%c751, %c0_106] : memref<864x32xbf16, #tpu.memory_space<vmem>>, vector<28x32xbf16>
    %168 = arith.maximumf %166, %167 : vector<28x32xbf16>
    %cst_107 = arith.constant dense<0.000000e+00> : vector<14x32xf32>
    %169 = tpu.matmul %41, %168, %cst_107 {dimension_numbers = #tpu.dot_dimension_numbers<[1], [0], [0], [1], [0, 0, 1, 1], [], []>} : vector<14x28xbf16>, vector<28x32xbf16>, vector<14x32xf32> -> vector<14x32xf32>
    %170 = arith.truncf %169 : vector<14x32xf32> to vector<14x32xbf16>
    %c168 = arith.constant 168 : index
    %c0_108 = arith.constant 0 : index
    %171 = vector.load %arg18[%c168, %c0_108] : memref<200x32xbf16, #tpu.memory_space<vmem>>, vector<14x32xbf16>
    tpu.vector_store %arg18[%c168, %c0_108], %170 {strides = array<i32>} : memref<200x32xbf16, #tpu.memory_space<vmem>>, vector<14x32xbf16>,
    %c780 = arith.constant 780 : index
    %c0_109 = arith.constant 0 : index
    %172 = vector.load %arg17[%c780, %c0_109] : memref<864x32xbf16, #tpu.memory_space<vmem>>, vector<28x32xbf16>
    %c781 = arith.constant 781 : index
    %c0_110 = arith.constant 0 : index
    %173 = vector.load %arg17[%c781, %c0_110] : memref<864x32xbf16, #tpu.memory_space<vmem>>, vector<28x32xbf16>
    %174 = arith.maximumf %172, %173 : vector<28x32xbf16>
    %c810 = arith.constant 810 : index
    %c0_111 = arith.constant 0 : index
    %175 = vector.load %arg17[%c810, %c0_111] : memref<864x32xbf16, #tpu.memory_space<vmem>>, vector<28x32xbf16>
    %176 = arith.maximumf %174, %175 : vector<28x32xbf16>
    %c811 = arith.constant 811 : index
    %c0_112 = arith.constant 0 : index
    %177 = vector.load %arg17[%c811, %c0_112] : memref<864x32xbf16, #tpu.memory_space<vmem>>, vector<28x32xbf16>
    %178 = arith.maximumf %176, %177 : vector<28x32xbf16>
    %cst_113 = arith.constant dense<0.000000e+00> : vector<14x32xf32>
    %179 = tpu.matmul %41, %178, %cst_113 {dimension_numbers = #tpu.dot_dimension_numbers<[1], [0], [0], [1], [0, 0, 1, 1], [], []>} : vector<14x28xbf16>, vector<28x32xbf16>, vector<14x32xf32> -> vector<14x32xf32>
    %180 = arith.truncf %179 : vector<14x32xf32> to vector<14x32xbf16>
    %c182 = arith.constant 182 : index
    %c0_114 = arith.constant 0 : index
    %181 = vector.load %arg18[%c182, %c0_114] : memref<200x32xbf16, #tpu.memory_space<vmem>>, vector<14x32xbf16>
    tpu.vector_store %arg18[%c182, %c0_114], %180 {strides = array<i32>} : memref<200x32xbf16, #tpu.memory_space<vmem>>, vector<14x32xbf16>,
    %cst_115 = arith.constant 0.000000e+00 : f32
    %182 = vector.broadcast %cst_115 : f32 to vector<168x64xf32>
    %c0_116 = arith.constant 0 : index
    %c0_117 = arith.constant 0 : index
    %183 = vector.load %arg18[%c0_116, %c0_117] : memref<200x32xbf16, #tpu.memory_space<vmem>>, vector<168x32xbf16>
    %c0_118 = arith.constant 0 : index
    %c0_119 = arith.constant 0 : index
    %c0_120 = arith.constant 0 : index
    %184 = vector.load %arg4[%c0_118, %c0_119, %c0_120] : memref<9x32x64xbf16, #tpu.memory_space<vmem>>, vector<1x32x64xbf16>
    %185 = vector.shape_cast %184 : vector<1x32x64xbf16> to vector<32x64xbf16>
    %cst_121 = arith.constant dense<0.000000e+00> : vector<168x64xf32>
    %186 = tpu.matmul %183, %185, %cst_121 {dimension_numbers = #tpu.dot_dimension_numbers<[1], [0], [0], [1], [0, 0, 1, 1], [], []>} : vector<168x32xbf16>, vector<32x64xbf16>, vector<168x64xf32> -> vector<168x64xf32>
    %187 = arith.addf %182, %186 : vector<168x64xf32>
    %c1_122 = arith.constant 1 : index
    %c0_123 = arith.constant 0 : index
    %188 = vector.load %arg18[%c1_122, %c0_123] : memref<200x32xbf16, #tpu.memory_space<vmem>>, vector<168x32xbf16>
    %c1_124 = arith.constant 1 : index
    %c0_125 = arith.constant 0 : index
    %c0_126 = arith.constant 0 : index
    %189 = vector.load %arg4[%c1_124, %c0_125, %c0_126] : memref<9x32x64xbf16, #tpu.memory_space<vmem>>, vector<1x32x64xbf16>
    %190 = vector.shape_cast %189 : vector<1x32x64xbf16> to vector<32x64xbf16>
    %cst_127 = arith.constant dense<0.000000e+00> : vector<168x64xf32>
    %191 = tpu.matmul %188, %190, %cst_127 {dimension_numbers = #tpu.dot_dimension_numbers<[1], [0], [0], [1], [0, 0, 1, 1], [], []>} : vector<168x32xbf16>, vector<32x64xbf16>, vector<168x64xf32> -> vector<168x64xf32>
    %192 = arith.addf %187, %191 : vector<168x64xf32>
    %c2 = arith.constant 2 : index
    %c0_128 = arith.constant 0 : index
    %193 = vector.load %arg18[%c2, %c0_128] : memref<200x32xbf16, #tpu.memory_space<vmem>>, vector<168x32xbf16>
    %c2_129 = arith.constant 2 : index
    %c0_130 = arith.constant 0 : index
    %c0_131 = arith.constant 0 : index
    %194 = vector.load %arg4[%c2_129, %c0_130, %c0_131] : memref<9x32x64xbf16, #tpu.memory_space<vmem>>, vector<1x32x64xbf16>
    %195 = vector.shape_cast %194 : vector<1x32x64xbf16> to vector<32x64xbf16>
    %cst_132 = arith.constant dense<0.000000e+00> : vector<168x64xf32>
    %196 = tpu.matmul %193, %195, %cst_132 {dimension_numbers = #tpu.dot_dimension_numbers<[1], [0], [0], [1], [0, 0, 1, 1], [], []>} : vector<168x32xbf16>, vector<32x64xbf16>, vector<168x64xf32> -> vector<168x64xf32>
    %197 = arith.addf %192, %196 : vector<168x64xf32>
    %c14_133 = arith.constant 14 : index
    %c0_134 = arith.constant 0 : index
    %198 = vector.load %arg18[%c14_133, %c0_134] : memref<200x32xbf16, #tpu.memory_space<vmem>>, vector<168x32xbf16>
    %c3 = arith.constant 3 : index
    %c0_135 = arith.constant 0 : index
    %c0_136 = arith.constant 0 : index
    %199 = vector.load %arg4[%c3, %c0_135, %c0_136] : memref<9x32x64xbf16, #tpu.memory_space<vmem>>, vector<1x32x64xbf16>
    %200 = vector.shape_cast %199 : vector<1x32x64xbf16> to vector<32x64xbf16>
    %cst_137 = arith.constant dense<0.000000e+00> : vector<168x64xf32>
    %201 = tpu.matmul %198, %200, %cst_137 {dimension_numbers = #tpu.dot_dimension_numbers<[1], [0], [0], [1], [0, 0, 1, 1], [], []>} : vector<168x32xbf16>, vector<32x64xbf16>, vector<168x64xf32> -> vector<168x64xf32>
    %202 = arith.addf %197, %201 : vector<168x64xf32>
    %c15 = arith.constant 15 : index
    %c0_138 = arith.constant 0 : index
    %203 = vector.load %arg18[%c15, %c0_138] : memref<200x32xbf16, #tpu.memory_space<vmem>>, vector<168x32xbf16>
    %c4 = arith.constant 4 : index
    %c0_139 = arith.constant 0 : index
    %c0_140 = arith.constant 0 : index
    %204 = vector.load %arg4[%c4, %c0_139, %c0_140] : memref<9x32x64xbf16, #tpu.memory_space<vmem>>, vector<1x32x64xbf16>
    %205 = vector.shape_cast %204 : vector<1x32x64xbf16> to vector<32x64xbf16>
    %cst_141 = arith.constant dense<0.000000e+00> : vector<168x64xf32>
    %206 = tpu.matmul %203, %205, %cst_141 {dimension_numbers = #tpu.dot_dimension_numbers<[1], [0], [0], [1], [0, 0, 1, 1], [], []>} : vector<168x32xbf16>, vector<32x64xbf16>, vector<168x64xf32> -> vector<168x64xf32>
    %207 = arith.addf %202, %206 : vector<168x64xf32>
    %c16 = arith.constant 16 : index
    %c0_142 = arith.constant 0 : index
    %208 = vector.load %arg18[%c16, %c0_142] : memref<200x32xbf16, #tpu.memory_space<vmem>>, vector<168x32xbf16>
    %c5 = arith.constant 5 : index
    %c0_143 = arith.constant 0 : index
    %c0_144 = arith.constant 0 : index
    %209 = vector.load %arg4[%c5, %c0_143, %c0_144] : memref<9x32x64xbf16, #tpu.memory_space<vmem>>, vector<1x32x64xbf16>
    %210 = vector.shape_cast %209 : vector<1x32x64xbf16> to vector<32x64xbf16>
    %cst_145 = arith.constant dense<0.000000e+00> : vector<168x64xf32>
    %211 = tpu.matmul %208, %210, %cst_145 {dimension_numbers = #tpu.dot_dimension_numbers<[1], [0], [0], [1], [0, 0, 1, 1], [], []>} : vector<168x32xbf16>, vector<32x64xbf16>, vector<168x64xf32> -> vector<168x64xf32>
    %212 = arith.addf %207, %211 : vector<168x64xf32>
    %c28_146 = arith.constant 28 : index
    %c0_147 = arith.constant 0 : index
    %213 = vector.load %arg18[%c28_146, %c0_147] : memref<200x32xbf16, #tpu.memory_space<vmem>>, vector<168x32xbf16>
    %c6 = arith.constant 6 : index
    %c0_148 = arith.constant 0 : index
    %c0_149 = arith.constant 0 : index
    %214 = vector.load %arg4[%c6, %c0_148, %c0_149] : memref<9x32x64xbf16, #tpu.memory_space<vmem>>, vector<1x32x64xbf16>
    %215 = vector.shape_cast %214 : vector<1x32x64xbf16> to vector<32x64xbf16>
    %cst_150 = arith.constant dense<0.000000e+00> : vector<168x64xf32>
    %216 = tpu.matmul %213, %215, %cst_150 {dimension_numbers = #tpu.dot_dimension_numbers<[1], [0], [0], [1], [0, 0, 1, 1], [], []>} : vector<168x32xbf16>, vector<32x64xbf16>, vector<168x64xf32> -> vector<168x64xf32>
    %217 = arith.addf %212, %216 : vector<168x64xf32>
    %c29 = arith.constant 29 : index
    %c0_151 = arith.constant 0 : index
    %218 = vector.load %arg18[%c29, %c0_151] : memref<200x32xbf16, #tpu.memory_space<vmem>>, vector<168x32xbf16>
    %c7 = arith.constant 7 : index
    %c0_152 = arith.constant 0 : index
    %c0_153 = arith.constant 0 : index
    %219 = vector.load %arg4[%c7, %c0_152, %c0_153] : memref<9x32x64xbf16, #tpu.memory_space<vmem>>, vector<1x32x64xbf16>
    %220 = vector.shape_cast %219 : vector<1x32x64xbf16> to vector<32x64xbf16>
    %cst_154 = arith.constant dense<0.000000e+00> : vector<168x64xf32>
    %221 = tpu.matmul %218, %220, %cst_154 {dimension_numbers = #tpu.dot_dimension_numbers<[1], [0], [0], [1], [0, 0, 1, 1], [], []>} : vector<168x32xbf16>, vector<32x64xbf16>, vector<168x64xf32> -> vector<168x64xf32>
    %222 = arith.addf %217, %221 : vector<168x64xf32>
    %c30_155 = arith.constant 30 : index
    %c0_156 = arith.constant 0 : index
    %223 = vector.load %arg18[%c30_155, %c0_156] : memref<200x32xbf16, #tpu.memory_space<vmem>>, vector<168x32xbf16>
    %c8 = arith.constant 8 : index
    %c0_157 = arith.constant 0 : index
    %c0_158 = arith.constant 0 : index
    %224 = vector.load %arg4[%c8, %c0_157, %c0_158] : memref<9x32x64xbf16, #tpu.memory_space<vmem>>, vector<1x32x64xbf16>
    %225 = vector.shape_cast %224 : vector<1x32x64xbf16> to vector<32x64xbf16>
    %cst_159 = arith.constant dense<0.000000e+00> : vector<168x64xf32>
    %226 = tpu.matmul %223, %225, %cst_159 {dimension_numbers = #tpu.dot_dimension_numbers<[1], [0], [0], [1], [0, 0, 1, 1], [], []>} : vector<168x32xbf16>, vector<32x64xbf16>, vector<168x64xf32> -> vector<168x64xf32>
    %227 = arith.addf %222, %226 : vector<168x64xf32>
    %c0_160 = arith.constant 0 : index
    %c0_161 = arith.constant 0 : index
    %228 = vector.load %arg5[%c0_160, %c0_161] : memref<1x64xf32, #tpu.memory_space<vmem>>, vector<1x64xf32>
    %229 = vector.broadcast %228 : vector<1x64xf32> to vector<168x64xf32>
    %230 = arith.addf %227, %229 : vector<168x64xf32>
    %cst_162 = arith.constant 0.000000e+00 : f32
    %231 = vector.broadcast %cst_162 : f32 to vector<168x64xf32>
    %232 = arith.maximumf %230, %231 : vector<168x64xf32>
    %233 = arith.truncf %232 : vector<168x64xf32> to vector<168x64xbf16>
    %c0_163 = arith.constant 0 : index
    %c0_164 = arith.constant 0 : index
    %234 = vector.load %arg19[%c0_163, %c0_164] : memref<168x64xbf16, #tpu.memory_space<vmem>>, vector<168x64xbf16>
    tpu.vector_store %arg19[%c0_163, %c0_164], %233 {strides = array<i32>} : memref<168x64xbf16, #tpu.memory_space<vmem>>, vector<168x64xbf16>,
    %235 = tpu.iota {dimensions = array<i32: 0>} : vector<6x12xi32>
    %236 = tpu.iota {dimensions = array<i32: 1>} : vector<6x12xi32>
    %c2_i32_165 = arith.constant 2 : i32
    %237 = vector.broadcast %c2_i32_165 : i32 to vector<6x12xi32>
    %238 = arith.muli %237, %235 : vector<6x12xi32>
    %239 = arith.cmpi eq, %236, %238 : vector<6x12xi32>
    %cst_166 = arith.constant 1.000000e+00 : f32
    %cst_167 = arith.constant 0.000000e+00 : f32
    %240 = vector.broadcast %cst_166 : f32 to vector<6x12xf32>
    %241 = vector.broadcast %cst_167 : f32 to vector<6x12xf32>
    %242 = arith.select %239, %240, %241 : vector<6x12xi1>, vector<6x12xf32>
    %243 = arith.truncf %242 : vector<6x12xf32> to vector<6x12xbf16>
    %c0_168 = arith.constant 0 : index
    %c0_169 = arith.constant 0 : index
    %244 = vector.load %arg19[%c0_168, %c0_169] : memref<168x64xbf16, #tpu.memory_space<vmem>>, vector<12x64xbf16>
    %c1_170 = arith.constant 1 : index
    %c0_171 = arith.constant 0 : index
    %245 = vector.load %arg19[%c1_170, %c0_171] : memref<168x64xbf16, #tpu.memory_space<vmem>>, vector<12x64xbf16>
    %246 = arith.maximumf %244, %245 : vector<12x64xbf16>
    %c14_172 = arith.constant 14 : index
    %c0_173 = arith.constant 0 : index
    %247 = vector.load %arg19[%c14_172, %c0_173] : memref<168x64xbf16, #tpu.memory_space<vmem>>, vector<12x64xbf16>
    %248 = arith.maximumf %246, %247 : vector<12x64xbf16>
    %c15_174 = arith.constant 15 : index
    %c0_175 = arith.constant 0 : index
    %249 = vector.load %arg19[%c15_174, %c0_175] : memref<168x64xbf16, #tpu.memory_space<vmem>>, vector<12x64xbf16>
    %250 = arith.maximumf %248, %249 : vector<12x64xbf16>
    %cst_176 = arith.constant dense<0.000000e+00> : vector<6x64xf32>
    %251 = tpu.matmul %243, %250, %cst_176 {dimension_numbers = #tpu.dot_dimension_numbers<[1], [0], [0], [1], [0, 0, 1, 1], [], []>} : vector<6x12xbf16>, vector<12x64xbf16>, vector<6x64xf32> -> vector<6x64xf32>
    %252 = arith.truncf %251 : vector<6x64xf32> to vector<6x64xbf16>
    %c0_177 = arith.constant 0 : index
    %c0_178 = arith.constant 0 : index
    %253 = vector.load %arg20[%c0_177, %c0_178] : memref<40x64xbf16, #tpu.memory_space<vmem>>, vector<6x64xbf16>
    tpu.vector_store %arg20[%c0_177, %c0_178], %252 {strides = array<i32>} : memref<40x64xbf16, #tpu.memory_space<vmem>>, vector<6x64xbf16>,
    %c28_179 = arith.constant 28 : index
    %c0_180 = arith.constant 0 : index
    %254 = vector.load %arg19[%c28_179, %c0_180] : memref<168x64xbf16, #tpu.memory_space<vmem>>, vector<12x64xbf16>
    %c29_181 = arith.constant 29 : index
    %c0_182 = arith.constant 0 : index
    %255 = vector.load %arg19[%c29_181, %c0_182] : memref<168x64xbf16, #tpu.memory_space<vmem>>, vector<12x64xbf16>
    %256 = arith.maximumf %254, %255 : vector<12x64xbf16>
    %c42_183 = arith.constant 42 : index
    %c0_184 = arith.constant 0 : index
    %257 = vector.load %arg19[%c42_183, %c0_184] : memref<168x64xbf16, #tpu.memory_space<vmem>>, vector<12x64xbf16>
    %258 = arith.maximumf %256, %257 : vector<12x64xbf16>
    %c43 = arith.constant 43 : index
    %c0_185 = arith.constant 0 : index
    %259 = vector.load %arg19[%c43, %c0_185] : memref<168x64xbf16, #tpu.memory_space<vmem>>, vector<12x64xbf16>
    %260 = arith.maximumf %258, %259 : vector<12x64xbf16>
    %cst_186 = arith.constant dense<0.000000e+00> : vector<6x64xf32>
    %261 = tpu.matmul %243, %260, %cst_186 {dimension_numbers = #tpu.dot_dimension_numbers<[1], [0], [0], [1], [0, 0, 1, 1], [], []>} : vector<6x12xbf16>, vector<12x64xbf16>, vector<6x64xf32> -> vector<6x64xf32>
    %262 = arith.truncf %261 : vector<6x64xf32> to vector<6x64xbf16>
    %c6_187 = arith.constant 6 : index
    %c0_188 = arith.constant 0 : index
    %263 = vector.load %arg20[%c6_187, %c0_188] : memref<40x64xbf16, #tpu.memory_space<vmem>>, vector<6x64xbf16>
    tpu.vector_store %arg20[%c6_187, %c0_188], %262 {strides = array<i32>} : memref<40x64xbf16, #tpu.memory_space<vmem>>, vector<6x64xbf16>,
    %c56_189 = arith.constant 56 : index
    %c0_190 = arith.constant 0 : index
    %264 = vector.load %arg19[%c56_189, %c0_190] : memref<168x64xbf16, #tpu.memory_space<vmem>>, vector<12x64xbf16>
    %c57 = arith.constant 57 : index
    %c0_191 = arith.constant 0 : index
    %265 = vector.load %arg19[%c57, %c0_191] : memref<168x64xbf16, #tpu.memory_space<vmem>>, vector<12x64xbf16>
    %266 = arith.maximumf %264, %265 : vector<12x64xbf16>
    %c70_192 = arith.constant 70 : index
    %c0_193 = arith.constant 0 : index
    %267 = vector.load %arg19[%c70_192, %c0_193] : memref<168x64xbf16, #tpu.memory_space<vmem>>, vector<12x64xbf16>
    %268 = arith.maximumf %266, %267 : vector<12x64xbf16>
    %c71 = arith.constant 71 : index
    %c0_194 = arith.constant 0 : index
    %269 = vector.load %arg19[%c71, %c0_194] : memref<168x64xbf16, #tpu.memory_space<vmem>>, vector<12x64xbf16>
    %270 = arith.maximumf %268, %269 : vector<12x64xbf16>
    %cst_195 = arith.constant dense<0.000000e+00> : vector<6x64xf32>
    %271 = tpu.matmul %243, %270, %cst_195 {dimension_numbers = #tpu.dot_dimension_numbers<[1], [0], [0], [1], [0, 0, 1, 1], [], []>} : vector<6x12xbf16>, vector<12x64xbf16>, vector<6x64xf32> -> vector<6x64xf32>
    %272 = arith.truncf %271 : vector<6x64xf32> to vector<6x64xbf16>
    %c12 = arith.constant 12 : index
    %c0_196 = arith.constant 0 : index
    %273 = vector.load %arg20[%c12, %c0_196] : memref<40x64xbf16, #tpu.memory_space<vmem>>, vector<6x64xbf16>
    tpu.vector_store %arg20[%c12, %c0_196], %272 {strides = array<i32>} : memref<40x64xbf16, #tpu.memory_space<vmem>>, vector<6x64xbf16>,
    %c84_197 = arith.constant 84 : index
    %c0_198 = arith.constant 0 : index
    %274 = vector.load %arg19[%c84_197, %c0_198] : memref<168x64xbf16, #tpu.memory_space<vmem>>, vector<12x64xbf16>
    %c85 = arith.constant 85 : index
    %c0_199 = arith.constant 0 : index
    %275 = vector.load %arg19[%c85, %c0_199] : memref<168x64xbf16, #tpu.memory_space<vmem>>, vector<12x64xbf16>
    %276 = arith.maximumf %274, %275 : vector<12x64xbf16>
    %c98_200 = arith.constant 98 : index
    %c0_201 = arith.constant 0 : index
    %277 = vector.load %arg19[%c98_200, %c0_201] : memref<168x64xbf16, #tpu.memory_space<vmem>>, vector<12x64xbf16>
    %278 = arith.maximumf %276, %277 : vector<12x64xbf16>
    %c99 = arith.constant 99 : index
    %c0_202 = arith.constant 0 : index
    %279 = vector.load %arg19[%c99, %c0_202] : memref<168x64xbf16, #tpu.memory_space<vmem>>, vector<12x64xbf16>
    %280 = arith.maximumf %278, %279 : vector<12x64xbf16>
    %cst_203 = arith.constant dense<0.000000e+00> : vector<6x64xf32>
    %281 = tpu.matmul %243, %280, %cst_203 {dimension_numbers = #tpu.dot_dimension_numbers<[1], [0], [0], [1], [0, 0, 1, 1], [], []>} : vector<6x12xbf16>, vector<12x64xbf16>, vector<6x64xf32> -> vector<6x64xf32>
    %282 = arith.truncf %281 : vector<6x64xf32> to vector<6x64xbf16>
    %c18 = arith.constant 18 : index
    %c0_204 = arith.constant 0 : index
    %283 = vector.load %arg20[%c18, %c0_204] : memref<40x64xbf16, #tpu.memory_space<vmem>>, vector<6x64xbf16>
    tpu.vector_store %arg20[%c18, %c0_204], %282 {strides = array<i32>} : memref<40x64xbf16, #tpu.memory_space<vmem>>, vector<6x64xbf16>,
    %c112_205 = arith.constant 112 : index
    %c0_206 = arith.constant 0 : index
    %284 = vector.load %arg19[%c112_205, %c0_206] : memref<168x64xbf16, #tpu.memory_space<vmem>>, vector<12x64xbf16>
    %c113 = arith.constant 113 : index
    %c0_207 = arith.constant 0 : index
    %285 = vector.load %arg19[%c113, %c0_207] : memref<168x64xbf16, #tpu.memory_space<vmem>>, vector<12x64xbf16>
    %286 = arith.maximumf %284, %285 : vector<12x64xbf16>
    %c126_208 = arith.constant 126 : index
    %c0_209 = arith.constant 0 : index
    %287 = vector.load %arg19[%c126_208, %c0_209] : memref<168x64xbf16, #tpu.memory_space<vmem>>, vector<12x64xbf16>
    %288 = arith.maximumf %286, %287 : vector<12x64xbf16>
    %c127 = arith.constant 127 : index
    %c0_210 = arith.constant 0 : index
    %289 = vector.load %arg19[%c127, %c0_210] : memref<168x64xbf16, #tpu.memory_space<vmem>>, vector<12x64xbf16>
    %290 = arith.maximumf %288, %289 : vector<12x64xbf16>
    %cst_211 = arith.constant dense<0.000000e+00> : vector<6x64xf32>
    %291 = tpu.matmul %243, %290, %cst_211 {dimension_numbers = #tpu.dot_dimension_numbers<[1], [0], [0], [1], [0, 0, 1, 1], [], []>} : vector<6x12xbf16>, vector<12x64xbf16>, vector<6x64xf32> -> vector<6x64xf32>
    %292 = arith.truncf %291 : vector<6x64xf32> to vector<6x64xbf16>
    %c24 = arith.constant 24 : index
    %c0_212 = arith.constant 0 : index
    %293 = vector.load %arg20[%c24, %c0_212] : memref<40x64xbf16, #tpu.memory_space<vmem>>, vector<6x64xbf16>
    tpu.vector_store %arg20[%c24, %c0_212], %292 {strides = array<i32>} : memref<40x64xbf16, #tpu.memory_space<vmem>>, vector<6x64xbf16>,
    %c140_213 = arith.constant 140 : index
    %c0_214 = arith.constant 0 : index
    %294 = vector.load %arg19[%c140_213, %c0_214] : memref<168x64xbf16, #tpu.memory_space<vmem>>, vector<12x64xbf16>
    %c141 = arith.constant 141 : index
    %c0_215 = arith.constant 0 : index
    %295 = vector.load %arg19[%c141, %c0_215] : memref<168x64xbf16, #tpu.memory_space<vmem>>, vector<12x64xbf16>
    %296 = arith.maximumf %294, %295 : vector<12x64xbf16>
    %c154_216 = arith.constant 154 : index
    %c0_217 = arith.constant 0 : index
    %297 = vector.load %arg19[%c154_216, %c0_217] : memref<168x64xbf16, #tpu.memory_space<vmem>>, vector<12x64xbf16>
    %298 = arith.maximumf %296, %297 : vector<12x64xbf16>
    %c155 = arith.constant 155 : index
    %c0_218 = arith.constant 0 : index
    %299 = vector.load %arg19[%c155, %c0_218] : memref<168x64xbf16, #tpu.memory_space<vmem>>, vector<12x64xbf16>
    %300 = arith.maximumf %298, %299 : vector<12x64xbf16>
    %cst_219 = arith.constant dense<0.000000e+00> : vector<6x64xf32>
    %301 = tpu.matmul %243, %300, %cst_219 {dimension_numbers = #tpu.dot_dimension_numbers<[1], [0], [0], [1], [0, 0, 1, 1], [], []>} : vector<6x12xbf16>, vector<12x64xbf16>, vector<6x64xf32> -> vector<6x64xf32>
    %302 = arith.truncf %301 : vector<6x64xf32> to vector<6x64xbf16>
    %c30_220 = arith.constant 30 : index
    %c0_221 = arith.constant 0 : index
    %303 = vector.load %arg20[%c30_220, %c0_221] : memref<40x64xbf16, #tpu.memory_space<vmem>>, vector<6x64xbf16>
    tpu.vector_store %arg20[%c30_220, %c0_221], %302 {strides = array<i32>} : memref<40x64xbf16, #tpu.memory_space<vmem>>, vector<6x64xbf16>,
    %cst_222 = arith.constant 0.000000e+00 : f32
    %304 = vector.broadcast %cst_222 : f32 to vector<24x128xf32>
    %c0_223 = arith.constant 0 : index
    %c0_224 = arith.constant 0 : index
    %305 = vector.load %arg20[%c0_223, %c0_224] : memref<40x64xbf16, #tpu.memory_space<vmem>>, vector<24x64xbf16>
    %c0_225 = arith.constant 0 : index
    %c0_226 = arith.constant 0 : index
    %c0_227 = arith.constant 0 : index
    %306 = vector.load %arg6[%c0_225, %c0_226, %c0_227] : memref<9x64x128xbf16, #tpu.memory_space<vmem>>, vector<1x64x128xbf16>
    %307 = vector.shape_cast %306 : vector<1x64x128xbf16> to vector<64x128xbf16>
    %cst_228 = arith.constant dense<0.000000e+00> : vector<24x128xf32>
    %308 = tpu.matmul %305, %307, %cst_228 {dimension_numbers = #tpu.dot_dimension_numbers<[1], [0], [0], [1], [0, 0, 1, 1], [], []>} : vector<24x64xbf16>, vector<64x128xbf16>, vector<24x128xf32> -> vector<24x128xf32>
    %309 = arith.addf %304, %308 : vector<24x128xf32>
    %c1_229 = arith.constant 1 : index
    %c0_230 = arith.constant 0 : index
    %310 = vector.load %arg20[%c1_229, %c0_230] : memref<40x64xbf16, #tpu.memory_space<vmem>>, vector<24x64xbf16>
    %c1_231 = arith.constant 1 : index
    %c0_232 = arith.constant 0 : index
    %c0_233 = arith.constant 0 : index
    %311 = vector.load %arg6[%c1_231, %c0_232, %c0_233] : memref<9x64x128xbf16, #tpu.memory_space<vmem>>, vector<1x64x128xbf16>
    %312 = vector.shape_cast %311 : vector<1x64x128xbf16> to vector<64x128xbf16>
    %cst_234 = arith.constant dense<0.000000e+00> : vector<24x128xf32>
    %313 = tpu.matmul %310, %312, %cst_234 {dimension_numbers = #tpu.dot_dimension_numbers<[1], [0], [0], [1], [0, 0, 1, 1], [], []>} : vector<24x64xbf16>, vector<64x128xbf16>, vector<24x128xf32> -> vector<24x128xf32>
    %314 = arith.addf %309, %313 : vector<24x128xf32>
    %c2_235 = arith.constant 2 : index
    %c0_236 = arith.constant 0 : index
    %315 = vector.load %arg20[%c2_235, %c0_236] : memref<40x64xbf16, #tpu.memory_space<vmem>>, vector<24x64xbf16>
    %c2_237 = arith.constant 2 : index
    %c0_238 = arith.constant 0 : index
    %c0_239 = arith.constant 0 : index
    %316 = vector.load %arg6[%c2_237, %c0_238, %c0_239] : memref<9x64x128xbf16, #tpu.memory_space<vmem>>, vector<1x64x128xbf16>
    %317 = vector.shape_cast %316 : vector<1x64x128xbf16> to vector<64x128xbf16>
    %cst_240 = arith.constant dense<0.000000e+00> : vector<24x128xf32>
    %318 = tpu.matmul %315, %317, %cst_240 {dimension_numbers = #tpu.dot_dimension_numbers<[1], [0], [0], [1], [0, 0, 1, 1], [], []>} : vector<24x64xbf16>, vector<64x128xbf16>, vector<24x128xf32> -> vector<24x128xf32>
    %319 = arith.addf %314, %318 : vector<24x128xf32>
    %c6_241 = arith.constant 6 : index
    %c0_242 = arith.constant 0 : index
    %320 = vector.load %arg20[%c6_241, %c0_242] : memref<40x64xbf16, #tpu.memory_space<vmem>>, vector<24x64xbf16>
    %c3_243 = arith.constant 3 : index
    %c0_244 = arith.constant 0 : index
    %c0_245 = arith.constant 0 : index
    %321 = vector.load %arg6[%c3_243, %c0_244, %c0_245] : memref<9x64x128xbf16, #tpu.memory_space<vmem>>, vector<1x64x128xbf16>
    %322 = vector.shape_cast %321 : vector<1x64x128xbf16> to vector<64x128xbf16>
    %cst_246 = arith.constant dense<0.000000e+00> : vector<24x128xf32>
    %323 = tpu.matmul %320, %322, %cst_246 {dimension_numbers = #tpu.dot_dimension_numbers<[1], [0], [0], [1], [0, 0, 1, 1], [], []>} : vector<24x64xbf16>, vector<64x128xbf16>, vector<24x128xf32> -> vector<24x128xf32>
    %324 = arith.addf %319, %323 : vector<24x128xf32>
    %c7_247 = arith.constant 7 : index
    %c0_248 = arith.constant 0 : index
    %325 = vector.load %arg20[%c7_247, %c0_248] : memref<40x64xbf16, #tpu.memory_space<vmem>>, vector<24x64xbf16>
    %c4_249 = arith.constant 4 : index
    %c0_250 = arith.constant 0 : index
    %c0_251 = arith.constant 0 : index
    %326 = vector.load %arg6[%c4_249, %c0_250, %c0_251] : memref<9x64x128xbf16, #tpu.memory_space<vmem>>, vector<1x64x128xbf16>
    %327 = vector.shape_cast %326 : vector<1x64x128xbf16> to vector<64x128xbf16>
    %cst_252 = arith.constant dense<0.000000e+00> : vector<24x128xf32>
    %328 = tpu.matmul %325, %327, %cst_252 {dimension_numbers = #tpu.dot_dimension_numbers<[1], [0], [0], [1], [0, 0, 1, 1], [], []>} : vector<24x64xbf16>, vector<64x128xbf16>, vector<24x128xf32> -> vector<24x128xf32>
    %329 = arith.addf %324, %328 : vector<24x128xf32>
    %c8_253 = arith.constant 8 : index
    %c0_254 = arith.constant 0 : index
    %330 = vector.load %arg20[%c8_253, %c0_254] : memref<40x64xbf16, #tpu.memory_space<vmem>>, vector<24x64xbf16>
    %c5_255 = arith.constant 5 : index
    %c0_256 = arith.constant 0 : index
    %c0_257 = arith.constant 0 : index
    %331 = vector.load %arg6[%c5_255, %c0_256, %c0_257] : memref<9x64x128xbf16, #tpu.memory_space<vmem>>, vector<1x64x128xbf16>
    %332 = vector.shape_cast %331 : vector<1x64x128xbf16> to vector<64x128xbf16>
    %cst_258 = arith.constant dense<0.000000e+00> : vector<24x128xf32>
    %333 = tpu.matmul %330, %332, %cst_258 {dimension_numbers = #tpu.dot_dimension_numbers<[1], [0], [0], [1], [0, 0, 1, 1], [], []>} : vector<24x64xbf16>, vector<64x128xbf16>, vector<24x128xf32> -> vector<24x128xf32>
    %334 = arith.addf %329, %333 : vector<24x128xf32>
    %c12_259 = arith.constant 12 : index
    %c0_260 = arith.constant 0 : index
    %335 = vector.load %arg20[%c12_259, %c0_260] : memref<40x64xbf16, #tpu.memory_space<vmem>>, vector<24x64xbf16>
    %c6_261 = arith.constant 6 : index
    %c0_262 = arith.constant 0 : index
    %c0_263 = arith.constant 0 : index
    %336 = vector.load %arg6[%c6_261, %c0_262, %c0_263] : memref<9x64x128xbf16, #tpu.memory_space<vmem>>, vector<1x64x128xbf16>
    %337 = vector.shape_cast %336 : vector<1x64x128xbf16> to vector<64x128xbf16>
    %cst_264 = arith.constant dense<0.000000e+00> : vector<24x128xf32>
    %338 = tpu.matmul %335, %337, %cst_264 {dimension_numbers = #tpu.dot_dimension_numbers<[1], [0], [0], [1], [0, 0, 1, 1], [], []>} : vector<24x64xbf16>, vector<64x128xbf16>, vector<24x128xf32> -> vector<24x128xf32>
    %339 = arith.addf %334, %338 : vector<24x128xf32>
    %c13 = arith.constant 13 : index
    %c0_265 = arith.constant 0 : index
    %340 = vector.load %arg20[%c13, %c0_265] : memref<40x64xbf16, #tpu.memory_space<vmem>>, vector<24x64xbf16>
    %c7_266 = arith.constant 7 : index
    %c0_267 = arith.constant 0 : index
    %c0_268 = arith.constant 0 : index
    %341 = vector.load %arg6[%c7_266, %c0_267, %c0_268] : memref<9x64x128xbf16, #tpu.memory_space<vmem>>, vector<1x64x128xbf16>
    %342 = vector.shape_cast %341 : vector<1x64x128xbf16> to vector<64x128xbf16>
    %cst_269 = arith.constant dense<0.000000e+00> : vector<24x128xf32>
    %343 = tpu.matmul %340, %342, %cst_269 {dimension_numbers = #tpu.dot_dimension_numbers<[1], [0], [0], [1], [0, 0, 1, 1], [], []>} : vector<24x64xbf16>, vector<64x128xbf16>, vector<24x128xf32> -> vector<24x128xf32>
    %344 = arith.addf %339, %343 : vector<24x128xf32>
    %c14_270 = arith.constant 14 : index
    %c0_271 = arith.constant 0 : index
    %345 = vector.load %arg20[%c14_270, %c0_271] : memref<40x64xbf16, #tpu.memory_space<vmem>>, vector<24x64xbf16>
    %c8_272 = arith.constant 8 : index
    %c0_273 = arith.constant 0 : index
    %c0_274 = arith.constant 0 : index
    %346 = vector.load %arg6[%c8_272, %c0_273, %c0_274] : memref<9x64x128xbf16, #tpu.memory_space<vmem>>, vector<1x64x128xbf16>
    %347 = vector.shape_cast %346 : vector<1x64x128xbf16> to vector<64x128xbf16>
    %cst_275 = arith.constant dense<0.000000e+00> : vector<24x128xf32>
    %348 = tpu.matmul %345, %347, %cst_275 {dimension_numbers = #tpu.dot_dimension_numbers<[1], [0], [0], [1], [0, 0, 1, 1], [], []>} : vector<24x64xbf16>, vector<64x128xbf16>, vector<24x128xf32> -> vector<24x128xf32>
    %349 = arith.addf %344, %348 : vector<24x128xf32>
    %c0_276 = arith.constant 0 : index
    %c0_277 = arith.constant 0 : index
    %350 = vector.load %arg7[%c0_276, %c0_277] : memref<1x128xf32, #tpu.memory_space<vmem>>, vector<1x128xf32>
    %351 = vector.broadcast %350 : vector<1x128xf32> to vector<24x128xf32>
    %352 = arith.addf %349, %351 : vector<24x128xf32>
    %cst_278 = arith.constant 0.000000e+00 : f32
    %353 = vector.broadcast %cst_278 : f32 to vector<24x128xf32>
    %354 = arith.maximumf %352, %353 : vector<24x128xf32>
    %355 = arith.truncf %354 : vector<24x128xf32> to vector<24x128xbf16>
    %c0_279 = arith.constant 0 : index
    %c0_280 = arith.constant 0 : index
    %356 = vector.load %arg21[%c0_279, %c0_280] : memref<24x128xbf16, #tpu.memory_space<vmem>>, vector<24x128xbf16>
    tpu.vector_store %arg21[%c0_279, %c0_280], %355 {strides = array<i32>} : memref<24x128xbf16, #tpu.memory_space<vmem>>, vector<24x128xbf16>,
    %cst_281 = arith.constant 0.000000e+00 : f32
    %357 = vector.broadcast %cst_281 : f32 to vector<8x256xf32>
    %c0_282 = arith.constant 0 : index
    %c0_283 = arith.constant 0 : index
    %358 = vector.load %arg21[%c0_282, %c0_283] : memref<24x128xbf16, #tpu.memory_space<vmem>>, vector<8x128xbf16>
    %c0_284 = arith.constant 0 : index
    %c0_285 = arith.constant 0 : index
    %c0_286 = arith.constant 0 : index
    %359 = vector.load %arg8[%c0_284, %c0_285, %c0_286] : memref<9x128x256xbf16, #tpu.memory_space<vmem>>, vector<1x128x256xbf16>
    %360 = vector.shape_cast %359 : vector<1x128x256xbf16> to vector<128x256xbf16>
    %cst_287 = arith.constant dense<0.000000e+00> : vector<8x256xf32>
    %361 = tpu.matmul %358, %360, %cst_287 {dimension_numbers = #tpu.dot_dimension_numbers<[1], [0], [0], [1], [0, 0, 1, 1], [], []>} : vector<8x128xbf16>, vector<128x256xbf16>, vector<8x256xf32> -> vector<8x256xf32>
    %362 = arith.addf %357, %361 : vector<8x256xf32>
    %c1_288 = arith.constant 1 : index
    %c0_289 = arith.constant 0 : index
    %363 = vector.load %arg21[%c1_288, %c0_289] : memref<24x128xbf16, #tpu.memory_space<vmem>>, vector<8x128xbf16>
    %c1_290 = arith.constant 1 : index
    %c0_291 = arith.constant 0 : index
    %c0_292 = arith.constant 0 : index
    %364 = vector.load %arg8[%c1_290, %c0_291, %c0_292] : memref<9x128x256xbf16, #tpu.memory_space<vmem>>, vector<1x128x256xbf16>
    %365 = vector.shape_cast %364 : vector<1x128x256xbf16> to vector<128x256xbf16>
    %cst_293 = arith.constant dense<0.000000e+00> : vector<8x256xf32>
    %366 = tpu.matmul %363, %365, %cst_293 {dimension_numbers = #tpu.dot_dimension_numbers<[1], [0], [0], [1], [0, 0, 1, 1], [], []>} : vector<8x128xbf16>, vector<128x256xbf16>, vector<8x256xf32> -> vector<8x256xf32>
    %367 = arith.addf %362, %366 : vector<8x256xf32>
    %c2_294 = arith.constant 2 : index
    %c0_295 = arith.constant 0 : index
    %368 = vector.load %arg21[%c2_294, %c0_295] : memref<24x128xbf16, #tpu.memory_space<vmem>>, vector<8x128xbf16>
    %c2_296 = arith.constant 2 : index
    %c0_297 = arith.constant 0 : index
    %c0_298 = arith.constant 0 : index
    %369 = vector.load %arg8[%c2_296, %c0_297, %c0_298] : memref<9x128x256xbf16, #tpu.memory_space<vmem>>, vector<1x128x256xbf16>
    %370 = vector.shape_cast %369 : vector<1x128x256xbf16> to vector<128x256xbf16>
    %cst_299 = arith.constant dense<0.000000e+00> : vector<8x256xf32>
    %371 = tpu.matmul %368, %370, %cst_299 {dimension_numbers = #tpu.dot_dimension_numbers<[1], [0], [0], [1], [0, 0, 1, 1], [], []>} : vector<8x128xbf16>, vector<128x256xbf16>, vector<8x256xf32> -> vector<8x256xf32>
    %372 = arith.addf %367, %371 : vector<8x256xf32>
    %c6_300 = arith.constant 6 : index
    %c0_301 = arith.constant 0 : index
    %373 = vector.load %arg21[%c6_300, %c0_301] : memref<24x128xbf16, #tpu.memory_space<vmem>>, vector<8x128xbf16>
    %c3_302 = arith.constant 3 : index
    %c0_303 = arith.constant 0 : index
    %c0_304 = arith.constant 0 : index
    %374 = vector.load %arg8[%c3_302, %c0_303, %c0_304] : memref<9x128x256xbf16, #tpu.memory_space<vmem>>, vector<1x128x256xbf16>
    %375 = vector.shape_cast %374 : vector<1x128x256xbf16> to vector<128x256xbf16>
    %cst_305 = arith.constant dense<0.000000e+00> : vector<8x256xf32>
    %376 = tpu.matmul %373, %375, %cst_305 {dimension_numbers = #tpu.dot_dimension_numbers<[1], [0], [0], [1], [0, 0, 1, 1], [], []>} : vector<8x128xbf16>, vector<128x256xbf16>, vector<8x256xf32> -> vector<8x256xf32>
    %377 = arith.addf %372, %376 : vector<8x256xf32>
    %c7_306 = arith.constant 7 : index
    %c0_307 = arith.constant 0 : index
    %378 = vector.load %arg21[%c7_306, %c0_307] : memref<24x128xbf16, #tpu.memory_space<vmem>>, vector<8x128xbf16>
    %c4_308 = arith.constant 4 : index
    %c0_309 = arith.constant 0 : index
    %c0_310 = arith.constant 0 : index
    %379 = vector.load %arg8[%c4_308, %c0_309, %c0_310] : memref<9x128x256xbf16, #tpu.memory_space<vmem>>, vector<1x128x256xbf16>
    %380 = vector.shape_cast %379 : vector<1x128x256xbf16> to vector<128x256xbf16>
    %cst_311 = arith.constant dense<0.000000e+00> : vector<8x256xf32>
    %381 = tpu.matmul %378, %380, %cst_311 {dimension_numbers = #tpu.dot_dimension_numbers<[1], [0], [0], [1], [0, 0, 1, 1], [], []>} : vector<8x128xbf16>, vector<128x256xbf16>, vector<8x256xf32> -> vector<8x256xf32>
    %382 = arith.addf %377, %381 : vector<8x256xf32>
    %c8_312 = arith.constant 8 : index
    %c0_313 = arith.constant 0 : index
    %383 = vector.load %arg21[%c8_312, %c0_313] : memref<24x128xbf16, #tpu.memory_space<vmem>>, vector<8x128xbf16>
    %c5_314 = arith.constant 5 : index
    %c0_315 = arith.constant 0 : index
    %c0_316 = arith.constant 0 : index
    %384 = vector.load %arg8[%c5_314, %c0_315, %c0_316] : memref<9x128x256xbf16, #tpu.memory_space<vmem>>, vector<1x128x256xbf16>
    %385 = vector.shape_cast %384 : vector<1x128x256xbf16> to vector<128x256xbf16>
    %cst_317 = arith.constant dense<0.000000e+00> : vector<8x256xf32>
    %386 = tpu.matmul %383, %385, %cst_317 {dimension_numbers = #tpu.dot_dimension_numbers<[1], [0], [0], [1], [0, 0, 1, 1], [], []>} : vector<8x128xbf16>, vector<128x256xbf16>, vector<8x256xf32> -> vector<8x256xf32>
    %387 = arith.addf %382, %386 : vector<8x256xf32>
    %c12_318 = arith.constant 12 : index
    %c0_319 = arith.constant 0 : index
    %388 = vector.load %arg21[%c12_318, %c0_319] : memref<24x128xbf16, #tpu.memory_space<vmem>>, vector<8x128xbf16>
    %c6_320 = arith.constant 6 : index
    %c0_321 = arith.constant 0 : index
    %c0_322 = arith.constant 0 : index
    %389 = vector.load %arg8[%c6_320, %c0_321, %c0_322] : memref<9x128x256xbf16, #tpu.memory_space<vmem>>, vector<1x128x256xbf16>
    %390 = vector.shape_cast %389 : vector<1x128x256xbf16> to vector<128x256xbf16>
    %cst_323 = arith.constant dense<0.000000e+00> : vector<8x256xf32>
    %391 = tpu.matmul %388, %390, %cst_323 {dimension_numbers = #tpu.dot_dimension_numbers<[1], [0], [0], [1], [0, 0, 1, 1], [], []>} : vector<8x128xbf16>, vector<128x256xbf16>, vector<8x256xf32> -> vector<8x256xf32>
    %392 = arith.addf %387, %391 : vector<8x256xf32>
    %c13_324 = arith.constant 13 : index
    %c0_325 = arith.constant 0 : index
    %393 = vector.load %arg21[%c13_324, %c0_325] : memref<24x128xbf16, #tpu.memory_space<vmem>>, vector<8x128xbf16>
    %c7_326 = arith.constant 7 : index
    %c0_327 = arith.constant 0 : index
    %c0_328 = arith.constant 0 : index
    %394 = vector.load %arg8[%c7_326, %c0_327, %c0_328] : memref<9x128x256xbf16, #tpu.memory_space<vmem>>, vector<1x128x256xbf16>
    %395 = vector.shape_cast %394 : vector<1x128x256xbf16> to vector<128x256xbf16>
    %cst_329 = arith.constant dense<0.000000e+00> : vector<8x256xf32>
    %396 = tpu.matmul %393, %395, %cst_329 {dimension_numbers = #tpu.dot_dimension_numbers<[1], [0], [0], [1], [0, 0, 1, 1], [], []>} : vector<8x128xbf16>, vector<128x256xbf16>, vector<8x256xf32> -> vector<8x256xf32>
    %397 = arith.addf %392, %396 : vector<8x256xf32>
    %c14_330 = arith.constant 14 : index
    %c0_331 = arith.constant 0 : index
    %398 = vector.load %arg21[%c14_330, %c0_331] : memref<24x128xbf16, #tpu.memory_space<vmem>>, vector<8x128xbf16>
    %c8_332 = arith.constant 8 : index
    %c0_333 = arith.constant 0 : index
    %c0_334 = arith.constant 0 : index
    %399 = vector.load %arg8[%c8_332, %c0_333, %c0_334] : memref<9x128x256xbf16, #tpu.memory_space<vmem>>, vector<1x128x256xbf16>
    %400 = vector.shape_cast %399 : vector<1x128x256xbf16> to vector<128x256xbf16>
    %cst_335 = arith.constant dense<0.000000e+00> : vector<8x256xf32>
    %401 = tpu.matmul %398, %400, %cst_335 {dimension_numbers = #tpu.dot_dimension_numbers<[1], [0], [0], [1], [0, 0, 1, 1], [], []>} : vector<8x128xbf16>, vector<128x256xbf16>, vector<8x256xf32> -> vector<8x256xf32>
    %402 = arith.addf %397, %401 : vector<8x256xf32>
    %c0_336 = arith.constant 0 : index
    %c0_337 = arith.constant 0 : index
    %403 = vector.load %arg9[%c0_336, %c0_337] : memref<1x256xf32, #tpu.memory_space<vmem>>, vector<1x256xf32>
    %404 = vector.broadcast %403 : vector<1x256xf32> to vector<8x256xf32>
    %405 = arith.addf %402, %404 : vector<8x256xf32>
    %cst_338 = arith.constant 0.000000e+00 : f32
    %406 = vector.broadcast %cst_338 : f32 to vector<8x256xf32>
    %407 = arith.maximumf %405, %406 : vector<8x256xf32>
    %408 = arith.truncf %407 : vector<8x256xf32> to vector<8x256xbf16>
    %c0_339 = arith.constant 0 : index
    %c0_340 = arith.constant 0 : index
    %409 = vector.load %arg22[%c0_339, %c0_340] : memref<8x256xbf16, #tpu.memory_space<vmem>>, vector<8x256xbf16>
    tpu.vector_store %arg22[%c0_339, %c0_340], %408 {strides = array<i32>} : memref<8x256xbf16, #tpu.memory_space<vmem>>, vector<8x256xbf16>,
    %c0_341 = arith.constant 0 : index
    %c0_342 = arith.constant 0 : index
    %410 = vector.load %arg11[%c0_341, %c0_342] : memref<1x128xf32, #tpu.memory_space<vmem>>, vector<1x128xf32>
    %c0_343 = arith.constant 0 : index
    %c0_344 = arith.constant 0 : index
    %411 = vector.load %arg22[%c0_343, %c0_344] : memref<8x256xbf16, #tpu.memory_space<vmem>>, vector<1x256xbf16>
    %c0_345 = arith.constant 0 : index
    %c0_346 = arith.constant 0 : index
    %c0_347 = arith.constant 0 : index
    %412 = vector.load %arg10[%c0_345, %c0_346, %c0_347] : memref<4x256x128xbf16, #tpu.memory_space<vmem>>, vector<1x256x128xbf16>
    %413 = vector.shape_cast %412 : vector<1x256x128xbf16> to vector<256x128xbf16>
    %cst_348 = arith.constant dense<0.000000e+00> : vector<1x128xf32>
    %414 = tpu.matmul %411, %413, %cst_348 {dimension_numbers = #tpu.dot_dimension_numbers<[1], [0], [0], [1], [0, 0, 1, 1], [], []>} : vector<1x256xbf16>, vector<256x128xbf16>, vector<1x128xf32> -> vector<1x128xf32>
    %415 = arith.addf %410, %414 : vector<1x128xf32>
    %c1_349 = arith.constant 1 : index
    %c0_350 = arith.constant 0 : index
    %416 = vector.load %arg22[%c1_349, %c0_350] : memref<8x256xbf16, #tpu.memory_space<vmem>>, vector<1x256xbf16>
    %c1_351 = arith.constant 1 : index
    %c0_352 = arith.constant 0 : index
    %c0_353 = arith.constant 0 : index
    %417 = vector.load %arg10[%c1_351, %c0_352, %c0_353] : memref<4x256x128xbf16, #tpu.memory_space<vmem>>, vector<1x256x128xbf16>
    %418 = vector.shape_cast %417 : vector<1x256x128xbf16> to vector<256x128xbf16>
    %cst_354 = arith.constant dense<0.000000e+00> : vector<1x128xf32>
    %419 = tpu.matmul %416, %418, %cst_354 {dimension_numbers = #tpu.dot_dimension_numbers<[1], [0], [0], [1], [0, 0, 1, 1], [], []>} : vector<1x256xbf16>, vector<256x128xbf16>, vector<1x128xf32> -> vector<1x128xf32>
    %420 = arith.addf %415, %419 : vector<1x128xf32>
    %c6_355 = arith.constant 6 : index
    %c0_356 = arith.constant 0 : index
    %421 = vector.load %arg22[%c6_355, %c0_356] : memref<8x256xbf16, #tpu.memory_space<vmem>>, vector<1x256xbf16>
    %c2_357 = arith.constant 2 : index
    %c0_358 = arith.constant 0 : index
    %c0_359 = arith.constant 0 : index
    %422 = vector.load %arg10[%c2_357, %c0_358, %c0_359] : memref<4x256x128xbf16, #tpu.memory_space<vmem>>, vector<1x256x128xbf16>
    %423 = vector.shape_cast %422 : vector<1x256x128xbf16> to vector<256x128xbf16>
    %cst_360 = arith.constant dense<0.000000e+00> : vector<1x128xf32>
    %424 = tpu.matmul %421, %423, %cst_360 {dimension_numbers = #tpu.dot_dimension_numbers<[1], [0], [0], [1], [0, 0, 1, 1], [], []>} : vector<1x256xbf16>, vector<256x128xbf16>, vector<1x128xf32> -> vector<1x128xf32>
    %425 = arith.addf %420, %424 : vector<1x128xf32>
    %c7_361 = arith.constant 7 : index
    %c0_362 = arith.constant 0 : index
    %426 = vector.load %arg22[%c7_361, %c0_362] : memref<8x256xbf16, #tpu.memory_space<vmem>>, vector<1x256xbf16>
    %c3_363 = arith.constant 3 : index
    %c0_364 = arith.constant 0 : index
    %c0_365 = arith.constant 0 : index
    %427 = vector.load %arg10[%c3_363, %c0_364, %c0_365] : memref<4x256x128xbf16, #tpu.memory_space<vmem>>, vector<1x256x128xbf16>
    %428 = vector.shape_cast %427 : vector<1x256x128xbf16> to vector<256x128xbf16>
    %cst_366 = arith.constant dense<0.000000e+00> : vector<1x128xf32>
    %429 = tpu.matmul %426, %428, %cst_366 {dimension_numbers = #tpu.dot_dimension_numbers<[1], [0], [0], [1], [0, 0, 1, 1], [], []>} : vector<1x256xbf16>, vector<256x128xbf16>, vector<1x128xf32> -> vector<1x128xf32>
    %430 = arith.addf %425, %429 : vector<1x128xf32>
    %cst_367 = arith.constant 0.000000e+00 : f32
    %431 = vector.broadcast %cst_367 : f32 to vector<1x128xf32>
    %432 = arith.maximumf %430, %431 : vector<1x128xf32>
    %433 = arith.truncf %432 : vector<1x128xf32> to vector<1x128xbf16>
    %c0_368 = arith.constant 0 : index
    %c0_369 = arith.constant 0 : index
    %434 = vector.load %arg12[%c0_368, %c0_369] : memref<128x64xbf16, #tpu.memory_space<vmem>>, vector<128x64xbf16>
    %cst_370 = arith.constant dense<0.000000e+00> : vector<1x64xf32>
    %435 = tpu.matmul %433, %434, %cst_370 {dimension_numbers = #tpu.dot_dimension_numbers<[1], [0], [0], [1], [0, 0, 1, 1], [], []>} : vector<1x128xbf16>, vector<128x64xbf16>, vector<1x64xf32> -> vector<1x64xf32>
    %c0_371 = arith.constant 0 : index
    %c0_372 = arith.constant 0 : index
    %436 = vector.load %arg13[%c0_371, %c0_372] : memref<1x64xf32, #tpu.memory_space<vmem>>, vector<1x64xf32>
    %437 = arith.addf %435, %436 : vector<1x64xf32>
    %cst_373 = arith.constant 0.000000e+00 : f32
    %438 = vector.broadcast %cst_373 : f32 to vector<1x64xf32>
    %439 = arith.maximumf %437, %438 : vector<1x64xf32>
    %440 = arith.truncf %439 : vector<1x64xf32> to vector<1x64xbf16>
    %c0_374 = arith.constant 0 : index
    %c0_375 = arith.constant 0 : index
    %441 = vector.load %arg14[%c0_374, %c0_375] : memref<64x10xbf16, #tpu.memory_space<vmem>>, vector<64x10xbf16>
    %cst_376 = arith.constant dense<0.000000e+00> : vector<1x10xf32>
    %442 = tpu.matmul %440, %441, %cst_376 {dimension_numbers = #tpu.dot_dimension_numbers<[1], [0], [0], [1], [0, 0, 1, 1], [], []>} : vector<1x64xbf16>, vector<64x10xbf16>, vector<1x10xf32> -> vector<1x10xf32>
    %c0_377 = arith.constant 0 : index
    %c0_378 = arith.constant 0 : index
    %443 = vector.load %arg15[%c0_377, %c0_378] : memref<1x10xf32, #tpu.memory_space<vmem>>, vector<1x10xf32>
    %444 = arith.addf %442, %443 : vector<1x10xf32>
    %cst_379 = arith.constant dense<0xFF800000> : vector<1xf32>
    %445 = vector.multi_reduction <maximumf>, %444, %cst_379 [1] : vector<1x10xf32> to vector<1xf32>
    %446 = vector.shape_cast %445 : vector<1xf32> to vector<1x1xf32>
    %447 = vector.broadcast %446 : vector<1x1xf32> to vector<1x10xf32>
    %448 = arith.subf %444, %447 : vector<1x10xf32>
    %449 = math.exp %448 : vector<1x10xf32>
    %cst_380 = arith.constant dense<0.000000e+00> : vector<1xf32>
    %450 = vector.multi_reduction <add>, %449, %cst_380 [1] : vector<1x10xf32> to vector<1xf32>
    %451 = vector.shape_cast %450 : vector<1xf32> to vector<1x1xf32>
    %452 = math.log %451 : vector<1x1xf32>
    %453 = vector.broadcast %452 : vector<1x1xf32> to vector<1x10xf32>
    %454 = arith.subf %448, %453 : vector<1x10xf32>
    %c0_381 = arith.constant 0 : index
    %c0_382 = arith.constant 0 : index
    %c0_383 = arith.constant 0 : index
    %455 = vector.load %arg16[%c0_381, %c0_382, %c0_383] : memref<1x1x10xf32, #tpu.memory_space<vmem>>, vector<1x1x10xf32>
    %456 = vector.shape_cast %455 : vector<1x1x10xf32> to vector<1x10xf32>
    %457 = vector.shape_cast %454 : vector<1x10xf32> to vector<1x1x10xf32>
    tpu.vector_store %arg16[%c0_381, %c0_382, %c0_383], %457 {strides = array<i32>} : memref<1x1x10xf32, #tpu.memory_space<vmem>>, vector<1x1x10xf32>,
    return
  }
  func.func @transform_0(%arg0: i32) -> (i32, i32, i32) {
    %c0_i32 = arith.constant 0 : i32
    %c0_i32_0 = arith.constant 0 : i32
    %c0_i32_1 = arith.constant 0 : i32
    return %arg0, %c0_i32, %c0_i32_0 : i32, i32, i32
  }
  func.func @transform_1(%arg0: i32) -> (i32, i32) {
    %c0_i32 = arith.constant 0 : i32
    %c0_i32_0 = arith.constant 0 : i32
    %c0_i32_1 = arith.constant 0 : i32
    return %c0_i32, %c0_i32_0 : i32, i32
  }
  func.func @transform_2(%arg0: i32) -> (i32, i32) {
    %c0_i32 = arith.constant 0 : i32
    %c0_i32_0 = arith.constant 0 : i32
    %c0_i32_1 = arith.constant 0 : i32
    return %c0_i32, %c0_i32_0 : i32, i32
  }
  func.func @transform_3(%arg0: i32) -> (i32, i32, i32) {
    %c0_i32 = arith.constant 0 : i32
    %c0_i32_0 = arith.constant 0 : i32
    %c0_i32_1 = arith.constant 0 : i32
    %c0_i32_2 = arith.constant 0 : i32
    return %c0_i32, %c0_i32_0, %c0_i32_1 : i32, i32, i32
  }
  func.func @transform_4(%arg0: i32) -> (i32, i32) {
    %c0_i32 = arith.constant 0 : i32
    %c0_i32_0 = arith.constant 0 : i32
    %c0_i32_1 = arith.constant 0 : i32
    return %c0_i32, %c0_i32_0 : i32, i32
  }
  func.func @transform_5(%arg0: i32) -> (i32, i32, i32) {
    %c0_i32 = arith.constant 0 : i32
    %c0_i32_0 = arith.constant 0 : i32
    %c0_i32_1 = arith.constant 0 : i32
    %c0_i32_2 = arith.constant 0 : i32
    return %c0_i32, %c0_i32_0, %c0_i32_1 : i32, i32, i32
  }
  func.func @transform_6(%arg0: i32) -> (i32, i32) {
    %c0_i32 = arith.constant 0 : i32
    %c0_i32_0 = arith.constant 0 : i32
    %c0_i32_1 = arith.constant 0 : i32
    return %c0_i32, %c0_i32_0 : i32, i32
  }
  func.func @transform_7(%arg0: i32) -> (i32, i32, i32) {
    %c0_i32 = arith.constant 0 : i32
    %c0_i32_0 = arith.constant 0 : i32
    %c0_i32_1 = arith.constant 0 : i32
    %c0_i32_2 = arith.constant 0 : i32
    return %c0_i32, %c0_i32_0, %c0_i32_1 : i32, i32, i32
  }
  func.func @transform_8(%arg0: i32) -> (i32, i32) {
    %c0_i32 = arith.constant 0 : i32
    %c0_i32_0 = arith.constant 0 : i32
    %c0_i32_1 = arith.constant 0 : i32
    return %c0_i32, %c0_i32_0 : i32, i32
  }
  func.func @transform_9(%arg0: i32) -> (i32, i32, i32) {
    %c0_i32 = arith.constant 0 : i32
    %c0_i32_0 = arith.constant 0 : i32
    %c0_i32_1 = arith.constant 0 : i32
    %c0_i32_2 = arith.constant 0 : i32
    return %c0_i32, %c0_i32_0, %c0_i32_1 : i32, i32, i32
  }
  func.func @transform_10(%arg0: i32) -> (i32, i32) {
    %c0_i32 = arith.constant 0 : i32
    %c0_i32_0 = arith.constant 0 : i32
    %c0_i32_1 = arith.constant 0 : i32
    return %c0_i32, %c0_i32_0 : i32, i32
  }
  func.func @transform_11(%arg0: i32) -> (i32, i32) {
    %c0_i32 = arith.constant 0 : i32
    %c0_i32_0 = arith.constant 0 : i32
    %c0_i32_1 = arith.constant 0 : i32
    return %c0_i32, %c0_i32_0 : i32, i32
  }
  func.func @transform_12(%arg0: i32) -> (i32, i32) {
    %c0_i32 = arith.constant 0 : i32
    %c0_i32_0 = arith.constant 0 : i32
    %c0_i32_1 = arith.constant 0 : i32
    return %c0_i32, %c0_i32_0 : i32, i32
  }
  func.func @transform_13(%arg0: i32) -> (i32, i32) {
    %c0_i32 = arith.constant 0 : i32
    %c0_i32_0 = arith.constant 0 : i32
    %c0_i32_1 = arith.constant 0 : i32
    return %c0_i32, %c0_i32_0 : i32, i32
  }
  func.func @transform_14(%arg0: i32) -> (i32, i32) {
    %c0_i32 = arith.constant 0 : i32
    %c0_i32_0 = arith.constant 0 : i32
    %c0_i32_1 = arith.constant 0 : i32
    return %c0_i32, %c0_i32_0 : i32, i32
  }
  func.func @transform_15(%arg0: i32) -> (i32, i32, i32) {
    %c0_i32 = arith.constant 0 : i32
    %c0_i32_0 = arith.constant 0 : i32
    %c0_i32_1 = arith.constant 0 : i32
    return %arg0, %c0_i32, %c0_i32_0 : i32, i32, i32
  }
}

</mosaic_0001>

<bundles_post_ra>
// kernel: net_forward.1
= control target key start
LH: loop header
LB: loop body
LE: loop exit
PB: predicated region body
PF: predicated region fallthrough
CT: control target
= control target key end

     0   :  { %s16312_s0 = inlined_call_operand.vmem [shape: bf16[2,904,32], index: 0, kind: input, shape index: {}]   ;;  %s16313_s1 = inlined_call_operand.vmem [shape: bf16[32,32], index: 1, kind: input, shape index: {}]   ;;  %s16314_s2 = inlined_call_operand.vmem [shape: f32[1,32], index: 2, kind: input, shape index: {}]   ;;  %s16315_s3 = inlined_call_operand.vmem [shape: bf16[9,32,64], index: 3, kind: input, shape index: {}]   ;;  %s16316_s4 = inlined_call_operand.vmem [shape: f32[1,64], index: 4, kind: input, shape index: {}]   ;;  %s16317_s5 = inlined_call_operand.vmem [shape: bf16[9,64,128], index: 5, kind: input, shape index: {}]   ;;  %s16318_s6 = inlined_call_operand.vmem [shape: f32[1,128], index: 6, kind: input, shape index: {}]   ;;  %s16319_s7 = inlined_call_operand.vmem [shape: bf16[9,128,256], index: 7, kind: input, shape index: {}]   ;;  %s16320_s8 = inlined_call_operand.vmem [shape: f32[1,256], index: 8, kind: input, shape index: {}]   ;;  %s16321_s9 = inlined_call_operand.vmem [shape: bf16[4,256,128], index: 9, kind: input, shape index: {}]   ;;  %s16322_s10 = inlined_call_operand.vmem [shape: f32[1,128], index: 10, kind: input, shape index: {}]   ;;  %s16323_s11 = inlined_call_operand.vmem [shape: bf16[128,64], index: 11, kind: input, shape index: {}]   ;;  %s16324_s12 = inlined_call_operand.vmem [shape: f32[1,64], index: 12, kind: input, shape index: {}]   ;;  %s16325_s13 = inlined_call_operand.vmem [shape: bf16[64,10], index: 13, kind: input, shape index: {}]   ;;  %s16326_s14 = inlined_call_operand.vmem [shape: f32[1,10], index: 14, kind: input, shape index: {}]   ;;  %s16327_s15 = inlined_call_operand.hbm [shape: f32[2,1,10], index: 15, kind: output, shape index: {}]  }
   0x1   :  { %16360 = sst [smem:[#allocation36_spill]] %s16312_s0 }
   0x2   :  { %16361 = sst [smem:[#allocation37_spill]] %s16313_s1 }
   0x3   :  { %16362 = sst [smem:[#allocation38_spill]] %s16314_s2 }
   0x4   :  { %20 = vsyncpa [#allocation9], 0 }
   0x5   :  { %22 = vsyncpa [#allocation9 + $0x1], 0  ;;  %s13189_s18 = smov 0   ;;  %s13191_s19 = smov 0  }
   0x6   :  { %s13193_s20 = smov 0   ;;  %s13195_s21 = smov 0  }
   0x7 LB: > { %16363 = sst [smem:[#allocation11_spill]] %s13099_s20  ;;  %s13210_s22 = sadd.s32 4294967295, %s13103_s21   ;;  %s13103_s21 = sphi %s13195_s21, %s16469_s21   ;;  %s13099_s20 = sphi %s13193_s20, %s16466_s20   ;;  %s13095_s19 = sphi %s13191_s19, %s16468_s19   ;;  %s13091_s18 = sphi %s13189_s18, %s16467_s18  }
   0x8   : > { %s10235_s23 = sadd.s32 4294967294, %s13103_s21   ;;  %s13214_s24 = sadd.s32 1, %s13103_s21  }
   0x9   : > { %s355_s25 = sadd.s32 1, %s13099_s20  ;;  %s352_s26 = ssub.s32 %s13103_s21, %s13214_s24 }
   0xa   : > { %p365_p0 = scmp.ne.s32.totalorder %s13099_s20, %s13095_s19  ;;  %p353_p1 = scmp.eq.s32.totalorder %s352_s26, 0 }
   0xb   : > { %p366_p2 = scmp.eq.s32.totalorder %s13210_s22, 1  ;;  %p371_p3 = scmp.ne.s32.totalorder %s13095_s19, %s13091_s18 }
   0xc   : > { %p372_p4 = scmp.eq.s32.totalorder %s10235_s23, 1  ;;  %p10238_p7 = scmp.ge.s32.totalorder %s13103_s21, 1 }
   0xd   : > { %s13225_s27 = scalar_select %p353_p1, %s13099_s20, %s355_s25  }
   0xe   : > { %p13227_p5 = por %p366_p2, %p365_p0  ;;  %p13231_p6 = por %p372_p4, %p371_p3 }
   0xf   : > { %16364 = sst [smem:[#allocation12_spill]] %s13225_s27  ;;  %p440_p8 = scmp.lt.s32.totalorder %s13103_s21, 3 }
  0x11   : > { %p441_p9 = pnand %p10238_p7, %p440_p8 }
  0x13   : > { %444 = sbr.rel (%p441_p9) target bundleno = 3206 (0xc86), region = 80 }
  0x1a   : > { %s16367_s1 = sld [smem:[#allocation37_spill]]  ;;  %p487_p10 = scmp.lt.s32.totalorder %s13210_s22, 1  ;;  %vm674_vm0 = vcmask 261120   ;;  %v16339_v53 = vmov 0.0   ;;  %vm13106_vm1 = vmmov 0   ;;  %v1836_v57 = vlaneseq }
  0x1b   : > { %s16368_s0 = sld [smem:[#allocation36_spill]]  ;;  %s16370_s2 = sld [smem:[#allocation38_spill]]  ;;  %vm1851_vm4 = vsmask.f32 7424  ;;  %vm1877_vm5 = vcmask 1040384   ;;  %vm16330_vm7 = vcmask 1045504  }
  0x1c   : > { %s488_s25 = scalar_select %p487_p10, %s13210_s22, 1  ;;  %v13364_v58 = vshrl.u32 %v1836_v57, 7  ;;  %vm16329_vm6 = vsmask.f32 256  ;;  %vm1913_vm8 = vcmask 228352   ;;  %vm2056_vm9 = vcmask 1041408  }
  0x1d   : > { %vm2212_vm10 = vcmask 1043456   ;;  %vm493_vm11 = vcmask 257024   ;;  %vm1971_vm12 = vcmask 256000   ;;  %vm2113_vm13 = vcmask 1042432   ;;  %s485_s16 = sand.u32 1, %s13095_s19   ;;  %s11227_s17 = sshll.u32 %s13210_s22, 4 }
  0x1e   : > { %s12519_s26 = smul.u32 452, %s488_s25  ;;  %16369 = vst [vmem:[#allocation13_spill] sm:$0xff] %v13364_v58  ;;  %v1838_v61 = vadd.s32 8, %v13364_v58  ;;  %vm2114_vm14 = vcmask 1046532   ;;  %vm2124_vm15 = vcmask 257027   ;;  %s486_s23 = scalar_lea.vmem [#allocation8], %s485_s16 }
  0x1f   : > { %s10180_s25 = sshll.u32 %s486_s23, 4  ;;  %s10168_s20 = scalar_lea.sflag [#allocation9], %s485_s16  ;;  %s16271_s25 = int_to_ptr.vmem [resolvable:$true] %s10180_s25 }
  0x20   : > { %v12562_v0 = vld [vmem:[%s16367_s1] sm:$0xff]   ;;  %v12563_v1 = vld [vmem:[%s16367_s1 + $0x8] sm:$0xff]   ;;  %s13041_s27 = scalar_lea.vmem %s16271_s25, 16  ;;  %s13108_s22 = smov [#allocation8]  }
  0x21   : > { %11679 = vmatprep.subr.bf16.mxu0 %v12562_v0  ;;  %11719 = vmatprep.subr.bf16.mxu1 %v12562_v0  ;;  %s13248_s30 = scalar_lea.vmem %s16368_s0, %s12519_s26  ;;  %v13369_v59 = vld [vmem:[%s16370_s2] ss:$0 sm:$0xff]  ;;  %p13042_p11 = scmp.ne.s32.totalorder %s16271_s25, %s13041_s27 }
  0x22   : > { %11680 = vmatpush3.bf16.msra.mxu0 %v12562_v0  ;;  %11720 = vmatpush3.bf16.msra.mxu1 %v12562_v0  ;;  %v12564_v2 = vld [vmem:[%s13248_s30] sm:$0xff]   ;;  %v12565_v3 = vld [vmem:[%s13248_s30 + $0x8] sm:$0xff]   ;;  %v12566_v4 = vld [vmem:[%s13248_s30 + $0x90] sm:$0xff]   ;;  %s13045_s1 = sshll.u32 %s13108_s22, 4  ;;  %s13046_s1 = int_to_ptr.vmem [resolvable:$false] %s13045_s1 }
  0x23   : > { %11681 = vmatprep.subr.bf16.mxu0 %v12563_v1  ;;  %11721 = vmatprep.subr.bf16.mxu1 %v12563_v1  ;;  %v12567_v5 = vld [vmem:[%s13248_s30 + $0x98] sm:$0xff]   ;;  %v12568_v6 = vld [vmem:[%s13248_s30 + $0x10] sm:$0xff]   ;;  %v12570_v7 = vld [vmem:[%s13248_s30 + $0xa0] sm:$0xff]   ;;  %p13043_p12 = pnand %p13042_p11, %p13227_p5  ;;  %s13047_s0 = scalar_lea.vmem %s13046_s1, 32 }
  0x24   : > { %11683 = vmatprep.mubr.msk.bf16.mxu0 %vm674_vm0, %v12564_v2  ;;  %11723 = vmatprep.mubr.msk.bf16.mxu1 %vm674_vm0, %v12566_v4  ;;  %v12569_v8 = vld [vmem:[%s13248_s30 + $0x18] sm:$0xff]   ;;  %v12572_v9 = vld [vmem:[%s13248_s30 + $0x20] sm:$0xff]   ;;  %v12571_v10 = vld [vmem:[%s13248_s30 + $0xa8] sm:$0xff]   ;;  %p13048_p0 = scmp.lt.s32.totalorder %s16271_s25, %s13046_s1  ;;  %p13049_p1 = scmp.lt.s32.totalorder %s13047_s0, %s13041_s27 }
  0x25   : > { %v12574_v11 = vld [vmem:[%s13248_s30 + $0xb0] sm:$0xff]   ;;  %v12573_v12 = vld [vmem:[%s13248_s30 + $0x28] sm:$0xff]   ;;  %v12575_v14 = vld [vmem:[%s13248_s30 + $0xb8] sm:$0xff]   ;;  %p13044_p13 = pneg %p13043_p12 }
  0x26   : > { %11682 = vmatpush3.bf16.msra.mxu0 %v12563_v1  ;;  %11722 = vmatpush3.bf16.msra.mxu1 %v12563_v1  ;;  %v12576_v13 = vld [vmem:[%s13248_s30 + $0x30] sm:$0xff]   ;;  %v12578_v15 = vld [vmem:[%s13248_s30 + $0xc0] sm:$0xff]   ;;  %v12577_v16 = vld [vmem:[%s13248_s30 + $0x38] sm:$0xff]   ;;  %p13050_p2 = por %p13049_p1, %p13048_p0 }
  0x27   : > { %11759 = vmatprep.subr.bf16.mxu0 %v12562_v0  ;;  %v12580_v17 = vld [vmem:[%s13248_s30 + $0x40] sm:$0xff]   ;;  %v12579_v18 = vld [vmem:[%s13248_s30 + $0xc8] sm:$0xff]   ;;  %v12582_v19 = vld [vmem:[%s13248_s30 + $0xd0] sm:$0xff]   ;;  %11799 = vmatprep.subr.bf16.mxu1 %v16339_v53 }
  0x28   : > { %v12581_v20 = vld [vmem:[%s13248_s30 + $0x48] sm:$0xff]   ;;  %v12584_v21 = vld [vmem:[%s13248_s30 + $0x50] sm:$0xff]   ;;  %v12583_v22 = vld [vmem:[%s13248_s30 + $0xd8] sm:$0xff]   ;;  %p13051_p3 = pnand %p13050_p2, %p13044_p13 }
  0x29   : > { %11684 = vmatmul.mubr.msk.bf16.vlgmr.msra.gmra.mrb[0].mxu0 %vm674_vm0, %v12565_v3  ;;  %11724 = vmatmul.mubr.msk.bf16.vlgmr.msra.gmra.mrb[0].mxu1 %vm674_vm0, %v12567_v5  ;;  %v12586_v23 = vld [vmem:[%s13248_s30 + $0xe0] sm:$0xff]   ;;  %v12585_v24 = vld [vmem:[%s13248_s30 + $0x58] sm:$0xff]   ;;  %v12588_v26 = vld [vmem:[%s13248_s30 + $0xe8] sm:$0xff]  }
  0x2a   : > { %11760 = vmatpush3.bf16.msra.mxu0 %v12562_v0  ;;  %11687 = vmatprep.mubr.msk.bf16.mxu0 %vm674_vm0, %v12568_v6  ;;  %v12587_v25 = vld [vmem:[%s13248_s30 + $0x60] sm:$0xff]   ;;  %v12590_v27 = vld [vmem:[%s13248_s30 + $0xf0] sm:$0xff]   ;;  %v12589_v28 = vld [vmem:[%s13248_s30 + $0x68] sm:$0xff]  }
  0x2b   : > { %11761 = vmatprep.subr.bf16.mxu0 %v12563_v1  ;;  %11727 = vmatprep.mubr.msk.bf16.mxu1 %vm674_vm0, %v12570_v7  ;;  %v12591_v29 = vld [vmem:[%s13248_s30 + $0x70] sm:$0xff]   ;;  %v12592_v30 = vld [vmem:[%s13248_s30 + $0xf8] sm:$0xff]   ;;  %v12594_v31 = vld [vmem:[%s13248_s30 + $0x100] sm:$0xff]   ;;  %v1840_v7 = vand.u32 127, %v1836_v57 }
  0x2c   : > { %v12593_v32 = vld [vmem:[%s13248_s30 + $0x78] sm:$0xff]   ;;  %v12595_v33 = vld [vmem:[%s13248_s30 + $0x80] sm:$0xff]   ;;  %v12596_v34 = vld [vmem:[%s13248_s30 + $0x108] sm:$0xff]  }
  0x2d   : > { %v12598_v35 = vld [vmem:[%s13248_s30 + $0x110] sm:$0xff]   ;;  %v12597_v36 = vld [vmem:[%s13248_s30 + $0x88] sm:$0xff]   ;;  %v12600_v37 = vld [vmem:[%s13248_s30 + $0x120] sm:$0xff]  }
  0x2e   : > { %11762 = vmatpush3.bf16.msra.mxu0 %v12563_v1  ;;  %v12599_v38 = vld [vmem:[%s13248_s30 + $0x118] sm:$0xff]   ;;  %v12601_v39 = vld [vmem:[%s13248_s30 + $0x128] sm:$0xff]   ;;  %v12602_v40 = vld [vmem:[%s13248_s30 + $0x130] sm:$0xff]  }
  0x2f   : > { %v12603_v41 = vld [vmem:[%s13248_s30 + $0x138] sm:$0xff]   ;;  %v12604_v42 = vld [vmem:[%s13248_s30 + $0x140] sm:$0xff]   ;;  %v12605_v43 = vld [vmem:[%s13248_s30 + $0x148] sm:$0xff]   ;;  %11871 = vmatprep.subr.bf16.mxu0 %v16339_v53 }
  0x30   : > { %v12606_v44 = vld [vmem:[%s13248_s30 + $0x150] sm:$0xff]   ;;  %v12607_v45 = vld [vmem:[%s13248_s30 + $0x158] sm:$0xff]   ;;  %v12608_v46 = vld [vmem:[%s13248_s30 + $0x160] sm:$0xff]  }
  0x31   : > { %11688 = vmatmul.mubr.msk.bf16.gmra.mrb[4].mxu0 %vm674_vm0, %v12569_v8  ;;  %11728 = vmatmul.mubr.msk.bf16.gmra.mrb[4].mxu1 %vm674_vm0, %v12571_v10  ;;  %v12609_v47 = vld [vmem:[%s13248_s30 + $0x168] sm:$0xff]   ;;  %v12610_v48 = vld [vmem:[%s13248_s30 + $0x170] sm:$0xff]   ;;  %v12611_v49 = vld [vmem:[%s13248_s30 + $0x178] sm:$0xff]  }
  0x32   : > { %11691 = vmatprep.mubr.msk.bf16.mxu0 %vm674_vm0, %v12572_v9  ;;  %11731 = vmatprep.mubr.msk.bf16.mxu1 %vm674_vm0, %v12574_v11  ;;  %v12612_v50 = vld [vmem:[%s13248_s30 + $0x180] sm:$0xff]   ;;  %v12613_v51 = vld [vmem:[%s13248_s30 + $0x188] sm:$0xff]   ;;  %v12614_v52 = vld [vmem:[%s13248_s30 + $0x190] sm:$0xff]   ;;  %v1841_v11 = vmul.u32 2, %v13364_v58 }
  0x33   : > { %v12615_v54 = vld [vmem:[%s13248_s30 + $0x198] sm:$0xff]   ;;  %v12616_v55 = vld [vmem:[%s13248_s30 + $0x1a0] sm:$0xff]   ;;  %v12617_v56 = vld [vmem:[%s13248_s30 + $0x1a8] sm:$0xff]   ;;  %s16269_s30 = scalar_lea.hbm %s16327_s15, %s11227_s17 }
  0x34   : > { %vm13383_vm2 = vcmp.eq.s32.totalorder %v1840_v7, %v1841_v11 }
  0x39   : > { %11692 = vmatmul.mubr.msk.bf16.gmra.mrb[8].mxu0 %vm674_vm0, %v12573_v12  ;;  %11732 = vmatmul.mubr.msk.bf16.gmra.mrb[8].mxu1 %vm674_vm0, %v12575_v14  ;;  %v1842_v12 = vmul.u32 2, %v1838_v61 }
  0x3a   : > { %11695 = vmatprep.mubr.msk.bf16.mxu0 %vm674_vm0, %v12576_v13  ;;  %11735 = vmatprep.mubr.msk.bf16.mxu1 %vm674_vm0, %v12578_v15 }
  0x3b   : > { %vm13387_vm3 = vcmp.eq.s32.totalorder %v1840_v7, %v1842_v12 }
  0x41   : > { %11696 = vmatmul.mubr.msk.bf16.gmra.mrb[12].mxu0 %vm674_vm0, %v12577_v16  ;;  %11736 = vmatmul.mubr.msk.bf16.gmra.mrb[12].mxu1 %vm674_vm0, %v12579_v18 }
  0x42   : > { %11699 = vmatprep.mubr.msk.bf16.mxu0 %vm674_vm0, %v12580_v17  ;;  %11739 = vmatprep.mubr.msk.bf16.mxu1 %vm674_vm0, %v12582_v19 }
  0x49   : > { %11700 = vmatmul.mubr.msk.bf16.gmra.mrb[16].mxu0 %vm674_vm0, %v12581_v20  ;;  %11740 = vmatmul.mubr.msk.bf16.gmra.mrb[16].mxu1 %vm674_vm0, %v12583_v22 }
  0x4a   : > { %11703 = vmatprep.mubr.msk.bf16.mxu0 %vm674_vm0, %v12584_v21  ;;  %11743 = vmatprep.mubr.msk.bf16.mxu1 %vm674_vm0, %v12586_v23 }
  0x51   : > { %11704 = vmatmul.mubr.msk.bf16.gmra.mrb[20].mxu0 %vm674_vm0, %v12585_v24  ;;  %11744 = vmatmul.mubr.msk.bf16.gmra.mrb[20].mxu1 %vm674_vm0, %v12588_v26 }
  0x52   : > { %11707 = vmatprep.mubr.msk.bf16.mxu0 %vm674_vm0, %v12587_v25  ;;  %11747 = vmatprep.mubr.msk.bf16.mxu1 %vm674_vm0, %v12590_v27 }
  0x59   : > { %11708 = vmatmul.mubr.msk.bf16.gmra.mrb[24].mxu0 %vm674_vm0, %v12589_v28  ;;  %11748 = vmatmul.mubr.msk.bf16.gmra.mrb[24].mxu1 %vm674_vm0, %v12592_v30 }
  0x5a   : > { %11711 = vmatprep.mubr.msk.bf16.mxu0 %vm674_vm0, %v12591_v29  ;;  %11751 = vmatprep.mubr.msk.bf16.mxu1 %vm674_vm0, %v12594_v31 }
  0x61   : > { %11712 = vmatmul.mubr.msk.bf16.gmra.mrb[28].mxu0 %vm674_vm0, %v12593_v32  ;;  %11752 = vmatmul.mubr.msk.bf16.gmra.mrb[28].mxu1 %vm674_vm0, %v12596_v34 }
  0x62   : > { %11715 = vmatprep.mubr.msk.bf16.mxu0 %vm674_vm0, %v12595_v33  ;;  %11755 = vmatprep.mubr.msk.bf16.mxu1 %vm674_vm0, %v12598_v35 }
  0x69   : > { %11716 = vmatmul.mubr.msk.bf16.gmra.mrb[32].mxu0 %vm674_vm0, %v12597_v36  ;;  %11756 = vmatmul.mubr.msk.bf16.gmra.mrb[32].mxu1 %vm674_vm0, %v12599_v38 }
  0x6a   : > { %11763 = vmatprep.mubr.msk.bf16.mxu0 %vm674_vm0, %v12600_v37  ;;  %11803 = vmatprep.mubr.msk.bf16.mxu1 %vm13106_vm1, %v16339_v53 }
  0x71   : > { %11764 = vmatmul.mubr.msk.bf16.vlgmr.msra.gmra.mrb[36].mxu0 %vm674_vm0, %v12601_v39 }
  0x72   : > { %11767 = vmatprep.mubr.msk.bf16.mxu0 %vm674_vm0, %v12602_v40 }
  0x79   : > { %11768 = vmatmul.mubr.msk.bf16.gmra.mrb[40].mxu0 %vm674_vm0, %v12603_v41 }
  0x7a   : > { %11771 = vmatprep.mubr.msk.bf16.mxu0 %vm674_vm0, %v12604_v42 }
  0x81   : > { %11772 = vmatmul.mubr.msk.bf16.gmra.mrb[44].mxu0 %vm674_vm0, %v12605_v43  ;;  %v13402_v43 = vsel %vm13383_vm2, 1.0, %v16339_v53  ;;  %vm14045_vm2 = vmor %vm2113_vm13, %vm2114_vm14  ;;  %vm16331_vm14 = vcmask 253952  }
  0x82   : > { %11775 = vmatprep.mubr.msk.bf16.mxu0 %vm674_vm0, %v12606_v44  ;;  %16375 = vst [vmem:[#allocation14_spill] sm:$0xff] %v13402_v43  ;;  %v1846_v44 = vsel %vm13387_vm3, 1.0, %v16339_v53  ;;  %vm2127_vm3 = vcmask 254976  }
  0x89   : > { %11776 = vmatmul.mubr.msk.bf16.gmra.mrb[48].mxu0 %vm674_vm0, %v12607_v45 }
  0x8a   : > { %11779 = vmatprep.mubr.msk.bf16.mxu0 %vm674_vm0, %v12608_v46 }
  0x91   : > { %11780 = vmatmul.mubr.msk.bf16.gmra.mrb[52].mxu0 %vm674_vm0, %v12609_v47 }
  0x92   : > { %11783 = vmatprep.mubr.msk.bf16.mxu0 %vm674_vm0, %v12610_v48 }
  0x99   : > { %11784 = vmatmul.mubr.msk.bf16.gmra.mrb[56].mxu0 %vm674_vm0, %v12611_v49 }
  0x9a   : > { %11787 = vmatprep.mubr.msk.bf16.mxu0 %vm674_vm0, %v12612_v50 }
  0xa1   : > { %11788 = vmatmul.mubr.msk.bf16.gmra.mrb[60].mxu0 %vm674_vm0, %v12613_v51 }
  0xa2   : > { %11791 = vmatprep.mubr.msk.bf16.mxu0 %vm674_vm0, %v12614_v52 }
  0xa9   : > { %11792 = vmatmul.mubr.msk.bf16.gmra.mrb[64].mxu0 %vm674_vm0, %v12615_v54 }
  0xaa   : > { %11795 = vmatprep.mubr.msk.bf16.mxu0 %vm674_vm0, %v12616_v55 }
  0xb1   : > { %11796 = vmatmul.mubr.msk.bf16.gmra.mrb[68].mxu0 %vm674_vm0, %v12617_v56 }
  0xb2   : > { %11875 = vmatprep.mubr.msk.bf16.mxu0 %vm13106_vm1, %v16339_v53 }
  0xfc   : > { %v11685_v60 = vpop.f32.mrb[0].mxu0  ;;  %v11725_v2 = vpop.f32.mrb[0].mxu1 }
  0xfd   : > { %v772_v62 = vadd.f32 %v11685_v60, %v13369_v59  ;;  %v763_v63 = vpop.f32.mrb[1].mxu0  ;;  %v1201_v5 = vadd.f32 %v11725_v2, %v13369_v59  ;;  %v1192_v6 = vpop.f32.mrb[1].mxu1 }
  0xfe   : > { %v764_v0 = vadd.f32 %v13369_v59, %v763_v63  ;;  %v11686_v1 = vpop.f32.mrb[2].mxu0  ;;  %v1193_v9 = vadd.f32 %v13369_v59, %v1192_v6  ;;  %v11726_v10 = vpop.f32.mrb[2].mxu1 }
  0xff   : > { %v775_v3 = vadd.f32 %v11686_v1, %v13369_v59  ;;  %v766_v4 = vpop.f32.mrb[3].mxu0  ;;  %v908_v13 = vmax.f32 %v772_v62, 0.0  ;;  %v1337_v15 = vmax.f32 %v1201_v5, 0.0  ;;  %v1204_v16 = vadd.f32 %v11726_v10, %v13369_v59  ;;  %v1195_v17 = vpop.f32.mrb[3].mxu1 }
 0x100   : > { %v767_v8 = vadd.f32 %v13369_v59, %v766_v4  ;;  %v906_v18 = vmax.f32 %v764_v0, 0.0  ;;  %v1335_v20 = vmax.f32 %v1193_v9, 0.0  ;;  %v1196_v21 = vadd.f32 %v13369_v59, %v1195_v17 }
 0x101   : > { %v909_v14 = vmax.f32 %v775_v3, 0.0  ;;  %v1338_v23 = vmax.f32 %v1204_v16, 0.0  ;;  %v13414_v4 = vpack.c.bf16 %v1846_v44, %v13402_v43 }
 0x102   : > { %v907_v19 = vmax.f32 %v767_v8, 0.0  ;;  %v1336_v26 = vmax.f32 %v1196_v21, 0.0 }
 0x103   : > { %v943_v22 = vpack.c.bf16 %v909_v14, %v908_v13  ;;  %v1372_v29 = vpack.c.bf16 %v1338_v23, %v1337_v15 }
 0x104   : > { %v942_v24 = vpack.c.bf16 %v907_v19, %v906_v18  ;;  %v11689_v25 = vpop.f32.mrb[4].mxu0  ;;  %v1371_v34 = vpack.c.bf16 %v1336_v26, %v1335_v20  ;;  %v11729_v35 = vpop.f32.mrb[4].mxu1 }
 0x105   : > { %961 = vst.msk [vmem:[#allocation2 + $0x8] sm:$0xff] %vm674_vm0, %v943_v22  ;;  %v788_v27 = vadd.f32 %v11689_v25, %v13369_v59  ;;  %v779_v28 = vpop.f32.mrb[5].mxu0  ;;  %1390 = vst.msk [vmem:[#allocation2 + $0x98] sm:$0xff] %vm674_vm0, %v1372_v29  ;;  %v1217_v38 = vadd.f32 %v11729_v35, %v13369_v59  ;;  %v1208_v39 = vpop.f32.mrb[5].mxu1 }
 0x106   : > { %960 = vst.msk [vmem:[#allocation2] sm:$0xff] %vm674_vm0, %v942_v24  ;;  %v780_v32 = vadd.f32 %v13369_v59, %v779_v28  ;;  %v11690_v33 = vpop.f32.mrb[6].mxu0  ;;  %1389 = vst.msk [vmem:[#allocation2 + $0x90] sm:$0xff] %vm674_vm0, %v1371_v34  ;;  %v1209_v41 = vadd.f32 %v13369_v59, %v1208_v39  ;;  %v11730_v42 = vpop.f32.mrb[6].mxu1 }
 0x107   : > { %v791_v36 = vadd.f32 %v11690_v33, %v13369_v59  ;;  %v782_v37 = vpop.f32.mrb[7].mxu0  ;;  %v912_v45 = vmax.f32 %v788_v27, 0.0  ;;  %v1341_v47 = vmax.f32 %v1217_v38, 0.0  ;;  %v1220_v48 = vadd.f32 %v11730_v42, %v13369_v59  ;;  %v1211_v49 = vpop.f32.mrb[7].mxu1 }
 0x108   : > { %v783_v40 = vadd.f32 %v13369_v59, %v782_v37  ;;  %v910_v50 = vmax.f32 %v780_v32, 0.0  ;;  %v1339_v52 = vmax.f32 %v1209_v41, 0.0  ;;  %v1212_v54 = vadd.f32 %v13369_v59, %v1211_v49 }
 0x109   : > { %v913_v46 = vmax.f32 %v791_v36, 0.0  ;;  %v1342_v56 = vmax.f32 %v1220_v48, 0.0 }
 0x10a   : > { %v911_v51 = vmax.f32 %v783_v40, 0.0  ;;  %v1340_v61 = vmax.f32 %v1212_v54, 0.0 }
 0x10b   : > { %v945_v55 = vpack.c.bf16 %v913_v46, %v912_v45  ;;  %v1374_v1 = vpack.c.bf16 %v1342_v56, %v1341_v47 }
 0x10c   : > { %v944_v57 = vpack.c.bf16 %v911_v51, %v910_v50  ;;  %v11693_v60 = vpop.f32.mrb[8].mxu0  ;;  %v1850_v62 = vld [vmem:[#allocation2 + $0x8] sm:$0x7f]  ;;  %v1373_v7 = vpack.c.bf16 %v1340_v61, %v1339_v52  ;;  %v11733_v8 = vpop.f32.mrb[8].mxu1  ;;  %v1871_v11 = vld [vmem:[#allocation2 + $0x8] sm:$0x80] }
 0x10d   : > { %963 = vst.msk [vmem:[#allocation2 + $0x18] sm:$0xff] %vm674_vm0, %v945_v55  ;;  %v804_v63 = vadd.f32 %v11693_v60, %v13369_v59  ;;  %v795_v0 = vpop.f32.mrb[9].mxu0  ;;  %v13411_v2 = vld [vmem:[#allocation2] sm:$0xff]  ;;  %v1860_v3 = vshll.u32 %v1850_v62, 16  ;;  %1392 = vst.msk [vmem:[#allocation2 + $0xa8] sm:$0xff] %vm674_vm0, %v1374_v1  ;;  %v1233_v15 = vadd.f32 %v11733_v8, %v13369_v59  ;;  %v1224_v16 = vpop.f32.mrb[9].mxu1 }
 0x10e   : > { %962 = vst.msk [vmem:[#allocation2 + $0x10] sm:$0xff] %vm674_vm0, %v944_v57  ;;  %v796_v5 = vadd.f32 %v13369_v59, %v795_v0  ;;  %v11694_v6 = vpop.f32.mrb[10].mxu0  ;;  %v1853_v9 = vshrl.u32 %v13411_v2, 16  ;;  %v1855_v10 = vshll.u32 %v13411_v2, 16  ;;  %1391 = vst.msk [vmem:[#allocation2 + $0xa0] sm:$0xff] %vm674_vm0, %v1373_v7  ;;  %v1225_v20 = vadd.f32 %v13369_v59, %v1224_v16  ;;  %v11734_v21 = vpop.f32.mrb[10].mxu1 }
 0x10f   : > { %v916_v12 = vmax.f32 %v804_v63, 0.0  ;;  %v807_v13 = vadd.f32 %v11694_v6, %v13369_v59  ;;  %v798_v14 = vpop.f32.mrb[11].mxu0  ;;  %v1862_v17 = vrot.slane %v1860_v3, 1  ;;  %v1345_v24 = vmax.f32 %v1233_v15, 0.0  ;;  %v1227_v26 = vpop.f32.mrb[11].mxu1 }
 0x110   : > { %v914_v18 = vmax.f32 %v796_v5, 0.0  ;;  %v799_v19 = vadd.f32 %v13369_v59, %v798_v14  ;;  %v1857_v22 = vrot.slane %v1855_v10, 1  ;;  %v1236_v25 = vadd.f32 %v11734_v21, %v13369_v59  ;;  %v1849_v16 = vld [vmem:[#allocation2 + $0x8] sm:$0x3f] }
 0x111   : > { %v917_v23 = vmax.f32 %v807_v13, 0.0  ;;  %v1890_v27 = vshrl.u32 %v1871_v11, 16  ;;  %v1343_v29 = vmax.f32 %v1225_v20, 0.0  ;;  %v1228_v30 = vadd.f32 %v13369_v59, %v1227_v26 }
 0x112   : > { %v915_v28 = vmax.f32 %v799_v19, 0.0  ;;  %v1858_v31 = vor.u32 %v1857_v22, %v1853_v9  ;;  %v1346_v33 = vmax.f32 %v1236_v25, 0.0  ;;  %v1878_v34 = vrot.slane %v1871_v11, 7 }
 0x113   : > { %v947_v32 = vpack.c.bf16 %v917_v23, %v916_v12  ;;  %v1864_v35 = vshrl.u32 %v1850_v62, 16  ;;  %v1344_v38 = vmax.f32 %v1228_v30, 0.0  ;;  %v1892_v40 = vrot.slane %v1890_v27, 7 }
 0x114   : > { %v946_v36 = vpack.c.bf16 %v915_v28, %v914_v18  ;;  %v11697_v37 = vpop.f32.mrb[12].mxu0  ;;  %v1863_v39 = vsel %vm1851_vm4, %v1858_v31, %v1862_v17  ;;  %v1376_v41 = vpack.c.bf16 %v1346_v33, %v1345_v24  ;;  %v11737_v51 = vpop.f32.mrb[12].mxu1  ;;  %v1873_v5 = vld [vmem:[#allocation2 + $0x18] sm:$0x1f] }
 0x115   : > { %965 = vst.msk [vmem:[#allocation2 + $0x28] sm:$0xff] %vm674_vm0, %v947_v32  ;;  %v820_v42 = vadd.f32 %v11697_v37, %v13369_v59  ;;  %v811_v44 = vpop.f32.mrb[13].mxu0  ;;  %v1869_v45 = vmax.bf16 %v1863_v39, %v13411_v2  ;;  %v1872_v46 = vld [vmem:[#allocation2 + $0x10] sm:$0xff]  ;;  %v1866_v47 = vor.u32 %v1864_v35, %v1862_v17  ;;  %v1375_v48 = vpack.c.bf16 %v1344_v38, %v1343_v29  ;;  %v1240_v61 = vpop.f32.mrb[13].mxu1  ;;  %v1887_v11 = vld [vmem:[#allocation2 + $0x18] sm:$0x3f] }
 0x116   : > { %964 = vst.msk [vmem:[#allocation2 + $0x20] sm:$0xff] %vm674_vm0, %v946_v36  ;;  %v812_v49 = vadd.f32 %v13369_v59, %v811_v44  ;;  %v11698_v50 = vpop.f32.mrb[14].mxu0  ;;  %v1879_v52 = vrot.slane %v1872_v46, 7  ;;  %v1894_v54 = vshrl.u32 %v1872_v46, 16  ;;  %1394 = vst.msk [vmem:[#allocation2 + $0xb8] sm:$0xff] %vm674_vm0, %v1376_v41  ;;  %v1249_v60 = vadd.f32 %v11737_v51, %v13369_v59  ;;  %v11738_v2 = vpop.f32.mrb[14].mxu1 }
 0x117   : > { %v920_v55 = vmax.f32 %v820_v42, 0.0  ;;  %v823_v56 = vadd.f32 %v11698_v50, %v13369_v59  ;;  %v814_v57 = vpop.f32.mrb[15].mxu0  ;;  %v1897_v62 = vshll.u32 %v1872_v46, 16  ;;  %1393 = vst.msk [vmem:[#allocation2 + $0xb0] sm:$0xff] %vm674_vm0, %v1375_v48  ;;  %v1241_v1 = vadd.f32 %v13369_v59, %v1240_v61  ;;  %v1243_v10 = vpop.f32.mrb[15].mxu1 }
 0x118   : > { %v918_v63 = vmax.f32 %v812_v49, 0.0  ;;  %v815_v0 = vadd.f32 %v13369_v59, %v814_v57  ;;  %v1880_v3 = vsel %vm1877_vm5, %v1878_v34, %v1879_v52  ;;  %v1349_v7 = vmax.f32 %v1249_v60, 0.0  ;;  %v13449_v37 = vld [vmem:[#allocation2 + $0x18] sm:$0xc0] }
 0x119   : > { %v921_v6 = vmax.f32 %v823_v56, 0.0  ;;  %v1252_v8 = vadd.f32 %v11738_v2, %v13369_v59  ;;  %v1885_v9 = vmax.bf16 %v1880_v3, %v1869_v45  ;;  %v1347_v13 = vmax.f32 %v1241_v1, 0.0 }
 0x11a   : > { %v919_v12 = vmax.f32 %v815_v0, 0.0  ;;  %v1896_v14 = vrot.slane %v1894_v54, 7  ;;  %v1244_v15 = vadd.f32 %v13369_v59, %v1243_v10  ;;  %v1870_v19 = vmax.bf16 %v1866_v47, %v1849_v16 }
 0x11b   : > { %v949_v17 = vpack.c.bf16 %v921_v6, %v920_v55  ;;  %v1350_v18 = vmax.f32 %v1252_v8, 0.0  ;;  %v1881_v20 = vrot.slane %v1873_v5, 7  ;;  %v1902_v25 = vshrl.u32 %v1887_v11, 16 }
 0x11c   : > { %v948_v21 = vpack.c.bf16 %v919_v12, %v918_v63  ;;  %v11701_v22 = vpop.f32.mrb[16].mxu0  ;;  %v1899_v23 = vor.u32 %v1897_v62, %v1896_v14  ;;  %v1348_v24 = vmax.f32 %v1244_v15, 0.0  ;;  %v1905_v30 = vshll.u32 %v1887_v11, 16  ;;  %v11741_v35 = vpop.f32.mrb[16].mxu1  ;;  %v13463_v1 = vld [vmem:[#allocation2 + $0x28] sm:$0x1f] }
 0x11d   : > { %967 = vst.msk [vmem:[#allocation2 + $0x38] sm:$0xff] %vm674_vm0, %v949_v17  ;;  %v836_v26 = vadd.f32 %v11701_v22, %v13369_v59  ;;  %v827_v27 = vpop.f32.mrb[17].mxu0  ;;  %v1378_v28 = vpack.c.bf16 %v1350_v18, %v1349_v7  ;;  %v1882_v29 = vsel %vm1877_vm5, %v1879_v52, %v1881_v20  ;;  %v1265_v44 = vadd.f32 %v11741_v35, %v13369_v59  ;;  %v1256_v45 = vpop.f32.mrb[17].mxu1  ;;  %v13457_v50 = vld [vmem:[#allocation2 + $0x20] sm:$0xff] }
 0x11e   : > { %966 = vst.msk [vmem:[#allocation2 + $0x30] sm:$0xff] %vm674_vm0, %v948_v21  ;;  %v828_v31 = vadd.f32 %v13369_v59, %v827_v27  ;;  %v11702_v32 = vpop.f32.mrb[18].mxu0  ;;  %v1900_v33 = vsel %vm16329_vm6, %v1892_v40, %v1899_v23  ;;  %v1377_v34 = vpack.c.bf16 %v1348_v24, %v1347_v13  ;;  %v1886_v36 = vmax.bf16 %v1882_v29, %v1870_v19  ;;  %v11742_v48 = vpop.f32.mrb[18].mxu1 }
 0x11f   : > { %v924_v38 = vmax.f32 %v836_v26, 0.0  ;;  %v839_v39 = vadd.f32 %v11702_v32, %v13369_v59  ;;  %v830_v41 = vpop.f32.mrb[19].mxu0  ;;  %1396 = vst.msk [vmem:[#allocation2 + $0xc8] sm:$0xff] %vm674_vm0, %v1378_v28  ;;  %v1911_v42 = vmax.bf16 %v1900_v33, %v1885_v9  ;;  %v1257_v40 = vadd.f32 %v13369_v59, %v1256_v45  ;;  %v1259_v55 = vpop.f32.mrb[19].mxu1 }
 0x120   : > { %v922_v46 = vmax.f32 %v828_v31, 0.0  ;;  %v831_v47 = vadd.f32 %v13369_v59, %v830_v41  ;;  %1395 = vst.msk [vmem:[#allocation2 + $0xc0] sm:$0xff] %vm674_vm0, %v1377_v34  ;;  %v1904_v49 = vrot.slane %v1902_v25, 7  ;;  %v1353_v52 = vmax.f32 %v1265_v44, 0.0 }
 0x121   : > { %v925_v51 = vmax.f32 %v839_v39, 0.0  ;;  %11800 = vmatpush3.bf16.msra.mxu1 %v1911_v42  ;;  %v1268_v54 = vadd.f32 %v11742_v48, %v13369_v59  ;;  %v1978_v56 = vshrl.u32 %v13449_v37, 16  ;;  %v1351_v60 = vmax.f32 %v1257_v40, 0.0 }
 0x122   : > { %v923_v57 = vmax.f32 %v831_v47, 0.0  ;;  %11801 = vmatprep.subr.bf16.mxu1 %v16339_v53  ;;  %v1907_v61 = vor.u32 %v1905_v30, %v1904_v49  ;;  %v1260_v62 = vadd.f32 %v13369_v59, %v1259_v55  ;;  %v1980_v2 = vshll.u32 %v13449_v37, 16 }
 0x123   : > { %v951_v63 = vpack.c.bf16 %v925_v51, %v924_v38  ;;  %v1354_v0 = vmax.f32 %v1268_v54, 0.0  ;;  %v1985_v3 = vshll.u32 %v13457_v50, 16  ;;  %v1989_v9 = vshrl.u32 %v13457_v50, 16  ;;  %v2006_v38 = vld [vmem:[#allocation2 + $0x28] sm:$0xe0] }
 0x124   : > { %v950_v5 = vpack.c.bf16 %v923_v57, %v922_v46  ;;  %v1908_v6 = vsel %vm16329_vm6, %v1896_v14, %v1907_v61  ;;  %v11705_v7 = vpop.f32.mrb[20].mxu0  ;;  %v1352_v8 = vmax.f32 %v1260_v62, 0.0  ;;  %v1982_v15 = vrot.slane %v1980_v2, 1  ;;  %v11745_v19 = vpop.f32.mrb[20].mxu1 }
 0x125   : > { %969 = vst.msk [vmem:[#allocation2 + $0x48] sm:$0xff] %vm674_vm0, %v951_v63  ;;  %v1380_v10 = vpack.c.bf16 %v1354_v0, %v1353_v52  ;;  %v1912_v11 = vmax.bf16 %v1908_v6, %v1886_v36  ;;  %v852_v12 = vadd.f32 %v11705_v7, %v13369_v59  ;;  %v843_v13 = vpop.f32.mrb[21].mxu0  ;;  %v1987_v14 = vrot.slane %v1985_v3, 1  ;;  %v1272_v26 = vpop.f32.mrb[21].mxu1  ;;  %v13483_v39 = vld [vmem:[#allocation2 + $0x30] sm:$0xff] }
 0x126   : > { %968 = vst.msk [vmem:[#allocation2 + $0x40] sm:$0xff] %vm674_vm0, %v950_v5  ;;  %v1379_v16 = vpack.c.bf16 %v1352_v8, %v1351_v60  ;;  %v844_v17 = vadd.f32 %v13369_v59, %v843_v13  ;;  %v11706_v18 = vpop.f32.mrb[22].mxu0  ;;  %v1993_v20 = vshll.u32 %v13463_v1, 16  ;;  %v1281_v25 = vadd.f32 %v11745_v19, %v13369_v59  ;;  %v11746_v30 = vpop.f32.mrb[22].mxu1  ;;  %v2008_v5 = vld [vmem:[#allocation2 + $0x38] sm:$0x7] }
 0x127   : > { %1398 = vst.msk [vmem:[#allocation2 + $0xd8] sm:$0xff] %vm674_vm0, %v1380_v10  ;;  %v1919_v21 = vsel %vm16330_vm7, %v1912_v11, 0  ;;  %v928_v22 = vmax.f32 %v852_v12, 0.0  ;;  %v855_v23 = vadd.f32 %v11706_v18, %v13369_v59  ;;  %v846_v24 = vpop.f32.mrb[23].mxu0  ;;  %v1273_v29 = vadd.f32 %v13369_v59, %v1272_v26  ;;  %v1275_v35 = vpop.f32.mrb[23].mxu1 }
 0x128   : > { %11802 = vmatpush3.bf16.msra.mxu1 %v1919_v21  ;;  %1397 = vst.msk [vmem:[#allocation2 + $0xd0] sm:$0xff] %vm674_vm0, %v1379_v16  ;;  %v926_v27 = vmax.f32 %v844_v17, 0.0  ;;  %v847_v28 = vadd.f32 %v13369_v59, %v846_v24  ;;  %v1983_v31 = vor.u32 %v1982_v15, %v1978_v56  ;;  %v1357_v33 = vmax.f32 %v1281_v25, 0.0  ;;  %v2023_v12 = vld [vmem:[#allocation2 + $0x38] sm:$0xf] }
 0x129   : > { %v929_v32 = vmax.f32 %v855_v23, 0.0  ;;  %v1284_v34 = vadd.f32 %v11746_v30, %v13369_v59  ;;  %11807 = vmatprep.subr.bf16.mxu1 %v16339_v53  ;;  %v1991_v36 = vor.u32 %v1989_v9, %v1987_v14  ;;  %v1355_v42 = vmax.f32 %v1273_v29, 0.0 }
 0x12a   : > { %v927_v41 = vmax.f32 %v847_v28, 0.0  ;;  %v1276_v44 = vadd.f32 %v13369_v59, %v1275_v35  ;;  %v1988_v45 = vsel %vm1851_vm4, %v1983_v31, %v1987_v14  ;;  %v1995_v40 = vrot.slane %v1993_v20, 1 }
 0x12b   : > { %v953_v46 = vpack.c.bf16 %v929_v32, %v928_v22  ;;  %v1358_v47 = vmax.f32 %v1284_v34, 0.0  ;;  %11804 = vmatmul.mubr.msk.bf16.vlgmr.msra.gmra.mrb[36].mxu1 %vm1913_vm8, %v13414_v4  ;;  %v2003_v48 = vmax.bf16 %v1988_v45, %v13449_v37  ;;  %v2012_v54 = vrot.slane %v2006_v38, 7  ;;  %v1975_v34 = vld [vmem:[#allocation2 + $0x28] sm:$0xf] }
 0x12c   : > { %v952_v49 = vpack.c.bf16 %v927_v41, %v926_v27  ;;  %v11709_v51 = vpop.f32.mrb[24].mxu0  ;;  %v1356_v52 = vmax.f32 %v1276_v44, 0.0  ;;  %v2013_v55 = vrot.slane %v13483_v39, 7  ;;  %11811 = vmatprep.mubr.msk.bf16.mxu1 %vm13106_vm1, %v16339_v53  ;;  %v1996_v61 = vsel %vm1851_vm4, %v1991_v36, %v1995_v40  ;;  %v11749_v6 = vpop.f32.mrb[24].mxu1 }
 0x12d   : > { %971 = vst.msk [vmem:[#allocation2 + $0x58] sm:$0xff] %vm674_vm0, %v953_v46  ;;  %v868_v56 = vadd.f32 %v11709_v51, %v13369_v59  ;;  %v859_v57 = vpop.f32.mrb[25].mxu0  ;;  %v1382_v60 = vpack.c.bf16 %v1358_v47, %v1357_v33  ;;  %v2025_v62 = vshrl.u32 %v2006_v38, 16  ;;  %v2004_v2 = vmax.bf16 %v1996_v61, %v13457_v50  ;;  %v1288_v13 = vpop.f32.mrb[25].mxu1 }
 0x12e   : > { %970 = vst.msk [vmem:[#allocation2 + $0x50] sm:$0xff] %vm674_vm0, %v952_v49  ;;  %v860_v37 = vadd.f32 %v13369_v59, %v859_v57  ;;  %v11710_v63 = vpop.f32.mrb[26].mxu0  ;;  %v1381_v0 = vpack.c.bf16 %v1356_v52, %v1355_v42  ;;  %v2014_v3 = vsel %vm1877_vm5, %v2012_v54, %v2013_v55  ;;  %v2020_v10 = vmax.bf16 %v2012_v54, %v2003_v48  ;;  %v11750_v18 = vpop.f32.mrb[26].mxu1 }
 0x12f   : > { %v932_v7 = vmax.f32 %v868_v56, 0.0  ;;  %v871_v8 = vadd.f32 %v11710_v63, %v13369_v59  ;;  %v862_v9 = vpop.f32.mrb[27].mxu0  ;;  %1400 = vst.msk [vmem:[#allocation2 + $0xe8] sm:$0xff] %vm674_vm0, %v1382_v60  ;;  %v2027_v11 = vrot.slane %v2025_v62, 7  ;;  %v2021_v50 = vmax.bf16 %v2014_v3, %v2004_v2  ;;  %v1291_v22 = vpop.f32.mrb[27].mxu1 }
 0x130   : > { %v930_v15 = vmax.f32 %v860_v37, 0.0  ;;  %v863_v16 = vadd.f32 %v13369_v59, %v862_v9  ;;  %1399 = vst.msk [vmem:[#allocation2 + $0xe0] sm:$0xff] %vm674_vm0, %v1381_v0  ;;  %v2028_v17 = vshll.u32 %v2006_v38, 16  ;;  %v2032_v14 = vshrl.u32 %v13483_v39, 16 }
 0x131   : > { %v933_v19 = vmax.f32 %v871_v8, 0.0  ;;  %v2035_v20 = vshll.u32 %v13483_v39, 16  ;;  %v1997_v21 = vshrl.u32 %v13463_v1, 16  ;;  %v2015_v25 = vrot.slane %v2008_v5, 7 }
 0x132   : > { %v931_v23 = vmax.f32 %v863_v16, 0.0  ;;  %v2030_v24 = vor.u32 %v2028_v17, %v2027_v11  ;;  %v2040_v26 = vshrl.u32 %v2023_v12, 16  ;;  %v2034_v28 = vrot.slane %v2032_v14, 7 }
 0x133   : > { %v955_v27 = vpack.c.bf16 %v933_v19, %v932_v7  ;;  %v1999_v29 = vor.u32 %v1997_v21, %v1995_v40  ;;  %v2043_v30 = vshll.u32 %v2023_v12, 16  ;;  %v2016_v35 = vsel %vm1877_vm5, %v2013_v55, %v2015_v25 }
 0x134   : > { %v954_v31 = vpack.c.bf16 %v931_v23, %v930_v15  ;;  %v2050_v32 = vmax.bf16 %v2030_v24, %v2020_v10  ;;  %v11713_v33 = vpop.f32.mrb[28].mxu0  ;;  %v2042_v36 = vrot.slane %v2040_v26, 7  ;;  %v2037_v38 = vor.u32 %v2035_v20, %v2034_v28  ;;  %v11753_v48 = vpop.f32.mrb[28].mxu1  ;;  %v13526_v23 = vld [vmem:[#allocation2 + $0x38] sm:$0xf0] }
 0x135   : > { %973 = vst.msk [vmem:[#allocation2 + $0x68] sm:$0xff] %vm674_vm0, %v955_v27  ;;  %v884_v1 = vadd.f32 %v11713_v33, %v13369_v59  ;;  %v875_v39 = vpop.f32.mrb[29].mxu0  ;;  %v2005_v41 = vmax.bf16 %v1999_v29, %v1975_v34  ;;  %v1297_v42 = vadd.f32 %v11749_v6, %v13369_v59  ;;  %v1289_v40 = vadd.f32 %v13369_v59, %v1288_v13  ;;  %v1304_v56 = vpop.f32.mrb[29].mxu1  ;;  %v13532_v29 = vld [vmem:[#allocation2 + $0x40] sm:$0xff] }
 0x136   : > { %972 = vst.msk [vmem:[#allocation2 + $0x60] sm:$0xff] %vm674_vm0, %v954_v31  ;;  %v2057_v44 = vrot.slane %v2050_v32, 6  ;;  %v876_v45 = vadd.f32 %v13369_v59, %v875_v39  ;;  %v11714_v46 = vpop.f32.mrb[30].mxu0  ;;  %v2045_v47 = vor.u32 %v2043_v30, %v2042_v36  ;;  %v2038_v49 = vsel %vm16329_vm6, %v2027_v11, %v2037_v38  ;;  %v11754_v37 = vpop.f32.mrb[30].mxu1  ;;  %v13537_v36 = vld [vmem:[#allocation2 + $0x48] sm:$0x7] }
 0x137   : > { %v936_v51 = vmax.f32 %v884_v1, 0.0  ;;  %v887_v52 = vadd.f32 %v11714_v46, %v13369_v59  ;;  %v2022_v54 = vmax.bf16 %v2016_v35, %v2005_v41  ;;  %v878_v55 = vpop.f32.mrb[31].mxu0  ;;  %v2051_v57 = vmax.bf16 %v2038_v49, %v2021_v50  ;;  %v1307_v5 = vpop.f32.mrb[31].mxu1 }
 0x138   : > { %v934_v60 = vmax.f32 %v876_v45, 0.0  ;;  %v2046_v61 = vsel %vm16329_vm6, %v2034_v28, %v2045_v47  ;;  %v879_v62 = vadd.f32 %v13369_v59, %v878_v55  ;;  %v1361_v2 = vmax.f32 %v1297_v42, 0.0 }
 0x139   : > { %v937_v63 = vmax.f32 %v887_v52, 0.0  ;;  %v2052_v0 = vmax.bf16 %v2046_v61, %v2022_v54  ;;  %v1359_v3 = vmax.f32 %v1289_v40, 0.0  ;;  %v2058_v6 = vrot.slane %v2051_v57, 6 }
 0x13a   : > { %v935_v7 = vmax.f32 %v879_v62, 0.0  ;;  %v1300_v8 = vadd.f32 %v11750_v18, %v13369_v59  ;;  %v1292_v9 = vadd.f32 %v13369_v59, %v1291_v22  ;;  %v1313_v12 = vadd.f32 %v11753_v48, %v13369_v59 }
 0x13b   : > { %v957_v10 = vpack.c.bf16 %v937_v63, %v936_v51  ;;  %v2060_v11 = vrot.slane %v2052_v0, 6  ;;  %v1305_v13 = vadd.f32 %v13369_v59, %v1304_v56  ;;  %v2059_v15 = vsel %vm2056_vm9, %v2057_v44, %v2058_v6  ;;  %v2162_v44 = vld [vmem:[#allocation2 + $0x48] sm:$0xf8]  ;;  %v13548_v56 = vld [vmem:[#allocation2 + $0x50] sm:$0xff] }
 0x13c   : > { %v956_v16 = vpack.c.bf16 %v935_v7, %v934_v60  ;;  %v11717_v50 = vpop.f32.mrb[32].mxu0  ;;  %v1362_v17 = vmax.f32 %v1300_v8, 0.0  ;;  %v1360_v19 = vmax.f32 %v1292_v9, 0.0  ;;  %11808 = vmatpush3.bf16.msra.mxu1 %v2059_v15  ;;  %v1365_v21 = vmax.f32 %v1313_v12, 0.0  ;;  %v11757_v30 = vpop.f32.mrb[32].mxu1 }
 0x13d   : > { %975 = vst.msk [vmem:[#allocation2 + $0x78] sm:$0xff] %vm674_vm0, %v957_v10  ;;  %v2061_v14 = vsel %vm2056_vm9, %v2058_v6, %v2060_v11  ;;  %v900_v18 = vadd.f32 %v11717_v50, %v13369_v59  ;;  %v891_v20 = vpop.f32.mrb[33].mxu0  ;;  %v1363_v22 = vmax.f32 %v1305_v13, 0.0  ;;  %11809 = vmatprep.subr.bf16.mxu1 %v16339_v53  ;;  %v1316_v34 = vadd.f32 %v11754_v37, %v13369_v59  ;;  %v1320_v38 = vpop.f32.mrb[33].mxu1 }
 0x13e   : > { %v2064_v24 = vsel %vm16330_vm7, %v2061_v14, 0  ;;  %974 = vst.msk [vmem:[#allocation2 + $0x70] sm:$0xff] %vm674_vm0, %v956_v16  ;;  %v892_v25 = vadd.f32 %v13369_v59, %v891_v20  ;;  %v1384_v26 = vpack.c.bf16 %v1362_v17, %v1361_v2  ;;  %v11718_v27 = vpop.f32.mrb[34].mxu0  ;;  %v1383_v28 = vpack.c.bf16 %v1360_v19, %v1359_v3  ;;  %v11758_v45 = vpop.f32.mrb[34].mxu1 }
 0x13f   : > { %v940_v31 = vmax.f32 %v900_v18, 0.0  ;;  %v903_v32 = vadd.f32 %v11718_v27, %v13369_v59  ;;  %v894_v33 = vpop.f32.mrb[35].mxu0  ;;  %v1308_v35 = vadd.f32 %v13369_v59, %v1307_v5  ;;  %v2134_v41 = vshrl.u32 %v13526_v23, 16  ;;  %v1323_v49 = vpop.f32.mrb[35].mxu1 }
 0x140   : > { %v938_v1 = vmax.f32 %v892_v25, 0.0  ;;  %1402 = vst.msk [vmem:[#allocation2 + $0xf8] sm:$0xff] %vm674_vm0, %v1384_v26  ;;  %1401 = vst.msk [vmem:[#allocation2 + $0xf0] sm:$0xff] %vm674_vm0, %v1383_v28  ;;  %v895_v39 = vadd.f32 %v13369_v59, %v894_v33  ;;  %v2136_v42 = vshll.u32 %v13526_v23, 16  ;;  %11810 = vmatpush3.bf16.msra.mxu1 %v2064_v24  ;;  %v1366_v47 = vmax.f32 %v1316_v34, 0.0 }
 0x141   : > { %v941_v46 = vmax.f32 %v903_v32, 0.0  ;;  %v1364_v40 = vmax.f32 %v1308_v35, 0.0  ;;  %v2141_v48 = vshll.u32 %v13532_v29, 16  ;;  %11815 = vmatprep.subr.bf16.mxu1 %v16339_v53  ;;  %v2145_v54 = vshrl.u32 %v13532_v29, 16  ;;  %v2164_v24 = vld [vmem:[#allocation2 + $0x58] sm:$0x1] }
 0x142   : > { %v939_v51 = vmax.f32 %v895_v39, 0.0  ;;  %v2138_v52 = vrot.slane %v2136_v42, 1  ;;  %v2149_v55 = vshll.u32 %v13537_v36, 16  ;;  %v1386_v60 = vpack.c.bf16 %v1366_v47, %v1365_v21 }
 0x143   : > { %v959_v57 = vpack.c.bf16 %v941_v46, %v940_v31  ;;  %v1385_v61 = vpack.c.bf16 %v1364_v40, %v1363_v22  ;;  %v2143_v62 = vrot.slane %v2141_v48, 1  ;;  %11812 = vmatmul.mubr.msk.bf16.vlgmr.msra.gmra.mrb[40].mxu1 %vm1913_vm8, %v13414_v4  ;;  %v2168_v2 = vrot.slane %v2162_v44, 7  ;;  %v2131_v48 = vld [vmem:[#allocation2 + $0x48] sm:$0x3] }
 0x144   : > { %v958_v37 = vpack.c.bf16 %v939_v51, %v938_v1  ;;  %v2139_v63 = vor.u32 %v2138_v52, %v2134_v41  ;;  %v2151_v0 = vrot.slane %v2149_v55, 1  ;;  %v11765_v3 = vpop.f32.mrb[36].mxu0  ;;  %1404 = vst.msk [vmem:[#allocation2 + $0x108] sm:$0xff] %vm674_vm0, %v1386_v60  ;;  %v2169_v6 = vrot.slane %v13548_v56, 7  ;;  %11819 = vmatprep.mubr.msk.bf16.mxu1 %vm13106_vm1, %v16339_v53 }
 0x145   : > { %977 = vst.msk [vmem:[#allocation2 + $0x88] sm:$0xff] %vm674_vm0, %v959_v57  ;;  %1403 = vst.msk [vmem:[#allocation2 + $0x100] sm:$0xff] %vm674_vm0, %v1385_v61  ;;  %v2147_v5 = vor.u32 %v2145_v54, %v2143_v62  ;;  %v2181_v7 = vshrl.u32 %v2162_v44, 16  ;;  %v2184_v8 = vshll.u32 %v2162_v44, 16  ;;  %v1621_v9 = vpop.f32.mrb[37].mxu0  ;;  %v2188_v11 = vshrl.u32 %v13548_v56, 16 }
 0x146   : > { %976 = vst.msk [vmem:[#allocation2 + $0x80] sm:$0xff] %vm674_vm0, %v958_v37  ;;  %v2144_v10 = vsel %vm1851_vm4, %v2139_v63, %v2143_v62  ;;  %v2191_v12 = vshll.u32 %v13548_v56, 16  ;;  %v1329_v13 = vadd.f32 %v11757_v30, %v13369_v59  ;;  %v11766_v15 = vpop.f32.mrb[38].mxu0  ;;  %v2170_v17 = vsel %vm1877_vm5, %v2168_v2, %v2169_v6  ;;  %v2179_v30 = vld [vmem:[#allocation2 + $0x58] sm:$0x3] }
 0x147   : > { %v2152_v16 = vsel %vm1851_vm4, %v2147_v5, %v2151_v0  ;;  %v2159_v50 = vmax.bf16 %v2144_v10, %v13526_v23  ;;  %v2183_v19 = vrot.slane %v2181_v7, 7  ;;  %v1624_v14 = vpop.f32.mrb[39].mxu0  ;;  %v2190_v20 = vrot.slane %v2188_v11, 7 }
 0x148   : > { %v2160_v18 = vmax.bf16 %v2152_v16, %v13532_v29  ;;  %v1369_v21 = vmax.f32 %v1329_v13, 0.0  ;;  %v1321_v22 = vadd.f32 %v13369_v59, %v1320_v38  ;;  %v1332_v27 = vadd.f32 %v11758_v45, %v13369_v59  ;;  %v13586_v13 = vld [vmem:[#allocation2 + $0x60] sm:$0xff] }
 0x149   : > { %v2176_v25 = vmax.bf16 %v2168_v2, %v2159_v50  ;;  %v2186_v26 = vor.u32 %v2184_v8, %v2183_v19  ;;  %v1324_v28 = vadd.f32 %v13369_v59, %v1323_v49  ;;  %v2193_v23 = vor.u32 %v2191_v12, %v2190_v20  ;;  %v13581_v8 = vld [vmem:[#allocation2 + $0x58] sm:$0xfc] }
 0x14a   : > { %v2177_v31 = vmax.bf16 %v2170_v17, %v2160_v18  ;;  %v1367_v32 = vmax.f32 %v1321_v22, 0.0  ;;  %v2153_v33 = vshrl.u32 %v13537_v36, 16  ;;  %v1370_v35 = vmax.f32 %v1332_v27, 0.0  ;;  %v2312_v18 = vld [vmem:[#allocation2 + $0x70] sm:$0x7f] }
 0x14b   : > { %v2206_v34 = vmax.bf16 %v2186_v26, %v2176_v25  ;;  %v1368_v29 = vmax.f32 %v1324_v28, 0.0  ;;  %v2171_v1 = vrot.slane %v2164_v24, 7  ;;  %v2194_v39 = vsel %vm16329_vm6, %v2183_v19, %v2193_v23  ;;  %v2286_v19 = vld [vmem:[#allocation2 + $0x68] sm:$0x1] }
 0x14c   : > { %v2155_v38 = vor.u32 %v2153_v33, %v2151_v0  ;;  %v2196_v41 = vshrl.u32 %v2179_v30, 16  ;;  %v2199_v42 = vshll.u32 %v2179_v30, 16  ;;  %v11769_v44 = vpop.f32.mrb[40].mxu0  ;;  %v2207_v46 = vmax.bf16 %v2194_v39, %v2177_v31 }
 0x14d   : > { %v2213_v45 = vrot.slane %v2206_v34, 4  ;;  %v1388_v47 = vpack.c.bf16 %v1370_v35, %v1369_v21  ;;  %v1387_v40 = vpack.c.bf16 %v1368_v29, %v1367_v32  ;;  %v1637_v49 = vpop.f32.mrb[41].mxu0  ;;  %v2172_v52 = vsel %vm1877_vm5, %v2169_v6, %v2171_v1  ;;  %v2322_v34 = vld [vmem:[#allocation2 + $0x70] sm:$0xff] }
 0x14e   : > { %v2161_v51 = vmax.bf16 %v2155_v38, %v2131_v48  ;;  %v2198_v36 = vrot.slane %v2196_v41, 7  ;;  %v1630_v54 = vadd.f32 %v11765_v3, %v13369_v59  ;;  %v11770_v55 = vpop.f32.mrb[42].mxu0  ;;  %v2214_v56 = vrot.slane %v2207_v46, 4 }
 0x14f   : > { %1406 = vst.msk [vmem:[#allocation2 + $0x118] sm:$0xff] %vm674_vm0, %v1388_v47  ;;  %1405 = vst.msk [vmem:[#allocation2 + $0x110] sm:$0xff] %vm674_vm0, %v1387_v40  ;;  %v1622_v57 = vadd.f32 %v13369_v59, %v1621_v9  ;;  %v1633_v60 = vadd.f32 %v11766_v15, %v13369_v59  ;;  %v1625_v61 = vadd.f32 %v13369_v59, %v1624_v14  ;;  %v1640_v62 = vpop.f32.mrb[43].mxu0  ;;  %v2311_v14 = vld [vmem:[#allocation2 + $0x68] sm:$0xfe]  ;;  %v2290_v24 = vshll.u32 %v13581_v8, 16 }
 0x150   : > { %v2178_v37 = vmax.bf16 %v2172_v52, %v2161_v51  ;;  %v2201_v63 = vor.u32 %v2199_v42, %v2198_v36  ;;  %v1766_v0 = vmax.f32 %v1630_v54, 0.0  ;;  %v1646_v2 = vadd.f32 %v11769_v44, %v13369_v59  ;;  %v13606_v54 = vld [vmem:[%s16370_s2] ss:$0 sm:$0xff] }
 0x151   : > { %v2215_v3 = vsel %vm2212_vm10, %v2213_v45, %v2214_v56  ;;  %v1764_v5 = vmax.f32 %v1622_v57, 0.0  ;;  %v1767_v6 = vmax.f32 %v1633_v60, 0.0  ;;  %v1765_v7 = vmax.f32 %v1625_v61, 0.0 }
 0x152   : > { %11816 = vmatpush3.bf16.msra.mxu1 %v2215_v3  ;;  %v2202_v9 = vsel %vm16329_vm6, %v2190_v20, %v2201_v63  ;;  %v1770_v10 = vmax.f32 %v1646_v2, 0.0  ;;  %v1638_v11 = vadd.f32 %v13369_v59, %v1637_v49  ;;  %v1649_v12 = vadd.f32 %v11770_v55, %v13369_v59  ;;  %v13618_v3 = vld [vmem:[#allocation2 + $0x80] sm:$0x7f] }
 0x153   : > { %11817 = vmatprep.subr.bf16.mxu1 %v16339_v53  ;;  %v2208_v15 = vmax.bf16 %v2202_v9, %v2178_v37  ;;  %v1801_v16 = vpack.c.bf16 %v1767_v6, %v1766_v0  ;;  %v1800_v50 = vpack.c.bf16 %v1765_v7, %v1764_v5  ;;  %v1641_v17 = vadd.f32 %v13369_v59, %v1640_v62  ;;  %v13612_v62 = vld [vmem:[#allocation2 + $0x78] sm:$0xff] }
 0x154   : > { %v1768_v21 = vmax.f32 %v1638_v11, 0.0  ;;  %v1771_v22 = vmax.f32 %v1649_v12, 0.0  ;;  %v2288_v20 = vshrl.u32 %v13581_v8, 16  ;;  %v11773_v25 = vpop.f32.mrb[44].mxu0  ;;  %v2295_v28 = vshll.u32 %v13586_v13, 16 }
 0x155   : > { %v2216_v26 = vrot.slane %v2208_v15, 4  ;;  %1819 = vst.msk [vmem:[#allocation2 + $0x128] sm:$0xff] %vm674_vm0, %v1801_v16  ;;  %1818 = vst.msk [vmem:[#allocation2 + $0x120] sm:$0xff] %vm674_vm0, %v1800_v50  ;;  %v1769_v27 = vmax.f32 %v1641_v17, 0.0  ;;  %v2299_v59 = vshrl.u32 %v13586_v13, 16  ;;  %v1653_v30 = vpop.f32.mrb[45].mxu0  ;;  %v1662_v55 = vadd.f32 %v13606_v54, %v11773_v25 }
 0x156   : > { %v1803_v31 = vpack.c.bf16 %v1771_v22, %v1770_v10  ;;  %v2292_v23 = vrot.slane %v2290_v24, 1  ;;  %v2303_v32 = vshll.u32 %v2286_v19, 16  ;;  %v2315_v33 = vrot.slane %v2311_v14, 7  ;;  %v11774_v35 = vpop.f32.mrb[46].mxu0  ;;  %v2432_v10 = vld [vmem:[#allocation2 + $0x80] sm:$0x80] }
 0x157   : > { %v2217_v29 = vsel %vm2212_vm10, %v2214_v56, %v2216_v26  ;;  %v1802_v1 = vpack.c.bf16 %v1769_v27, %v1768_v21  ;;  %v2297_v39 = vrot.slane %v2295_v28, 1  ;;  %v2316_v38 = vrot.slane %v2312_v18, 7  ;;  %v1656_v41 = vpop.f32.mrb[47].mxu0  ;;  %v2433_v50 = vld [vmem:[#allocation2 + $0x88] sm:$0xff] }
 0x158   : > { %v2220_v42 = vsel %vm16330_vm7, %v2217_v29, 0  ;;  %1821 = vst.msk [vmem:[#allocation2 + $0x138] sm:$0xff] %vm674_vm0, %v1803_v31  ;;  %v2293_v44 = vor.u32 %v2292_v23, %v2288_v20  ;;  %v2305_v46 = vrot.slane %v2303_v32, 1  ;;  %v2324_v45 = vshrl.u32 %v2311_v14, 16 }
 0x159   : > { %11818 = vmatpush3.bf16.msra.mxu1 %v2220_v42  ;;  %1820 = vst.msk [vmem:[#allocation2 + $0x130] sm:$0xff] %vm674_vm0, %v1802_v1  ;;  %v2301_v47 = vor.u32 %v2299_v59, %v2297_v39  ;;  %v2317_v40 = vsel %vm1877_vm5, %v2315_v33, %v2316_v38  ;;  %v2327_v48 = vshll.u32 %v2311_v14, 16  ;;  %v2331_v49 = vshrl.u32 %v2322_v34, 16  ;;  %v2447_v38 = vld [vmem:[#allocation2 + $0x90] sm:$0x3f] }
 0x15a   : > { %11823 = vmatprep.subr.bf16.mxu1 %v16339_v53  ;;  %v2298_v51 = vsel %vm1851_vm4, %v2293_v44, %v2297_v39  ;;  %v2326_v52 = vrot.slane %v2324_v45, 7  ;;  %v2334_v36 = vshll.u32 %v2322_v34, 16  ;;  %v1654_v61 = vadd.f32 %v13606_v54, %v1653_v30  ;;  %v2434_v39 = vld [vmem:[#allocation2 + $0x90] sm:$0x1f] }
 0x15b   : > { %v2306_v56 = vsel %vm1851_vm4, %v2301_v47, %v2305_v46  ;;  %v2309_v57 = vmax.bf16 %v2298_v51, %v13581_v8  ;;  %v2333_v60 = vrot.slane %v2331_v49, 7  ;;  %v1774_v0 = vmax.f32 %v1662_v55, 0.0 }
 0x15c   : > { %11820 = vmatmul.mubr.msk.bf16.vlgmr.msra.gmra.mrb[44].mxu1 %vm1913_vm8, %v13414_v4  ;;  %v2310_v37 = vmax.bf16 %v2306_v56, %v13586_v13  ;;  %v2329_v63 = vor.u32 %v2327_v48, %v2326_v52  ;;  %v1665_v2 = vadd.f32 %v13606_v54, %v11774_v35  ;;  %v11777_v5 = vpop.f32.mrb[48].mxu0  ;;  %v1772_v8 = vmax.f32 %v1654_v61, 0.0 }
 0x15d   : > { %v2320_v6 = vmax.bf16 %v2315_v33, %v2309_v57  ;;  %v2336_v7 = vor.u32 %v2334_v36, %v2333_v60  ;;  %v1657_v9 = vadd.f32 %v13606_v54, %v1656_v41  ;;  %11827 = vmatprep.mubr.msk.bf16.mxu1 %vm13106_vm1, %v16339_v53  ;;  %v1669_v11 = vpop.f32.mrb[49].mxu0  ;;  %v2414_v13 = vshrl.u32 %v13612_v62, 16  ;;  %v13643_v57 = vld [vmem:[#allocation2 + $0x90] sm:$0xc0] }
 0x15e   : > { %v2321_v12 = vmax.bf16 %v2317_v40, %v2310_v37  ;;  %v1775_v15 = vmax.f32 %v1665_v2, 0.0  ;;  %v2416_v16 = vshll.u32 %v13612_v62, 16  ;;  %v11778_v17 = vpop.f32.mrb[50].mxu0  ;;  %v2421_v21 = vshll.u32 %v13618_v3, 16 }
 0x15f   : > { %v2337_v19 = vsel %vm16329_vm6, %v2326_v52, %v2336_v7  ;;  %v2340_v14 = vmax.bf16 %v2329_v63, %v2320_v6  ;;  %v1773_v18 = vmax.f32 %v1657_v9, 0.0  ;;  %v1672_v22 = vpop.f32.mrb[51].mxu0  ;;  %v2438_v26 = vrot.slane %v2432_v10, 7  ;;  %v2559_v9 = vld [vmem:[#allocation2 + $0xa0] sm:$0xe0] }
 0x160   : > { %v2341_v20 = vmax.bf16 %v2337_v19, %v2321_v12  ;;  %v1805_v24 = vpack.c.bf16 %v1775_v15, %v1774_v0  ;;  %v2418_v25 = vrot.slane %v2416_v16, 1  ;;  %v2423_v59 = vrot.slane %v2421_v21, 1  ;;  %v13648_v0 = vld [vmem:[#allocation2 + $0x98] sm:$0xff] }
 0x161   : > { %v2345_v27 = vrot.slane %v2340_v14, 2  ;;  %v1804_v28 = vpack.c.bf16 %v1773_v18, %v1772_v8  ;;  %v2439_v30 = vrot.slane %v2433_v50, 7  ;;  %v2449_v32 = vshrl.u32 %v2432_v10, 16  ;;  %v13653_v8 = vld [vmem:[#allocation2 + $0xa0] sm:$0x1f] }
 0x162   : > { %v2346_v31 = vrot.slane %v2341_v20, 2  ;;  %1823 = vst.msk [vmem:[#allocation2 + $0x148] sm:$0xff] %vm674_vm0, %v1805_v24  ;;  %v2419_v23 = vor.u32 %v2418_v25, %v2414_v13  ;;  %v2453_v33 = vshrl.u32 %v2433_v50, 16  ;;  %v2456_v35 = vshll.u32 %v2433_v50, 16  ;;  %v13661_v20 = vld [vmem:[#allocation2 + $0xa8] sm:$0xff] }
 0x163   : > { %1822 = vst.msk [vmem:[#allocation2 + $0x140] sm:$0xff] %vm674_vm0, %v1804_v28  ;;  %v2440_v34 = vsel %vm1877_vm5, %v2438_v26, %v2439_v30  ;;  %v1678_v29 = vadd.f32 %v13606_v54, %v11777_v5  ;;  %v1670_v1 = vadd.f32 %v13606_v54, %v1669_v11  ;;  %v2451_v46 = vrot.slane %v2449_v32, 7  ;;  %v2411_v11 = vld [vmem:[#allocation2 + $0x80] sm:$0x3f] }
 0x164   : > { %v2347_v41 = vsel %vm16330_vm7, %v2345_v27, %v2346_v31  ;;  %v2350_v42 = vsel %vm16330_vm7, %v2346_v31, 0  ;;  %v2424_v44 = vsel %vm1851_vm4, %v2419_v23, %v2423_v59  ;;  %v13635_v45 = vpop.f32.mrb[52].mxu0  ;;  %v2455_v40 = vrot.slane %v2453_v33, 7 }
 0x165   : > { %11824 = vmatpush3.bf16.msra.mxu1 %v2347_v41  ;;  %v2430_v47 = vmax.bf16 %v2424_v44, %v13612_v62  ;;  %v1778_v48 = vmax.f32 %v1678_v29, 0.0  ;;  %v1776_v49 = vmax.f32 %v1670_v1, 0.0  ;;  %v13638_v51 = vpop.f32.mrb[53].mxu0  ;;  %v1681_v52 = vadd.f32 %v13606_v54, %v11778_v17 }
 0x166   : > { %11825 = vmatprep.subr.bf16.mxu1 %v16339_v53  ;;  %v2425_v36 = vshrl.u32 %v13618_v3, 16  ;;  %v2441_v55 = vrot.slane %v2434_v39, 7  ;;  %v2461_v56 = vshrl.u32 %v2447_v38, 16  ;;  %v13645_v60 = vpop.f32.mrb[54].mxu0  ;;  %v2458_v37 = vor.u32 %v2456_v35, %v2455_v40 }
 0x167   : > { %v2445_v61 = vmax.bf16 %v2440_v34, %v2430_v47  ;;  %v2464_v62 = vshll.u32 %v2447_v38, 16  ;;  %v1673_v63 = vadd.f32 %v13606_v54, %v1672_v22  ;;  %v13650_v2 = vpop.f32.mrb[55].mxu0  ;;  %v1779_v5 = vmax.f32 %v1681_v52, 0.0  ;;  %v13695_v52 = vld [vmem:[#allocation2 + $0x110] sm:$0xff] }
 0x168   : > { %v2427_v6 = vor.u32 %v2425_v36, %v2423_v59  ;;  %v2442_v7 = vsel %vm1877_vm5, %v2439_v30, %v2441_v55  ;;  %v2463_v3 = vrot.slane %v2461_v56, 7  ;;  %v2459_v10 = vsel %vm16329_vm6, %v2451_v46, %v2458_v37 }
 0x169   : > { %11826 = vmatpush3.bf16.msra.mxu1 %v2350_v42  ;;  %v1777_v12 = vmax.f32 %v1673_v63, 0.0  ;;  %v2531_v15 = vshrl.u32 %v13643_v57, 16  ;;  %v2533_v13 = vshll.u32 %v13643_v57, 16  ;;  %v2470_v16 = vmax.bf16 %v2459_v10, %v2445_v61  ;;  %v13710_v63 = vld [vmem:[#allocation2 + $0x118] sm:$0x1f] }
 0x16a   : > { %11831 = vmatprep.subr.bf16.mxu1 %v16339_v53  ;;  %v1807_v50 = vpack.c.bf16 %v1779_v5, %v1778_v48  ;;  %v2431_v17 = vmax.bf16 %v2427_v6, %v2411_v11  ;;  %v2466_v19 = vor.u32 %v2464_v62, %v2463_v3  ;;  %v2538_v21 = vshll.u32 %v13648_v0, 16  ;;  %v3097_v6 = vld [vmem:[#allocation2 + $0x118] sm:$0xe0] }
 0x16b   : > { %v1806_v14 = vpack.c.bf16 %v1777_v12, %v1776_v49  ;;  %v2535_v18 = vrot.slane %v2533_v13, 1  ;;  %v2542_v22 = vshrl.u32 %v13648_v0, 16  ;;  %v2546_v26 = vshll.u32 %v13653_v8, 16  ;;  %v13693_v49 = vld [vmem:[#allocation2 + $0x108] sm:$0xc0] }
 0x16c   : > { %11828 = vmatmul.mubr.msk.bf16.vlgmr.msra.gmra.mrb[48].mxu1 %vm1913_vm8, %v13414_v4  ;;  %1825 = vst.msk [vmem:[#allocation2 + $0x158] sm:$0xff] %vm674_vm0, %v1807_v50  ;;  %v2446_v24 = vmax.bf16 %v2442_v7, %v2431_v17  ;;  %v2467_v25 = vsel %vm16329_vm6, %v2455_v40, %v2466_v19  ;;  %v2565_v27 = vrot.slane %v2559_v9, 7  ;;  %v13668_v28 = vpop.f32.mrb[56].mxu0  ;;  %v2540_v30 = vrot.slane %v2538_v21, 1  ;;  %v13724_v50 = vld [vmem:[#allocation2 + $0x120] sm:$0xff] }
 0x16d   : > { %11832 = vmatpush3.bf16.msra.mxu1 %v2470_v16  ;;  %1824 = vst.msk [vmem:[#allocation2 + $0x150] sm:$0xff] %vm674_vm0, %v1806_v14  ;;  %11835 = vmatprep.mubr.msk.bf16.mxu1 %vm13106_vm1, %v16339_v53  ;;  %v2536_v59 = vor.u32 %v2535_v18, %v2531_v15  ;;  %v2566_v31 = vrot.slane %v13661_v20, 7  ;;  %v2578_v23 = vshrl.u32 %v2559_v9, 16  ;;  %v13674_v32 = vpop.f32.mrb[57].mxu0  ;;  %v13677_v34 = vrot.slane %v2546_v26, 1 }
 0x16e   : > { %11833 = vmatprep.subr.bf16.mxu1 %v16339_v53  ;;  %v2471_v33 = vmax.bf16 %v2467_v25, %v2446_v24  ;;  %v2581_v35 = vshll.u32 %v2559_v9, 16  ;;  %v2585_v29 = vshrl.u32 %v13661_v20, 16  ;;  %v13680_v1 = vpop.f32.mrb[58].mxu0  ;;  %v2544_v38 = vor.u32 %v2542_v22, %v2540_v30 }
 0x16f   : > { %v2541_v39 = vsel %vm1851_vm4, %v2536_v59, %v2540_v30  ;;  %v2567_v41 = vsel %vm1877_vm5, %v2565_v27, %v2566_v31  ;;  %v2580_v42 = vrot.slane %v2578_v23, 7  ;;  %v13686_v44 = vpop.f32.mrb[59].mxu0  ;;  %v2588_v48 = vshll.u32 %v13661_v20, 16 }
 0x170   : > { %v2473_v46 = vsel %vm16330_vm7, %v2471_v33, 0  ;;  %v2556_v47 = vmax.bf16 %v2541_v39, %v13643_v57  ;;  %v13690_v40 = vrot.slane %v2585_v29, 7  ;;  %v2549_v36 = vsel %vm1851_vm4, %v2544_v38, %v13677_v34  ;;  %v2561_v39 = vld [vmem:[#allocation2 + $0xb0] sm:$0x7] }
 0x171   : > { %11834 = vmatpush3.bf16.msra.mxu1 %v2473_v46  ;;  %v2583_v55 = vor.u32 %v2581_v35, %v2580_v42  ;;  %v13701_v56 = vadd.f32 %v13606_v54, %v13635_v45  ;;  %v13705_v57 = vadd.f32 %v13606_v54, %v13638_v51  ;;  %v2557_v61 = vmax.bf16 %v2549_v36, %v13648_v0 }
 0x172   : > { %11839 = vmatprep.subr.bf16.mxu1 %v16339_v53  ;;  %v2573_v37 = vmax.bf16 %v2565_v27, %v2556_v47  ;;  %v2590_v62 = vor.u32 %v2588_v48, %v13690_v40  ;;  %v3069_v5 = vshrl.u32 %v13693_v49, 16  ;;  %v3071_v3 = vshll.u32 %v13693_v49, 16  ;;  %v2576_v47 = vld [vmem:[#allocation2 + $0xb0] sm:$0xf] }
 0x173   : > { %v1782_v7 = vmax.f32 %v13701_v56, 0.0  ;;  %v1780_v45 = vmax.f32 %v13705_v57, 0.0  ;;  %v3076_v51 = vshll.u32 %v13695_v52, 16  ;;  %v2574_v0 = vmax.bf16 %v2567_v41, %v2557_v61  ;;  %v2528_v61 = vld [vmem:[#allocation2 + $0xa0] sm:$0xf] }
 0x174   : > { %11836 = vmatmul.mubr.msk.bf16.vlgmr.msra.gmra.mrb[52].mxu1 %vm1913_vm8, %v13414_v4  ;;  %v2591_v9 = vsel %vm16329_vm6, %v2580_v42, %v2590_v62  ;;  %v2603_v10 = vmax.bf16 %v2583_v55, %v2573_v37  ;;  %v3080_v11 = vshrl.u32 %v13695_v52, 16  ;;  %v13721_v12 = vpop.f32.mrb[60].mxu0  ;;  %v3073_v15 = vrot.slane %v3071_v3, 1  ;;  %v3099_v3 = vld [vmem:[#allocation2 + $0x128] sm:$0x7] }
 0x175   : > { %v3078_v13 = vrot.slane %v3076_v51, 1  ;;  %v3084_v16 = vshll.u32 %v13710_v63, 16  ;;  %v3103_v17 = vrot.slane %v3097_v6, 7  ;;  %11843 = vmatprep.mubr.msk.bf16.mxu1 %vm13106_vm1, %v16339_v53  ;;  %v13728_v19 = vpop.f32.mrb[61].mxu0  ;;  %v2604_v14 = vmax.bf16 %v2591_v9, %v2574_v0 }
 0x176   : > { %v2609_v18 = vrot.slane %v2603_v10, 6  ;;  %v3104_v21 = vrot.slane %v13724_v50, 7  ;;  %v3116_v22 = vshrl.u32 %v3097_v6, 16  ;;  %v13731_v24 = vpop.f32.mrb[62].mxu0  ;;  %v3074_v25 = vor.u32 %v3073_v15, %v3069_v5  ;;  %v3114_v10 = vld [vmem:[#allocation2 + $0x128] sm:$0xf] }
 0x177   : > { %v3082_v26 = vor.u32 %v3080_v11, %v3078_v13  ;;  %v3086_v27 = vrot.slane %v3084_v16, 1  ;;  %v3119_v59 = vshll.u32 %v3097_v6, 16  ;;  %v13733_v30 = vpop.f32.mrb[63].mxu0  ;;  %v13735_v23 = vrot.slane %v2604_v14, 6 }
 0x178   : > { %v3105_v33 = vsel %vm1877_vm5, %v3103_v17, %v3104_v21  ;;  %v3118_v35 = vrot.slane %v3116_v22, 7  ;;  %v3123_v29 = vshrl.u32 %v13724_v50, 16  ;;  %v3079_v38 = vsel %vm1851_vm4, %v3074_v25, %v3078_v13 }
 0x179   : > { %v3087_v41 = vsel %vm1851_vm4, %v3082_v26, %v3086_v27  ;;  %v3126_v42 = vshll.u32 %v13724_v50, 16  ;;  %v1697_v46 = vadd.f32 %v13606_v54, %v13645_v60  ;;  %v2611_v48 = vsel %vm2056_vm9, %v2609_v18, %v13735_v23 }
 0x17a   : > { %v3094_v36 = vmax.bf16 %v3079_v38, %v13693_v49  ;;  %v3095_v55 = vmax.bf16 %v3087_v41, %v13695_v52  ;;  %v3121_v56 = vor.u32 %v3119_v59, %v3118_v35  ;;  %11840 = vmatpush3.bf16.msra.mxu1 %v2611_v48  ;;  %v13748_v37 = vrot.slane %v3123_v29, 7  ;;  %v3066_v29 = vld [vmem:[#allocation2 + $0x118] sm:$0xf] }
 0x17b   : > { %v1783_v62 = vmax.f32 %v1697_v46, 0.0  ;;  %v2550_v5 = vshrl.u32 %v13653_v8, 16  ;;  %v2568_v6 = vrot.slane %v2561_v39, 7  ;;  %11841 = vmatprep.subr.bf16.mxu1 %v16339_v53  ;;  %v2593_v0 = vshrl.u32 %v2576_v47, 16  ;;  %v2676_v39 = vld [vmem:[#allocation2 + $0xb0] sm:$0xf0] }
 0x17c   : > { %v3111_v60 = vmax.bf16 %v3103_v17, %v3094_v36  ;;  %v3112_v51 = vmax.bf16 %v3105_v33, %v3095_v55  ;;  %v2596_v9 = vshll.u32 %v2576_v47, 16  ;;  %v13752_v49 = vpop.f32.mrb[64].mxu0  ;;  %v3128_v52 = vor.u32 %v3126_v42, %v13748_v37  ;;  %v2677_v42 = vld [vmem:[#allocation2 + $0xb8] sm:$0xff]  ;;  %v13775_v36 = vld [vmem:[#allocation2 + $0xc0] sm:$0x7] }
 0x17d   : > { %v1809_v11 = vpack.c.bf16 %v1783_v62, %v1782_v7  ;;  %v2552_v15 = vor.u32 %v2550_v5, %v13677_v34  ;;  %v2569_v8 = vsel %vm1877_vm5, %v2566_v31, %v2568_v6  ;;  %v13759_v13 = vpop.f32.mrb[65].mxu0  ;;  %v2595_v50 = vrot.slane %v2593_v0, 7  ;;  %v2709_v5 = vld [vmem:[#allocation2 + $0xc0] sm:$0xf8]  ;;  %v2710_v0 = vld [vmem:[#allocation2 + $0xc8] sm:$0xff] }
 0x17e   : > { %v3141_v16 = vmax.bf16 %v3121_v56, %v3111_v60  ;;  %v1689_v17 = vadd.f32 %v13606_v54, %v13650_v2  ;;  %v3088_v14 = vshrl.u32 %v13710_v63, 16  ;;  %v13764_v18 = vpop.f32.mrb[66].mxu0  ;;  %v3129_v22 = vsel %vm16329_vm6, %v3118_v35, %v3128_v52 }
 0x17f   : > { %1827 = vst.msk [vmem:[#allocation2 + $0x168] sm:$0xff] %vm674_vm0, %v1809_v11  ;;  %v2558_v34 = vmax.bf16 %v2552_v15, %v2528_v61  ;;  %v3106_v7 = vrot.slane %v3099_v3, 7  ;;  %v3131_v20 = vshrl.u32 %v3114_v10, 16  ;;  %v13768_v25 = vpop.f32.mrb[67].mxu0  ;;  %v3142_v31 = vmax.bf16 %v3129_v22, %v3112_v51 }
 0x180   : > { %v3147_v26 = vrot.slane %v3141_v16, 6  ;;  %v2598_v59 = vor.u32 %v2596_v9, %v2595_v50  ;;  %v1781_v33 = vmax.f32 %v1689_v17, 0.0  ;;  %v3090_v38 = vor.u32 %v3088_v14, %v3086_v27 }
 0x181   : > { %v2575_v2 = vmax.bf16 %v2569_v8, %v2558_v34  ;;  %v3107_v63 = vsel %vm1877_vm5, %v3104_v21, %v3106_v7  ;;  %v3133_v41 = vrot.slane %v3131_v20, 7  ;;  %v3148_v35 = vrot.slane %v3142_v31, 6 }
 0x182   : > { %v2599_v46 = vsel %vm16329_vm6, %v13690_v40, %v2598_v59  ;;  %v1808_v47 = vpack.c.bf16 %v1781_v33, %v1780_v45  ;;  %v3134_v48 = vshll.u32 %v3114_v10, 16  ;;  %v3096_v56 = vmax.bf16 %v3090_v38, %v3066_v29 }
 0x183   : > { %v2605_v55 = vmax.bf16 %v2599_v46, %v2575_v2  ;;  %v2681_v61 = vshrl.u32 %v2676_v39, 16  ;;  %v2683_v62 = vshll.u32 %v2676_v39, 16  ;;  %v3149_v27 = vsel %vm2056_vm9, %v3147_v26, %v3148_v35 }
 0x184   : > { %1826 = vst.msk [vmem:[#allocation2 + $0x160] sm:$0xff] %vm674_vm0, %v1808_v47  ;;  %v3136_v21 = vor.u32 %v3134_v48, %v3133_v41  ;;  %v2688_v6 = vshll.u32 %v2677_v42, 16  ;;  %v2692_v3 = vshrl.u32 %v2677_v42, 16  ;;  %v11797_v60 = vpop.f32.mrb[68].mxu0  ;;  %11872 = vmatpush3.bf16.msra.mxu0 %v3149_v27  ;;  %v3113_v57 = vmax.bf16 %v3107_v63, %v3096_v56  ;;  %v2711_v48 = vld [vmem:[#allocation2 + $0xd0] sm:$0x1] }
 0x185   : > { %v2612_v40 = vrot.slane %v2605_v55, 6  ;;  %v2685_v45 = vrot.slane %v2683_v62, 1  ;;  %v2696_v51 = vshll.u32 %v13775_v36, 16  ;;  %v13780_v9 = vpop.f32.mrb[69].mxu0  ;;  %11873 = vmatprep.subr.bf16.mxu0 %v16339_v53  ;;  %v2715_v11 = vrot.slane %v2709_v5, 7 }
 0x186   : > { %v3137_v10 = vsel %vm16329_vm6, %v13748_v37, %v3136_v21  ;;  %v2690_v52 = vrot.slane %v2688_v6, 1  ;;  %v2716_v15 = vrot.slane %v2710_v0, 7  ;;  %v11798_v8 = vpop.f32.mrb[70].mxu0  ;;  %v2728_v31 = vshrl.u32 %v2709_v5, 16  ;;  %v2726_v62 = vld [vmem:[#allocation2 + $0xd0] sm:$0x3] }
 0x187   : > { %v2613_v16 = vsel %vm2056_vm9, %v13735_v23, %v2612_v40  ;;  %v3143_v50 = vmax.bf16 %v3137_v10, %v3113_v57  ;;  %v2686_v17 = vor.u32 %v2685_v45, %v2681_v61  ;;  %v2698_v14 = vrot.slane %v2696_v51, 1  ;;  %v13787_v22 = vpop.f32.mrb[71].mxu0  ;;  %v2678_v6 = vld [vmem:[#allocation2 + $0xc0] sm:$0x3]  ;;  %v2826_v51 = vld [vmem:[#allocation2 + $0xd0] sm:$0xfc] }
 0x188   : > { %v2616_v34 = vsel %vm16330_vm7, %v2613_v16, 0  ;;  %v2694_v7 = vor.u32 %v2692_v3, %v2690_v52  ;;  %v2717_v20 = vsel %vm1877_vm5, %v2715_v11, %v2716_v15  ;;  %v2731_v59 = vshll.u32 %v2709_v5, 16  ;;  %v2828_v8 = vld [vmem:[#allocation2 + $0xe0] sm:$0x1] }
 0x189   : > { %11842 = vmatpush3.bf16.msra.mxu1 %v2616_v34  ;;  %v3150_v37 = vrot.slane %v3143_v50, 6  ;;  %v2691_v26 = vsel %vm1851_vm4, %v2686_v17, %v2690_v52  ;;  %v2735_v33 = vshrl.u32 %v2710_v0, 16  ;;  %v2730_v2 = vrot.slane %v2728_v31, 7 }
 0x18a   : > { %11847 = vmatprep.subr.bf16.mxu1 %v16339_v53  ;;  %v2699_v23 = vsel %vm1851_vm4, %v2694_v7, %v2698_v14  ;;  %v2706_v29 = vmax.bf16 %v2691_v26, %v2676_v39  ;;  %v2738_v38 = vshll.u32 %v2710_v0, 16  ;;  %v1710_v47 = vadd.f32 %v13606_v54, %v13668_v28  ;;  %v2827_v0 = vld [vmem:[#allocation2 + $0xd8] sm:$0xff] }
 0x18b   : > { %v3151_v63 = vsel %vm2056_vm9, %v3148_v35, %v3150_v37  ;;  %v2707_v41 = vmax.bf16 %v2699_v23, %v2677_v42  ;;  %v2737_v46 = vrot.slane %v2735_v33, 7  ;;  %v2733_v61 = vor.u32 %v2731_v59, %v2730_v2  ;;  %v2854_v33 = vld [vmem:[#allocation2 + $0xe8] sm:$0x7f] }
 0x18c   : > { %11844 = vmatmul.mubr.msk.bf16.vlgmr.msra.gmra.mrb[56].mxu1 %vm1913_vm8, %v13414_v4  ;;  %v3154_v55 = vsel %vm16330_vm7, %v3151_v63, 0  ;;  %v2723_v56 = vmax.bf16 %v2715_v11, %v2706_v29  ;;  %v1702_v39 = vadd.f32 %v13606_v54, %v13674_v32  ;;  %v1786_v42 = vmax.f32 %v1710_v47, 0.0 }
 0x18d   : > { %11874 = vmatpush3.bf16.msra.mxu0 %v3154_v55  ;;  %v2724_v5 = vmax.bf16 %v2717_v20, %v2707_v41  ;;  %v2740_v35 = vor.u32 %v2738_v38, %v2737_v46  ;;  %v1713_v27 = vadd.f32 %v13606_v54, %v13680_v1  ;;  %11851 = vmatprep.mubr.msk.bf16.mxu1 %vm13106_vm1, %v16339_v53  ;;  %v2700_v3 = vshrl.u32 %v13775_v36, 16  ;;  %v2864_v38 = vld [vmem:[#allocation2 + $0xe8] sm:$0xff] }
 0x18e   : > { %v2753_v28 = vmax.bf16 %v2733_v61, %v2723_v56  ;;  %v1784_v21 = vmax.f32 %v1702_v39, 0.0  ;;  %v2718_v60 = vrot.slane %v2711_v48, 7  ;;  %11887 = vmatprep.subr.bf16.mxu0 %v16339_v53  ;;  %v2743_v57 = vshrl.u32 %v2726_v62, 16 }
 0x18f   : > { %v2741_v32 = vsel %vm16329_vm6, %v2730_v2, %v2740_v35  ;;  %v1787_v40 = vmax.f32 %v1713_v27, 0.0  ;;  %v2746_v45 = vshll.u32 %v2726_v62, 16  ;;  %v2702_v52 = vor.u32 %v2700_v3, %v2698_v14  ;;  %v2853_v14 = vld [vmem:[#allocation2 + $0xe0] sm:$0xfe] }
 0x190   : > { %v2754_v10 = vmax.bf16 %v2741_v32, %v2724_v5  ;;  %v2759_v1 = vrot.slane %v2753_v28, 4  ;;  %v2719_v11 = vsel %vm1877_vm5, %v2716_v15, %v2718_v60  ;;  %11876 = vmatmul.mubr.msk.bf16.vlgmr.msra.gmra.mrb[72].mxu0 %vm1913_vm8, %v13414_v4  ;;  %v2745_v16 = vrot.slane %v2743_v57, 7 }
 0x191   : > { %v1811_v36 = vpack.c.bf16 %v1787_v40, %v1786_v42  ;;  %v1705_v50 = vadd.f32 %v13606_v54, %v13686_v44  ;;  %v2830_v17 = vshrl.u32 %v2826_v51, 16  ;;  %11891 = vmatprep.mubr.msk.bf16.mxu0 %vm13106_vm1, %v16339_v53  ;;  %v2708_v7 = vmax.bf16 %v2702_v52, %v2678_v6 }
 0x192   : > { %v2760_v34 = vrot.slane %v2754_v10, 4  ;;  %v2832_v20 = vshll.u32 %v2826_v51, 16  ;;  %v2837_v31 = vshll.u32 %v2827_v0, 16  ;;  %v2748_v15 = vor.u32 %v2746_v45, %v2745_v16 }
 0x193   : > { %1829 = vst.msk [vmem:[#allocation2 + $0x178] sm:$0xff] %vm674_vm0, %v1811_v36  ;;  %v1785_v37 = vmax.f32 %v1705_v50, 0.0  ;;  %v2841_v26 = vshrl.u32 %v2827_v0, 16  ;;  %v2845_v59 = vshll.u32 %v2828_v8, 16  ;;  %v2725_v29 = vmax.bf16 %v2719_v11, %v2708_v7  ;;  %v2970_v36 = vld [vmem:[#allocation2 + $0xf8] sm:$0x80] }
 0x194   : > { %v2761_v23 = vsel %vm2212_vm10, %v2759_v1, %v2760_v34  ;;  %v2834_v44 = vrot.slane %v2832_v20, 1  ;;  %v2839_v2 = vrot.slane %v2837_v31, 1  ;;  %v2749_v63 = vsel %vm16329_vm6, %v2737_v46, %v2748_v15  ;;  %v2948_v1 = vld [vmem:[#allocation2 + $0xf0] sm:$0xff]  ;;  %v2971_v20 = vld [vmem:[#allocation2 + $0x100] sm:$0xff] }
 0x195   : > { %11848 = vmatpush3.bf16.msra.mxu1 %v2761_v23  ;;  %v1810_v41 = vpack.c.bf16 %v1785_v37, %v1784_v21  ;;  %v2847_v47 = vrot.slane %v2845_v59, 1  ;;  %v2857_v48 = vrot.slane %v2853_v14, 7  ;;  %v2755_v55 = vmax.bf16 %v2749_v63, %v2725_v29 }
 0x196   : > { %11849 = vmatprep.subr.bf16.mxu1 %v16339_v53  ;;  %v2835_v56 = vor.u32 %v2834_v44, %v2830_v17  ;;  %v2843_v61 = vor.u32 %v2841_v26, %v2839_v2  ;;  %v2858_v39 = vrot.slane %v2854_v33, 7  ;;  %v2866_v62 = vshrl.u32 %v2853_v14, 16 }
 0x197   : > { %1828 = vst.msk [vmem:[#allocation2 + $0x170] sm:$0xff] %vm674_vm0, %v1810_v41  ;;  %v2869_v5 = vshll.u32 %v2853_v14, 16  ;;  %v2873_v35 = vshrl.u32 %v2864_v38, 16  ;;  %v2876_v42 = vshll.u32 %v2864_v38, 16  ;;  %v2762_v27 = vrot.slane %v2755_v55, 4 }
 0x198   : > { %v2840_v28 = vsel %vm1851_vm4, %v2835_v56, %v2839_v2  ;;  %v2848_v46 = vsel %vm1851_vm4, %v2843_v61, %v2847_v47  ;;  %v2859_v21 = vsel %vm1877_vm5, %v2857_v48, %v2858_v39  ;;  %v2868_v60 = vrot.slane %v2866_v62, 7  ;;  %v2972_v39 = vld [vmem:[#allocation2 + $0x108] sm:$0x1f] }
 0x199   : > { %v2851_v6 = vmax.bf16 %v2840_v28, %v2826_v51  ;;  %v2852_v3 = vmax.bf16 %v2848_v46, %v2827_v0  ;;  %v2875_v32 = vrot.slane %v2873_v35, 7  ;;  %v2763_v40 = vsel %vm2212_vm10, %v2760_v34, %v2762_v27  ;;  %v2950_v0 = vld [vmem:[#allocation2 + $0xf8] sm:$0x7f]  ;;  %v2985_v62 = vld [vmem:[#allocation2 + $0x108] sm:$0x3f] }
 0x19a   : > { %v1726_v57 = vadd.f32 %v13606_v54, %v13721_v12  ;;  %v1718_v45 = vadd.f32 %v13606_v54, %v13728_v19  ;;  %v1729_v10 = vadd.f32 %v13606_v54, %v13731_v24  ;;  %v2766_v52 = vsel %vm16330_vm7, %v2763_v40, 0  ;;  %v13853_v40 = vld [vmem:[#allocation2 + $0x128] sm:$0xf0] }
 0x19b   : > { %v2862_v11 = vmax.bf16 %v2857_v48, %v2851_v6  ;;  %v2863_v8 = vmax.bf16 %v2859_v21, %v2852_v3  ;;  %v2871_v51 = vor.u32 %v2869_v5, %v2868_v60  ;;  %11850 = vmatpush3.bf16.msra.mxu1 %v2766_v52  ;;  %v2878_v16 = vor.u32 %v2876_v42, %v2875_v32 }
 0x19c   : > { %v1790_v50 = vmax.f32 %v1726_v57, 0.0  ;;  %v1788_v17 = vmax.f32 %v1718_v45, 0.0  ;;  %v1791_v34 = vmax.f32 %v1729_v10, 0.0  ;;  %11855 = vmatprep.subr.bf16.mxu1 %v16339_v53  ;;  %v1721_v19 = vadd.f32 %v13606_v54, %v13733_v30 }
 0x19d   : > { %v2882_v12 = vmax.bf16 %v2871_v51, %v2862_v11  ;;  %v2952_v24 = vshrl.u32 %v2948_v1, 16  ;;  %v2954_v7 = vshll.u32 %v2948_v1, 16  ;;  %v2879_v31 = vsel %vm16329_vm6, %v2868_v60, %v2878_v16 }
 0x19e   : > { %v1813_v14 = vpack.c.bf16 %v1791_v34, %v1790_v50  ;;  %v2959_v15 = vshll.u32 %v2950_v0, 16  ;;  %v2976_v37 = vrot.slane %v2970_v36, 7  ;;  %11852 = vmatmul.mubr.msk.bf16.vlgmr.msra.gmra.mrb[60].mxu1 %vm1913_vm8, %v13414_v4  ;;  %v2883_v26 = vmax.bf16 %v2879_v31, %v2863_v8 }
 0x19f   : > { %v2886_v59 = vrot.slane %v2882_v12, 2  ;;  %v1789_v33 = vmax.f32 %v1721_v19, 0.0  ;;  %v2956_v23 = vrot.slane %v2954_v7, 1  ;;  %11859 = vmatprep.mubr.msk.bf16.mxu1 %vm13106_vm1, %v16339_v53  ;;  %v2977_v29 = vrot.slane %v2971_v20, 7  ;;  %v3247_v7 = vld [vmem:[#allocation2 + $0x138] sm:$0xf8] }
 0x1a0   : > { %1831 = vst.msk [vmem:[#allocation2 + $0x188] sm:$0xff] %vm674_vm0, %v1813_v14  ;;  %v2961_v30 = vrot.slane %v2959_v15, 1  ;;  %v2987_v44 = vshrl.u32 %v2970_v36, 16  ;;  %v2991_v2 = vshrl.u32 %v2971_v20, 16  ;;  %v2887_v38 = vrot.slane %v2883_v26, 2 }
 0x1a1   : > { %v1812_v63 = vpack.c.bf16 %v1789_v33, %v1788_v17  ;;  %v2957_v41 = vor.u32 %v2956_v23, %v2952_v24  ;;  %v2994_v47 = vshll.u32 %v2971_v20, 16  ;;  %v2978_v48 = vsel %vm1877_vm5, %v2976_v37, %v2977_v29  ;;  %v13867_v20 = vld [vmem:[#allocation2 + $0x140] sm:$0xff] }
 0x1a2   : > { %v2989_v55 = vrot.slane %v2987_v44, 7  ;;  %v2993_v56 = vrot.slane %v2991_v2, 7  ;;  %v1742_v61 = vadd.f32 %v13606_v54, %v13752_v49  ;;  %v2888_v5 = vsel %vm16330_vm7, %v2886_v59, %v2887_v38 }
 0x1a3   : > { %v2891_v35 = vsel %vm16330_vm7, %v2887_v38, 0  ;;  %1830 = vst.msk [vmem:[#allocation2 + $0x180] sm:$0xff] %vm674_vm0, %v1812_v63  ;;  %v2962_v42 = vsel %vm1851_vm4, %v2957_v41, %v2961_v30  ;;  %v1734_v27 = vadd.f32 %v13606_v54, %v13759_v13  ;;  %11856 = vmatpush3.bf16.msra.mxu1 %v2888_v5  ;;  %v1745_v49 = vadd.f32 %v13606_v54, %v13764_v18  ;;  %v2949_v13 = vld [vmem:[#allocation2 + $0xf8] sm:$0x3f]  ;;  %v3364_v41 = vld [vmem:[#allocation2 + $0x148] sm:$0xfc] }
 0x1a4   : > { %v2968_v28 = vmax.bf16 %v2962_v42, %v2948_v1  ;;  %v2996_v46 = vor.u32 %v2994_v47, %v2993_v56  ;;  %v1794_v21 = vmax.f32 %v1742_v61, 0.0  ;;  %11857 = vmatprep.subr.bf16.mxu1 %v16339_v53  ;;  %v2963_v3 = vshrl.u32 %v2950_v0, 16  ;;  %v13856_v1 = vld [vmem:[#allocation2 + $0x130] sm:$0xff]  ;;  %v13861_v0 = vld [vmem:[#allocation2 + $0x138] sm:$0x7] }
 0x1a5   : > { %v1792_v6 = vmax.f32 %v1734_v27, 0.0  ;;  %v2979_v60 = vrot.slane %v2972_v39, 7  ;;  %v2999_v32 = vshrl.u32 %v2985_v62, 16  ;;  %v1795_v10 = vmax.f32 %v1745_v49, 0.0  ;;  %v3365_v61 = vld [vmem:[#allocation2 + $0x150] sm:$0xff] }
 0x1a6   : > { %v2983_v57 = vmax.bf16 %v2978_v48, %v2968_v28  ;;  %v2997_v45 = vsel %vm16329_vm6, %v2989_v55, %v2996_v46  ;;  %v3002_v52 = vshll.u32 %v2985_v62, 16  ;;  %v2965_v11 = vor.u32 %v2963_v3, %v2961_v30  ;;  %v3366_v42 = vld [vmem:[#allocation2 + $0x158] sm:$0x1]  ;;  %v3392_v49 = vld [vmem:[#allocation2 + $0x160] sm:$0x7f] }
 0x1a7   : > { %v2980_v8 = vsel %vm1877_vm5, %v2977_v29, %v2979_v60  ;;  %v3001_v18 = vrot.slane %v2999_v32, 7  ;;  %v1737_v51 = vadd.f32 %v13606_v54, %v13768_v25  ;;  %11858 = vmatpush3.bf16.msra.mxu1 %v2891_v35  ;;  %v1815_v16 = vpack.c.bf16 %v1795_v10, %v1794_v21 }
 0x1a8   : > { %v3008_v36 = vmax.bf16 %v2997_v45, %v2983_v57  ;;  %v3219_v50 = vshrl.u32 %v13853_v40, 16  ;;  %v3221_v17 = vshll.u32 %v13853_v40, 16  ;;  %11863 = vmatprep.subr.bf16.mxu1 %v16339_v53  ;;  %v2969_v34 = vmax.bf16 %v2965_v11, %v2949_v13  ;;  %v3391_v57 = vld [vmem:[#allocation2 + $0x158] sm:$0xfe] }
 0x1a9   : > { %v3004_v12 = vor.u32 %v3002_v52, %v3001_v18  ;;  %v1793_v19 = vmax.f32 %v1737_v51, 0.0  ;;  %v3226_v24 = vshll.u32 %v13856_v1, 16  ;;  %1833 = vst.msk [vmem:[#allocation2 + $0x198] sm:$0xff] %vm674_vm0, %v1815_v16  ;;  %v3230_v25 = vshrl.u32 %v13856_v1, 16  ;;  %v3402_v18 = vld [vmem:[#allocation2 + $0x160] sm:$0xff] }
 0x1aa   : > { %v3223_v54 = vrot.slane %v3221_v17, 1  ;;  %v3234_v31 = vshll.u32 %v13861_v0, 16  ;;  %v3253_v14 = vrot.slane %v3247_v7, 7  ;;  %11860 = vmatmul.mubr.msk.bf16.vlgmr.msra.gmra.mrb[64].mxu1 %vm1913_vm8, %v13414_v4  ;;  %v2984_v15 = vmax.bf16 %v2980_v8, %v2969_v34 }
 0x1ab   : > { %v3005_v37 = vsel %vm16329_vm6, %v2993_v56, %v3004_v12  ;;  %v1814_v26 = vpack.c.bf16 %v1793_v19, %v1792_v6  ;;  %v3228_v59 = vrot.slane %v3226_v24, 1  ;;  %11864 = vmatpush3.bf16.msra.mxu1 %v3008_v36  ;;  %11867 = vmatprep.mubr.msk.bf16.mxu1 %vm13106_vm1, %v16339_v53  ;;  %v3254_v30 = vrot.slane %v13867_v20, 7 }
 0x1ac   : > { %v3224_v33 = vor.u32 %v3223_v54, %v3219_v50  ;;  %v13877_v23 = vrot.slane %v3234_v31, 1  ;;  %v3266_v29 = vshrl.u32 %v3247_v7, 16  ;;  %11865 = vmatprep.subr.bf16.mxu1 %v16339_v53  ;;  %v3009_v44 = vmax.bf16 %v3005_v37, %v2984_v15  ;;  %v3249_v37 = vld [vmem:[#allocation2 + $0x148] sm:$0x1] }
 0x1ad   : > { %1832 = vst.msk [vmem:[#allocation2 + $0x190] sm:$0xff] %vm674_vm0, %v1814_v26  ;;  %v3232_v2 = vor.u32 %v3230_v25, %v3228_v59  ;;  %v3269_v38 = vshll.u32 %v3247_v7, 16  ;;  %v3273_v63 = vshrl.u32 %v13867_v20, 16  ;;  %v3255_v48 = vsel %vm1877_vm5, %v3253_v14, %v3254_v30 }
 0x1ae   : > { %v3229_v47 = vsel %vm1851_vm4, %v3224_v33, %v3228_v59  ;;  %v3268_v55 = vrot.slane %v3266_v29, 7  ;;  %v3276_v56 = vshll.u32 %v13867_v20, 16  ;;  %v3011_v39 = vsel %vm16330_vm7, %v3009_v44, 0  ;;  %v3264_v44 = vld [vmem:[#allocation2 + $0x148] sm:$0x3] }
 0x1af   : > { %v3237_v62 = vsel %vm1851_vm4, %v3232_v2, %v13877_v23  ;;  %v3244_v5 = vmax.bf16 %v3229_v47, %v13853_v40  ;;  %v13892_v35 = vrot.slane %v3273_v63, 7  ;;  %11866 = vmatpush3.bf16.msra.mxu1 %v3011_v39  ;;  %v3368_v46 = vshrl.u32 %v3364_v41, 16  ;;  %v3216_v39 = vld [vmem:[#allocation2 + $0x138] sm:$0x3] }
 0x1b0   : > { %v3245_v27 = vmax.bf16 %v3237_v62, %v13856_v1  ;;  %v3271_v28 = vor.u32 %v3269_v38, %v3268_v55  ;;  %v3370_v21 = vshll.u32 %v3364_v41, 16  ;;  %11879 = vmatprep.subr.bf16.mxu1 %v16339_v53  ;;  %v3375_v60 = vshll.u32 %v3365_v61, 16  ;;  %v13036_v38 = vld [vmem:[%s16370_s2] ss:$0 sm:$0xff] }
 0x1b1   : > { %v3261_v6 = vmax.bf16 %v3253_v14, %v3244_v5  ;;  %v3278_v3 = vor.u32 %v3276_v56, %v13892_v35  ;;  %v3379_v32 = vshrl.u32 %v3365_v61, 16  ;;  %v3383_v10 = vshll.u32 %v3366_v42, 16  ;;  %v3486_v5 = vld [vmem:[#allocation2 + $0x168] sm:$0xff] }
 0x1b2   : > { %v3262_v45 = vmax.bf16 %v3255_v48, %v3245_v27  ;;  %v3372_v40 = vrot.slane %v3370_v21, 1  ;;  %v3395_v13 = vrot.slane %v3391_v57, 7  ;;  %11868 = vmatmul.mubr.msk.bf16.vlgmr.msra.gmra.mrb[68].mxu1 %vm1913_vm8, %v13414_v4  ;;  %v3377_v11 = vrot.slane %v3375_v60, 1  ;;  %v3508_v21 = vld [vmem:[#allocation2 + $0x170] sm:$0x80] }
 0x1b3   : > { %v3279_v52 = vsel %vm16329_vm6, %v3268_v55, %v3278_v3  ;;  %v3291_v1 = vmax.bf16 %v3271_v28, %v3261_v6  ;;  %v3396_v8 = vrot.slane %v3392_v49, 7  ;;  %v3385_v16 = vrot.slane %v3383_v10, 1  ;;  %11883 = vmatprep.mubr.msk.bf16.mxu1 %vm13106_vm1, %v16339_v53 }
 0x1b4   : > { %v3292_v51 = vmax.bf16 %v3279_v52, %v3262_v45  ;;  %v3373_v36 = vor.u32 %v3372_v40, %v3368_v46  ;;  %v3404_v50 = vshrl.u32 %v3391_v57, 16  ;;  %v3381_v34 = vor.u32 %v3379_v32, %v3377_v11  ;;  %v3488_v46 = vld [vmem:[#allocation2 + $0x170] sm:$0x7f] }
 0x1b5   : > { %v3297_v17 = vrot.slane %v3291_v1, 4  ;;  %v3397_v12 = vsel %vm1877_vm5, %v3395_v13, %v3396_v8  ;;  %v3407_v19 = vshll.u32 %v3391_v57, 16  ;;  %v3411_v25 = vshrl.u32 %v3402_v18, 16 }
 0x1b6   : > { %v13903_v24 = vrot.slane %v3292_v51, 4  ;;  %v3378_v7 = vsel %vm1851_vm4, %v3373_v36, %v3377_v11  ;;  %v3406_v54 = vrot.slane %v3404_v50, 7  ;;  %v3386_v31 = vsel %vm1851_vm4, %v3381_v34, %v3385_v16  ;;  %v3523_v36 = vld [vmem:[#allocation2 + $0x180] sm:$0x3f] }
 0x1b7   : > { %v3389_v14 = vmax.bf16 %v3378_v7, %v3364_v41  ;;  %v3414_v15 = vshll.u32 %v3402_v18, 16  ;;  %v3390_v59 = vmax.bf16 %v3386_v31, %v3365_v61  ;;  %v3413_v29 = vrot.slane %v3411_v25, 7  ;;  %v3487_v31 = vld [vmem:[#allocation2 + $0x170] sm:$0x3f] }
 0x1b8   : > { %v3299_v26 = vsel %vm2212_vm10, %v3297_v17, %v13903_v24  ;;  %v3409_v33 = vor.u32 %v3407_v19, %v3406_v54  ;;  %v1750_v63 = vadd.f32 %v13036_v38, %v13780_v9  ;;  %v3238_v41 = vshrl.u32 %v13861_v0, 16 }
 0x1b9   : > { %11880 = vmatpush3.bf16.msra.mxu1 %v3299_v26  ;;  %v3400_v2 = vmax.bf16 %v3395_v13, %v3389_v14  ;;  %v3401_v47 = vmax.bf16 %v3397_v12, %v3390_v59  ;;  %v3416_v48 = vor.u32 %v3414_v15, %v3413_v29  ;;  %v3256_v55 = vrot.slane %v3249_v37, 7  ;;  %v3509_v13 = vld [vmem:[#allocation2 + $0x178] sm:$0xff]  ;;  %v13929_v29 = vld [vmem:[#allocation2 + $0x180] sm:$0xc0] }
 0x1ba   : > { %11881 = vmatprep.subr.bf16.mxu1 %v16339_v53  ;;  %v1796_v61 = vmax.f32 %v1750_v63, 0.0  ;;  %v3281_v62 = vshrl.u32 %v3264_v44, 16  ;;  %v3240_v27 = vor.u32 %v3238_v41, %v13877_v23  ;;  %v3284_v28 = vshll.u32 %v3264_v44, 16  ;;  %v13931_v44 = vld [vmem:[#allocation2 + $0x188] sm:$0xff] }
 0x1bb   : > { %v3420_v56 = vmax.bf16 %v3409_v33, %v3400_v2  ;;  %v3417_v42 = vsel %vm16329_vm6, %v3406_v54, %v3416_v48  ;;  %v3257_v9 = vsel %vm1877_vm5, %v3254_v30, %v3256_v55  ;;  %v1753_v60 = vadd.f32 %v13036_v38, %v13787_v22  ;;  %v3510_v22 = vld [vmem:[#allocation2 + $0x180] sm:$0x1f]  ;;  %v3605_v48 = vld [vmem:[#allocation2 + $0x190] sm:$0x1f] }
 0x1bc   : > { %v3421_v49 = vmax.bf16 %v3417_v42, %v3401_v47  ;;  %v3283_v0 = vrot.slane %v3281_v62, 7  ;;  %v3246_v3 = vmax.bf16 %v3240_v27, %v3216_v39  ;;  %v3490_v32 = vshrl.u32 %v3486_v5, 16  ;;  %v3635_v42 = vld [vmem:[#allocation2 + $0x190] sm:$0xe0] }
 0x1bd   : > { %v3424_v6 = vrot.slane %v3420_v56, 2  ;;  %v3492_v57 = vshll.u32 %v3486_v5, 16  ;;  %v3497_v10 = vshll.u32 %v3488_v46, 16  ;;  %v3514_v23 = vrot.slane %v3508_v21, 7 }
 0x1be   : > { %v3425_v45 = vrot.slane %v3421_v49, 2  ;;  %v3286_v40 = vor.u32 %v3284_v28, %v3283_v0  ;;  %v3263_v52 = vmax.bf16 %v3257_v9, %v3246_v3  ;;  %v1797_v20 = vmax.f32 %v1753_v60, 0.0  ;;  %v3636_v3 = vld [vmem:[#allocation2 + $0x198] sm:$0xff] }
 0x1bf   : > { %v3494_v1 = vrot.slane %v3492_v57, 1  ;;  %v3515_v30 = vrot.slane %v3509_v13, 7  ;;  %v3499_v51 = vrot.slane %v3497_v10, 1  ;;  %v3525_v12 = vshrl.u32 %v3508_v21, 16 }
 0x1c0   : > { %v3426_v11 = vsel %vm16330_vm7, %v3424_v6, %v3425_v45  ;;  %v3287_v8 = vsel %vm16329_vm6, %v13892_v35, %v3286_v40  ;;  %v3429_v18 = vsel %vm16330_vm7, %v3425_v45, 0  ;;  %v1816_v50 = vpack.c.bf16 %v1797_v20, %v1796_v61 }
 0x1c1   : > { %11888 = vmatpush3.bf16.msra.mxu0 %v3426_v11  ;;  %v3293_v16 = vmax.bf16 %v3287_v8, %v3263_v52  ;;  %v3495_v17 = vor.u32 %v3494_v1, %v3490_v32  ;;  %v3516_v34 = vsel %vm1877_vm5, %v3514_v23, %v3515_v30  ;;  %v3529_v19 = vshrl.u32 %v3509_v13, 16 }
 0x1c2   : > { %11889 = vmatprep.subr.bf16.mxu0 %v16339_v53  ;;  %v3532_v7 = vshll.u32 %v3509_v13, 16  ;;  %v3501_v54 = vshrl.u32 %v3488_v46, 16  ;;  %1834 = vst.msk [vmem:[#allocation2 + $0x1a0] sm:$0xff] %vm674_vm0, %v1816_v50  ;;  %v3517_v14 = vrot.slane %v3510_v22, 7  ;;  %v3537_v15 = vshrl.u32 %v3523_v36, 16 }
 0x1c3   : > { %v3300_v25 = vrot.slane %v3293_v16, 4  ;;  %v3500_v35 = vsel %vm1851_vm4, %v3495_v17, %v3499_v51  ;;  %v3527_v26 = vrot.slane %v3525_v12, 7  ;;  %v3531_v59 = vrot.slane %v3529_v19, 7 }
 0x1c4   : > { %v3506_v37 = vmax.bf16 %v3500_v35, %v3486_v5  ;;  %v3503_v33 = vor.u32 %v3501_v54, %v3499_v51  ;;  %v3518_v38 = vsel %vm1877_vm5, %v3515_v30, %v3517_v14  ;;  %v3539_v63 = vrot.slane %v3537_v15, 7  ;;  %v12621_v35 = vld [vmem:[%s16315_s3 + $0x10] sm:$0xff]  }
 0x1c5   : > { %v3301_v2 = vsel %vm2212_vm10, %v13903_v24, %v3300_v25  ;;  %11890 = vmatpush3.bf16.msra.mxu0 %v3429_v18  ;;  %v3540_v47 = vshll.u32 %v3523_v36, 16  ;;  %v3534_v56 = vor.u32 %v3532_v7, %v3531_v59  ;;  %v3607_v62 = vshrl.u32 %v13929_v29, 16 }
 0x1c6   : > { %v3304_v41 = vsel %vm16330_vm7, %v3301_v2, 0  ;;  %v3521_v55 = vmax.bf16 %v3516_v34, %v3506_v37  ;;  %v3507_v61 = vmax.bf16 %v3503_v33, %v3487_v31  ;;  %11903 = vmatprep.subr.bf16.mxu0 %v16339_v53  ;;  %v3609_v5 = vshll.u32 %v13929_v29, 16  ;;  %v3604_v34 = vld [vmem:[#allocation2 + $0x190] sm:$0xf] }
 0x1c7   : > { %11882 = vmatpush3.bf16.msra.mxu1 %v3304_v41  ;;  %v3542_v39 = vor.u32 %v3540_v47, %v3539_v63  ;;  %v3614_v24 = vshll.u32 %v13931_v44, 16  ;;  %v3535_v27 = vsel %vm16329_vm6, %v3527_v26, %v3534_v56  ;;  %v3618_v28 = vshrl.u32 %v13931_v44, 16  ;;  %v12623_v47 = vld [vmem:[%s16315_s3 + $0x18] sm:$0xff]  }
 0x1c8   : > { %11895 = vmatprep.subr.bf16.mxu1 %v16339_v53  ;;  %11892 = vmatmul.mubr.msk.bf16.vlgmr.msra.gmra.mrb[76].mxu0 %vm1913_vm8, %v13414_v4  ;;  %v3522_v9 = vmax.bf16 %v3518_v38, %v3507_v61  ;;  %v3622_v46 = vshll.u32 %v3605_v48, 16  ;;  %v3546_v21 = vmax.bf16 %v3535_v27, %v3521_v55  ;;  %v3611_v6 = vrot.slane %v3609_v5, 1 }
 0x1c9   : > { %v3543_v49 = vsel %vm16329_vm6, %v3531_v59, %v3542_v39  ;;  %v3616_v0 = vrot.slane %v3614_v24, 1  ;;  %11907 = vmatprep.mubr.msk.bf16.mxu0 %vm13106_vm1, %v16339_v53  ;;  %v3641_v57 = vrot.slane %v3635_v42, 7  ;;  %v3642_v45 = vrot.slane %v3636_v3, 7  ;;  %v3637_v52 = vld [vmem:[#allocation2 + $0x1a0] sm:$0x7] }
 0x1ca   : > { %11884 = vmatmul.mubr.msk.bf16.vlgmr.msra.gmra.mrb[72].mxu1 %vm1913_vm8, %v13414_v4  ;;  %v3547_v60 = vmax.bf16 %v3543_v49, %v3522_v9  ;;  %v3624_v32 = vrot.slane %v3622_v46, 1  ;;  %v3612_v40 = vor.u32 %v3611_v6, %v3607_v62  ;;  %v3654_v13 = vshrl.u32 %v3635_v42, 16  ;;  %v3652_v8 = vld [vmem:[#allocation2 + $0x1a0] sm:$0xf] }
 0x1cb   : > { %11896 = vmatpush3.bf16.msra.mxu1 %v3546_v21  ;;  %11899 = vmatprep.mubr.msk.bf16.mxu1 %vm13106_vm1, %v16339_v53  ;;  %v3620_v10 = vor.u32 %v3618_v28, %v3616_v0  ;;  %v3657_v23 = vshll.u32 %v3635_v42, 16  ;;  %v3643_v1 = vsel %vm1877_vm5, %v3641_v57, %v3642_v45  ;;  %v3661_v30 = vshrl.u32 %v3636_v3, 16  ;;  %v12618_v24 = vld [vmem:[%s16315_s3] sm:$0xff]   ;;  %v12619_v42 = vld [vmem:[%s16315_s3 + $0x8] sm:$0xff]  }
 0x1cc   : > { %11897 = vmatprep.subr.bf16.mxu1 %v16339_v53  ;;  %v3549_v20 = vsel %vm16330_vm7, %v3547_v60, 0  ;;  %v3664_v11 = vshll.u32 %v3636_v3, 16  ;;  %v3617_v18 = vsel %vm1851_vm4, %v3612_v40, %v3616_v0  ;;  %v3656_v22 = vrot.slane %v3654_v13, 7 }
 0x1cd   : > { %v3625_v51 = vsel %vm1851_vm4, %v3620_v10, %v3624_v32  ;;  %v3626_v36 = vshrl.u32 %v3605_v48, 16  ;;  %v3632_v16 = vmax.bf16 %v3617_v18, %v13929_v29  ;;  %v3663_v17 = vrot.slane %v3661_v30, 7 }
 0x1ce   : > { %v3633_v50 = vmax.bf16 %v3625_v51, %v13931_v44  ;;  %v3644_v12 = vrot.slane %v3637_v52, 7  ;;  %v3659_v19 = vor.u32 %v3657_v23, %v3656_v22  ;;  %v3669_v54 = vshrl.u32 %v3652_v8, 16 }
 0x1cf   : > { %11898 = vmatpush3.bf16.msra.mxu1 %v3549_v20  ;;  %v3628_v7 = vor.u32 %v3626_v36, %v3624_v32  ;;  %v3672_v25 = vshll.u32 %v3652_v8, 16  ;;  %v3649_v31 = vmax.bf16 %v3641_v57, %v3632_v16  ;;  %v3666_v15 = vor.u32 %v3664_v11, %v3663_v17 }
 0x1d0   : > { %v3650_v14 = vmax.bf16 %v3643_v1, %v3633_v50  ;;  %v3645_v37 = vsel %vm1877_vm5, %v3642_v45, %v3644_v12  ;;  %11911 = vmatprep.subr.bf16.mxu1 %v16339_v53  ;;  %v3671_v59 = vrot.slane %v3669_v54, 7  ;;  %v16332_v44 = vmov 0  }
 0x1d1   : > { %v3634_v26 = vmax.bf16 %v3628_v7, %v3604_v34  ;;  %v3667_v33 = vsel %vm16329_vm6, %v3656_v22, %v3666_v15  ;;  %v3679_v29 = vmax.bf16 %v3659_v19, %v3649_v31  ;;  %494 = vst.msk [vmem:[#allocation3] sm:$0xf] %vm493_vm11, %v16332_v44  ;;  %495 = vst.msk [vmem:[#allocation3 + $0x4] sm:$0xf] %vm493_vm11, %v16332_v44  ;;  %vm2279_vm10 = vcmask 257026  }
 0x1d2   : > { %11900 = vmatmul.mubr.msk.bf16.vlgmr.msra.gmra.mrb[76].mxu1 %vm1913_vm8, %v13414_v4  ;;  %496 = vst.msk [vmem:[#allocation3 + $0x8] sm:$0xf] %vm493_vm11, %v16332_v44  ;;  %497 = vst.msk [vmem:[#allocation3 + $0xc] sm:$0xf] %vm493_vm11, %v16332_v44  ;;  %v3680_v2 = vmax.bf16 %v3667_v33, %v3650_v14  ;;  %v3674_v63 = vor.u32 %v3672_v25, %v3671_v59  ;;  %v12635_v59 = vld [vmem:[%s16315_s3 + $0x30] sm:$0xff]  }
 0x1d3   : > { %498 = vst.msk [vmem:[#allocation3 + $0x10] sm:$0xf] %vm493_vm11, %v16332_v44  ;;  %499 = vst.msk [vmem:[#allocation3 + $0x14] sm:$0xf] %vm493_vm11, %v16332_v44  ;;  %v3651_v38 = vmax.bf16 %v3645_v37, %v3634_v26  ;;  %11912 = vmatpush3.bf16.msra.mxu1 %v12621_v35  ;;  %11915 = vmatprep.mubr.msk.bf16.mxu1 %vm13106_vm1, %v16339_v53  ;;  %v3685_v48 = vrot.slane %v3679_v29, 6 }
 0x1d4   : > { %500 = vst.msk [vmem:[#allocation3 + $0x18] sm:$0xf] %vm493_vm11, %v16332_v44  ;;  %501 = vst.msk [vmem:[#allocation3 + $0x1c] sm:$0xf] %vm493_vm11, %v16332_v44  ;;  %11913 = vmatprep.subr.bf16.mxu1 %v16339_v53  ;;  %v3686_v41 = vrot.slane %v3680_v2, 6  ;;  %v3675_v55 = vsel %vm16329_vm6, %v3663_v17, %v3674_v63  ;;  %vm2407_vm6 = vcmask 257025  }
 0x1d5   : > { %502 = vst.msk [vmem:[#allocation3 + $0x20] sm:$0xf] %vm493_vm11, %v16332_v44  ;;  %503 = vst.msk [vmem:[#allocation3 + $0x24] sm:$0xf] %vm493_vm11, %v16332_v44  ;;  %v3681_v56 = vmax.bf16 %v3675_v55, %v3651_v38 }
 0x1d6   : > { %504 = vst.msk [vmem:[#allocation3 + $0x28] sm:$0xf] %vm493_vm11, %v16332_v44  ;;  %505 = vst.msk [vmem:[#allocation3 + $0x2c] sm:$0xf] %vm493_vm11, %v16332_v44  ;;  %v3687_v61 = vsel %vm2056_vm9, %v3685_v48, %v3686_v41 }
 0x1d7   : > { %506 = vst.msk [vmem:[#allocation3 + $0x30] sm:$0xf] %vm493_vm11, %v16332_v44  ;;  %507 = vst.msk [vmem:[#allocation3 + $0x34] sm:$0xf] %vm493_vm11, %v16332_v44  ;;  %11914 = vmatpush3.bf16.msra.mxu1 %v12623_v47  ;;  %11904 = vmatpush3.bf16.msra.mxu0 %v3687_v61  ;;  %v3688_v39 = vrot.slane %v3681_v56, 6  ;;  %v12632_v61 = vld [vmem:[%s16315_s3 + $0x20] sm:$0xff]  }
 0x1d8   : > { %508 = vst.msk [vmem:[#allocation3 + $0x38] sm:$0xf] %vm493_vm11, %v16332_v44  ;;  %509 = vst.msk [vmem:[#allocation3 + $0x3c] sm:$0xf] %vm493_vm11, %v16332_v44  ;;  %12007 = vmatprep.subr.bf16.mxu1 %v16339_v53  ;;  %11905 = vmatprep.subr.bf16.mxu0 %v16339_v53 }
 0x1d9   : > { %510 = vst.msk [vmem:[#allocation3 + $0x40] sm:$0xf] %vm493_vm11, %v16332_v44  ;;  %511 = vst.msk [vmem:[#allocation3 + $0x44] sm:$0xf] %vm493_vm11, %v16332_v44  ;;  %v3689_v62 = vsel %vm2056_vm9, %v3686_v41, %v3688_v39 }
 0x1da   : > { %512 = vst.msk [vmem:[#allocation3 + $0x48] sm:$0xf] %vm493_vm11, %v16332_v44  ;;  %513 = vst.msk [vmem:[#allocation3 + $0x4c] sm:$0xf] %vm493_vm11, %v16332_v44  ;;  %v3692_v5 = vsel %vm16330_vm7, %v3689_v62, 0 }
 0x1db   : > { %514 = vst.msk [vmem:[#allocation3 + $0x50] sm:$0xf] %vm493_vm11, %v16332_v44  ;;  %515 = vst.msk [vmem:[#allocation3 + $0x54] sm:$0xf] %vm493_vm11, %v16332_v44  ;;  %11906 = vmatpush3.bf16.msra.mxu0 %v3692_v5 }
 0x1dc   : > { %516 = vst.msk [vmem:[#allocation3 + $0x58] sm:$0xf] %vm493_vm11, %v16332_v44  ;;  %517 = vst.msk [vmem:[#allocation3 + $0x5c] sm:$0xf] %vm493_vm11, %v16332_v44  ;;  %11959 = vmatprep.subr.bf16.mxu0 %v16339_v53 }
 0x1dd   : > { %518 = vst.msk [vmem:[#allocation3 + $0x60] sm:$0xf] %vm493_vm11, %v16332_v44 }
 0x1de   : > { %11908 = vmatmul.mubr.msk.bf16.vlgmr.msra.gmra.mrb[80].mxu0 %vm1913_vm8, %v13414_v4  ;;  %vm2269_vm8 = vcmask 1045508  }
 0x1df   : > { %11960 = vmatpush3.bf16.msra.mxu0 %v12618_v24  ;;  %11963 = vmatprep.mubr.msk.bf16.mxu0 %vm13106_vm1, %v16339_v53  ;;  %vm14058_vm13 = vmor %vm2056_vm9, %vm2269_vm8  ;;  %vm4255_vm9 = vcmask 1046528   ;;  %vm2399_vm8 = vcmask 1044484  }
 0x1e0   : > { %11961 = vmatprep.subr.bf16.mxu0 %v16339_v53  ;;  %vm14112_vm7 = vmor %vm1877_vm5, %vm2399_vm8  ;;  %vm4545_vm5 = vcmask 1044480   ;;  %vm16386_vm8 = vcmask 253952  }
 0x1e3   : > { %11962 = vmatpush3.bf16.msra.mxu0 %v12619_v42 }
 0x1e4   : > { %12055 = vmatprep.subr.bf16.mxu0 %v16339_v53 }
 0x1fe   : > { %v1955_v27 = vpop.f32.mrb[36].mxu1 }
 0x1ff   : > { %v11230_v9 = vpack.c.bf16 %v1955_v27, %v1955_v27  ;;  %v11805_v28 = vpop.f32.mrb[37].mxu1 }
 0x200   : > { %v1958_v46 = vpop.f32.mrb[38].mxu1 }
 0x201   : > { %1970 = vst.msk [vmem:[#allocation3] sm:$0xf] %vm493_vm11, %v11230_v9  ;;  %v11231_v4 = vpack.c.bf16 %v1958_v46, %v1958_v46  ;;  %v11806_v21 = vpop.f32.mrb[39].mxu1  ;;  %v12636_v9 = vld [vmem:[%s16315_s3 + $0x38] sm:$0xff]  }
 0x203   : > { %1972 = vst.msk [vmem:[#allocation3 + $0x4] sm:$0x7] %vm1971_vm12, %v11231_v4 }
 0x208   : > { %v3752_v52 = vld [vmem:[#allocation3] sm:$0xf] }
 0x209   : > { %v4246_v34 = vld [vmem:[#allocation3] sm:$0xe] }
 0x216   : > { %v2100_v49 = vpop.f32.mrb[40].mxu1 }
 0x217   : > { %v11232_v6 = vpack.c.bf16 %v2100_v49, %v2100_v49  ;;  %v11813_v0 = vpop.f32.mrb[41].mxu1 }
 0x218   : > { %v2103_v3 = vpop.f32.mrb[42].mxu1 }
 0x219   : > { %v2116_v60 = vrot.slane %v11232_v6, 5  ;;  %v11233_v32 = vpack.c.bf16 %v2103_v3, %v2103_v3  ;;  %v11814_v57 = vpop.f32.mrb[43].mxu1  ;;  %v16380_v3 = vmov 0 }
 0x21a   : > { %v16381_v3 = vsel %vm14112_vm7, 4294967295, %v16380_v3 }
 0x21b   : > { %v2117_v40 = vrot.slane %v2116_v60, 4  ;;  %2125 = vst.msk [vmem:[#allocation3 + $0x4] sm:$0x8] %vm2124_vm15, %v2116_v60  ;;  %v2118_v10 = vrot.slane %v11233_v32, 5  ;;  %16382 = vst [vmem:[#allocation15_spill] sm:$0xff] %v16381_v3 }
 0x21d   : > { %v2119_v13 = vsel %vm14045_vm2, %v2117_v40, %v2118_v10  ;;  %v2120_v23 = vrot.slane %v2118_v10, 4 }
 0x21e   : > { %2126 = vst.msk [vmem:[#allocation3 + $0x8] sm:$0xf] %vm493_vm11, %v2119_v13 }
 0x21f   : > { %2128 = vst.msk [vmem:[#allocation3 + $0xc] sm:$0x3] %vm2127_vm3, %v2120_v23 }
 0x222   : > { %v3753_v20 = vld [vmem:[#allocation3 + $0x4] sm:$0xf] }
 0x223   : > { %v10397_v1 = vcombine.low %v3752_v52, %v3753_v20  ;;  %v4463_v7 = vld [vmem:[#allocation3 + $0x4] sm:$0x8]  ;;  %v10439_v31 = vcombine.low %v4246_v34, %v3753_v20 }
 0x225   : > { %11964 = vmatmul.mubr.msk.bf16.vlgmr.msra.gmra.mrb[84].mxu0 %vm674_vm0, %v10397_v1  ;;  %v14065_v54 = vld [vmem:[#allocation3 + $0x8] sm:$0xf]  ;;  %v3841_v25 = vshll.u32 %v10397_v1, 16  ;;  %v3839_v14 = vshrl.u32 %v10397_v1, 16  ;;  %v4256_v2 = vrot.slane %v10439_v31, 1 }
 0x226   : > { %11967 = vmatprep.mubr.msk.bf16.mxu0 %vm13106_vm1, %v16339_v53  ;;  %v14070_v35 = vcombine.low %v4463_v7, %v14065_v54  ;;  %12056 = vmatpush3.bf16.msra.mxu0 %v12635_v59 }
 0x227   : > { %v3843_v37 = vrot.slane %v3841_v25, 1  ;;  %12057 = vmatprep.subr.bf16.mxu0 %v16339_v53 }
 0x228   : > { %v4764_v63 = vshrl.u32 %v14070_v35, 16  ;;  %v4767_v48 = vshll.u32 %v14070_v35, 16 }
 0x229   : > { %v3844_v55 = vor.u32 %v3843_v37, %v3839_v14 }
 0x22a   : > { %v4766_v28 = vrot.slane %v4764_v63, 3  ;;  %v4769_v6 = vrot.slane %v4767_v48, 4  ;;  %12058 = vmatpush3.bf16.msra.mxu0 %v12636_v9 }
 0x22b   : > { %12151 = vmatprep.subr.bf16.mxu0 %v16339_v53 }
 0x22c   : > { %v4770_v13 = vor.u32 %v4769_v6, %v4766_v28 }
 0x22f   : > { %v2256_v30 = vpop.f32.mrb[44].mxu1 }
 0x230   : > { %v11234_v11 = vpack.c.bf16 %v2256_v30, %v2256_v30  ;;  %v11821_v8 = vpop.f32.mrb[45].mxu1 }
 0x231   : > { %v2259_v18 = vpop.f32.mrb[46].mxu1 }
 0x232   : > { %v2271_v51 = vrot.slane %v11234_v11, 6  ;;  %v11235_v22 = vpack.c.bf16 %v2259_v18, %v2259_v18  ;;  %v11822_v36 = vpop.f32.mrb[47].mxu1 }
 0x234   : > { %v2272_v50 = vrot.slane %v2271_v51, 4  ;;  %2280 = vst.msk [vmem:[#allocation3 + $0xc] sm:$0xc] %vm2279_vm10, %v2271_v51  ;;  %v2273_v17 = vrot.slane %v11235_v22, 6 }
 0x236   : > { %v2274_v12 = vsel %vm14058_vm13, %v2272_v50, %v2273_v17  ;;  %v2275_v19 = vrot.slane %v2273_v17, 4  ;;  %v12640_v50 = vld [vmem:[%s16315_s3 + $0x28] sm:$0xff]  }
 0x237   : > { %2281 = vst.msk [vmem:[#allocation3 + $0x10] sm:$0xf] %vm493_vm11, %v2274_v12 }
 0x238   : > { %2283 = vst.msk [vmem:[#allocation3 + $0x14] sm:$0x1] %vm16331_vm14, %v2275_v19  ;;  %vm4762_vm14 = vsmask.f32 4352 }
 0x23b   : > { %v14072_v15 = vld [vmem:[#allocation3 + $0x8] sm:$0xff]  }
 0x23c   : > { %v14074_v26 = vld [vmem:[#allocation3 + $0xc] sm:$0xf]  ;;  %11968 = vmatmul.mubr.msk.bf16.gmra.mrb[88].mxu0 %vm674_vm0, %v14072_v15  ;;  %v3846_v29 = vshll.u32 %v14072_v15, 16  ;;  %v4257_v38 = vrot.slane %v14072_v15, 1  ;;  %v3850_v22 = vshrl.u32 %v14072_v15, 16 }
 0x23d   : > { %11971 = vmatprep.mubr.msk.bf16.mxu0 %vm13106_vm1, %v16339_v53  ;;  %v5832_v7 = vld [vmem:[#allocation3 + $0xc] sm:$0x8] }
 0x23e   : > { %v14088_v47 = vld [vmem:[#allocation3 + $0x10] sm:$0xf]  ;;  %v3848_v56 = vrot.slane %v3846_v29, 1  ;;  %v14102_v62 = vsel %vm4255_vm9, %v4256_v2, %v4257_v38 }
 0x23f   : > { %v2386_v41 = vpop.f32.mrb[48].mxu1  ;;  %v14097_v39 = vcombine.low %v14074_v26, %v14088_v47  ;;  %v5250_v19 = vld [vmem:[#allocation3 + $0x10] sm:$0xf] }
 0x240   : > { %v11236_v5 = vpack.c.bf16 %v2386_v41, %v2386_v41  ;;  %v11829_v24 = vpop.f32.mrb[49].mxu1  ;;  %v3849_v27 = vsel %vm1851_vm4, %v3844_v55, %v3848_v56  ;;  %v3852_v31 = vor.u32 %v3850_v22, %v3848_v56  ;;  %v10577_v2 = vcombine.low %v5832_v7, %v5250_v19 }
 0x241   : > { %v2389_v42 = vpop.f32.mrb[50].mxu1  ;;  %v4772_v46 = vshrl.u32 %v14097_v39, 16  ;;  %11916 = vmatmul.mubr.msk.bf16.vlgmr.msra.gmra.mrb[80].mxu1 %vm674_vm0, %v3849_v27  ;;  %v4775_v0 = vshll.u32 %v14097_v39, 16 }
 0x242   : > { %v2401_v4 = vrot.slane %v11236_v5, 7  ;;  %v11237_v21 = vpack.c.bf16 %v2389_v42, %v2389_v42  ;;  %v11830_v49 = vpop.f32.mrb[51].mxu1  ;;  %11919 = vmatprep.mubr.msk.bf16.mxu1 %vm13106_vm1, %v16339_v53  ;;  %12008 = vmatpush3.bf16.msra.mxu1 %v12632_v61  ;;  %v5841_v42 = vrot.slane %v10577_v2, 3 }
 0x243   : > { %v4774_v60 = vrot.slane %v4772_v46, 3  ;;  %12009 = vmatprep.subr.bf16.mxu1 %v16339_v53  ;;  %v4777_v40 = vrot.slane %v4775_v0, 4 }
 0x244   : > { %v2402_v32 = vrot.slane %v2401_v4, 4  ;;  %2408 = vst.msk [vmem:[#allocation3 + $0x14] sm:$0xe] %vm2407_vm6, %v2401_v4  ;;  %v2403_v57 = vrot.slane %v11237_v21, 7 }
 0x245   : > { %v4778_v23 = vor.u32 %v4777_v40, %v4774_v60 }
 0x246   : > { %v2404_v10 = vsel %vm14112_vm7, %v2402_v32, %v2403_v57  ;;  %12010 = vmatpush3.bf16.msra.mxu1 %v12640_v50 }
 0x247   : > { %2409 = vst.msk [vmem:[#allocation3 + $0x18] sm:$0xf] %vm493_vm11, %v2404_v10  ;;  %v2509_v52 = vpop.f32.mrb[52].mxu1  ;;  %v14125_v30 = vsel %vm4762_vm14, %v4770_v13, %v4778_v23  ;;  %12103 = vmatprep.subr.bf16.mxu1 %v16339_v53 }
 0x248   : > { %v11238_v20 = vpack.c.bf16 %v2509_v52, %v2509_v52  ;;  %v11837_v1 = vpop.f32.mrb[53].mxu1 }
 0x249   : > { %v2512_v11 = vpop.f32.mrb[54].mxu1 }
 0x24a   : > { %2524 = vst.msk [vmem:[#allocation3 + $0x1c] sm:$0xf] %vm493_vm11, %v11238_v20  ;;  %v11239_v8 = vpack.c.bf16 %v2512_v11, %v2512_v11  ;;  %v11838_v18 = vpop.f32.mrb[55].mxu1 }
 0x24b   : > { %v12624_v51 = vld [vmem:[#allocation3 + $0x10] sm:$0xff]  }
 0x24c   : > { %v14129_v36 = vld [vmem:[#allocation3 + $0x14] sm:$0xf]  ;;  %2525 = vst.msk [vmem:[#allocation3 + $0x20] sm:$0x7] %vm1971_vm12, %v11239_v8  ;;  %11972 = vmatmul.mubr.msk.bf16.gmra.mrb[92].mxu0 %vm674_vm0, %v12624_v51  ;;  %v3854_v34 = vshll.u32 %v12624_v51, 16  ;;  %v4259_v12 = vrot.slane %v12624_v51, 1 }
 0x24d   : > { %11975 = vmatprep.mubr.msk.bf16.mxu0 %vm13106_vm1, %v16339_v53  ;;  %v3858_v27 = vshrl.u32 %v12624_v51, 16 }
 0x24e   : > { %v14140_v25 = vld [vmem:[#allocation3 + $0x18] sm:$0xf]  ;;  %v3856_v14 = vrot.slane %v3854_v34, 1  ;;  %v14149_v59 = vsel %vm4255_vm9, %v4257_v38, %v4259_v12 }
 0x24f   : > { %v14144_v37 = vcombine.low %v14129_v36, %v14140_v25  ;;  %v14152_v29 = vld [vmem:[#allocation3 + $0x14] sm:$0xff]  }
 0x250   : > { %v3857_v63 = vsel %vm1851_vm4, %v3852_v31, %v3856_v14  ;;  %v5842_v46 = vrot.slane %v14152_v29, 3  ;;  %v3860_v21 = vor.u32 %v3858_v27, %v3856_v14 }
 0x251   : > { %v14155_v48 = vld [vmem:[#allocation3 + $0x18] sm:$0xff]   ;;  %11920 = vmatmul.mubr.msk.bf16.gmra.mrb[84].mxu1 %vm674_vm0, %v3857_v63  ;;  %v4781_v15 = vshrl.u32 %v14144_v37, 16  ;;  %v4784_v38 = vshll.u32 %v14144_v37, 16 }
 0x252   : > { %v14157_v41 = vld [vmem:[#allocation3 + $0x1c] sm:$0xf]  ;;  %11923 = vmatprep.mubr.msk.bf16.mxu1 %vm13106_vm1, %v16339_v53  ;;  %v3862_v56 = vshll.u32 %v14155_v48, 16  ;;  %v4261_v61 = vrot.slane %v14155_v48, 1  ;;  %v14183_v49 = vsel %vm4545_vm5, %v5841_v42, %v5842_v46  ;;  %v3866_v42 = vshrl.u32 %v14155_v48, 16 }
 0x253   : > { %v4783_v5 = vrot.slane %v4781_v15, 3  ;;  %v4786_v24 = vrot.slane %v4784_v38, 4  ;;  %16383 = vst [vmem:[#allocation16_spill] sm:$0xff] %v14183_v49 }
 0x254   : > { %11976 = vmatmul.mubr.msk.bf16.gmra.mrb[96].mxu0 %vm674_vm0, %v14155_v48  ;;  %v3864_v9 = vrot.slane %v3862_v56, 1  ;;  %v14173_v28 = vsel %vm4255_vm9, %v4259_v12, %v4261_v61 }
 0x255   : > { %11979 = vmatprep.mubr.msk.bf16.mxu0 %vm13106_vm1, %v16339_v53  ;;  %v14178_v4 = vor.u32 %v4786_v24, %v4783_v5 }
 0x256   : > { %v3865_v0 = vsel %vm1851_vm4, %v3860_v21, %v3864_v9 }
 0x257   : > { %v14187_v6 = vsel %vm4762_vm14, %v4778_v23, %v14178_v4 }
 0x259   : > { %11924 = vmatmul.mubr.msk.bf16.gmra.mrb[88].mxu1 %vm674_vm0, %v3865_v0 }
 0x25a   : > { %11927 = vmatprep.mubr.msk.bf16.mxu1 %vm13106_vm1, %v16339_v53 }
 0x25f   : > { %v2652_v60 = vpop.f32.mrb[56].mxu1 }
 0x260   : > { %v11240_v32 = vpack.c.bf16 %v2652_v60, %v2652_v60  ;;  %v11845_v57 = vpop.f32.mrb[57].mxu1 }
 0x261   : > { %v2655_v40 = vpop.f32.mrb[58].mxu1 }
 0x262   : > { %v2665_v10 = vrot.slane %v11240_v32, 5  ;;  %v11241_v13 = vpack.c.bf16 %v2655_v40, %v2655_v40  ;;  %v11846_v52 = vpop.f32.mrb[59].mxu1  ;;  %v3868_v40 = vor.u32 %v3866_v42, %v3864_v9 }
 0x263   : > { %v3190_v20 = vpop.f32.mrb[72].mxu0 }
 0x264   : > { %v2666_v1 = vrot.slane %v2665_v10, 4  ;;  %2673 = vst.msk [vmem:[#allocation3 + $0x20] sm:$0x8] %vm2124_vm15, %v2665_v10  ;;  %v2667_v23 = vrot.slane %v11241_v13, 5  ;;  %v11248_v11 = vpack.c.bf16 %v3190_v20, %v3190_v20  ;;  %v11877_v8 = vpop.f32.mrb[73].mxu0 }
 0x265   : > { %v3193_v18 = vpop.f32.mrb[74].mxu0 }
 0x266   : > { %v2668_v51 = vsel %vm14045_vm2, %v2666_v1, %v2667_v23  ;;  %v2669_v22 = vrot.slane %v2667_v23, 4  ;;  %v3203_v50 = vrot.slane %v11248_v11, 5  ;;  %v11249_v34 = vpack.c.bf16 %v3193_v18, %v3193_v18  ;;  %v11878_v12 = vpop.f32.mrb[75].mxu0 }
 0x267   : > { %2674 = vst.msk [vmem:[#allocation3 + $0x24] sm:$0xf] %vm493_vm11, %v2668_v51 }
 0x268   : > { %2675 = vst.msk [vmem:[#allocation3 + $0x28] sm:$0x3] %vm2127_vm3, %v2669_v22  ;;  %v3204_v19 = vrot.slane %v3203_v50, 4  ;;  %v3205_v7 = vrot.slane %v11249_v34, 5 }
 0x269   : > { %3211 = vst.msk [vmem:[#allocation3 + $0x3c] sm:$0x8] %vm2124_vm15, %v3203_v50 }
 0x26a   : > { %v3206_v31 = vsel %vm14045_vm2, %v3204_v19, %v3205_v7  ;;  %v3207_v14 = vrot.slane %v3205_v7, 4 }
 0x26b   : > { %3212 = vst.msk [vmem:[#allocation3 + $0x40] sm:$0xf] %vm493_vm11, %v3206_v31  ;;  %v14202_v2 = vld [vmem:[#allocation3 + $0x20] sm:$0xf] }
 0x26c   : > { %3213 = vst.msk [vmem:[#allocation3 + $0x44] sm:$0x3] %vm2127_vm3, %v3207_v14  ;;  %v14207_v63 = vcombine.low %v14157_v41, %v14202_v2  ;;  %v14222_v0 = vld [vmem:[#allocation3 + $0x1c] sm:$0xff]  }
 0x26d   : > { %16384 = vst [vmem:[#allocation17_spill] sm:$0xff] %v14222_v0  ;;  %v5844_v8 = vrot.slane %v14222_v0, 3 }
 0x26e   : > { %v14209_v15 = vld [vmem:[#allocation3 + $0x20] sm:$0xff]   ;;  %v4790_v5 = vshrl.u32 %v14207_v63, 16  ;;  %v4793_v24 = vshll.u32 %v14207_v63, 16 }
 0x26f   : > { %v14211_v38 = vld [vmem:[#allocation3 + $0x24] sm:$0xf]  ;;  %11980 = vmatmul.mubr.msk.bf16.gmra.mrb[100].mxu0 %vm674_vm0, %v14209_v15  ;;  %v3870_v27 = vshll.u32 %v14209_v15, 16  ;;  %v4263_v21 = vrot.slane %v14209_v15, 1  ;;  %v14243_v48 = vsel %vm4545_vm5, %v5842_v46, %v5844_v8 }
 0x270   : > { %11983 = vmatprep.mubr.msk.bf16.mxu0 %vm13106_vm1, %v16339_v53  ;;  %v4792_v60 = vrot.slane %v4790_v5, 3  ;;  %v4795_v32 = vrot.slane %v4793_v24, 4  ;;  %16385 = vst [vmem:[#allocation18_spill] sm:$0xff] %v14243_v48 }
 0x271   : > { %v2802_v57 = vpop.f32.mrb[60].mxu1  ;;  %v3872_v10 = vrot.slane %v3870_v27, 1  ;;  %v14229_v13 = vsel %vm4255_vm9, %v4261_v61, %v4263_v21 }
 0x272   : > { %v11242_v52 = vpack.c.bf16 %v2802_v57, %v2802_v57  ;;  %v11853_v20 = vpop.f32.mrb[61].mxu1  ;;  %v4796_v1 = vor.u32 %v4795_v32, %v4792_v60 }
 0x273   : > { %v2805_v23 = vpop.f32.mrb[62].mxu1  ;;  %v3873_v11 = vsel %vm1851_vm4, %v3868_v40, %v3872_v10 }
 0x274   : > { %v2815_v18 = vrot.slane %v11242_v52, 6  ;;  %v11243_v51 = vpack.c.bf16 %v2805_v23, %v2805_v23  ;;  %v11854_v22 = vpop.f32.mrb[63].mxu1  ;;  %11928 = vmatmul.mubr.msk.bf16.gmra.mrb[92].mxu1 %vm674_vm0, %v3873_v11  ;;  %v14236_v9 = vsel %vm4762_vm14, %v14178_v4, %v4796_v1  ;;  %v3874_v23 = vshrl.u32 %v14209_v15, 16 }
 0x275   : > { %11931 = vmatprep.mubr.msk.bf16.mxu1 %vm13106_vm1, %v16339_v53 }
 0x276   : > { %v2816_v61 = vrot.slane %v2815_v18, 4  ;;  %2823 = vst.msk [vmem:[#allocation3 + $0x28] sm:$0xc] %vm2279_vm10, %v2815_v18  ;;  %v2817_v50 = vrot.slane %v11243_v51, 6 }
 0x278   : > { %v2818_v34 = vsel %vm14058_vm13, %v2816_v61, %v2817_v50  ;;  %v2819_v12 = vrot.slane %v2817_v50, 4  ;;  %v3876_v50 = vor.u32 %v3874_v23, %v3872_v10 }
 0x279   : > { %2824 = vst.msk [vmem:[#allocation3 + $0x2c] sm:$0xf] %vm493_vm11, %v2818_v34 }
 0x27a   : > { %2825 = vst.msk [vmem:[#allocation3 + $0x30] sm:$0x1] %vm16386_vm8, %v2819_v12 }
 0x27d   : > { %v2927_v4 = vpop.f32.mrb[64].mxu1  ;;  %v14250_v19 = vld [vmem:[#allocation3 + $0x28] sm:$0xf] }
 0x27e   : > { %v14252_v7 = vld [vmem:[#allocation3 + $0x24] sm:$0xff]   ;;  %v11244_v29 = vpack.c.bf16 %v2927_v4, %v2927_v4  ;;  %v11861_v46 = vpop.f32.mrb[65].mxu1  ;;  %v14256_v31 = vcombine.low %v14211_v38, %v14250_v19 }
 0x27f   : > { %16387 = vst [vmem:[#allocation19_spill] sm:$0xff] %v14252_v7  ;;  %v2930_v14 = vpop.f32.mrb[66].mxu1  ;;  %v16335_v40 = vrot.slane %v14252_v7, 3 }
 0x280   : > { %v2940_v5 = vrot.slane %v11244_v29, 7  ;;  %v11245_v24 = vpack.c.bf16 %v2930_v14, %v2930_v14  ;;  %v11862_v42 = vpop.f32.mrb[67].mxu1  ;;  %v12627_v27 = vld [vmem:[#allocation3 + $0x28] sm:$0xff]   ;;  %v4799_v32 = vshrl.u32 %v14256_v31, 16  ;;  %v4802_v57 = vshll.u32 %v14256_v31, 16 }
 0x281   : > { %v14258_v60 = vld [vmem:[#allocation3 + $0x2c] sm:$0xf]  ;;  %11984 = vmatmul.mubr.msk.bf16.gmra.mrb[104].mxu0 %vm674_vm0, %v12627_v27  ;;  %v3878_v11 = vshll.u32 %v12627_v27, 16  ;;  %v4265_v18 = vrot.slane %v12627_v27, 1  ;;  %v14279_v29 = vsel %vm4545_vm5, %v5844_v8, %v16335_v40 }
 0x282   : > { %v2941_v52 = vrot.slane %v2940_v5, 4  ;;  %2946 = vst.msk [vmem:[#allocation3 + $0x30] sm:$0xe] %vm2407_vm6, %v2940_v5  ;;  %v2942_v20 = vrot.slane %v11245_v24, 7  ;;  %11987 = vmatprep.mubr.msk.bf16.mxu0 %vm13106_vm1, %v16339_v53  ;;  %v4801_v22 = vrot.slane %v4799_v32, 3  ;;  %v4804_v12 = vrot.slane %v4802_v57, 4 }
 0x283   : > { %v3880_v34 = vrot.slane %v3878_v11, 1  ;;  %v14274_v15 = vsel %vm4255_vm9, %v4263_v21, %v4265_v18  ;;  %16388 = vst [vmem:[#allocation20_spill] sm:$0xff] %v14279_v29 }
 0x284   : > { %v2943_v61 = vsel %vm14112_vm7, %v2941_v52, %v2942_v20  ;;  %v4805_v24 = vor.u32 %v4804_v12, %v4801_v22 }
 0x285   : > { %2947 = vst.msk [vmem:[#allocation3 + $0x34] sm:$0xf] %vm493_vm11, %v2943_v61  ;;  %v3047_v4 = vpop.f32.mrb[68].mxu1  ;;  %v3881_v5 = vsel %vm1851_vm4, %v3876_v50, %v3880_v34  ;;  %v14303_v50 = vld [vmem:[#allocation3 + $0x40] sm:$0xf] }
 0x286   : > { %v11246_v46 = vpack.c.bf16 %v3047_v4, %v3047_v4  ;;  %v11869_v14 = vpop.f32.mrb[69].mxu1  ;;  %11932 = vmatmul.mubr.msk.bf16.gmra.mrb[96].mxu1 %vm674_vm0, %v3881_v5  ;;  %v14287_v21 = vsel %vm4762_vm14, %v4796_v1, %v4805_v24  ;;  %v3882_v1 = vshrl.u32 %v12627_v27, 16  ;;  %16389 = vst [vmem:[#allocation21_spill] sm:$0xff] %v14303_v50 }
 0x287   : > { %v3050_v42 = vpop.f32.mrb[70].mxu1  ;;  %11935 = vmatprep.mubr.msk.bf16.mxu1 %vm13106_vm1, %v16339_v53 }
 0x288   : > { %3062 = vst.msk [vmem:[#allocation3 + $0x38] sm:$0xf] %vm493_vm11, %v11246_v46  ;;  %v11247_v10 = vpack.c.bf16 %v3050_v42, %v3050_v42  ;;  %v11870_v32 = vpop.f32.mrb[71].mxu1  ;;  %v3884_v5 = vor.u32 %v3882_v1, %v3880_v34 }
 0x289   : > { %v14289_v8 = vld [vmem:[#allocation3 + $0x30] sm:$0xf] }
 0x28a   : > { %3063 = vst.msk [vmem:[#allocation3 + $0x3c] sm:$0x7] %vm1971_vm12, %v11247_v10  ;;  %v14294_v57 = vcombine.low %v14258_v60, %v14289_v8  ;;  %v14350_v40 = vld [vmem:[#allocation3 + $0x2c] sm:$0xff]  }
 0x28b   : > { %16392 = vst [vmem:[#allocation24_spill] sm:$0xff] %v14350_v40 }
 0x28c   : > { %v12628_v52 = vld [vmem:[#allocation3 + $0x30] sm:$0xff]   ;;  %v4808_v11 = vshrl.u32 %v14294_v57, 16  ;;  %v4811_v22 = vshll.u32 %v14294_v57, 16 }
 0x28d   : > { %v14296_v20 = vld [vmem:[#allocation3 + $0x34] sm:$0xf]  ;;  %11988 = vmatmul.mubr.msk.bf16.gmra.mrb[108].mxu0 %vm674_vm0, %v12628_v52  ;;  %v3886_v61 = vshll.u32 %v12628_v52, 16  ;;  %v4267_v12 = vrot.slane %v12628_v52, 1 }
 0x28e   : > { %11991 = vmatprep.mubr.msk.bf16.mxu0 %vm13106_vm1, %v16339_v53  ;;  %v4810_v46 = vrot.slane %v4808_v11, 3  ;;  %v4813_v14 = vrot.slane %v4811_v22, 4 }
 0x28f   : > { %v14307_v4 = vld [vmem:[#allocation3 + $0x38] sm:$0xf]  ;;  %v3888_v42 = vrot.slane %v3886_v61, 1  ;;  %v14314_v32 = vsel %vm4255_vm9, %v4265_v18, %v4267_v12 }
 0x290   : > { %16390 = vst [vmem:[#allocation22_spill] sm:$0xff] %v14307_v4  ;;  %v14311_v10 = vcombine.low %v14296_v20, %v14307_v4  ;;  %v4814_v23 = vor.u32 %v4813_v14, %v4810_v46  ;;  %v14352_v58 = vld [vmem:[#allocation3 + $0x34] sm:$0xff]  }
 0x291   : > { %v14316_v27 = vld [vmem:[#allocation3 + $0x38] sm:$0xff]   ;;  %v3889_v51 = vsel %vm1851_vm4, %v3884_v5, %v3888_v42  ;;  %16393 = vst [vmem:[#allocation25_spill] sm:$0xff] %v14352_v58 }
 0x292   : > { %v14318_v44 = vld [vmem:[#allocation3 + $0x3c] sm:$0xf]  ;;  %11936 = vmatmul.mubr.msk.bf16.gmra.mrb[100].mxu1 %vm674_vm0, %v3889_v51  ;;  %v3894_v34 = vshll.u32 %v14316_v27, 16  ;;  %v16334_v22 = vrot.slane %v14316_v27, 1  ;;  %v14329_v18 = vsel %vm4762_vm14, %v4805_v24, %v4814_v23  ;;  %v4817_v61 = vshrl.u32 %v14311_v10, 16 }
 0x293   : > { %16391 = vst [vmem:[#allocation23_spill] sm:$0xff] %v14318_v44  ;;  %v14323_v11 = vcombine.low %v14318_v44, %v14303_v50  ;;  %11939 = vmatprep.mubr.msk.bf16.mxu1 %vm13106_vm1, %v16339_v53  ;;  %v4820_v51 = vshll.u32 %v14311_v10, 16  ;;  %v3890_v24 = vshrl.u32 %v12628_v52, 16 }
 0x294   : > { %v14339_v46 = vsel %vm4255_vm9, %v4267_v12, %v16334_v22  ;;  %v14345_v5 = vrot.slane %v3894_v34, 1  ;;  %v4819_v56 = vrot.slane %v4817_v61, 3 }
 0x295   : > { %v4826_v14 = vshrl.u32 %v14323_v11, 16  ;;  %11992 = vmatmul.mubr.msk.bf16.gmra.mrb[112].mxu0 %vm674_vm0, %v14316_v27  ;;  %v4829_v1 = vshll.u32 %v14323_v11, 16  ;;  %v4822_v55 = vrot.slane %v4820_v51, 4  ;;  %v3892_v12 = vor.u32 %v3890_v24, %v3888_v42 }
 0x296   : > { %11995 = vmatprep.mubr.msk.bf16.mxu0 %vm13106_vm1, %v16339_v53 }
 0x297   : > { %v4828_v17 = vrot.slane %v4826_v14, 3  ;;  %v4831_v33 = vrot.slane %v4829_v1, 4  ;;  %v4823_v22 = vor.u32 %v4822_v55, %v4819_v56  ;;  %v3897_v52 = vsel %vm1851_vm4, %v3892_v12, %v14345_v5  ;;  %v14368_v1 = vld [vmem:[#allocation3 + $0x3c] sm:$0xff]  }
 0x299   : > { %v14356_v34 = vor.u32 %v4831_v33, %v4828_v17  ;;  %v14360_v43 = vsel %vm4762_vm14, %v4814_v23, %v4823_v22  ;;  %v5848_v33 = vrot.slane %v14350_v40, 3  ;;  %v5850_v17 = vrot.slane %v14352_v58, 3 }
 0x29a   : > { %11940 = vmatmul.mubr.msk.bf16.gmra.mrb[104].mxu1 %vm674_vm0, %v3897_v52  ;;  %16394 = vst [vmem:[#allocation26_spill] sm:$0xff] %v14360_v43 }
 0x29b   : > { %v3465_v61 = vpop.f32.mrb[76].mxu0  ;;  %11943 = vmatprep.mubr.msk.bf16.mxu1 %vm13106_vm1, %v16339_v53  ;;  %v14366_v55 = vsel %vm4762_vm14, %v4823_v22, %v14356_v34  ;;  %v16396_v53 = vrot.slane %v14252_v7, 3  ;;  %v14379_v58 = vsel %vm4545_vm5, %v5848_v33, %v5850_v17 }
 0x29c   : > { %v11252_v51 = vpack.c.bf16 %v3465_v61, %v3465_v61  ;;  %v11893_v14 = vpop.f32.mrb[77].mxu0  ;;  %16395 = vst [vmem:[#allocation27_spill] sm:$0xff] %v14366_v55  ;;  %16398 = vst [vmem:[#allocation29_spill] sm:$0xff] %v14379_v58 }
 0x29d   : > { %v3340_v56 = vpop.f32.mrb[72].mxu1  ;;  %v3468_v42 = vpop.f32.mrb[78].mxu0  ;;  %v14375_v29 = vsel %vm4545_vm5, %v16396_v53, %v5848_v33 }
 0x29e   : > { %v11250_v24 = vpack.c.bf16 %v3340_v56, %v3340_v56  ;;  %v11885_v23 = vpop.f32.mrb[73].mxu1  ;;  %v3478_v12 = vrot.slane %v11252_v51, 7  ;;  %v11253_v52 = vpack.c.bf16 %v3468_v42, %v3468_v42  ;;  %v11894_v61 = vpop.f32.mrb[79].mxu0  ;;  %16397 = vst [vmem:[#allocation28_spill] sm:$0xff] %v14375_v29  ;;  %v16347_v51 = vrot.slane %v14368_v1, 3 }
 0x29f   : > { %v3343_v14 = vpop.f32.mrb[74].mxu1 }
 0x2a0   : > { %v3353_v22 = vrot.slane %v11250_v24, 6  ;;  %v3479_v48 = vrot.slane %v3478_v12, 4  ;;  %3484 = vst.msk [vmem:[#allocation3 + $0x4c] sm:$0xe] %vm2407_vm6, %v3478_v12  ;;  %v11251_v49 = vpack.c.bf16 %v3343_v14, %v3343_v14  ;;  %v11886_v0 = vpop.f32.mrb[75].mxu1  ;;  %v3480_v40 = vrot.slane %v11253_v52, 7  ;;  %vm16400_vm6 = vmmov %vm16386_vm8 }
 0x2a1   : > { %v14389_v24 = vsel %vm4545_vm5, %v5850_v17, %v16347_v51  ;;  %v3898_v17 = vshrl.u32 %v14316_v27, 16 }
 0x2a2   : > { %v3354_v56 = vrot.slane %v3353_v22, 4  ;;  %3361 = vst.msk [vmem:[#allocation3 + $0x44] sm:$0xc] %vm2279_vm10, %v3353_v22  ;;  %v3355_v42 = vrot.slane %v11251_v49, 6  ;;  %v3481_v53 = vsel %vm14112_vm7, %v3479_v48, %v3480_v40  ;;  %16399 = vst [vmem:[#allocation30_spill] sm:$0xff] %v14389_v24 }
 0x2a3   : > { %3485 = vst.msk [vmem:[#allocation3 + $0x50] sm:$0xf] %vm493_vm11, %v3481_v53  ;;  %v16402_v53 = vmov 0.0  }
 0x2a4   : > { %v3356_v0 = vsel %vm14058_vm13, %v3354_v56, %v3355_v42  ;;  %v3357_v33 = vrot.slane %v3355_v42, 4 }
 0x2a5   : > { %3362 = vst.msk [vmem:[#allocation3 + $0x48] sm:$0xf] %vm493_vm11, %v3356_v0  ;;  %v3585_v23 = vpop.f32.mrb[76].mxu1 }
 0x2a6   : > { %3363 = vst.msk [vmem:[#allocation3 + $0x4c] sm:$0x1] %vm16400_vm6, %v3357_v33  ;;  %v11254_v49 = vpack.c.bf16 %v3585_v23, %v3585_v23  ;;  %v11901_v12 = vpop.f32.mrb[77].mxu1  ;;  %v3900_v33 = vor.u32 %v3898_v17, %v14345_v5 }
 0x2a7   : > { %v3588_v52 = vpop.f32.mrb[78].mxu1 }
 0x2a8   : > { %3600 = vst.msk [vmem:[#allocation3 + $0x54] sm:$0xf] %vm493_vm11, %v11254_v49  ;;  %v11255_v48 = vpack.c.bf16 %v3588_v52, %v3588_v52  ;;  %v11902_v40 = vpop.f32.mrb[79].mxu1 }
 0x2a9   : > { %v12630_v61 = vld [vmem:[#allocation3 + $0x40] sm:$0xff]  }
 0x2aa   : > { %v14397_v14 = vld [vmem:[#allocation3 + $0x44] sm:$0xf]  ;;  %3601 = vst.msk [vmem:[#allocation3 + $0x58] sm:$0x7] %vm1971_vm12, %v11255_v48  ;;  %11996 = vmatmul.mubr.msk.bf16.gmra.mrb[116].mxu0 %vm674_vm0, %v12630_v61  ;;  %v3902_v22 = vshll.u32 %v12630_v61, 16  ;;  %v4271_v42 = vrot.slane %v12630_v61, 1 }
 0x2ab   : > { %16401 = vst [vmem:[#allocation31_spill] sm:$0xff] %v14397_v14  ;;  %v3772_v56 = vld [vmem:[#allocation3 + $0x50] sm:$0xf]  ;;  %11999 = vmatprep.mubr.msk.bf16.mxu0 %vm13106_vm1, %v16402_v53  ;;  %v16405_v48 = vrot.slane %v14316_v27, 1  ;;  %v3906_v7 = vshrl.u32 %v12630_v61, 16  ;;  %vm16432_vm12 = vcmask 1045504  }
 0x2ac   : > { %v14405_v0 = vld [vmem:[#allocation3 + $0x48] sm:$0xf]  ;;  %v3904_v23 = vrot.slane %v3902_v22, 1  ;;  %v14425_v22 = vld [vmem:[#allocation3 + $0x50] sm:$0xf] }
 0x2ad   : > { %16403 = vst [vmem:[#allocation32_spill] sm:$0xff] %v14405_v0  ;;  %v14408_v49 = vld [vmem:[#allocation3 + $0x48] sm:$0xff]   ;;  %v14412_v12 = vcombine.low %v14397_v14, %v14405_v0  ;;  %v14419_v40 = vsel %vm4255_vm9, %v16405_v48, %v4271_v42  ;;  %16406 = vst [vmem:[#allocation34_spill] sm:$0xff] %v14425_v22 }
 0x2ae   : > { %v14414_v52 = vld [vmem:[#allocation3 + $0x4c] sm:$0xf]  ;;  %v3905_v51 = vsel %vm1851_vm4, %v3900_v33, %v3904_v23  ;;  %v3910_v5 = vshll.u32 %v14408_v49, 16  ;;  %v4273_v27 = vrot.slane %v14408_v49, 1 }
 0x2af   : > { %16404 = vst [vmem:[#allocation33_spill] sm:$0xff] %v14414_v52  ;;  %v3777_v17 = vld [vmem:[#allocation3 + $0x54] sm:$0x1]  ;;  %11944 = vmatmul.mubr.msk.bf16.gmra.mrb[108].mxu1 %vm674_vm0, %v3905_v51  ;;  %v4835_v48 = vshrl.u32 %v14412_v12, 16  ;;  %v4838_v33 = vshll.u32 %v14412_v12, 16  ;;  %v14441_v51 = vcombine.low %v14414_v52, %v14425_v22  ;;  %v3908_v52 = vor.u32 %v3906_v7, %v3904_v23  ;;  %v14464_v23 = vld [vmem:[#allocation3 + $0x4c] sm:$0xff]  }
 0x2b0   : > { %v14428_v3 = vcombine.low %v3772_v56, %v3777_v17  ;;  %v14430_v24 = vld [vmem:[#allocation3 + $0x54] sm:$0xf]  ;;  %11947 = vmatprep.mubr.msk.bf16.mxu1 %vm13106_vm1, %v16402_v53  ;;  %v3912_v0 = vrot.slane %v3910_v5, 1  ;;  %v14448_v14 = vsel %vm4255_vm9, %v4271_v42, %v4273_v27 }
 0x2b1   : > { %v3728_v58 = vpop.f32.mrb[80].mxu0  ;;  %v4837_v50 = vrot.slane %v4835_v48, 3  ;;  %v4840_v4 = vrot.slane %v4838_v33, 4  ;;  %v4844_v61 = vshrl.u32 %v14441_v51, 16  ;;  %v4847_v7 = vshll.u32 %v14441_v51, 16 }
 0x2b2   : > { %12000 = vmatmul.mubr.msk.bf16.gmra.mrb[120].mxu0 %vm674_vm0, %v14408_v49  ;;  %v11256_v17 = vpack.c.bf16 %v3728_v58, %v3728_v58  ;;  %v11909_v29 = vpop.f32.mrb[81].mxu0  ;;  %v16359_v16 = vrot.slane %v14428_v3, 1  ;;  %v3918_v58 = vshll.u32 %v14428_v3, 16  ;;  %v3913_v48 = vsel %vm1851_vm4, %v3908_v52, %v3912_v0 }
 0x2b3   : > { %v3731_v55 = vpop.f32.mrb[82].mxu0  ;;  %12003 = vmatprep.mubr.msk.bf16.mxu0 %vm13106_vm1, %v16402_v53 }
 0x2b4   : > { %v3741_v43 = vrot.slane %v11256_v17, 5  ;;  %v11257_v22 = vpack.c.bf16 %v3731_v55, %v3731_v55  ;;  %v11910_v44 = vpop.f32.mrb[83].mxu0  ;;  %v14455_v29 = vsel %vm4255_vm9, %v4273_v27, %v16359_v16  ;;  %v4841_v17 = vor.u32 %v4840_v4, %v4837_v50  ;;  %v14460_v55 = vld [vmem:[#allocation3 + $0x44] sm:$0xff]  }
 0x2b5   : > { %v4846_v44 = vrot.slane %v4844_v61, 3  ;;  %v10421_v16 = vcombine.low %v3772_v56, %v3772_v56  ;;  %v4849_v50 = vrot.slane %v4847_v7, 4  ;;  %v3914_v4 = vshrl.u32 %v14408_v49, 16 }
 0x2b6   : > { %v3742_v5 = vrot.slane %v3741_v43, 4  ;;  %3749 = vst.msk [vmem:[#allocation3 + $0x58] sm:$0x8] %vm2124_vm15, %v3741_v43  ;;  %v3743_v42 = vrot.slane %v11257_v22, 5  ;;  %v14472_v43 = vsel %vm4762_vm14, %v14356_v34, %v4841_v17  ;;  %v3920_v45 = vrot.slane %v3918_v58, 1  ;;  %vm16434_vm15 = vmmov %vm16432_vm12 }
 0x2b7   : > { %11948 = vmatmul.mubr.msk.bf16.gmra.mrb[112].mxu1 %vm674_vm0, %v3913_v48  ;;  %v5854_v52 = vrot.slane %v14460_v55, 3  ;;  %v4850_v56 = vor.u32 %v4849_v50, %v4846_v44  ;;  %v5856_v22 = vrot.slane %v14464_v23, 3  ;;  %v3916_v34 = vor.u32 %v3914_v4, %v3912_v0 }
 0x2b8   : > { %v3744_v27 = vsel %vm14045_vm2, %v3742_v5, %v3743_v42  ;;  %v3745_v33 = vrot.slane %v3743_v42, 4  ;;  %11951 = vmatprep.mubr.msk.bf16.mxu1 %vm13106_vm1, %v16402_v53  ;;  %v16407_v61 = vrot.slane %v14368_v1, 3  ;;  %v4547_v42 = vrot.slane %v14097_v39, 3  ;;  %v12650_v39 = vld [vmem:[%s16315_s3 + $0x50] sm:$0xff]   ;;  %vm16435_vm2 = vmmov %vm16432_vm12 }
 0x2b9   : > { %3750 = vst.msk [vmem:[#allocation3 + $0x5c] sm:$0xf] %vm493_vm11, %v3744_v27  ;;  %v14496_v48 = vsel %vm4545_vm5, %v5854_v52, %v5856_v22  ;;  %v3921_v44 = vsel %vm1851_vm4, %v3916_v34, %v3920_v45  ;;  %v4546_v7 = vrot.slane %v14070_v35, 3  ;;  %vm5547_vm11 = vsmask.f32 5376  ;;  %vm16437_vm10 = vmmov %vm16435_vm2 }
 0x2ba   : > { %3751 = vst.msk [vmem:[#allocation3 + $0x60] sm:$0x3] %vm2127_vm3, %v3745_v33  ;;  %12004 = vmatmul.mubr.msk.bf16.gmra.mrb[124].mxu0 %vm674_vm0, %v10421_v16  ;;  %v14485_v5 = vsel %vm4545_vm5, %v16407_v61, %v5854_v52  ;;  %v14489_v16 = vsel %vm4762_vm14, %v4841_v17, %v4850_v56  ;;  %16408 = vst [vmem:[#allocation35_spill] sm:$0xff] %v14496_v48  ;;  %v3922_v52 = vshrl.u32 %v14428_v3, 16 }
 0x2bb   : > { %12059 = vmatprep.mubr.msk.bf16.mxu0 %vm13106_vm1, %v16402_v53  ;;  %v4548_v4 = vsel %vm4545_vm5, %v4546_v7, %v4547_v42  ;;  %vm16436_vm3 = vmmov %vm16435_vm2 }
 0x2bc   : > { %vm16438_vm13 = vmmov %vm16435_vm2 }
 0x2bd   : > { %v14491_v49 = vld [vmem:[#allocation3 + $0x58] sm:$0xf]  ;;  %vm16439_vm8 = vmmov %vm16435_vm2 }
 0x2be   : > { %v14493_v58 = vld [vmem:[#allocation3 + $0x54] sm:$0xff]   ;;  %v10485_v0 = vcombine.low %v14430_v24, %v14491_v49  ;;  %vm16440_vm6 = vmmov %vm16435_vm2 }
 0x2bf   : > { %11952 = vmatmul.mubr.msk.bf16.gmra.mrb[116].mxu1 %vm674_vm0, %v3921_v44  ;;  %v5858_v50 = vrot.slane %v14493_v58, 3 }
 0x2c0   : > { %11955 = vmatprep.mubr.msk.bf16.mxu1 %vm13106_vm1, %v16402_v53  ;;  %v4853_v17 = vshrl.u32 %v10485_v0, 16  ;;  %v4856_v27 = vshll.u32 %v10485_v0, 16  ;;  %v14508_v33 = vld [vmem:[#allocation3 + $0x5c] sm:$0xf]  ;;  %v12651_v0 = vld [vmem:[%s16315_s3 + $0x58] sm:$0xff]  }
 0x2c1   : > { %v5538_v34 = vld [vmem:[#allocation3 + $0x60] sm:$0x7]  ;;  %v14523_v7 = vsel %vm4545_vm5, %v5856_v22, %v5858_v50  ;;  %v12654_v22 = vld [vmem:[%s16315_s3 + $0x48] sm:$0xff]  }
 0x2c2   : > { %12060 = vmatmul.mubr.msk.bf16.vlgmr.msra.gmra.mrb[128].mxu0 %vm674_vm0, %v4548_v4  ;;  %v4855_v35 = vrot.slane %v4853_v17, 3  ;;  %v4858_v61 = vrot.slane %v4856_v27, 4  ;;  %v14515_v44 = vcombine.low %v14508_v33, %v5538_v34  ;;  %v3924_v27 = vor.u32 %v3922_v52, %v3920_v45 }
 0x2c3   : > { %12063 = vmatprep.mubr.msk.bf16.mxu0 %vm13106_vm1, %v16402_v53  ;;  %12152 = vmatpush3.bf16.msra.mxu0 %v12650_v39  ;;  %v4549_v4 = vrot.slane %v14144_v37, 3  ;;  %v12649_v37 = vld [vmem:[%s16315_s3 + $0x40] sm:$0xff]  }
 0x2c4   : > { %12153 = vmatprep.subr.bf16.mxu0 %v16402_v53  ;;  %v14526_v48 = vor.u32 %v4858_v61, %v4855_v35  ;;  %v5860_v17 = vrot.slane %v14515_v44, 3 }
 0x2c5   : > { %v4550_v45 = vsel %vm4545_vm5, %v4547_v42, %v4549_v4 }
 0x2c6   : > { %v14532_v34 = vsel %vm4762_vm14, %v4850_v56, %v14526_v48  ;;  %v14537_v39 = vsel %vm4545_vm5, %v5858_v50, %v5860_v17  ;;  %v4551_v56 = vrot.slane %v14207_v63, 3  ;;  %v4555_v50 = vrot.slane %v14294_v57, 3 }
 0x2c7   : > { %11956 = vmatmul.mubr.msk.bf16.gmra.mrb[120].mxu1 %vm674_vm0, %v3924_v27  ;;  %12154 = vmatpush3.bf16.msra.mxu0 %v12651_v0  ;;  %v4559_v57 = vrot.slane %v14323_v11, 3  ;;  %v4563_v0 = vrot.slane %v14441_v51, 3 }
 0x2c8   : > { %12011 = vmatprep.mubr.msk.bf16.mxu1 %vm13106_vm1, %v16402_v53  ;;  %12247 = vmatprep.subr.bf16.mxu0 %v16402_v53  ;;  %v4552_v42 = vsel %vm4545_vm5, %v4549_v4, %v4551_v56 }
 0x2ca   : > { %12064 = vmatmul.mubr.msk.bf16.gmra.mrb[132].mxu0 %vm674_vm0, %v4550_v45 }
 0x2cb   : > { %12067 = vmatprep.mubr.msk.bf16.mxu0 %vm13106_vm1, %v16402_v53 }
 0x2cf   : > { %12012 = vmatmul.mubr.msk.bf16.vlgmr.msra.gmra.mrb[124].mxu1 %vm674_vm0, %v14102_v62  ;;  %v4553_v62 = vrot.slane %v14256_v31, 3  ;;  %v4557_v31 = vrot.slane %v14311_v10, 3  ;;  %v4561_v10 = vrot.slane %v14412_v12, 3  ;;  %v4484_v12 = vld [vmem:[#allocation3 + $0x58] sm:$0x7] }
 0x2d0   : > { %12015 = vmatprep.mubr.msk.bf16.mxu1 %vm13106_vm1, %v16402_v53  ;;  %12104 = vmatpush3.bf16.msra.mxu1 %v12649_v37  ;;  %v10467_v27 = vcombine.low %v14430_v24, %v4484_v12  ;;  %v12672_v12 = vld [vmem:[%s16315_s3 + $0x68] sm:$0xff]  }
 0x2d1   : > { %12105 = vmatprep.subr.bf16.mxu1 %v16402_v53  ;;  %v4554_v63 = vsel %vm4545_vm5, %v4551_v56, %v4553_v62  ;;  %v4562_v11 = vsel %vm4545_vm5, %v4559_v57, %v4561_v10 }
 0x2d2   : > { %12068 = vmatmul.mubr.msk.bf16.gmra.mrb[136].mxu0 %vm674_vm0, %v4552_v42  ;;  %v4565_v4 = vrot.slane %v10467_v27, 3  ;;  %v16412_v27 = vcombine.low %v14140_v25, %v14157_v41  ;;  %v16413_v25 = vcombine.low %v14202_v2, %v14211_v38  ;;  %v16414_v41 = vcombine.low %v14250_v19, %v14258_v60 }
 0x2d3   : > { %12071 = vmatprep.mubr.msk.bf16.mxu0 %vm13106_vm1, %v16402_v53  ;;  %v16415_v2 = vcombine.low %v14289_v8, %v14296_v20 }
 0x2d4   : > { %12106 = vmatpush3.bf16.msra.mxu1 %v12654_v22 }
 0x2d5   : > { %12199 = vmatprep.subr.bf16.mxu1 %v16402_v53 }
 0x2d7   : > { %12016 = vmatmul.mubr.msk.bf16.gmra.mrb[128].mxu1 %vm674_vm0, %v14149_v59  ;;  %v4556_v59 = vsel %vm4545_vm5, %v4553_v62, %v4555_v50 }
 0x2d8   : > { %12019 = vmatprep.mubr.msk.bf16.mxu1 %vm13106_vm1, %v16402_v53 }
 0x2da   : > { %12072 = vmatmul.mubr.msk.bf16.gmra.mrb[140].mxu0 %vm674_vm0, %v4554_v63 }
 0x2db   : > { %12075 = vmatprep.mubr.msk.bf16.mxu0 %vm13106_vm1, %v16402_v53 }
 0x2df   : > { %12020 = vmatmul.mubr.msk.bf16.gmra.mrb[132].mxu1 %vm674_vm0, %v14173_v28  ;;  %v4558_v28 = vsel %vm4545_vm5, %v4555_v50, %v4557_v31 }
 0x2e0   : > { %12023 = vmatprep.mubr.msk.bf16.mxu1 %vm13106_vm1, %v16402_v53 }
 0x2e2   : > { %12076 = vmatmul.mubr.msk.bf16.gmra.mrb[144].mxu0 %vm674_vm0, %v4556_v59  ;;  %v16409_v59 = vcombine.low %v14065_v54, %v14074_v26 }
 0x2e3   : > { %12079 = vmatprep.mubr.msk.bf16.mxu0 %vm13106_vm1, %v16402_v53 }
 0x2e7   : > { %12024 = vmatmul.mubr.msk.bf16.gmra.mrb[136].mxu1 %vm674_vm0, %v14229_v13  ;;  %v4560_v13 = vsel %vm4545_vm5, %v4557_v31, %v4559_v57 }
 0x2e8   : > { %12027 = vmatprep.mubr.msk.bf16.mxu1 %vm13106_vm1, %v16402_v53 }
 0x2ea   : > { %12080 = vmatmul.mubr.msk.bf16.gmra.mrb[148].mxu0 %vm674_vm0, %v4558_v28  ;;  %v16410_v28 = vrot.slane %v14428_v3, 1 }
 0x2eb   : > { %12083 = vmatprep.mubr.msk.bf16.mxu0 %vm13106_vm1, %v16402_v53 }
 0x2ef   : > { %12028 = vmatmul.mubr.msk.bf16.gmra.mrb[140].mxu1 %vm674_vm0, %v14274_v15 }
 0x2f0   : > { %12031 = vmatprep.mubr.msk.bf16.mxu1 %vm13106_vm1, %v16402_v53 }
 0x2f2   : > { %12084 = vmatmul.mubr.msk.bf16.gmra.mrb[152].mxu0 %vm674_vm0, %v4560_v13  ;;  %v16411_v13 = vcombine.low %v14088_v47, %v14129_v36 }
 0x2f3   : > { %12087 = vmatprep.mubr.msk.bf16.mxu0 %vm13106_vm1, %v16402_v53 }
 0x2f7   : > { %12032 = vmatmul.mubr.msk.bf16.gmra.mrb[144].mxu1 %vm674_vm0, %v14314_v32  ;;  %v4564_v32 = vsel %vm4545_vm5, %v4561_v10, %v4563_v0 }
 0x2f8   : > { %v4160_v52 = vpop.f32.mrb[84].mxu0  ;;  %12035 = vmatprep.mubr.msk.bf16.mxu1 %vm13106_vm1, %v16402_v53 }
 0x2f9   : > { %v11965_v15 = vpop.f32.mrb[85].mxu0 }
 0x2fa   : > { %v4163_v35 = vpop.f32.mrb[86].mxu0  ;;  %12088 = vmatmul.mubr.msk.bf16.gmra.mrb[156].mxu0 %vm674_vm0, %v4562_v11 }
 0x2fb   : > { %v11966_v61 = vpop.f32.mrb[87].mxu0  ;;  %12091 = vmatprep.mubr.msk.bf16.mxu0 %vm13106_vm1, %v16402_v53 }
 0x2ff   : > { %12036 = vmatmul.mubr.msk.bf16.gmra.mrb[148].mxu1 %vm674_vm0, %v14339_v46  ;;  %v4566_v46 = vsel %vm4545_vm5, %v4563_v0, %v4565_v4 }
 0x300   : > { %12039 = vmatprep.mubr.msk.bf16.mxu1 %vm13106_vm1, %v16402_v53 }
 0x302   : > { %12092 = vmatmul.mubr.msk.bf16.gmra.mrb[160].mxu0 %vm674_vm0, %v4564_v32 }
 0x303   : > { %12095 = vmatprep.mubr.msk.bf16.mxu0 %vm13106_vm1, %v16402_v53 }
 0x307   : > { %12040 = vmatmul.mubr.msk.bf16.gmra.mrb[152].mxu1 %vm674_vm0, %v14419_v40 }
 0x308   : > { %12043 = vmatprep.mubr.msk.bf16.mxu1 %vm13106_vm1, %v16402_v53 }
 0x30a   : > { %12096 = vmatmul.mubr.msk.bf16.gmra.mrb[164].mxu0 %vm674_vm0, %v4566_v46 }
 0x30b   : > { %12099 = vmatprep.mubr.msk.bf16.mxu0 %vm13106_vm1, %v16402_v53 }
 0x30f   : > { %v4168_v51 = vpop.f32.mrb[88].mxu0  ;;  %12044 = vmatmul.mubr.msk.bf16.gmra.mrb[156].mxu1 %vm674_vm0, %v14448_v14  ;;  %v12666_v14 = vld [vmem:[%s16315_s3 + $0x70] sm:$0xff]  }
 0x310   : > { %v11969_v45 = vpop.f32.mrb[89].mxu0  ;;  %12047 = vmatprep.mubr.msk.bf16.mxu1 %vm13106_vm1, %v16402_v53 }
 0x311   : > { %v4171_v37 = vpop.f32.mrb[90].mxu0 }
 0x312   : > { %v11970_v40 = vpop.f32.mrb[91].mxu0  ;;  %12100 = vmatmul.mubr.msk.bf16.gmra.mrb[168].mxu0 %vm674_vm0, %v4565_v4 }
 0x313   : > { %12155 = vmatprep.mubr.msk.bf16.mxu0 %vm13106_vm1, %v16402_v53 }
 0x314   : > { %v4004_v56 = vpop.f32.mrb[80].mxu1 }
 0x315   : > { %v11917_v22 = vpop.f32.mrb[81].mxu1  ;;  %v14634_v42 = vadd.f32 %v4160_v52, %v4004_v56  ;;  %v12663_v52 = vld [vmem:[%s16315_s3 + $0x60] sm:$0xff]  }
 0x316   : > { %v4007_v62 = vpop.f32.mrb[82].mxu1  ;;  %v16416_v22 = vld [vmem:[#allocation22_spill] sm:$0xff] }
 0x317   : > { %v11918_v63 = vpop.f32.mrb[83].mxu1  ;;  %v14636_v50 = vadd.f32 %v4163_v35, %v4007_v62  ;;  %12048 = vmatmul.mubr.msk.bf16.gmra.mrb[160].mxu1 %vm674_vm0, %v14455_v29  ;;  %v12667_v29 = vld [vmem:[%s16315_s3 + $0x78] sm:$0xff]   ;;  %v16417_v62 = vld [vmem:[#allocation23_spill] sm:$0xff] }
 0x318   : > { %12051 = vmatprep.mubr.msk.bf16.mxu1 %vm13106_vm1, %v16402_v53  ;;  %v16418_v63 = vcombine.low %v16416_v22, %v16417_v62 }
 0x31a   : > { %12156 = vmatmul.mubr.msk.bf16.vlgmr.msra.gmra.mrb[172].mxu0 %vm674_vm0, %v16409_v59  ;;  %v16421_v59 = vld [vmem:[#allocation31_spill] sm:$0xff] }
 0x31b   : > { %12159 = vmatprep.mubr.msk.bf16.mxu0 %vm13106_vm1, %v16402_v53  ;;  %12248 = vmatpush3.bf16.msra.mxu0 %v12666_v14  ;;  %v16419_v14 = vld [vmem:[#allocation26_spill] sm:$0xff] }
 0x31c   : > { %12249 = vmatprep.subr.bf16.mxu0 %v16402_v53 }
 0x31f   : > { %v4176_v31 = vpop.f32.mrb[92].mxu0  ;;  %12052 = vmatmul.mubr.msk.bf16.gmra.mrb[164].mxu1 %vm674_vm0, %v16410_v28  ;;  %12250 = vmatpush3.bf16.msra.mxu0 %v12667_v29 }
 0x320   : > { %v11973_v57 = vpop.f32.mrb[93].mxu0  ;;  %12107 = vmatprep.mubr.msk.bf16.mxu1 %vm13106_vm1, %v16402_v53  ;;  %12343 = vmatprep.subr.bf16.mxu0 %v16402_v53 }
 0x321   : > { %v4179_v54 = vpop.f32.mrb[94].mxu0 }
 0x322   : > { %v11974_v26 = vpop.f32.mrb[95].mxu0  ;;  %12160 = vmatmul.mubr.msk.bf16.gmra.mrb[176].mxu0 %vm674_vm0, %v16411_v13 }
 0x323   : > { %12163 = vmatprep.mubr.msk.bf16.mxu0 %vm13106_vm1, %v16402_v53 }
 0x324   : > { %v4012_v3 = vpop.f32.mrb[84].mxu1 }
 0x325   : > { %v11921_v10 = vpop.f32.mrb[85].mxu1  ;;  %v14670_v15 = vadd.f32 %v4168_v51, %v4012_v3  ;;  %v16424_v3 = vld [vmem:[#allocation32_spill] sm:$0xff] }
 0x326   : > { %v4015_v11 = vpop.f32.mrb[86].mxu1  ;;  %v16425_v10 = vld [vmem:[#allocation33_spill] sm:$0xff] }
 0x327   : > { %v11922_v35 = vpop.f32.mrb[87].mxu1  ;;  %v4184_v61 = vpop.f32.mrb[96].mxu0  ;;  %v14672_v0 = vadd.f32 %v4171_v37, %v4015_v11  ;;  %12108 = vmatmul.mubr.msk.bf16.vlgmr.msra.gmra.mrb[168].mxu1 %vm674_vm0, %v14125_v30 }
 0x328   : > { %v11977_v47 = vpop.f32.mrb[97].mxu0  ;;  %12111 = vmatprep.mubr.msk.bf16.mxu1 %vm13106_vm1, %v16402_v53  ;;  %12200 = vmatpush3.bf16.msra.mxu1 %v12663_v52  ;;  %v16426_v52 = vcombine.low %v16424_v3, %v16425_v10 }
 0x329   : > { %v4187_v36 = vpop.f32.mrb[98].mxu0  ;;  %12201 = vmatprep.subr.bf16.mxu1 %v16402_v53 }
 0x32a   : > { %v11978_v32 = vpop.f32.mrb[99].mxu0  ;;  %12164 = vmatmul.mubr.msk.bf16.gmra.mrb[180].mxu0 %vm674_vm0, %v16412_v27 }
 0x32b   : > { %12167 = vmatprep.mubr.msk.bf16.mxu0 %vm13106_vm1, %v16402_v53  ;;  %v5249_v32 = vld [vmem:[#allocation3 + $0xc] sm:$0xc] }
 0x32c   : > { %v4020_v30 = vpop.f32.mrb[88].mxu1  ;;  %12202 = vmatpush3.bf16.msra.mxu1 %v12672_v12 }
 0x32d   : > { %v14688_v4 = vadd.f32 %v4176_v31, %v4020_v30  ;;  %v11925_v46 = vpop.f32.mrb[89].mxu1  ;;  %12295 = vmatprep.subr.bf16.mxu1 %v16402_v53  ;;  %v16427_v30 = vld [vmem:[#allocation34_spill] sm:$0xff] }
 0x32e   : > { %v4023_v51 = vpop.f32.mrb[90].mxu1  ;;  %v16428_v46 = vcombine.low %v16427_v30, %v14430_v24  ;;  %v16430_v30 = vld [vmem:[#allocation19_spill] sm:$0xff] }
 0x32f   : > { %v14691_v45 = vadd.f32 %v4179_v54, %v4023_v51  ;;  %v11926_v37 = vpop.f32.mrb[91].mxu1  ;;  %12112 = vmatmul.mubr.msk.bf16.gmra.mrb[172].mxu1 %vm674_vm0, %v14187_v6  ;;  %v16423_v54 = vld [vmem:[#allocation27_spill] sm:$0xff] }
 0x330   : > { %12115 = vmatprep.mubr.msk.bf16.mxu1 %vm13106_vm1, %v16402_v53 }
 0x332   : > { %12168 = vmatmul.mubr.msk.bf16.gmra.mrb[184].mxu0 %vm674_vm0, %v16413_v25  ;;  %v13037_v25 = vld [vmem:[#allocation3 + $0x10] sm:$0xf] }
 0x333   : > { %12171 = vmatprep.mubr.msk.bf16.mxu0 %vm13106_vm1, %v16402_v53 }
 0x337   : > { %12116 = vmatmul.mubr.msk.bf16.gmra.mrb[176].mxu1 %vm674_vm0, %v14236_v9 }
 0x338   : > { %12119 = vmatprep.mubr.msk.bf16.mxu1 %vm13106_vm1, %v16402_v53 }
 0x33a   : > { %12172 = vmatmul.mubr.msk.bf16.gmra.mrb[188].mxu0 %vm674_vm0, %v16414_v41  ;;  %v14771_v41 = vcombine.low %v5249_v32, %v13037_v25 }
 0x33b   : > { %12175 = vmatprep.mubr.msk.bf16.mxu0 %vm13106_vm1, %v16402_v53 }
 0x33f   : > { %12120 = vmatmul.mubr.msk.bf16.gmra.mrb[180].mxu1 %vm674_vm0, %v14287_v21 }
 0x340   : > { %12123 = vmatprep.mubr.msk.bf16.mxu1 %vm13106_vm1, %v16402_v53 }
 0x342   : > { %v4192_v6 = vpop.f32.mrb[100].mxu0  ;;  %12176 = vmatmul.mubr.msk.bf16.gmra.mrb[192].mxu0 %vm674_vm0, %v16415_v2 }
 0x343   : > { %v11981_v38 = vpop.f32.mrb[101].mxu0  ;;  %12179 = vmatprep.mubr.msk.bf16.mxu0 %vm13106_vm1, %v16402_v53 }
 0x344   : > { %v4195_v9 = vpop.f32.mrb[102].mxu0 }
 0x345   : > { %v11982_v19 = vpop.f32.mrb[103].mxu0 }
 0x346   : > { %v5549_v19 = vshrl.u32 %v14771_v41, 16 }
 0x347   : > { %v4028_v60 = vpop.f32.mrb[92].mxu1  ;;  %12124 = vmatmul.mubr.msk.bf16.gmra.mrb[184].mxu1 %vm674_vm0, %v14329_v18  ;;  %v16420_v18 = vld [vmem:[#allocation21_spill] sm:$0xff] }
 0x348   : > { %v14725_v21 = vadd.f32 %v4184_v61, %v4028_v60  ;;  %v11929_v40 = vpop.f32.mrb[93].mxu1  ;;  %12127 = vmatprep.mubr.msk.bf16.mxu1 %vm13106_vm1, %v16402_v53  ;;  %v16422_v29 = vcombine.low %v16420_v18, %v16421_v59  ;;  %v5552_v60 = vshll.u32 %v14771_v41, 16  ;;  %v5551_v59 = vrot.slane %v5549_v19, 2  ;;  %v16431_v19 = vld [vmem:[#allocation24_spill] sm:$0xff] }
 0x349   : > { %v4031_v56 = vpop.f32.mrb[94].mxu1 }
 0x34a   : > { %v14729_v8 = vadd.f32 %v4187_v36, %v4031_v56  ;;  %v11930_v20 = vpop.f32.mrb[95].mxu1  ;;  %12180 = vmatmul.mubr.msk.bf16.gmra.mrb[196].mxu0 %vm674_vm0, %v16418_v63  ;;  %v10513_v56 = vcombine.low %v14491_v49, %v14491_v49 }
 0x34b   : > { %12183 = vmatprep.mubr.msk.bf16.mxu0 %vm13106_vm1, %v16402_v53 }
 0x34f   : > { %12128 = vmatmul.mubr.msk.bf16.gmra.mrb[188].mxu1 %vm674_vm0, %v16419_v14 }
 0x350   : > { %12131 = vmatprep.mubr.msk.bf16.mxu1 %vm13106_vm1, %v16402_v53 }
 0x352   : > { %12184 = vmatmul.mubr.msk.bf16.gmra.mrb[200].mxu0 %vm674_vm0, %v16422_v29  ;;  %v5554_v29 = vrot.slane %v5552_v60, 3  ;;  %v5584_v60 = vshrl.u32 %v16431_v19, 16 }
 0x353   : > { %12187 = vmatprep.mubr.msk.bf16.mxu0 %vm13106_vm1, %v16402_v53 }
 0x354   : > { %v4200_v31 = vpop.f32.mrb[104].mxu0  ;;  %v5555_v10 = vor.u32 %v5554_v29, %v5551_v59 }
 0x355   : > { %v11985_v28 = vpop.f32.mrb[105].mxu0 }
 0x356   : > { %v4203_v57 = vpop.f32.mrb[106].mxu0 }
 0x357   : > { %12132 = vmatmul.mubr.msk.bf16.gmra.mrb[192].mxu1 %vm674_vm0, %v16423_v54  ;;  %v11986_v26 = vpop.f32.mrb[107].mxu0  ;;  %v16429_v54 = vld [vmem:[#allocation17_spill] sm:$0xff] }
 0x358   : > { %12135 = vmatprep.mubr.msk.bf16.mxu1 %vm13106_vm1, %v16402_v53  ;;  %v5566_v26 = vshrl.u32 %v16429_v54, 16 }
 0x359   : > { %v4036_v13 = vpop.f32.mrb[96].mxu1 }
 0x35a   : > { %12188 = vmatmul.mubr.msk.bf16.gmra.mrb[204].mxu0 %vm674_vm0, %v16426_v52  ;;  %v14755_v11 = vadd.f32 %v4192_v6, %v4036_v13  ;;  %v11933_v35 = vpop.f32.mrb[97].mxu1  ;;  %v14773_v6 = vld [vmem:[#allocation3 + $0x14] sm:$0xff]   ;;  %v5568_v32 = vrot.slane %v5566_v26, 2 }
 0x35b   : > { %12191 = vmatprep.mubr.msk.bf16.mxu0 %vm13106_vm1, %v16402_v53  ;;  %v4039_v61 = vpop.f32.mrb[98].mxu1  ;;  %v5557_v2 = vshrl.u32 %v14773_v6, 16  ;;  %v5560_v38 = vshll.u32 %v14773_v6, 16 }
 0x35c   : > { %v14759_v47 = vadd.f32 %v4195_v9, %v4039_v61  ;;  %v11934_v36 = vpop.f32.mrb[99].mxu1 }
 0x35d   : > { %v5559_v63 = vrot.slane %v5557_v2, 2  ;;  %v5562_v14 = vrot.slane %v5560_v38, 3  ;;  %v5331_v2 = vrot.slane %v14771_v41, 2  ;;  %v12683_v41 = vld [vmem:[%s16315_s3 + $0x88] sm:$0xff]  }
 0x35f   : > { %12136 = vmatmul.mubr.msk.bf16.gmra.mrb[196].mxu1 %vm674_vm0, %v14472_v43  ;;  %v5563_v49 = vor.u32 %v5562_v14, %v5559_v63 }
 0x360   : > { %12139 = vmatprep.mubr.msk.bf16.mxu1 %vm13106_vm1, %v16402_v53  ;;  %v4208_v12 = vpop.f32.mrb[108].mxu0 }
 0x361   : > { %v11989_v27 = vpop.f32.mrb[109].mxu0  ;;  %v5564_v36 = vsel %vm5547_vm11, %v5555_v10, %v5563_v49 }
 0x362   : > { %12192 = vmatmul.mubr.msk.bf16.gmra.mrb[208].mxu0 %vm674_vm0, %v16428_v46  ;;  %v4211_v51 = vpop.f32.mrb[110].mxu0  ;;  %v5578_v46 = vshll.u32 %v16430_v30, 16 }
 0x363   : > { %12195 = vmatprep.mubr.msk.bf16.mxu0 %vm13106_vm1, %v16402_v53  ;;  %v11990_v37 = vpop.f32.mrb[111].mxu0 }
 0x364   : > { %v5580_v25 = vrot.slane %v5578_v46, 3 }
 0x365   : > { %v4044_v43 = vpop.f32.mrb[100].mxu1 }
 0x366   : > { %v14777_v9 = vadd.f32 %v4200_v31, %v4044_v43  ;;  %v11937_v24 = vpop.f32.mrb[101].mxu1  ;;  %v5332_v43 = vrot.slane %v14773_v6, 2 }
 0x367   : > { %12140 = vmatmul.mubr.msk.bf16.gmra.mrb[200].mxu1 %vm674_vm0, %v14489_v16  ;;  %v4047_v40 = vpop.f32.mrb[102].mxu1 }
 0x368   : > { %12143 = vmatprep.mubr.msk.bf16.mxu1 %vm13106_vm1, %v16402_v53  ;;  %v14787_v20 = vadd.f32 %v4203_v57, %v4047_v40  ;;  %v11938_v22 = vpop.f32.mrb[103].mxu1  ;;  %v4216_v62 = vpop.f32.mrb[112].mxu0  ;;  %v5569_v57 = vshll.u32 %v16429_v54, 16  ;;  %v5587_v40 = vshll.u32 %v16431_v19, 16 }
 0x369   : > { %v11993_v18 = vpop.f32.mrb[113].mxu0  ;;  %v5333_v22 = vsel %vm16432_vm12, %v5331_v2, %v5332_v43  ;;  %vm16441_vm12 = vmmov %vm16435_vm2 }
 0x36a   : > { %12196 = vmatmul.mubr.msk.bf16.gmra.mrb[212].mxu0 %vm674_vm0, %v10513_v56  ;;  %v4219_v16 = vpop.f32.mrb[114].mxu0  ;;  %v5571_v27 = vrot.slane %v5569_v57, 3  ;;  %v5586_v18 = vrot.slane %v5584_v60, 2  ;;  %v5589_v59 = vrot.slane %v5587_v40, 3 }
 0x36b   : > { %12251 = vmatprep.mubr.msk.bf16.mxu0 %vm13106_vm1, %v16402_v53  ;;  %v11994_v31 = vpop.f32.mrb[115].mxu0 }
 0x36c   : > { %v13039_v31 = vld [vmem:[#allocation3 + $0x1c] sm:$0xff]  }
 0x36d   : > { %v4052_v28 = vpop.f32.mrb[104].mxu1 }
 0x36e   : > { %v14794_v13 = vadd.f32 %v4208_v12, %v4052_v28  ;;  %v11941_v3 = vpop.f32.mrb[105].mxu1  ;;  %v5572_v12 = vor.u32 %v5571_v27, %v5568_v32 }
 0x36f   : > { %12144 = vmatmul.mubr.msk.bf16.gmra.mrb[204].mxu1 %vm674_vm0, %v14532_v34  ;;  %v4055_v52 = vpop.f32.mrb[106].mxu1  ;;  %v5575_v34 = vshrl.u32 %v16430_v30, 16 }
 0x370   : > { %12147 = vmatprep.mubr.msk.bf16.mxu1 %vm13106_vm1, %v16402_v53  ;;  %v14800_v35 = vadd.f32 %v4211_v51, %v4055_v52  ;;  %v11942_v61 = vpop.f32.mrb[107].mxu1  ;;  %v5573_v51 = vsel %vm5547_vm11, %v5563_v49, %v5572_v12  ;;  %v5334_v49 = vrot.slane %v13039_v31, 2  ;;  %v5590_v52 = vor.u32 %v5589_v59, %v5586_v18 }
 0x371   : > { %v5577_v37 = vrot.slane %v5575_v34, 2  ;;  %v16433_v61 = vld [vmem:[#allocation25_spill] sm:$0xff] }
 0x372   : > { %12252 = vmatmul.mubr.msk.bf16.vlgmr.msra.gmra.mrb[216].mxu0 %vm674_vm0, %v5564_v36  ;;  %v5593_v36 = vshrl.u32 %v16433_v61, 16  ;;  %v5596_v32 = vshll.u32 %v16433_v61, 16 }
 0x373   : > { %12255 = vmatprep.mubr.msk.bf16.mxu0 %vm13106_vm1, %v16402_v53  ;;  %v5581_v24 = vor.u32 %v5580_v25, %v5577_v37  ;;  %v13040_v37 = vld [vmem:[#allocation3 + $0x24] sm:$0xff]  }
 0x374   : > { %v5595_v34 = vrot.slane %v5593_v36, 2  ;;  %v5598_v46 = vrot.slane %v5596_v32, 3  ;;  %v5336_v25 = vrot.slane %v13040_v37, 2 }
 0x375   : > { %v5582_v14 = vsel %vm5547_vm11, %v5572_v12, %v5581_v24  ;;  %v5335_v12 = vsel %vm16434_vm15, %v5332_v43, %v5334_v49  ;;  %vm16442_vm15 = vmmov %vm16435_vm2 }
 0x377   : > { %12148 = vmatmul.mubr.msk.bf16.gmra.mrb[208].mxu1 %vm674_vm0, %v14526_v48  ;;  %v12681_v48 = vld [vmem:[%s16315_s3 + $0x80] sm:$0xff]  }
 0x378   : > { %12203 = vmatprep.mubr.msk.bf16.mxu1 %vm13106_vm1, %v16402_v53 }
 0x37a   : > { %12256 = vmatmul.mubr.msk.bf16.gmra.mrb[220].mxu0 %vm674_vm0, %v5573_v51 }
 0x37b   : > { %12259 = vmatprep.mubr.msk.bf16.mxu0 %vm13106_vm1, %v16402_v53 }
 0x37d   : > { %v4224_v38 = vpop.f32.mrb[116].mxu0 }
 0x37e   : > { %v11997_v56 = vpop.f32.mrb[117].mxu0 }
 0x37f   : > { %v4227_v63 = vpop.f32.mrb[118].mxu0  ;;  %12204 = vmatmul.mubr.msk.bf16.vlgmr.msra.gmra.mrb[212].mxu1 %vm674_vm0, %v5333_v22  ;;  %v5599_v22 = vor.u32 %v5598_v46, %v5595_v34 }
 0x380   : > { %v11998_v6 = vpop.f32.mrb[119].mxu0  ;;  %12207 = vmatprep.mubr.msk.bf16.mxu1 %vm13106_vm1, %v16402_v53  ;;  %12296 = vmatpush3.bf16.msra.mxu1 %v12681_v48 }
 0x381   : > { %12297 = vmatprep.subr.bf16.mxu1 %v16402_v53  ;;  %v5605_v6 = vshll.u32 %v14368_v1, 16 }
 0x382   : > { %v4060_v29 = vpop.f32.mrb[108].mxu1  ;;  %12260 = vmatmul.mubr.msk.bf16.gmra.mrb[224].mxu0 %vm674_vm0, %v5582_v14  ;;  %v5337_v14 = vsel %vm16435_vm2, %v5334_v49, %v5336_v25  ;;  %vm519_vm2 = vcmask 519168  }
 0x383   : > { %v14833_v28 = vadd.f32 %v4216_v62, %v4060_v29  ;;  %v11945_v54 = vpop.f32.mrb[109].mxu1  ;;  %12263 = vmatprep.mubr.msk.bf16.mxu0 %vm13106_vm1, %v16402_v53  ;;  %v5607_v29 = vrot.slane %v5605_v6, 3 }
 0x384   : > { %v4063_v26 = vpop.f32.mrb[110].mxu1  ;;  %12298 = vmatpush3.bf16.msra.mxu1 %v12683_v41  ;;  %v5338_v54 = vrot.slane %v16431_v19, 2 }
 0x385   : > { %v14837_v57 = vadd.f32 %v4219_v16, %v4063_v26  ;;  %v11946_v3 = vpop.f32.mrb[111].mxu1  ;;  %v4232_v10 = vpop.f32.mrb[120].mxu0  ;;  %v5591_v16 = vsel %vm5547_vm11, %v5581_v24, %v5590_v52  ;;  %v5602_v24 = vshrl.u32 %v14368_v1, 16 }
 0x386   : > { %v12001_v27 = vpop.f32.mrb[121].mxu0  ;;  %v5339_v34 = vsel %vm16436_vm3, %v5336_v25, %v5338_v54  ;;  %vm6208_vm3 = vsmask.f32 7440 }
 0x387   : > { %v4235_v62 = vpop.f32.mrb[122].mxu0  ;;  %12208 = vmatmul.mubr.msk.bf16.gmra.mrb[216].mxu1 %vm674_vm0, %v5335_v12  ;;  %v5604_v59 = vrot.slane %v5602_v24, 2 }
 0x388   : > { %v12002_v30 = vpop.f32.mrb[123].mxu0  ;;  %12211 = vmatprep.mubr.msk.bf16.mxu1 %vm13106_vm1, %v16402_v53 }
 0x389   : > { %v5608_v12 = vor.u32 %v5607_v29, %v5604_v59  ;;  %v5614_v30 = vshll.u32 %v14460_v55, 16 }
 0x38a   : > { %v4068_v51 = vpop.f32.mrb[112].mxu1  ;;  %12264 = vmatmul.mubr.msk.bf16.gmra.mrb[228].mxu0 %vm674_vm0, %v5591_v16 }
 0x38b   : > { %v14847_v2 = vadd.f32 %v4224_v38, %v4068_v51  ;;  %v11949_v48 = vpop.f32.mrb[113].mxu1  ;;  %12267 = vmatprep.mubr.msk.bf16.mxu0 %vm13106_vm1, %v16402_v53  ;;  %v5616_v51 = vrot.slane %v5614_v30, 3  ;;  %v5632_v30 = vshll.u32 %v14493_v58, 16 }
 0x38c   : > { %v4071_v43 = vpop.f32.mrb[114].mxu1  ;;  %v5340_v48 = vrot.slane %v16433_v61, 2 }
 0x38d   : > { %v14851_v60 = vadd.f32 %v4227_v63, %v4071_v43  ;;  %v11950_v40 = vpop.f32.mrb[115].mxu1  ;;  %v4240_v56 = vpop.f32.mrb[124].mxu0  ;;  %v5600_v63 = vsel %vm5547_vm11, %v5590_v52, %v5599_v22  ;;  %v5611_v52 = vshrl.u32 %v14460_v55, 16 }
 0x38e   : > { %v12005_v41 = vpop.f32.mrb[125].mxu0 }
 0x38f   : > { %v4243_v18 = vpop.f32.mrb[126].mxu0  ;;  %12212 = vmatmul.mubr.msk.bf16.gmra.mrb[220].mxu1 %vm674_vm0, %v5337_v14  ;;  %v5613_v46 = vrot.slane %v5611_v52, 2  ;;  %v5620_v14 = vshrl.u32 %v14464_v23, 16  ;;  %v5629_v52 = vshrl.u32 %v14493_v58, 16 }
 0x390   : > { %v12006_v38 = vpop.f32.mrb[127].mxu0  ;;  %12215 = vmatprep.mubr.msk.bf16.mxu1 %vm13106_vm1, %v16402_v53 }
 0x391   : > { %v5617_v41 = vor.u32 %v5616_v51, %v5613_v46  ;;  %v5341_v38 = vsel %vm16437_vm10, %v5338_v54, %v5340_v48  ;;  %v5622_v59 = vrot.slane %v5620_v14, 2 }
 0x392   : > { %v4076_v31 = vpop.f32.mrb[116].mxu1  ;;  %12268 = vmatmul.mubr.msk.bf16.gmra.mrb[232].mxu0 %vm674_vm0, %v5600_v63 }
 0x393   : > { %v14862_v26 = vadd.f32 %v4232_v10, %v4076_v31  ;;  %v11953_v3 = vpop.f32.mrb[117].mxu1  ;;  %12271 = vmatprep.mubr.msk.bf16.mxu0 %vm13106_vm1, %v16402_v53 }
 0x394   : > { %v4079_v49 = vpop.f32.mrb[118].mxu1  ;;  %v5342_v3 = vrot.slane %v14368_v1, 2 }
 0x395   : > { %v14866_v36 = vadd.f32 %v4235_v62, %v4079_v49  ;;  %v11954_v32 = vpop.f32.mrb[119].mxu1  ;;  %v4646_v27 = vpop.f32.mrb[128].mxu0  ;;  %v5609_v62 = vsel %vm5547_vm11, %v5599_v22, %v5608_v12  ;;  %v5623_v22 = vshll.u32 %v14464_v23, 16 }
 0x396   : > { %v12061_v16 = vpop.f32.mrb[129].mxu0  ;;  %v5343_v1 = vsel %vm16438_vm13, %v5340_v48, %v5342_v3  ;;  %vm6251_vm13 = vsmask.f32 4368 }
 0x397   : > { %v4649_v19 = vpop.f32.mrb[130].mxu0  ;;  %12216 = vmatmul.mubr.msk.bf16.gmra.mrb[224].mxu1 %vm674_vm0, %v5339_v34  ;;  %v5625_v29 = vrot.slane %v5623_v22, 3 }
 0x398   : > { %v12062_v10 = vpop.f32.mrb[131].mxu0  ;;  %12219 = vmatprep.mubr.msk.bf16.mxu1 %vm13106_vm1, %v16402_v53 }
 0x399   : > { %v5626_v10 = vor.u32 %v5625_v29, %v5622_v59 }
 0x39a   : > { %v4084_v37 = vpop.f32.mrb[120].mxu1  ;;  %12272 = vmatmul.mubr.msk.bf16.gmra.mrb[236].mxu0 %vm674_vm0, %v5609_v62 }
 0x39b   : > { %v14877_v43 = vadd.f32 %v4240_v56, %v4084_v37  ;;  %v11957_v40 = vpop.f32.mrb[121].mxu1  ;;  %12275 = vmatprep.mubr.msk.bf16.mxu0 %vm13106_vm1, %v16402_v53  ;;  %v5618_v56 = vsel %vm5547_vm11, %v5608_v12, %v5617_v41 }
 0x39c   : > { %v4087_v25 = vpop.f32.mrb[122].mxu1  ;;  %v5631_v40 = vrot.slane %v5629_v52, 2 }
 0x39d   : > { %v11958_v24 = vpop.f32.mrb[123].mxu1  ;;  %v4654_v6 = vpop.f32.mrb[132].mxu0  ;;  %v5634_v25 = vrot.slane %v5632_v30, 3 }
 0x39e   : > { %v12065_v18 = vpop.f32.mrb[133].mxu0 }
 0x39f   : > { %v4657_v63 = vpop.f32.mrb[134].mxu0  ;;  %12220 = vmatmul.mubr.msk.bf16.gmra.mrb[228].mxu1 %vm674_vm0, %v5341_v38  ;;  %v5635_v22 = vor.u32 %v5634_v25, %v5631_v40 }
 0x3a0   : > { %v12066_v61 = vpop.f32.mrb[135].mxu0  ;;  %12223 = vmatprep.mubr.msk.bf16.mxu1 %vm13106_vm1, %v16402_v53 }
 0x3a2   : > { %v4356_v31 = vpop.f32.mrb[124].mxu1  ;;  %12276 = vmatmul.mubr.msk.bf16.gmra.mrb[240].mxu0 %vm674_vm0, %v5618_v56  ;;  %v5638_v56 = vshrl.u32 %v14515_v44, 16 }
 0x3a3   : > { %v4442_v49 = vadd.f32 %v4356_v31, %v14634_v42  ;;  %v12013_v32 = vpop.f32.mrb[125].mxu1  ;;  %12279 = vmatprep.mubr.msk.bf16.mxu0 %vm13106_vm1, %v16402_v53 }
 0x3a4   : > { %v4359_v54 = vpop.f32.mrb[126].mxu1  ;;  %v5640_v32 = vrot.slane %v5638_v56, 2 }
 0x3a5   : > { %v4443_v12 = vadd.f32 %v4359_v54, %v14636_v50  ;;  %v12014_v16 = vpop.f32.mrb[127].mxu1  ;;  %v4662_v34 = vpop.f32.mrb[136].mxu0  ;;  %v14896_v62 = vadd.f32 %v4646_v27, %v4442_v49  ;;  %v5627_v50 = vsel %vm5547_vm11, %v5617_v41, %v5626_v10  ;;  %v5344_v27 = vrot.slane %v14460_v55, 2 }
 0x3a6   : > { %v12069_v46 = vpop.f32.mrb[137].mxu0  ;;  %v5641_v41 = vshll.u32 %v14515_v44, 16 }
 0x3a7   : > { %v4665_v42 = vpop.f32.mrb[138].mxu0  ;;  %12224 = vmatmul.mubr.msk.bf16.gmra.mrb[232].mxu1 %vm674_vm0, %v5343_v1  ;;  %v14900_v51 = vadd.f32 %v4649_v19, %v4443_v12  ;;  %v5345_v55 = vsel %vm16439_vm8, %v5342_v3, %v5344_v27  ;;  %vm16455_vm8 = vsmask.f32 256 }
 0x3a8   : > { %v12070_v37 = vpop.f32.mrb[139].mxu0  ;;  %12227 = vmatprep.mubr.msk.bf16.mxu1 %vm13106_vm1, %v16402_v53  ;;  %v5643_v54 = vrot.slane %v5641_v41, 3 }
 0x3aa   : > { %v4364_v24 = vpop.f32.mrb[128].mxu1  ;;  %12280 = vmatmul.mubr.msk.bf16.gmra.mrb[244].mxu0 %vm674_vm0, %v5627_v50  ;;  %v5644_v1 = vor.u32 %v5643_v54, %v5640_v32 }
 0x3ab   : > { %v4444_v48 = vadd.f32 %v4364_v24, %v14670_v15  ;;  %v12017_v14 = vpop.f32.mrb[129].mxu1  ;;  %12283 = vmatprep.mubr.msk.bf16.mxu0 %vm13106_vm1, %v16402_v53 }
 0x3ac   : > { %v4367_v19 = vpop.f32.mrb[130].mxu1  ;;  %v5645_v50 = vsel %vm5547_vm11, %v5635_v22, %v5644_v1 }
 0x3ad   : > { %v4445_v18 = vadd.f32 %v4367_v19, %v14672_v0  ;;  %v12018_v38 = vpop.f32.mrb[131].mxu1  ;;  %v4670_v61 = vpop.f32.mrb[140].mxu0  ;;  %v14913_v59 = vadd.f32 %v4654_v6, %v4444_v48  ;;  %v5636_v0 = vsel %vm5547_vm11, %v5626_v10, %v5635_v22  ;;  %v5346_v6 = vrot.slane %v14464_v23, 2 }
 0x3ae   : > { %v12073_v29 = vpop.f32.mrb[141].mxu0 }
 0x3af   : > { %v4673_v15 = vpop.f32.mrb[142].mxu0  ;;  %12228 = vmatmul.mubr.msk.bf16.gmra.mrb[236].mxu1 %vm674_vm0, %v5345_v55  ;;  %v14917_v31 = vadd.f32 %v4657_v63, %v4445_v18  ;;  %v5347_v40 = vsel %vm16440_vm6, %v5344_v27, %v5346_v6  ;;  %v5270_v27 = vld [vmem:[#allocation3 + $0x60] sm:$0x3]  ;;  %vm15227_vm6 = vmor %vm16455_vm8, %vm6251_vm13  ;;  %vm6455_vm8 = vcmask 519171  }
 0x3b0   : > { %v12074_v49 = vpop.f32.mrb[143].mxu0  ;;  %12231 = vmatprep.mubr.msk.bf16.mxu1 %vm13106_vm1, %v16402_v53  ;;  %v10541_v41 = vcombine.low %v14508_v33, %v5270_v27 }
 0x3b2   : > { %v4372_v52 = vpop.f32.mrb[132].mxu1  ;;  %12284 = vmatmul.mubr.msk.bf16.gmra.mrb[248].mxu0 %vm674_vm0, %v5636_v0 }
 0x3b3   : > { %v4446_v3 = vadd.f32 %v4372_v52, %v14688_v4  ;;  %v12021_v30 = vpop.f32.mrb[133].mxu1  ;;  %12287 = vmatprep.mubr.msk.bf16.mxu0 %vm13106_vm1, %v16402_v53 }
 0x3b4   : > { %v4375_v63 = vpop.f32.mrb[134].mxu1 }
 0x3b5   : > { %v4447_v12 = vadd.f32 %v4375_v63, %v14691_v45  ;;  %v12022_v16 = vpop.f32.mrb[135].mxu1  ;;  %v4678_v46 = vpop.f32.mrb[144].mxu0  ;;  %v14928_v10 = vadd.f32 %v4662_v34, %v4446_v3  ;;  %v5348_v34 = vrot.slane %v14493_v58, 2 }
 0x3b6   : > { %v12077_v37 = vpop.f32.mrb[145].mxu0 }
 0x3b7   : > { %v4681_v25 = vpop.f32.mrb[146].mxu0  ;;  %12232 = vmatmul.mubr.msk.bf16.gmra.mrb[240].mxu1 %vm674_vm0, %v5347_v40  ;;  %v14932_v23 = vadd.f32 %v4665_v42, %v4447_v12  ;;  %v5349_v56 = vsel %vm16441_vm12, %v5346_v6, %v5348_v34  ;;  %vm6284_vm12 = vcmask 97280  }
 0x3b8   : > { %v12078_v4 = vpop.f32.mrb[147].mxu0  ;;  %12235 = vmatprep.mubr.msk.bf16.mxu1 %vm13106_vm1, %v16402_v53 }
 0x3ba   : > { %v4380_v45 = vpop.f32.mrb[136].mxu1  ;;  %12288 = vmatmul.mubr.msk.bf16.gmra.mrb[252].mxu0 %vm674_vm0, %v5645_v50 }
 0x3bb   : > { %v4448_v24 = vadd.f32 %v4380_v45, %v14725_v21  ;;  %v12025_v48 = vpop.f32.mrb[137].mxu1  ;;  %12291 = vmatprep.mubr.msk.bf16.mxu0 %vm13106_vm1, %v16402_v53 }
 0x3bc   : > { %v4383_v42 = vpop.f32.mrb[138].mxu1 }
 0x3bd   : > { %v4449_v14 = vadd.f32 %v4383_v42, %v14729_v8  ;;  %v12026_v19 = vpop.f32.mrb[139].mxu1  ;;  %v4686_v18 = vpop.f32.mrb[148].mxu0  ;;  %v14943_v38 = vadd.f32 %v4670_v61, %v4448_v24  ;;  %v5350_v8 = vrot.slane %v10541_v41, 2 }
 0x3be   : > { %v12081_v22 = vpop.f32.mrb[149].mxu0 }
 0x3bf   : > { %v4689_v58 = vpop.f32.mrb[150].mxu0  ;;  %12236 = vmatmul.mubr.msk.bf16.gmra.mrb[244].mxu1 %vm674_vm0, %v5349_v56  ;;  %v14948_v21 = vadd.f32 %v4673_v15, %v4449_v14  ;;  %v5351_v6 = vsel %vm16442_vm15, %v5348_v34, %v5350_v8  ;;  %v16443_v22 = vld [vmem:[#allocation16_spill] sm:$0xff] }
 0x3c0   : > { %v12082_v29 = vpop.f32.mrb[151].mxu0  ;;  %12239 = vmatprep.mubr.msk.bf16.mxu1 %vm13106_vm1, %v16402_v53 }
 0x3c2   : > { %v4388_v55 = vpop.f32.mrb[140].mxu1  ;;  %12292 = vmatmul.mubr.msk.bf16.gmra.mrb[0].mxu0 %vm674_vm0, %v5644_v1 }
 0x3c3   : > { %v4450_v61 = vadd.f32 %v4388_v55, %v14755_v11  ;;  %v12029_v49 = vpop.f32.mrb[141].mxu1  ;;  %12345 = vmatprep.mubr.msk.bf16.mxu0 %vm13106_vm1, %v16402_v53 }
 0x3c4   : > { %v4391_v33 = vpop.f32.mrb[142].mxu1 }
 0x3c5   : > { %v4451_v0 = vadd.f32 %v4391_v33, %v14759_v47  ;;  %v12030_v32 = vpop.f32.mrb[143].mxu1  ;;  %v4694_v15 = vpop.f32.mrb[152].mxu0  ;;  %v14957_v54 = vadd.f32 %v4678_v46, %v4450_v61 }
 0x3c6   : > { %v12085_v52 = vpop.f32.mrb[153].mxu0  ;;  %v16444_v32 = vld [vmem:[#allocation18_spill] sm:$0xff] }
 0x3c7   : > { %v4697_v3 = vpop.f32.mrb[154].mxu0  ;;  %12240 = vmatmul.mubr.msk.bf16.gmra.mrb[248].mxu1 %vm674_vm0, %v5351_v6  ;;  %v14961_v30 = vadd.f32 %v4681_v25, %v4451_v0 }
 0x3c8   : > { %v12086_v11 = vpop.f32.mrb[155].mxu0  ;;  %12243 = vmatprep.mubr.msk.bf16.mxu1 %vm13106_vm1, %v16402_v53 }
 0x3ca   : > { %v4396_v63 = vpop.f32.mrb[144].mxu1 }
 0x3cb   : > { %v4452_v12 = vadd.f32 %v4396_v63, %v14777_v9  ;;  %v12033_v47 = vpop.f32.mrb[145].mxu1 }
 0x3cc   : > { %v4399_v16 = vpop.f32.mrb[146].mxu1 }
 0x3cd   : > { %v4453_v46 = vadd.f32 %v4399_v16, %v14787_v20  ;;  %v12034_v1 = vpop.f32.mrb[147].mxu1  ;;  %v4702_v37 = vpop.f32.mrb[156].mxu0  ;;  %v14967_v40 = vadd.f32 %v4686_v18, %v4452_v12 }
 0x3ce   : > { %v12089_v4 = vpop.f32.mrb[157].mxu0  ;;  %v16445_v1 = vld [vmem:[#allocation20_spill] sm:$0xff] }
 0x3cf   : > { %v4705_v50 = vpop.f32.mrb[158].mxu0  ;;  %12244 = vmatmul.mubr.msk.bf16.gmra.mrb[252].mxu1 %vm674_vm0, %v5350_v8  ;;  %v14970_v25 = vadd.f32 %v4689_v58, %v4453_v46 }
 0x3d0   : > { %v12090_v45 = vpop.f32.mrb[159].mxu0  ;;  %12299 = vmatprep.mubr.msk.bf16.mxu1 %vm13106_vm1, %v16402_v53 }
 0x3d2   : > { %v4404_v34 = vpop.f32.mrb[148].mxu1 }
 0x3d3   : > { %v4454_v9 = vadd.f32 %v4404_v34, %v14794_v13  ;;  %v12037_v24 = vpop.f32.mrb[149].mxu1 }
 0x3d4   : > { %v4407_v48 = vpop.f32.mrb[150].mxu1 }
 0x3d5   : > { %v4455_v20 = vadd.f32 %v4407_v48, %v14800_v35  ;;  %v12038_v27 = vpop.f32.mrb[151].mxu1  ;;  %v4710_v42 = vpop.f32.mrb[160].mxu0  ;;  %v14976_v14 = vadd.f32 %v4694_v15, %v4454_v9 }
 0x3d6   : > { %v12093_v19 = vpop.f32.mrb[161].mxu0 }
 0x3d7   : > { %v4713_v18 = vpop.f32.mrb[162].mxu0  ;;  %12300 = vmatmul.mubr.msk.bf16.vlgmr.msra.gmra.mrb[0].mxu1 %vm674_vm0, %v16443_v22  ;;  %v14980_v56 = vadd.f32 %v4697_v3, %v4455_v20 }
 0x3d8   : > { %v12094_v41 = vpop.f32.mrb[163].mxu0  ;;  %12303 = vmatprep.mubr.msk.bf16.mxu1 %vm13106_vm1, %v16402_v53 }
 0x3da   : > { %v4412_v13 = vpop.f32.mrb[152].mxu1 }
 0x3db   : > { %v4456_v58 = vadd.f32 %v4412_v13, %v14833_v28  ;;  %v12041_v29 = vpop.f32.mrb[153].mxu1 }
 0x3dc   : > { %v4415_v35 = vpop.f32.mrb[154].mxu1 }
 0x3dd   : > { %v4457_v55 = vadd.f32 %v4415_v35, %v14837_v57  ;;  %v12042_v8 = vpop.f32.mrb[155].mxu1  ;;  %v4718_v61 = vpop.f32.mrb[164].mxu0  ;;  %v14986_v49 = vadd.f32 %v4702_v37, %v4456_v58 }
 0x3de   : > { %v12097_v33 = vpop.f32.mrb[165].mxu0  ;;  %v16447_v8 = vld [vmem:[#allocation29_spill] sm:$0xff] }
 0x3df   : > { %v4721_v0 = vpop.f32.mrb[166].mxu0  ;;  %12304 = vmatmul.mubr.msk.bf16.gmra.mrb[4].mxu1 %vm674_vm0, %v16444_v32  ;;  %v14990_v15 = vadd.f32 %v4705_v50, %v4457_v55 }
 0x3e0   : > { %v12098_v52 = vpop.f32.mrb[167].mxu0  ;;  %12307 = vmatprep.mubr.msk.bf16.mxu1 %vm13106_vm1, %v16402_v53 }
 0x3e2   : > { %v4420_v28 = vpop.f32.mrb[156].mxu1 }
 0x3e3   : > { %v4458_v6 = vadd.f32 %v4420_v28, %v14847_v2  ;;  %v12045_v3 = vpop.f32.mrb[157].mxu1 }
 0x3e4   : > { %v4423_v57 = vpop.f32.mrb[158].mxu1 }
 0x3e5   : > { %v4459_v11 = vadd.f32 %v4423_v57, %v14851_v60  ;;  %v12046_v63 = vpop.f32.mrb[159].mxu1  ;;  %v4726_v12 = vpop.f32.mrb[168].mxu0  ;;  %v14996_v47 = vadd.f32 %v4710_v42, %v4458_v6  ;;  %v16446_v42 = vld [vmem:[#allocation28_spill] sm:$0xff] }
 0x3e6   : > { %v12101_v16 = vpop.f32.mrb[169].mxu0  ;;  %v16448_v63 = vld [vmem:[#allocation30_spill] sm:$0xff] }
 0x3e7   : > { %v4729_v46 = vpop.f32.mrb[170].mxu0  ;;  %12308 = vmatmul.mubr.msk.bf16.gmra.mrb[8].mxu1 %vm674_vm0, %v16445_v1  ;;  %v15000_v37 = vadd.f32 %v4713_v18, %v4459_v11 }
 0x3e8   : > { %v12102_v4 = vpop.f32.mrb[171].mxu0  ;;  %12311 = vmatprep.mubr.msk.bf16.mxu1 %vm13106_vm1, %v16402_v53 }
 0x3ea   : > { %v4428_v2 = vpop.f32.mrb[160].mxu1 }
 0x3eb   : > { %v4460_v50 = vadd.f32 %v4428_v2, %v14862_v26  ;;  %v12049_v45 = vpop.f32.mrb[161].mxu1 }
 0x3ec   : > { %v4431_v60 = vpop.f32.mrb[162].mxu1 }
 0x3ed   : > { %v4461_v34 = vadd.f32 %v4431_v60, %v14866_v36  ;;  %v12050_v9 = vpop.f32.mrb[163].mxu1  ;;  %v5142_v24 = vpop.f32.mrb[172].mxu0  ;;  %v15006_v48 = vadd.f32 %v4718_v61, %v4460_v50 }
 0x3ee   : > { %v12157_v20 = vpop.f32.mrb[173].mxu0 }
 0x3ef   : > { %v5145_v27 = vpop.f32.mrb[174].mxu0  ;;  %12312 = vmatmul.mubr.msk.bf16.gmra.mrb[12].mxu1 %vm674_vm0, %v16446_v42  ;;  %v15010_v19 = vadd.f32 %v4721_v0, %v4461_v34 }
 0x3f0   : > { %v12158_v18 = vpop.f32.mrb[175].mxu0  ;;  %12315 = vmatprep.mubr.msk.bf16.mxu1 %vm13106_vm1, %v16402_v53 }
 0x3f2   : > { %v4436_v26 = vpop.f32.mrb[164].mxu1 }
 0x3f3   : > { %v4462_v22 = vadd.f32 %v4436_v26, %v14877_v43  ;;  %v12053_v41 = vpop.f32.mrb[165].mxu1 }
 0x3f4   : > { %v4439_v36 = vpop.f32.mrb[166].mxu1 }
 0x3f5   : > { %v12054_v13 = vpop.f32.mrb[167].mxu1  ;;  %v5150_v58 = vpop.f32.mrb[176].mxu0  ;;  %v15015_v29 = vadd.f32 %v4726_v12, %v4462_v22 }
 0x3f6   : > { %v12161_v35 = vpop.f32.mrb[177].mxu0 }
 0x3f7   : > { %v5153_v55 = vpop.f32.mrb[178].mxu0  ;;  %12316 = vmatmul.mubr.msk.bf16.gmra.mrb[16].mxu1 %vm674_vm0, %v16447_v8 }
 0x3f8   : > { %v12162_v61 = vpop.f32.mrb[179].mxu0  ;;  %12319 = vmatprep.mubr.msk.bf16.mxu1 %vm13106_vm1, %v16402_v53 }
 0x3fa   : > { %v4940_v33 = vpop.f32.mrb[168].mxu1 }
 0x3fb   : > { %v5026_v0 = vadd.f32 %v4940_v33, %v14896_v62  ;;  %v12109_v32 = vpop.f32.mrb[169].mxu1 }
 0x3fc   : > { %v4943_v43 = vpop.f32.mrb[170].mxu1 }
 0x3fd   : > { %v5027_v52 = vadd.f32 %v4943_v43, %v14900_v51  ;;  %v12110_v28 = vpop.f32.mrb[171].mxu1  ;;  %v5158_v6 = vpop.f32.mrb[180].mxu0  ;;  %v15023_v3 = vadd.f32 %v5142_v24, %v5026_v0 }
 0x3fe   : > { %v12165_v57 = vpop.f32.mrb[181].mxu0 }
 0x3ff   : > { %v5161_v11 = vpop.f32.mrb[182].mxu0  ;;  %12320 = vmatmul.mubr.msk.bf16.gmra.mrb[20].mxu1 %vm674_vm0, %v16448_v63  ;;  %v15027_v12 = vadd.f32 %v5145_v27, %v5027_v52 }
 0x400   : > { %v12166_v16 = vpop.f32.mrb[183].mxu0  ;;  %12323 = vmatprep.mubr.msk.bf16.mxu1 %vm13106_vm1, %v16402_v53 }
 0x402   : > { %v4948_v62 = vpop.f32.mrb[172].mxu1 }
 0x403   : > { %v5028_v46 = vadd.f32 %v4948_v62, %v14913_v59  ;;  %v12113_v1 = vpop.f32.mrb[173].mxu1 }
 0x404   : > { %v4951_v51 = vpop.f32.mrb[174].mxu1 }
 0x405   : > { %v5029_v4 = vadd.f32 %v4951_v51, %v14917_v31  ;;  %v12114_v2 = vpop.f32.mrb[175].mxu1  ;;  %v5166_v50 = vpop.f32.mrb[184].mxu0  ;;  %v15033_v45 = vadd.f32 %v5150_v58, %v5028_v46 }
 0x406   : > { %v12169_v60 = vpop.f32.mrb[185].mxu0 }
 0x407   : > { %v5169_v34 = vpop.f32.mrb[186].mxu0  ;;  %12324 = vmatmul.mubr.msk.bf16.gmra.mrb[24].mxu1 %vm674_vm0, %v14485_v5  ;;  %v15037_v9 = vadd.f32 %v5153_v55, %v5029_v4  ;;  %v16449_v5 = vld [vmem:[#allocation35_spill] sm:$0xff] }
 0x408   : > { %v12170_v24 = vpop.f32.mrb[187].mxu0  ;;  %12327 = vmatprep.mubr.msk.bf16.mxu1 %vm13106_vm1, %v16402_v53 }
 0x40a   : > { %v4956_v59 = vpop.f32.mrb[176].mxu1 }
 0x40b   : > { %v5030_v20 = vadd.f32 %v4956_v59, %v14928_v10  ;;  %v12117_v27 = vpop.f32.mrb[177].mxu1 }
 0x40c   : > { %v4959_v31 = vpop.f32.mrb[178].mxu1 }
 0x40d   : > { %v5031_v42 = vadd.f32 %v4959_v31, %v14932_v23  ;;  %v12118_v18 = vpop.f32.mrb[179].mxu1  ;;  %v5174_v26 = vpop.f32.mrb[188].mxu0  ;;  %v15043_v22 = vadd.f32 %v5158_v6, %v5030_v20 }
 0x40e   : > { %v12173_v41 = vpop.f32.mrb[189].mxu0 }
 0x40f   : > { %v5177_v36 = vpop.f32.mrb[190].mxu0  ;;  %12328 = vmatmul.mubr.msk.bf16.gmra.mrb[28].mxu1 %vm674_vm0, %v16449_v5  ;;  %v15047_v13 = vadd.f32 %v5161_v11, %v5031_v42 }
 0x410   : > { %v12174_v58 = vpop.f32.mrb[191].mxu0  ;;  %12331 = vmatprep.mubr.msk.bf16.mxu1 %vm13106_vm1, %v16402_v53 }
 0x412   : > { %v4964_v10 = vpop.f32.mrb[180].mxu1 }
 0x413   : > { %v5032_v35 = vadd.f32 %v4964_v10, %v14943_v38  ;;  %v12121_v55 = vpop.f32.mrb[181].mxu1 }
 0x414   : > { %v4967_v23 = vpop.f32.mrb[182].mxu1 }
 0x415   : > { %v5033_v8 = vadd.f32 %v4967_v23, %v14948_v21  ;;  %v12122_v61 = vpop.f32.mrb[183].mxu1  ;;  %v5182_v33 = vpop.f32.mrb[192].mxu0  ;;  %v15053_v0 = vadd.f32 %v5166_v50, %v5032_v35 }
 0x416   : > { %v12177_v32 = vpop.f32.mrb[193].mxu0 }
 0x417   : > { %v5185_v43 = vpop.f32.mrb[194].mxu0  ;;  %12332 = vmatmul.mubr.msk.bf16.gmra.mrb[32].mxu1 %vm674_vm0, %v14523_v7  ;;  %v15057_v52 = vadd.f32 %v5169_v34, %v5033_v8 }
 0x418   : > { %v12178_v28 = vpop.f32.mrb[195].mxu0  ;;  %12335 = vmatprep.mubr.msk.bf16.mxu1 %vm13106_vm1, %v16402_v53 }
 0x41a   : > { %v4972_v38 = vpop.f32.mrb[184].mxu1 }
 0x41b   : > { %v5034_v6 = vadd.f32 %v4972_v38, %v14957_v54  ;;  %v12125_v57 = vpop.f32.mrb[185].mxu1 }
 0x41c   : > { %v4975_v21 = vpop.f32.mrb[186].mxu1 }
 0x41d   : > { %v5035_v11 = vadd.f32 %v4975_v21, %v14961_v30  ;;  %v12126_v63 = vpop.f32.mrb[187].mxu1  ;;  %v5190_v16 = vpop.f32.mrb[196].mxu0  ;;  %v15063_v62 = vadd.f32 %v5174_v26, %v5034_v6 }
 0x41e   : > { %v12181_v46 = vpop.f32.mrb[197].mxu0 }
 0x41f   : > { %v5193_v1 = vpop.f32.mrb[198].mxu0  ;;  %12336 = vmatmul.mubr.msk.bf16.gmra.mrb[36].mxu1 %vm674_vm0, %v14537_v39  ;;  %v15067_v7 = vadd.f32 %v5177_v36, %v5035_v11  ;;  %v16450_v39 = vmov 0  }
 0x420   : > { %v12182_v51 = vpop.f32.mrb[199].mxu0  ;;  %12339 = vmatprep.mubr.msk.bf16.mxu1 %vm13106_vm1, %v16402_v53  ;;  %520 = vst.msk [vmem:[#allocation5] sm:$0xf] %vm519_vm2, %v16450_v39  ;;  %521 = vst.msk [vmem:[#allocation5 + $0x4] sm:$0xf] %vm519_vm2, %v16450_v39 }
 0x421   : > { %522 = vst.msk [vmem:[#allocation5 + $0x8] sm:$0xf] %vm519_vm2, %v16450_v39  ;;  %523 = vst.msk [vmem:[#allocation5 + $0xc] sm:$0xf] %vm519_vm2, %v16450_v39 }
 0x422   : > { %v4980_v54 = vpop.f32.mrb[188].mxu1  ;;  %524 = vst.msk [vmem:[#allocation5 + $0x10] sm:$0xf] %vm519_vm2, %v16450_v39 }
 0x423   : > { %v5036_v4 = vadd.f32 %v4980_v54, %v14967_v40  ;;  %v12129_v2 = vpop.f32.mrb[189].mxu1 }
 0x424   : > { %v4983_v30 = vpop.f32.mrb[190].mxu1 }
 0x425   : > { %v5037_v50 = vadd.f32 %v4983_v30, %v14970_v25  ;;  %v12130_v60 = vpop.f32.mrb[191].mxu1  ;;  %v5198_v34 = vpop.f32.mrb[200].mxu0  ;;  %v15073_v24 = vadd.f32 %v5182_v33, %v5036_v4 }
 0x426   : > { %v12185_v59 = vpop.f32.mrb[201].mxu0 }
 0x427   : > { %v5201_v40 = vpop.f32.mrb[202].mxu0  ;;  %12340 = vmatmul.mubr.msk.bf16.gmra.mrb[40].mxu1 %vm674_vm0, %v5860_v17  ;;  %v15088_v25 = vadd.f32 %v5185_v43, %v5037_v50  ;;  %vm6207_vm0 = vsmask.f32 3328 }
 0x428   : > { %v12186_v20 = vpop.f32.mrb[203].mxu0  ;;  %vm15202_vm10 = vmor %vm6207_vm0, %vm6208_vm3 }
 0x429   : > { %vm16458_vm0 = vmmov %vm16442_vm15 }
 0x42a   : > { %v4988_v27 = vpop.f32.mrb[192].mxu1  ;;  %vm16459_vm3 = vmmov %vm16458_vm0 }
 0x42b   : > { %v5038_v31 = vadd.f32 %v4988_v27, %v14976_v14  ;;  %v12133_v42 = vpop.f32.mrb[193].mxu1  ;;  %vm16460_vm13 = vmmov %vm16458_vm0 }
 0x42c   : > { %v4991_v18 = vpop.f32.mrb[194].mxu1 }
 0x42d   : > { %v5039_v26 = vadd.f32 %v4991_v18, %v14980_v56  ;;  %v12134_v41 = vpop.f32.mrb[195].mxu1  ;;  %v5206_v36 = vpop.f32.mrb[204].mxu0  ;;  %v15092_v5 = vadd.f32 %v5190_v16, %v5038_v31 }
 0x42e   : > { %v12189_v58 = vpop.f32.mrb[205].mxu0 }
 0x42f   : > { %v5209_v10 = vpop.f32.mrb[206].mxu0  ;;  %v15094_v35 = vadd.f32 %v5193_v1, %v5039_v26 }
 0x430   : > { %v12190_v44 = vpop.f32.mrb[207].mxu0 }
 0x432   : > { %v4996_v17 = vpop.f32.mrb[196].mxu1 }
 0x433   : > { %v5040_v55 = vadd.f32 %v4996_v17, %v14986_v49  ;;  %v12137_v23 = vpop.f32.mrb[197].mxu1 }
 0x434   : > { %v4999_v8 = vpop.f32.mrb[198].mxu1 }
 0x435   : > { %v5041_v14 = vadd.f32 %v4999_v8, %v14990_v15  ;;  %v12138_v61 = vpop.f32.mrb[199].mxu1  ;;  %v5214_v33 = vpop.f32.mrb[208].mxu0  ;;  %v15098_v32 = vadd.f32 %v5198_v34, %v5040_v55 }
 0x436   : > { %v12193_v56 = vpop.f32.mrb[209].mxu0 }
 0x437   : > { %v5217_v43 = vpop.f32.mrb[210].mxu0  ;;  %v15100_v28 = vadd.f32 %v5201_v40, %v5041_v14 }
 0x438   : > { %v12194_v38 = vpop.f32.mrb[211].mxu0 }
 0x43a   : > { %v5004_v6 = vpop.f32.mrb[200].mxu1 }
 0x43b   : > { %v5042_v57 = vadd.f32 %v5004_v6, %v14996_v47  ;;  %v12141_v21 = vpop.f32.mrb[201].mxu1 }
 0x43c   : > { %v5007_v11 = vpop.f32.mrb[202].mxu1 }
 0x43d   : > { %v5043_v49 = vadd.f32 %v5007_v11, %v15000_v37  ;;  %v12142_v63 = vpop.f32.mrb[203].mxu1  ;;  %v5222_v16 = vpop.f32.mrb[212].mxu0  ;;  %v15104_v46 = vadd.f32 %v5206_v36, %v5042_v57 }
 0x43e   : > { %v12197_v15 = vpop.f32.mrb[213].mxu0 }
 0x43f   : > { %v5225_v1 = vpop.f32.mrb[214].mxu0  ;;  %v15106_v51 = vadd.f32 %v5209_v10, %v5043_v49 }
 0x440   : > { %v12198_v54 = vpop.f32.mrb[215].mxu0 }
 0x442   : > { %v5012_v4 = vpop.f32.mrb[204].mxu1 }
 0x443   : > { %v5044_v2 = vadd.f32 %v5012_v4, %v15006_v48  ;;  %v12145_v30 = vpop.f32.mrb[205].mxu1 }
 0x444   : > { %v5015_v50 = vpop.f32.mrb[206].mxu1 }
 0x445   : > { %v5045_v47 = vadd.f32 %v5015_v50, %v15010_v19  ;;  %v12146_v60 = vpop.f32.mrb[207].mxu1  ;;  %v5725_v34 = vpop.f32.mrb[216].mxu0  ;;  %v15110_v59 = vadd.f32 %v5214_v33, %v5044_v2 }
 0x446   : > { %v12253_v37 = vpop.f32.mrb[217].mxu0 }
 0x447   : > { %v5728_v40 = vpop.f32.mrb[218].mxu0  ;;  %v15112_v20 = vadd.f32 %v5217_v43, %v5045_v47 }
 0x448   : > { %v12254_v27 = vpop.f32.mrb[219].mxu0 }
 0x44a   : > { %v5020_v31 = vpop.f32.mrb[208].mxu1 }
 0x44b   : > { %v5046_v42 = vadd.f32 %v5020_v31, %v15015_v29  ;;  %v12149_v18 = vpop.f32.mrb[209].mxu1 }
 0x44c   : > { %v5023_v26 = vpop.f32.mrb[210].mxu1 }
 0x44d   : > { %v12150_v41 = vpop.f32.mrb[211].mxu1  ;;  %v5733_v48 = vpop.f32.mrb[220].mxu0  ;;  %v15115_v36 = vadd.f32 %v5222_v16, %v5046_v42 }
 0x44e   : > { %v12257_v58 = vpop.f32.mrb[221].mxu0 }
 0x44f   : > { %v5736_v19 = vpop.f32.mrb[222].mxu0 }
 0x450   : > { %v12258_v10 = vpop.f32.mrb[223].mxu0 }
 0x452   : > { %v5431_v44 = vpop.f32.mrb[212].mxu1 }
 0x453   : > { %v5517_v17 = vadd.f32 %v5431_v44, %v15023_v3  ;;  %v12205_v55 = vpop.f32.mrb[213].mxu1 }
 0x454   : > { %v5434_v23 = vpop.f32.mrb[214].mxu1 }
 0x455   : > { %v5518_v8 = vadd.f32 %v5434_v23, %v15027_v12  ;;  %v12206_v14 = vpop.f32.mrb[215].mxu1  ;;  %v5741_v61 = vpop.f32.mrb[224].mxu0  ;;  %v15119_v33 = vadd.f32 %v5725_v34, %v5517_v17 }
 0x456   : > { %v12261_v29 = vpop.f32.mrb[225].mxu0 }
 0x457   : > { %v5744_v56 = vpop.f32.mrb[226].mxu0  ;;  %v15121_v43 = vadd.f32 %v5728_v40, %v5518_v8 }
 0x458   : > { %v12262_v38 = vpop.f32.mrb[227].mxu0 }
 0x45a   : > { %v5439_v6 = vpop.f32.mrb[216].mxu1 }
 0x45b   : > { %v5519_v57 = vadd.f32 %v5439_v6, %v15033_v45  ;;  %v12209_v21 = vpop.f32.mrb[217].mxu1 }
 0x45c   : > { %v5442_v11 = vpop.f32.mrb[218].mxu1 }
 0x45d   : > { %v5520_v3 = vadd.f32 %v5442_v11, %v15037_v9  ;;  %v12210_v49 = vpop.f32.mrb[219].mxu1  ;;  %v5749_v63 = vpop.f32.mrb[228].mxu0  ;;  %v15125_v16 = vadd.f32 %v5733_v48, %v5519_v57 }
 0x45e   : > { %v12265_v12 = vpop.f32.mrb[229].mxu0 }
 0x45f   : > { %v5752_v15 = vpop.f32.mrb[230].mxu0  ;;  %v15127_v1 = vadd.f32 %v5736_v19, %v5520_v3 }
 0x460   : > { %v12266_v54 = vpop.f32.mrb[231].mxu0 }
 0x462   : > { %v5447_v4 = vpop.f32.mrb[220].mxu1 }
 0x463   : > { %v5521_v2 = vadd.f32 %v5447_v4, %v15043_v22  ;;  %v12213_v30 = vpop.f32.mrb[221].mxu1 }
 0x464   : > { %v5450_v50 = vpop.f32.mrb[222].mxu1 }
 0x465   : > { %v5522_v45 = vadd.f32 %v5450_v50, %v15047_v13  ;;  %v12214_v47 = vpop.f32.mrb[223].mxu1  ;;  %v5757_v60 = vpop.f32.mrb[232].mxu0  ;;  %v15131_v34 = vadd.f32 %v5741_v61, %v5521_v2 }
 0x466   : > { %v12269_v9 = vpop.f32.mrb[233].mxu0 }
 0x467   : > { %v5760_v37 = vpop.f32.mrb[234].mxu0  ;;  %v15133_v40 = vadd.f32 %v5744_v56, %v5522_v45 }
 0x468   : > { %v12270_v27 = vpop.f32.mrb[235].mxu0 }
 0x46a   : > { %v5455_v31 = vpop.f32.mrb[224].mxu1 }
 0x46b   : > { %v5523_v42 = vadd.f32 %v5455_v31, %v15053_v0  ;;  %v12217_v18 = vpop.f32.mrb[225].mxu1 }
 0x46c   : > { %v5458_v26 = vpop.f32.mrb[226].mxu1 }
 0x46d   : > { %v5524_v22 = vadd.f32 %v5458_v26, %v15057_v52  ;;  %v12218_v41 = vpop.f32.mrb[227].mxu1  ;;  %v5765_v48 = vpop.f32.mrb[236].mxu0  ;;  %v15137_v58 = vadd.f32 %v5749_v63, %v5523_v42 }
 0x46e   : > { %v12273_v13 = vpop.f32.mrb[237].mxu0 }
 0x46f   : > { %v5768_v19 = vpop.f32.mrb[238].mxu0  ;;  %v15139_v10 = vadd.f32 %v5752_v15, %v5524_v22 }
 0x470   : > { %v12274_v44 = vpop.f32.mrb[239].mxu0 }
 0x472   : > { %v5463_v17 = vpop.f32.mrb[228].mxu1 }
 0x473   : > { %v5525_v55 = vadd.f32 %v5463_v17, %v15063_v62  ;;  %v12221_v23 = vpop.f32.mrb[229].mxu1 }
 0x474   : > { %v5466_v8 = vpop.f32.mrb[230].mxu1 }
 0x475   : > { %v5526_v0 = vadd.f32 %v5466_v8, %v15067_v7  ;;  %v12222_v14 = vpop.f32.mrb[231].mxu1  ;;  %v5773_v61 = vpop.f32.mrb[240].mxu0  ;;  %v15143_v29 = vadd.f32 %v5757_v60, %v5525_v55 }
 0x476   : > { %v12277_v52 = vpop.f32.mrb[241].mxu0 }
 0x477   : > { %v5776_v56 = vpop.f32.mrb[242].mxu0  ;;  %v15145_v38 = vadd.f32 %v5760_v37, %v5526_v0 }
 0x478   : > { %v12278_v6 = vpop.f32.mrb[243].mxu0 }
 0x47a   : > { %v5471_v57 = vpop.f32.mrb[232].mxu1 }
 0x47b   : > { %v5527_v21 = vadd.f32 %v5471_v57, %v15073_v24  ;;  %v12225_v11 = vpop.f32.mrb[233].mxu1 }
 0x47c   : > { %v5474_v3 = vpop.f32.mrb[234].mxu1 }
 0x47d   : > { %v5528_v62 = vadd.f32 %v5474_v3, %v15088_v25  ;;  %v12226_v49 = vpop.f32.mrb[235].mxu1  ;;  %v5781_v63 = vpop.f32.mrb[244].mxu0  ;;  %v15149_v12 = vadd.f32 %v5765_v48, %v5527_v21 }
 0x47e   : > { %v12281_v7 = vpop.f32.mrb[245].mxu0 }
 0x47f   : > { %v5784_v15 = vpop.f32.mrb[246].mxu0  ;;  %v15151_v54 = vadd.f32 %v5768_v19, %v5528_v62 }
 0x480   : > { %v12282_v4 = vpop.f32.mrb[247].mxu0 }
 0x482   : > { %v5479_v2 = vpop.f32.mrb[236].mxu1 }
 0x483   : > { %v5529_v30 = vadd.f32 %v5479_v2, %v15092_v5  ;;  %v12229_v50 = vpop.f32.mrb[237].mxu1 }
 0x484   : > { %v5482_v45 = vpop.f32.mrb[238].mxu1 }
 0x485   : > { %v5530_v24 = vadd.f32 %v5482_v45, %v15094_v35  ;;  %v12230_v47 = vpop.f32.mrb[239].mxu1  ;;  %v5789_v60 = vpop.f32.mrb[248].mxu0  ;;  %v15155_v9 = vadd.f32 %v5773_v61, %v5529_v30 }
 0x486   : > { %v12285_v25 = vpop.f32.mrb[249].mxu0 }
 0x487   : > { %v5792_v37 = vpop.f32.mrb[250].mxu0  ;;  %v15157_v27 = vadd.f32 %v5776_v56, %v5530_v24 }
 0x488   : > { %v12286_v31 = vpop.f32.mrb[251].mxu0 }
 0x48a   : > { %v5487_v42 = vpop.f32.mrb[240].mxu1 }
 0x48b   : > { %v5531_v18 = vadd.f32 %v5487_v42, %v15098_v32  ;;  %v12233_v26 = vpop.f32.mrb[241].mxu1 }
 0x48c   : > { %v5490_v22 = vpop.f32.mrb[242].mxu1 }
 0x48d   : > { %v5532_v5 = vadd.f32 %v5490_v22, %v15100_v28  ;;  %v12234_v41 = vpop.f32.mrb[243].mxu1  ;;  %v5797_v48 = vpop.f32.mrb[252].mxu0  ;;  %v15161_v13 = vadd.f32 %v5781_v63, %v5531_v18 }
 0x48e   : > { %v12289_v35 = vpop.f32.mrb[253].mxu0 }
 0x48f   : > { %v5800_v19 = vpop.f32.mrb[254].mxu0  ;;  %v15163_v44 = vadd.f32 %v5784_v15, %v5532_v5 }
 0x490   : > { %v12290_v17 = vpop.f32.mrb[255].mxu0 }
 0x492   : > { %v5495_v55 = vpop.f32.mrb[244].mxu1 }
 0x493   : > { %v5533_v23 = vadd.f32 %v5495_v55, %v15104_v46  ;;  %v12237_v8 = vpop.f32.mrb[245].mxu1 }
 0x494   : > { %v5498_v0 = vpop.f32.mrb[246].mxu1 }
 0x495   : > { %v5534_v32 = vadd.f32 %v5498_v0, %v15106_v51  ;;  %v12238_v14 = vpop.f32.mrb[247].mxu1  ;;  %v5805_v61 = vpop.f32.mrb[0].mxu0  ;;  %v15167_v52 = vadd.f32 %v5789_v60, %v5533_v23 }
 0x496   : > { %v12293_v28 = vpop.f32.mrb[1].mxu0 }
 0x497   : > { %v5808_v56 = vpop.f32.mrb[2].mxu0  ;;  %v15169_v6 = vadd.f32 %v5792_v37, %v5534_v32 }
 0x498   : > { %v12294_v57 = vpop.f32.mrb[3].mxu0 }
 0x49a   : > { %v5503_v21 = vpop.f32.mrb[248].mxu1 }
 0x49b   : > { %v5535_v11 = vadd.f32 %v5503_v21, %v15110_v59  ;;  %v12241_v3 = vpop.f32.mrb[249].mxu1  ;;  %v15183_v59 = vld [vmem:[%s16316_s4] ss:$0 sm:$0xff] }
 0x49c   : > { %v5506_v62 = vpop.f32.mrb[250].mxu1 }
 0x49d   : > { %v5536_v46 = vadd.f32 %v5506_v62, %v15112_v20  ;;  %v12242_v49 = vpop.f32.mrb[251].mxu1  ;;  %v15173_v63 = vadd.f32 %v5797_v48, %v5535_v11 }
 0x49f   : > { %v15175_v51 = vadd.f32 %v5800_v19, %v5536_v46 }
 0x4a2   : > { %v5511_v7 = vpop.f32.mrb[252].mxu1 }
 0x4a3   : > { %v5537_v15 = vadd.f32 %v5511_v7, %v15115_v36  ;;  %v12245_v4 = vpop.f32.mrb[253].mxu1 }
 0x4a4   : > { %v5514_v2 = vpop.f32.mrb[254].mxu1 }
 0x4a5   : > { %v12246_v30 = vpop.f32.mrb[255].mxu1  ;;  %v15178_v50 = vadd.f32 %v5805_v61, %v5537_v15 }
 0x4aa   : > { %v5941_v45 = vpop.f32.mrb[0].mxu1 }
 0x4ab   : > { %v6027_v20 = vadd.f32 %v5941_v45, %v15119_v33  ;;  %v12301_v24 = vpop.f32.mrb[1].mxu1 }
 0x4ac   : > { %v5944_v47 = vpop.f32.mrb[2].mxu1 }
 0x4ad   : > { %v6055_v60 = vadd.f32 %v15183_v59, %v6027_v20  ;;  %v6028_v25 = vadd.f32 %v5944_v47, %v15121_v43  ;;  %v12302_v36 = vpop.f32.mrb[3].mxu1 }
 0x4af   : > { %v6076_v37 = vmax.f32 %v6055_v60, 0.0  ;;  %v6056_v31 = vadd.f32 %v15183_v59, %v6028_v25 }
 0x4b1   : > { %v11258_v42 = vpack.c.bf16 %v6076_v37, %v6076_v37  ;;  %v6077_v18 = vmax.f32 %v6056_v31, 0.0 }
 0x4b2   : > { %v5949_v26 = vpop.f32.mrb[4].mxu1 }
 0x4b3   : > { %6182 = vst.msk [vmem:[#allocation4] sm:$0xf] %vm519_vm2, %v11258_v42  ;;  %v11259_v22 = vpack.c.bf16 %v6077_v18, %v6077_v18  ;;  %v6029_v5 = vadd.f32 %v5949_v26, %v15125_v16  ;;  %v12305_v41 = vpop.f32.mrb[5].mxu1 }
 0x4b4   : > { %v5952_v33 = vpop.f32.mrb[6].mxu1 }
 0x4b5   : > { %6183 = vst.msk [vmem:[#allocation4 + $0x4] sm:$0xf] %vm519_vm2, %v11259_v22  ;;  %v6057_v48 = vadd.f32 %v15183_v59, %v6029_v5  ;;  %v6030_v43 = vadd.f32 %v5952_v33, %v15127_v1  ;;  %v12306_v35 = vpop.f32.mrb[7].mxu1 }
 0x4b6   : > { %v16453_v35 = vld [vmem:[#allocation14_spill] sm:$0xff] }
 0x4b7   : > { %v6078_v19 = vmax.f32 %v6057_v48, 0.0  ;;  %v6058_v17 = vadd.f32 %v15183_v59, %v6030_v43 }
 0x4b9   : > { %v11260_v55 = vpack.c.bf16 %v6078_v19, %v6078_v19  ;;  %v6079_v23 = vmax.f32 %v6058_v17, 0.0  ;;  %v15212_v19 = vpack.c.bf16 %v16453_v35, %v16453_v35 }
 0x4ba   : > { %v5957_v8 = vpop.f32.mrb[8].mxu1  ;;  %v6204_v0 = vld [vmem:[#allocation4] sm:$0xf] }
 0x4bb   : > { %6184 = vst.msk [vmem:[#allocation4 + $0x8] sm:$0xf] %vm519_vm2, %v11260_v55  ;;  %v11261_v16 = vpack.c.bf16 %v6079_v23, %v6079_v23  ;;  %v6031_v32 = vadd.f32 %v5957_v8, %v15131_v34  ;;  %v12309_v14 = vpop.f32.mrb[9].mxu1  ;;  %v6211_v61 = vshrl.u32 %v6204_v0, 16  ;;  %v6214_v28 = vshll.u32 %v6204_v0, 16 }
 0x4bc   : > { %v5960_v56 = vpop.f32.mrb[10].mxu1  ;;  %v6206_v57 = vld [vmem:[#allocation4 + $0x4] sm:$0x7]  ;;  %v6233_v4 = vld [vmem:[#allocation4 + $0x4] sm:$0x8] }
 0x4bd   : > { %6185 = vst.msk [vmem:[#allocation4 + $0xc] sm:$0xf] %vm519_vm2, %v11261_v16  ;;  %v6059_v1 = vadd.f32 %v15183_v59, %v6031_v32  ;;  %v6032_v21 = vadd.f32 %v5960_v56, %v15133_v40  ;;  %v12310_v11 = vpop.f32.mrb[11].mxu1  ;;  %v6213_v3 = vrot.slane %v6211_v61, 4  ;;  %v6216_v62 = vrot.slane %v6214_v28, 5 }
 0x4be   : > { %v6220_v46 = vshll.u32 %v6206_v57, 16  ;;  %v6224_v49 = vshrl.u32 %v6206_v57, 16  ;;  %v10613_v36 = vrot.slane %v6233_v4, 11  ;;  %v6254_v37 = vshrl.u32 %v6233_v4, 16  ;;  %v6205_v23 = vld [vmem:[#allocation4 + $0x4] sm:$0x3] }
 0x4bf   : > { %v6080_v7 = vmax.f32 %v6059_v1, 0.0  ;;  %v6060_v34 = vadd.f32 %v15183_v59, %v6032_v21  ;;  %v6217_v15 = vor.u32 %v6216_v62, %v6213_v3 }
 0x4c0   : > { %v6222_v30 = vrot.slane %v6220_v46, 5  ;;  %v6226_v45 = vrot.slane %v6224_v49, 4  ;;  %v10614_v28 = vrot.slane %v6254_v37, 11 }
 0x4c1   : > { %v11262_v20 = vpack.c.bf16 %v6080_v7, %v6080_v7  ;;  %v6081_v24 = vmax.f32 %v6060_v34, 0.0  ;;  %v6218_v40 = vrot.slane %v6217_v15, 4  ;;  %v12686_v34 = vld [vmem:[%s16317_s5 + $0x40] sm:$0xff]  }
 0x4c2   : > { %v5965_v47 = vpop.f32.mrb[12].mxu1  ;;  %v6227_v60 = vor.u32 %v6226_v45, %v6222_v30  ;;  %v6234_v25 = vld [vmem:[#allocation4 + $0x8] sm:$0xf]  ;;  %12403 = vmatprep.subr.bf16.mxu1 %v12686_v34 }
 0x4c3   : > { %6186 = vst.msk [vmem:[#allocation4 + $0x10] sm:$0xf] %vm519_vm2, %v11262_v20  ;;  %v11263_v31 = vpack.c.bf16 %v6081_v24, %v6081_v24  ;;  %v6033_v42 = vadd.f32 %v5965_v47, %v15137_v58  ;;  %v12313_v18 = vpop.f32.mrb[13].mxu1  ;;  %v6223_v26 = vsel %vm15202_vm10, %v6218_v40, %v6222_v30  ;;  %v6241_v22 = vrot.slane %v6234_v25, 7  ;;  %12404 = vmatpush3.bf16.msra.mxu1 %v12686_v34 }
 0x4c4   : > { %v5968_v5 = vpop.f32.mrb[14].mxu1  ;;  %v6228_v41 = vrot.slane %v6227_v60, 4  ;;  %v6231_v33 = vmax.bf16 %v6223_v26, %v6204_v0  ;;  %v6235_v48 = vld [vmem:[#allocation4 + $0xc] sm:$0x1]  ;;  %v15219_v14 = vld [vmem:[#allocation4 + $0xc] sm:$0xc] }
 0x4c5   : > { %v6250_v43 = vld [vmem:[#allocation4 + $0xc] sm:$0x3]  ;;  %6187 = vst.msk [vmem:[#allocation4 + $0x14] sm:$0xf] %vm519_vm2, %v11263_v31  ;;  %v6061_v17 = vadd.f32 %v15183_v59, %v6033_v42  ;;  %v6034_v58 = vadd.f32 %v5968_v5, %v15139_v10  ;;  %v12314_v55 = vpop.f32.mrb[15].mxu1  ;;  %v6242_v16 = vsel %vm14112_vm7, %v10613_v36, %v6241_v22  ;;  %v6243_v32 = vrot.slane %v6241_v22, 4 }
 0x4c6   : > { %v6232_v0 = vmax.bf16 %v6228_v41, %v6205_v23  ;;  %v6244_v61 = vrot.slane %v6235_v48, 7  ;;  %v6259_v56 = vshrl.u32 %v6234_v25, 16  ;;  %v6248_v21 = vmax.bf16 %v6242_v16, %v6231_v33 }
 0x4c7   : > { %v6082_v57 = vmax.f32 %v6061_v17, 0.0  ;;  %v6062_v1 = vadd.f32 %v15183_v59, %v6034_v58  ;;  %v6268_v11 = vshrl.u32 %v6250_v43, 16  ;;  %v6262_v62 = vshll.u32 %v6234_v25, 16 }
 0x4c8   : > { %v6245_v10 = vsel %vm14112_vm7, %v6243_v32, %v6244_v61  ;;  %v6261_v3 = vrot.slane %v6259_v56, 7  ;;  %v6338_v46 = vshrl.u32 %v15219_v14, 16  ;;  %v6271_v4 = vshll.u32 %v6250_v43, 16 }
 0x4c9   : > { %v11264_v49 = vpack.c.bf16 %v6082_v57, %v6082_v57  ;;  %v6083_v7 = vmax.f32 %v6062_v1, 0.0  ;;  %v6270_v15 = vrot.slane %v6268_v11, 7  ;;  %v6341_v47 = vshll.u32 %v15219_v14, 16 }
 0x4ca   : > { %v5973_v30 = vpop.f32.mrb[16].mxu1  ;;  %v6264_v45 = vor.u32 %v6262_v62, %v6261_v3  ;;  %v6266_v20 = vrot.slane %v6261_v3, 4  ;;  %v15231_v24 = vld [vmem:[#allocation4 + $0x10] sm:$0xf]  ;;  %v6340_v40 = vrot.slane %v6338_v46, 4  ;;  %v6249_v18 = vmax.bf16 %v6245_v10, %v6232_v0 }
 0x4cb   : > { %6188 = vst.msk [vmem:[#allocation4 + $0x18] sm:$0xf] %vm519_vm2, %v11264_v49  ;;  %v11265_v60 = vpack.c.bf16 %v6083_v7, %v6083_v7  ;;  %v6035_v25 = vadd.f32 %v5973_v30, %v15143_v29  ;;  %v12317_v36 = vpop.f32.mrb[17].mxu1  ;;  %v6273_v37 = vor.u32 %v6271_v4, %v6270_v15  ;;  %v6347_v31 = vshll.u32 %v15231_v24, 16 }
 0x4cc   : > { %v5976_v42 = vpop.f32.mrb[18].mxu1  ;;  %v6265_v26 = vsel %vm15227_vm6, %v10614_v28, %v6264_v45  ;;  %v6336_v22 = vld [vmem:[#allocation4 + $0x14] sm:$0x1]  ;;  %v6343_v5 = vrot.slane %v6341_v47, 5  ;;  %v6351_v41 = vshrl.u32 %v15231_v24, 16 }
 0x4cd   : > { %6189 = vst.msk [vmem:[#allocation4 + $0x1c] sm:$0xf] %vm519_vm2, %v11265_v60  ;;  %v6063_v33 = vadd.f32 %v15183_v59, %v6035_v25  ;;  %v6036_v29 = vadd.f32 %v5976_v42, %v15145_v38  ;;  %v12318_v48 = vpop.f32.mrb[19].mxu1  ;;  %v6274_v43 = vsel %vm15227_vm6, %v6266_v20, %v6273_v37  ;;  %v6277_v35 = vmax.bf16 %v6265_v26, %v6248_v21  ;;  %v6365_v17 = vld [vmem:[#allocation4 + $0x14] sm:$0xe] }
 0x4ce   : > { %v6278_v58 = vmax.bf16 %v6274_v43, %v6249_v18  ;;  %v6344_v55 = vor.u32 %v6343_v5, %v6340_v40  ;;  %v6349_v23 = vrot.slane %v6347_v31, 5  ;;  %v6353_v16 = vrot.slane %v6351_v41, 4 }
 0x4cf   : > { %v6084_v32 = vmax.f32 %v6063_v33, 0.0  ;;  %v6064_v0 = vadd.f32 %v15183_v59, %v6036_v29  ;;  %v6357_v61 = vshll.u32 %v6336_v22, 16  ;;  %v6369_v28 = vrot.slane %v6365_v17, 7 }
 0x4d0   : > { %v10615_v56 = vcombine.low %v6277_v35, %v6278_v58  ;;  %v6345_v57 = vrot.slane %v6344_v55, 4  ;;  %v6354_v1 = vor.u32 %v6353_v16, %v6349_v23  ;;  %v6379_v11 = vshrl.u32 %v6365_v17, 16 }
 0x4d1   : > { %v11266_v38 = vpack.c.bf16 %v6084_v32, %v6084_v32  ;;  %v6085_v10 = vmax.f32 %v6064_v0, 0.0  ;;  %v6359_v3 = vrot.slane %v6357_v61, 5  ;;  %v6370_v62 = vrot.slane %v6369_v28, 4 }
 0x4d2   : > { %v6289_v21 = vsel %vm16442_vm15, %v10615_v56, 0  ;;  %v5981_v46 = vpop.f32.mrb[20].mxu1  ;;  %v6350_v49 = vsel %vm15202_vm10, %v6345_v57, %v6349_v23  ;;  %v6355_v7 = vrot.slane %v6354_v1, 4  ;;  %v6366_v15 = vld [vmem:[#allocation4 + $0x18] sm:$0x7]  ;;  %v6381_v4 = vrot.slane %v6379_v11, 7 }
 0x4d3   : > { %6190 = vst.msk [vmem:[#allocation4 + $0x20] sm:$0xf] %vm519_vm2, %v11266_v38  ;;  %v11267_v30 = vpack.c.bf16 %v6085_v10, %v6085_v10  ;;  %12344 = vmatpush3.bf16.msra.mxu0 %v6289_v21  ;;  %v6037_v45 = vadd.f32 %v5981_v46, %v15149_v12  ;;  %v12321_v20 = vpop.f32.mrb[21].mxu1  ;;  %v6363_v40 = vmax.bf16 %v6350_v49, %v15219_v14  ;;  %v6371_v47 = vrot.slane %v6366_v15, 7  ;;  %v6377_v60 = vld [vmem:[#allocation4 + $0x18] sm:$0xf] }
 0x4d4   : > { %v5984_v25 = vpop.f32.mrb[22].mxu1  ;;  %12349 = vmatprep.subr.bf16.mxu0 %v16402_v53  ;;  %v6360_v36 = vsel %vm15202_vm10, %v6355_v7, %v6359_v3  ;;  %v6382_v37 = vshll.u32 %v6365_v17, 16  ;;  %v6387_v31 = vshrl.u32 %v6377_v60, 16  ;;  %v6459_v42 = vld [vmem:[#allocation4 + $0x1c] sm:$0xf]  ;;  %v6390_v29 = vshll.u32 %v6377_v60, 16 }
 0x4d5   : > { %6191 = vst.msk [vmem:[#allocation4 + $0x24] sm:$0xf] %vm519_vm2, %v11267_v30  ;;  %v6065_v18 = vadd.f32 %v15183_v59, %v6037_v45  ;;  %v6038_v12 = vadd.f32 %v5984_v25, %v15151_v54  ;;  %v12322_v26 = vpop.f32.mrb[23].mxu1  ;;  %v6364_v14 = vmax.bf16 %v6360_v36, %v15231_v24  ;;  %v6372_v22 = vsel %vm14112_vm7, %v6370_v62, %v6371_v47 }
 0x4d6   : > { %12346 = vmatmul.mubr.msk.bf16.vlgmr.msra.gmra.mrb[4].mxu0 %vm6284_vm12, %v15212_v19  ;;  %v6375_v5 = vmax.bf16 %v6369_v28, %v6363_v40  ;;  %v6384_v41 = vor.u32 %v6382_v37, %v6381_v4  ;;  %v6389_v33 = vrot.slane %v6387_v31, 7  ;;  %v6463_v54 = vshrl.u32 %v6459_v42, 16 }
 0x4d7   : > { %v6086_v48 = vmax.f32 %v6065_v18, 0.0  ;;  %v6066_v43 = vadd.f32 %v15183_v59, %v6038_v12  ;;  %12351 = vmatprep.mubr.msk.bf16.mxu0 %vm13106_vm1, %v16402_v53  ;;  %v6385_v35 = vrot.slane %v6381_v4, 4  ;;  %v6466_v24 = vshll.u32 %v6459_v42, 16 }
 0x4d8   : > { %v6392_v17 = vor.u32 %v6390_v29, %v6389_v33  ;;  %v6376_v23 = vmax.bf16 %v6372_v22, %v6364_v14  ;;  %v6465_v16 = vrot.slane %v6463_v54, 4  ;;  %v6396_v61 = vmax.bf16 %v6384_v41, %v6375_v5 }
 0x4d9   : > { %v11268_v58 = vpack.c.bf16 %v6086_v48, %v6086_v48  ;;  %v6087_v55 = vmax.f32 %v6066_v43, 0.0  ;;  %v6468_v56 = vrot.slane %v6466_v24, 5  ;;  %vm6587_vm15 = vcmask 516096  }
 0x4da   : > { %v5989_v32 = vpop.f32.mrb[24].mxu1  ;;  %v6393_v0 = vsel %vm15227_vm6, %v6385_v35, %v6392_v17  ;;  %v6461_v28 = vld [vmem:[#allocation4 + $0x20] sm:$0x7]  ;;  %v6485_v3 = vld [vmem:[#allocation4 + $0x20] sm:$0x8] }
 0x4db   : > { %6192 = vst.msk [vmem:[#allocation4 + $0x28] sm:$0xf] %vm519_vm2, %v11268_v58  ;;  %v11269_v57 = vpack.c.bf16 %v6087_v55, %v6087_v55  ;;  %v6039_v1 = vadd.f32 %v5989_v32, %v15155_v9  ;;  %v12325_v11 = vpop.f32.mrb[25].mxu1  ;;  %v6397_v38 = vmax.bf16 %v6393_v0, %v6376_v23  ;;  %v6472_v10 = vshll.u32 %v6461_v28, 16  ;;  %v6460_v58 = vld [vmem:[#allocation4 + $0x20] sm:$0x3] }
 0x4dc   : > { %v5992_v62 = vpop.f32.mrb[26].mxu1  ;;  %v6469_v21 = vor.u32 %v6468_v56, %v6465_v16  ;;  %v6476_v46 = vshrl.u32 %v6461_v28, 16  ;;  %v6486_v49 = vld [vmem:[#allocation4 + $0x24] sm:$0xf]  ;;  %v6504_v7 = vshrl.u32 %v6485_v3, 16  ;;  %v10620_v47 = vrot.slane %v6485_v3, 11 }
 0x4dd   : > { %6193 = vst.msk [vmem:[#allocation4 + $0x2c] sm:$0xf] %vm519_vm2, %v11269_v57  ;;  %v6067_v15 = vadd.f32 %v15183_v59, %v6039_v1  ;;  %v6040_v4 = vadd.f32 %v5992_v62, %v15157_v27  ;;  %v12326_v30 = vpop.f32.mrb[27].mxu1  ;;  %v10617_v45 = vcombine.low %v6396_v61, %v6397_v38  ;;  %v6474_v20 = vrot.slane %v6472_v10, 5 }
 0x4de   : > { %v6470_v40 = vrot.slane %v6469_v21, 4  ;;  %v6478_v9 = vrot.slane %v6476_v46, 4  ;;  %v6493_v60 = vrot.slane %v6486_v49, 7  ;;  %v10621_v31 = vrot.slane %v6504_v7, 11 }
 0x4df   : > { %v6088_v25 = vmax.f32 %v6067_v15, 0.0  ;;  %v6068_v36 = vadd.f32 %v15183_v59, %v6040_v4  ;;  %v6403_v37 = vrot.slane %v10617_v45, 2  ;;  %v6509_v14 = vshrl.u32 %v6486_v49, 16 }
 0x4e0   : > { %v6475_v18 = vsel %vm15202_vm10, %v6470_v40, %v6474_v20  ;;  %v6479_v12 = vor.u32 %v6478_v9, %v6474_v20  ;;  %v6495_v26 = vrot.slane %v6493_v60, 4  ;;  %v6494_v43 = vsel %vm14112_vm7, %v10620_v47, %v6493_v60 }
 0x4e1   : > { %v11270_v22 = vpack.c.bf16 %v6088_v25, %v6088_v25  ;;  %v6089_v27 = vmax.f32 %v6068_v36, 0.0  ;;  %v6405_v5 = vsel %vm16458_vm0, %v6403_v37, 0  ;;  %v6483_v41 = vmax.bf16 %v6475_v18, %v6459_v42 }
 0x4e2   : > { %12350 = vmatpush3.bf16.msra.mxu0 %v6405_v5  ;;  %v5997_v33 = vpop.f32.mrb[28].mxu1  ;;  %v6480_v29 = vrot.slane %v6479_v12, 4  ;;  %v6487_v48 = vld [vmem:[#allocation4 + $0x28] sm:$0x1]  ;;  %v6511_v32 = vrot.slane %v6509_v14, 7  ;;  %v6512_v0 = vshll.u32 %v6486_v49, 16 }
 0x4e3   : > { %v6502_v54 = vld [vmem:[#allocation4 + $0x28] sm:$0x3]  ;;  %6194 = vst.msk [vmem:[#allocation4 + $0x30] sm:$0xf] %vm519_vm2, %v11270_v22  ;;  %v11271_v35 = vpack.c.bf16 %v6089_v27, %v6089_v27  ;;  %v6041_v17 = vadd.f32 %v5997_v33, %v15161_v13  ;;  %v12329_v24 = vpop.f32.mrb[29].mxu1  ;;  %12355 = vmatprep.subr.bf16.mxu0 %v16402_v53  ;;  %v6496_v55 = vrot.slane %v6487_v48, 7  ;;  %v6500_v23 = vmax.bf16 %v6494_v43, %v6483_v41 }
 0x4e4   : > { %v6000_v42 = vpop.f32.mrb[30].mxu1  ;;  %v6484_v16 = vmax.bf16 %v6480_v29, %v6460_v58  ;;  %v6518_v61 = vshrl.u32 %v6502_v54, 16  ;;  %v15282_v28 = vld [vmem:[#allocation4 + $0x28] sm:$0xc]  ;;  %v6521_v11 = vshll.u32 %v6502_v54, 16  ;;  %v6514_v3 = vor.u32 %v6512_v0, %v6511_v32 }
 0x4e5   : > { %6195 = vst.msk [vmem:[#allocation4 + $0x34] sm:$0xf] %vm519_vm2, %v11271_v35  ;;  %v6069_v56 = vadd.f32 %v15183_v59, %v6041_v17  ;;  %v6042_v57 = vadd.f32 %v6000_v42, %v15163_v44  ;;  %v12330_v13 = vpop.f32.mrb[31].mxu1  ;;  %12352 = vmatmul.mubr.msk.bf16.vlgmr.msra.gmra.mrb[8].mxu0 %vm6284_vm12, %v15212_v19  ;;  %v6497_v1 = vsel %vm14112_vm7, %v6495_v26, %v6496_v55  ;;  %v6590_v38 = vld [vmem:[#allocation4 + $0x2c] sm:$0xf]  ;;  %v6516_v62 = vrot.slane %v6511_v32, 4 }
 0x4e6   : > { %v6501_v10 = vmax.bf16 %v6497_v1, %v6484_v16  ;;  %v6520_v21 = vrot.slane %v6518_v61, 7  ;;  %12357 = vmatprep.mubr.msk.bf16.mxu0 %vm13106_vm1, %v16402_v53  ;;  %v6593_v44 = vshrl.u32 %v15282_v28, 16  ;;  %v6596_v7 = vshll.u32 %v15282_v28, 16 }
 0x4e7   : > { %v6090_v46 = vmax.f32 %v6069_v56, 0.0  ;;  %v6070_v49 = vadd.f32 %v15183_v59, %v6042_v57  ;;  %v6515_v15 = vsel %vm15227_vm6, %v10621_v31, %v6514_v3  ;;  %v6602_v30 = vshll.u32 %v6590_v38, 16 }
 0x4e8   : > { %v6523_v4 = vor.u32 %v6521_v11, %v6520_v21  ;;  %v6606_v45 = vshrl.u32 %v6590_v38, 16  ;;  %v6527_v9 = vmax.bf16 %v6515_v15, %v6500_v23  ;;  %v6595_v47 = vrot.slane %v6593_v44, 4 }
 0x4e9   : > { %v11272_v20 = vpack.c.bf16 %v6090_v46, %v6090_v46  ;;  %v6091_v40 = vmax.f32 %v6070_v49, 0.0  ;;  %v6598_v37 = vrot.slane %v6596_v7, 5  ;;  %v6604_v18 = vrot.slane %v6602_v30, 5 }
 0x4ea   : > { %v6005_v60 = vpop.f32.mrb[32].mxu1  ;;  %v6524_v25 = vsel %vm15227_vm6, %v6516_v62, %v6523_v4  ;;  %v6591_v36 = vld [vmem:[#allocation4 + $0x30] sm:$0x1]  ;;  %v6608_v12 = vrot.slane %v6606_v45, 4  ;;  %v6620_v5 = vld [vmem:[#allocation4 + $0x30] sm:$0xe] }
 0x4eb   : > { %6196 = vst.msk [vmem:[#allocation4 + $0x38] sm:$0xf] %vm519_vm2, %v11272_v20  ;;  %v11273_v26 = vpack.c.bf16 %v6091_v40, %v6091_v40  ;;  %v6043_v31 = vadd.f32 %v6005_v60, %v15167_v52  ;;  %v12333_v14 = vpop.f32.mrb[33].mxu1  ;;  %v6528_v22 = vmax.bf16 %v6524_v25, %v6501_v10  ;;  %v6612_v27 = vshll.u32 %v6591_v36, 16 }
 0x4ec   : > { %v6008_v41 = vpop.f32.mrb[34].mxu1  ;;  %v6599_v33 = vor.u32 %v6598_v37, %v6595_v47  ;;  %v6609_v29 = vor.u32 %v6608_v12, %v6604_v18  ;;  %v6621_v48 = vld [vmem:[#allocation4 + $0x34] sm:$0x7]  ;;  %v6624_v43 = vrot.slane %v6620_v5, 7  ;;  %v6634_v56 = vshrl.u32 %v6620_v5, 16 }
 0x4ed   : > { %6197 = vst.msk [vmem:[#allocation4 + $0x3c] sm:$0xf] %vm519_vm2, %v11273_v26  ;;  %v6071_v54 = vadd.f32 %v15183_v59, %v6043_v31  ;;  %v6044_v35 = vadd.f32 %v6008_v41, %v15169_v6  ;;  %v12334_v17 = vpop.f32.mrb[35].mxu1  ;;  %v10622_v24 = vcombine.low %v6527_v9, %v6528_v22  ;;  %v6614_v58 = vrot.slane %v6612_v27, 5  ;;  %v6632_v61 = vld [vmem:[#allocation4 + $0x34] sm:$0xf] }
 0x4ee   : > { %v6600_v55 = vrot.slane %v6599_v33, 4  ;;  %v6610_v52 = vrot.slane %v6609_v29, 4  ;;  %v6625_v23 = vrot.slane %v6624_v43, 4  ;;  %v6626_v42 = vrot.slane %v6621_v48, 7 }
 0x4ef   : > { %v6092_v16 = vmax.f32 %v6071_v54, 0.0  ;;  %v6072_v32 = vadd.f32 %v15183_v59, %v6044_v35  ;;  %v6535_v0 = vsel %vm16459_vm3, %v10622_v24, 0  ;;  %v6636_v62 = vrot.slane %v6634_v56, 7 }
 0x4f0   : > { %12356 = vmatpush3.bf16.msra.mxu0 %v6535_v0  ;;  %v6605_v57 = vsel %vm15202_vm10, %v6600_v55, %v6604_v18  ;;  %v6615_v6 = vsel %vm15202_vm10, %v6610_v52, %v6614_v58  ;;  %v6637_v21 = vshll.u32 %v6620_v5, 16  ;;  %v6642_v46 = vshrl.u32 %v6632_v61, 16 }
 0x4f1   : > { %v11274_v13 = vpack.c.bf16 %v6092_v16, %v6092_v16  ;;  %v6093_v1 = vmax.f32 %v6072_v32, 0.0  ;;  %12361 = vmatprep.subr.bf16.mxu0 %v16402_v53  ;;  %v6618_v11 = vmax.bf16 %v6605_v57, %v15282_v28  ;;  %v6619_v10 = vmax.bf16 %v6615_v6, %v6590_v38 }
 0x4f2   : > { %v6013_v3 = vpop.f32.mrb[36].mxu1  ;;  %v15313_v49 = vld [vmem:[#allocation4 + $0x38] sm:$0xf]  ;;  %v6627_v4 = vsel %vm14112_vm7, %v6625_v23, %v6626_v42  ;;  %v6645_v28 = vshll.u32 %v6632_v61, 16  ;;  %v6639_v45 = vor.u32 %v6637_v21, %v6636_v62  ;;  %v6644_v20 = vrot.slane %v6642_v46, 7 }
 0x4f3   : > { %6198 = vst.msk [vmem:[#allocation4 + $0x40] sm:$0xf] %vm519_vm2, %v11274_v13  ;;  %v11275_v44 = vpack.c.bf16 %v6093_v1, %v6093_v1  ;;  %v6045_v7 = vadd.f32 %v6013_v3, %v15173_v63  ;;  %v12337_v15 = vpop.f32.mrb[37].mxu1  ;;  %12358 = vmatmul.mubr.msk.bf16.vlgmr.msra.gmra.mrb[12].mxu0 %vm6284_vm12, %v15212_v19  ;;  %v6630_v30 = vmax.bf16 %v6624_v43, %v6618_v11  ;;  %v6714_v40 = vshrl.u32 %v15313_v49, 16 }
 0x4f4   : > { %v6016_v38 = vpop.f32.mrb[38].mxu1  ;;  %12363 = vmatprep.mubr.msk.bf16.mxu0 %vm13106_vm1, %v16402_v53  ;;  %v6631_v60 = vmax.bf16 %v6627_v4, %v6619_v10  ;;  %v6712_v25 = vld [vmem:[#allocation4 + $0x3c] sm:$0x7]  ;;  %v6717_v36 = vshll.u32 %v15313_v49, 16  ;;  %v6640_v37 = vrot.slane %v6636_v62, 4  ;;  %v6647_v18 = vor.u32 %v6645_v28, %v6644_v20 }
 0x4f5   : > { %6199 = vst.msk [vmem:[#allocation4 + $0x44] sm:$0xf] %vm519_vm2, %v11275_v44  ;;  %v6073_v63 = vadd.f32 %v15183_v59, %v6045_v7  ;;  %v6046_v9 = vadd.f32 %v6016_v38, %v15175_v51  ;;  %v12338_v47 = vpop.f32.mrb[39].mxu1  ;;  %v6716_v12 = vrot.slane %v6714_v40, 4  ;;  %v6723_v26 = vshll.u32 %v6712_v25, 16 }
 0x4f6   : > { %v6719_v22 = vrot.slane %v6717_v36, 5  ;;  %v6727_v27 = vshrl.u32 %v6712_v25, 16  ;;  %v6736_v5 = vld [vmem:[#allocation4 + $0x3c] sm:$0x8]  ;;  %v6648_v41 = vsel %vm15227_vm6, %v6640_v37, %v6647_v18  ;;  %v6651_v33 = vmax.bf16 %v6639_v45, %v6630_v30  ;;  %v6711_v4 = vld [vmem:[#allocation4 + $0x3c] sm:$0x3] }
 0x4f7   : > { %v6094_v31 = vmax.f32 %v6073_v63, 0.0  ;;  %v6074_v14 = vadd.f32 %v15183_v59, %v6046_v9  ;;  %v6725_v51 = vrot.slane %v6723_v26, 5  ;;  %v6652_v43 = vmax.bf16 %v6648_v41, %v6631_v60 }
 0x4f8   : > { %v6720_v54 = vor.u32 %v6719_v22, %v6716_v12  ;;  %v6729_v17 = vrot.slane %v6727_v27, 4  ;;  %v6755_v58 = vshrl.u32 %v6736_v5, 16  ;;  %v10628_v3 = vrot.slane %v6736_v5, 11 }
 0x4f9   : > { %v11276_v29 = vpack.c.bf16 %v6094_v31, %v6094_v31  ;;  %v6095_v48 = vmax.f32 %v6074_v14, 0.0  ;;  %v10625_v42 = vcombine.low %v6651_v33, %v6652_v43  ;;  %vm7023_vm3 = vcmask 523264  }
 0x4fa   : > { %v6021_v35 = vpop.f32.mrb[40].mxu1  ;;  %v6737_v24 = vld [vmem:[#allocation4 + $0x40] sm:$0xf]  ;;  %v6721_v16 = vrot.slane %v6720_v54, 4  ;;  %v6730_v0 = vor.u32 %v6729_v17, %v6725_v51  ;;  %v10629_v7 = vrot.slane %v6755_v58, 11 }
 0x4fb   : > { %6200 = vst.msk [vmem:[#allocation4 + $0x48] sm:$0xf] %vm519_vm2, %v11276_v29  ;;  %v11277_v55 = vpack.c.bf16 %v6095_v48, %v6095_v48  ;;  %v6047_v52 = vadd.f32 %v6021_v35, %v15178_v50  ;;  %v12341_v23 = vpop.f32.mrb[41].mxu1  ;;  %v6744_v56 = vrot.slane %v6737_v24, 7  ;;  %v6658_v6 = vrot.slane %v10625_v42, 2 }
 0x4fc   : > { %v6024_v32 = vpop.f32.mrb[42].mxu1  ;;  %v6738_v61 = vld [vmem:[#allocation4 + $0x44] sm:$0x1]  ;;  %v6726_v1 = vsel %vm15202_vm10, %v6721_v16, %v6725_v51  ;;  %v6731_v10 = vrot.slane %v6730_v0, 4  ;;  %v6830_v21 = vld [vmem:[#allocation4 + $0x44] sm:$0xc] }
 0x4fd   : > { %6201 = vst.msk [vmem:[#allocation4 + $0x4c] sm:$0xf] %vm519_vm2, %v11277_v55  ;;  %v6075_v57 = vadd.f32 %v15183_v59, %v6047_v52  ;;  %v12342_v13 = vpop.f32.mrb[43].mxu1  ;;  %v6753_v11 = vld [vmem:[#allocation4 + $0x44] sm:$0x3]  ;;  %v6746_v50 = vrot.slane %v6744_v56, 4  ;;  %v6734_v59 = vmax.bf16 %v6726_v1, %v15313_v49  ;;  %v6745_v28 = vsel %vm14112_vm7, %v10628_v3, %v6744_v56 }
 0x4fe   : > { %v6747_v62 = vrot.slane %v6738_v61, 7  ;;  %v6660_v44 = vsel %vm16460_vm13, %v6658_v6, 0  ;;  %v6760_v15 = vshrl.u32 %v6737_v24, 16  ;;  %v6763_v38 = vshll.u32 %v6737_v24, 16 }
 0x4ff   : > { %v6096_v46 = vmax.f32 %v6075_v57, 0.0  ;;  %12362 = vmatpush3.bf16.msra.mxu0 %v6660_v44  ;;  %v6769_v30 = vshrl.u32 %v6753_v11, 16  ;;  %v6735_v20 = vmax.bf16 %v6731_v10, %v6711_v4  ;;  %v6834_v63 = vshrl.u32 %v6830_v21, 16 }
 0x500   : > { %12367 = vmatprep.subr.bf16.mxu0 %v16402_v53  ;;  %v6762_v40 = vrot.slane %v6760_v15, 7  ;;  %v6748_v9 = vsel %vm14112_vm7, %v6746_v50, %v6747_v62  ;;  %v6772_v60 = vshll.u32 %v6753_v11, 16  ;;  %v6837_v36 = vshll.u32 %v6830_v21, 16 }
 0x501   : > { %v11278_v45 = vpack.c.bf16 %v6096_v46, %v6096_v46  ;;  %v6771_v47 = vrot.slane %v6769_v30, 7  ;;  %v6836_v18 = vrot.slane %v6834_v63, 4  ;;  %v6751_v5 = vmax.bf16 %v6745_v28, %v6734_v59  ;;  %v12688_v63 = vld [vmem:[%s16317_s5 + $0x48] sm:$0xff]  }
 0x502   : > { %v6831_v25 = vld [vmem:[#allocation4 + $0x48] sm:$0xf]  ;;  %12364 = vmatmul.mubr.msk.bf16.vlgmr.msra.gmra.mrb[16].mxu0 %vm6284_vm12, %v15212_v19  ;;  %v6765_v49 = vor.u32 %v6763_v38, %v6762_v40  ;;  %v6767_v37 = vrot.slane %v6762_v40, 4  ;;  %v6839_v14 = vrot.slane %v6837_v36, 5  ;;  %v6752_v41 = vmax.bf16 %v6748_v9, %v6735_v20  ;;  %v12684_v20 = vld [vmem:[%s16317_s5 + $0x20] sm:$0xff]   ;;  %v12685_v40 = vld [vmem:[%s16317_s5 + $0x28] sm:$0xff]   ;;  %12405 = vmatprep.subr.bf16.mxu1 %v12688_v63 }
 0x503   : > { %6202 = vst.msk [vmem:[#allocation4 + $0x50] sm:$0xf] %vm519_vm2, %v11278_v45  ;;  %v6843_v12 = vshll.u32 %v6831_v25, 16  ;;  %v6774_v26 = vor.u32 %v6772_v60, %v6771_v47  ;;  %12369 = vmatprep.mubr.msk.bf16.mxu0 %vm13106_vm1, %v16402_v53  ;;  %v6847_v22 = vshrl.u32 %v6831_v25, 16  ;;  %vm16461_vm2 = vmmov %vm16458_vm0  ;;  %v12690_v9 = vld [vmem:[%s16317_s5 + $0x50] sm:$0xff]   ;;  %12406 = vmatpush3.bf16.msra.mxu1 %v12688_v63  ;;  %v12689_v47 = vld [vmem:[%s16317_s5 + $0x38] sm:$0xff]  }
 0x504   : > { %v6832_v31 = vld [vmem:[#allocation4 + $0x4c] sm:$0x1]  ;;  %v6861_v27 = vld [vmem:[#allocation4 + $0x4c] sm:$0xe]  ;;  %v6766_v33 = vsel %vm15227_vm6, %v10629_v7, %v6765_v49  ;;  %v6840_v48 = vor.u32 %v6839_v14, %v6836_v18  ;;  %12407 = vmatprep.subr.bf16.mxu1 %v12690_v9 }
 0x505   : > { %v6845_v51 = vrot.slane %v6843_v12, 5  ;;  %v6775_v29 = vsel %vm15227_vm6, %v6767_v37, %v6774_v26  ;;  %v6849_v43 = vrot.slane %v6847_v22, 4  ;;  %v6853_v54 = vshll.u32 %v6832_v31, 16  ;;  %v15394_v60 = vld [vmem:[%s16317_s5] sm:$0xff]  }
 0x506   : > { %v6778_v35 = vmax.bf16 %v6766_v33, %v6751_v5  ;;  %v6779_v17 = vmax.bf16 %v6775_v29, %v6752_v41  ;;  %v6875_v24 = vshrl.u32 %v6861_v27, 16  ;;  %v6841_v58 = vrot.slane %v6840_v48, 4  ;;  %v15403_v36 = vld [vmem:[%s16317_s5 + $0x80] sm:$0xff]  }
 0x507   : > { %v6850_v55 = vor.u32 %v6849_v43, %v6845_v51  ;;  %v6865_v52 = vrot.slane %v6861_v27, 7  ;;  %v6855_v32 = vrot.slane %v6853_v54, 5  ;;  %v6878_v50 = vshll.u32 %v6861_v27, 16  ;;  %12408 = vmatpush3.bf16.msra.mxu1 %v12690_v9 }
 0x508   : > { %v10630_v23 = vcombine.low %v6778_v35, %v6779_v17  ;;  %v6846_v42 = vsel %vm15202_vm10, %v6841_v58, %v6845_v51  ;;  %v6877_v13 = vrot.slane %v6875_v24, 7 }
 0x509   : > { %v6851_v16 = vrot.slane %v6850_v55, 4  ;;  %v6859_v57 = vmax.bf16 %v6846_v42, %v6830_v21  ;;  %v6866_v11 = vrot.slane %v6865_v52, 4 }
 0x50a   : > { %v6862_v0 = vld [vmem:[#allocation4 + $0x50] sm:$0x7]  ;;  %v6786_v56 = vsel %vm16461_vm2, %v10630_v23, 0  ;;  %v6880_v7 = vor.u32 %v6878_v50, %v6877_v13  ;;  %v6881_v15 = vrot.slane %v6877_v13, 4 }
 0x50b   : > { %v6873_v61 = vld [vmem:[#allocation4 + $0x50] sm:$0xf]  ;;  %v6867_v6 = vrot.slane %v6862_v0, 7  ;;  %12368 = vmatpush3.bf16.msra.mxu0 %v6786_v56  ;;  %v6856_v1 = vsel %vm15202_vm10, %v6851_v16, %v6855_v32  ;;  %v6871_v21 = vmax.bf16 %v6865_v52, %v6859_v57  ;;  %vm6332_vm10 = vcmask 518144  }
 0x50c   : > { %v6883_v10 = vshrl.u32 %v6873_v61, 16  ;;  %12373 = vmatprep.subr.bf16.mxu0 %v16402_v53  ;;  %v6860_v3 = vmax.bf16 %v6856_v1, %v6831_v25  ;;  %v6886_v44 = vshll.u32 %v6873_v61, 16  ;;  %v12695_v25 = vld [vmem:[%s16317_s5 + $0x58] sm:$0xff]  }
 0x50d   : > { %v6868_v62 = vsel %vm14112_vm7, %v6866_v11, %v6867_v6  ;;  %v6892_v28 = vmax.bf16 %v6880_v7, %v6871_v21  ;;  %vm16462_vm7 = vmmov %vm16458_vm0  ;;  %12409 = vmatprep.subr.bf16.mxu1 %v12695_v25  ;;  %vm6708_vm0 = vcmask 519169  }
 0x50e   : > { %v6885_v46 = vrot.slane %v6883_v10, 7  ;;  %12370 = vmatmul.mubr.msk.bf16.vlgmr.msra.gmra.mrb[20].mxu0 %vm6284_vm12, %v15212_v19  ;;  %v6872_v2 = vmax.bf16 %v6868_v62, %v6860_v3  ;;  %12410 = vmatpush3.bf16.msra.mxu1 %v12695_v25 }
 0x50f   : > { %12375 = vmatprep.mubr.msk.bf16.mxu0 %vm13106_vm1, %v16402_v53  ;;  %12427 = vmatprep.subr.bf16.mxu1 %v15403_v36 }
 0x510   : > { %v6888_v4 = vor.u32 %v6886_v44, %v6885_v46 }
 0x512   : > { %v6889_v59 = vsel %vm15227_vm6, %v6881_v15, %v6888_v4  ;;  %vm6457_vm6 = vcmask 517120  }
 0x513   : > { %v6893_v38 = vmax.bf16 %v6889_v59, %v6872_v2 }
 0x515   : > { %v10632_v8 = vcombine.low %v6892_v28, %v6893_v38 }
 0x517   : > { %v6899_v30 = vrot.slane %v10632_v8, 2 }
 0x519   : > { %v6901_v45 = vsel %vm16462_vm7, %v6899_v30, 0  ;;  %v12699_v30 = vld [vmem:[%s16317_s5 + $0x88] sm:$0xff]  }
 0x51a   : > { %12374 = vmatpush3.bf16.msra.mxu0 %v6901_v45 }
 0x51b   : > { %12379 = vmatprep.subr.bf16.mxu0 %v12684_v20 }
 0x51d   : > { %12376 = vmatmul.mubr.msk.bf16.vlgmr.msra.gmra.mrb[24].mxu0 %vm6284_vm12, %v15212_v19  ;;  %v12687_v19 = vld [vmem:[%s16317_s5 + $0x30] sm:$0xff]   ;;  %vm6585_vm12 = vcmask 519170  }
 0x51e   : > { %12380 = vmatpush3.bf16.msra.mxu0 %v12684_v20 }
 0x51f   : > { %12381 = vmatprep.subr.bf16.mxu0 %v12685_v40 }
 0x522   : > { %12382 = vmatpush3.bf16.msra.mxu0 %v12685_v40 }
 0x523   : > { %12383 = vmatprep.subr.bf16.mxu0 %v12687_v19 }
 0x526   : > { %12384 = vmatpush3.bf16.msra.mxu0 %v12687_v19  ;;  %v12696_v19 = vld [vmem:[%s16317_s5 + $0x8] sm:$0xff]  }
 0x527   : > { %12385 = vmatprep.subr.bf16.mxu0 %v12689_v47 }
 0x52a   : > { %12386 = vmatpush3.bf16.msra.mxu0 %v12689_v47 }
 0x52b   : > { %12391 = vmatprep.subr.bf16.mxu0 %v15394_v60 }
 0x5a9   : > { %v6325_v49 = vpop.f32.mrb[4].mxu0 }
 0x5aa   : > { %v6331_v37 = vpack.c.bf16 %v6325_v49, %v6325_v49  ;;  %v12347_v18 = vpop.f32.mrb[5].mxu0  ;;  %v12701_v49 = vld [vmem:[%s16317_s5 + $0x90] sm:$0xff]  }
 0x5ab   : > { %v6328_v12 = vpop.f32.mrb[6].mxu0  ;;  %v12703_v18 = vld [vmem:[%s16317_s5 + $0x98] sm:$0xff]  }
 0x5ac   : > { %6333 = vst.msk [vmem:[#allocation5] sm:$0x7] %vm6332_vm10, %v6331_v37  ;;  %v12348_v26 = vpop.f32.mrb[7].mxu0 }
 0x5ad   : > { %v12700_v26 = vld [vmem:[%s16317_s5 + $0x18] sm:$0xff]  }
 0x5b8   : > { %v6441_v31 = vpop.f32.mrb[8].mxu0 }
 0x5b9   : > { %v11279_v14 = vpack.c.bf16 %v6441_v31, %v6441_v31  ;;  %v12353_v22 = vpop.f32.mrb[9].mxu0 }
 0x5ba   : > { %v6444_v27 = vpop.f32.mrb[10].mxu0 }
 0x5bb   : > { %v6451_v5 = vrot.slane %v11279_v14, 5  ;;  %v12354_v41 = vpop.f32.mrb[11].mxu0  ;;  %v12706_v27 = vld [vmem:[%s16317_s5 + $0xc0] sm:$0xff]  }
 0x5bd   : > { %v6452_v33 = vrot.slane %v6451_v5, 4  ;;  %6456 = vst.msk [vmem:[#allocation5] sm:$0x8] %vm6455_vm8, %v6451_v5  ;;  %v12702_v5 = vld [vmem:[%s16317_s5 + $0x60] sm:$0xff]  }
 0x5bf   : > { %6458 = vst.msk [vmem:[#allocation5 + $0x4] sm:$0x3] %vm6457_vm6, %v6452_v33 }
 0x5c4   : > { %v6953_v56 = vld [vmem:[#allocation5] sm:$0xf] }
 0x5c5   : > { %v7156_v11 = vld [vmem:[#allocation5] sm:$0xe] }
 0x5c6   : > { %v6571_v51 = vpop.f32.mrb[12].mxu0  ;;  %v7253_v9 = vld [vmem:[#allocation5] sm:$0x8] }
 0x5c7   : > { %v11280_v29 = vpack.c.bf16 %v6571_v51, %v6571_v51  ;;  %v12359_v48 = vpop.f32.mrb[13].mxu0 }
 0x5c8   : > { %v6574_v43 = vpop.f32.mrb[14].mxu0 }
 0x5c9   : > { %v6581_v54 = vrot.slane %v11280_v29, 6  ;;  %v12360_v35 = vpop.f32.mrb[15].mxu0 }
 0x5cb   : > { %v6582_v17 = vrot.slane %v6581_v54, 4  ;;  %6586 = vst.msk [vmem:[#allocation5 + $0x4] sm:$0xc] %vm6585_vm12, %v6581_v54 }
 0x5cd   : > { %6588 = vst.msk [vmem:[#allocation5 + $0x8] sm:$0x1] %vm6587_vm15, %v6582_v17 }
 0x5d2   : > { %v15409_v16 = vld [vmem:[#allocation5 + $0x4] sm:$0xf] }
 0x5d3   : > { %v10643_v6 = vcombine.low %v6953_v56, %v15409_v16  ;;  %v10666_v10 = vcombine.low %v7156_v11, %v15409_v16  ;;  %v10681_v37 = vcombine.low %v7253_v9, %v15409_v16  ;;  %v12707_v11 = vld [vmem:[%s16317_s5 + $0x70] sm:$0xff]  }
 0x5d5   : > { %v6696_v24 = vpop.f32.mrb[16].mxu0  ;;  %v6987_v1 = vshll.u32 %v10643_v6, 16  ;;  %v6985_v44 = vshrl.u32 %v10643_v6, 16  ;;  %v7169_v7 = vrot.slane %v10666_v10, 1  ;;  %v7368_v12 = vshrl.u32 %v10681_v37, 16 }
 0x5d6   : > { %v11281_v58 = vpack.c.bf16 %v6696_v24, %v6696_v24  ;;  %v12365_v55 = vpop.f32.mrb[17].mxu0 }
 0x5d7   : > { %v6699_v52 = vpop.f32.mrb[18].mxu0  ;;  %v6989_v62 = vrot.slane %v6987_v1, 1  ;;  %v7370_v41 = vrot.slane %v7368_v12, 3  ;;  %v7557_v55 = vld [vmem:[#allocation5 + $0x4] sm:$0xc] }
 0x5d8   : > { %v6706_v23 = vrot.slane %v11281_v58, 7  ;;  %v12366_v42 = vpop.f32.mrb[19].mxu0 }
 0x5d9   : > { %v6990_v4 = vor.u32 %v6989_v62, %v6985_v44  ;;  %v12704_v42 = vld [vmem:[%s16317_s5 + $0x68] sm:$0xff]   ;;  %v12710_v62 = vld [vmem:[%s16317_s5 + $0xd0] sm:$0xff]  }
 0x5da   : > { %6709 = vst.msk [vmem:[#allocation5 + $0x8] sm:$0xe] %vm6708_vm0, %v6706_v23 }
 0x5e1   : > { %v6822_v32 = vpop.f32.mrb[20].mxu0  ;;  %v15414_v3 = vld [vmem:[#allocation5 + $0x8] sm:$0xf] }
 0x5e2   : > { %v6828_v0 = vpack.c.bf16 %v6822_v32, %v6822_v32  ;;  %v12371_v61 = vpop.f32.mrb[21].mxu0  ;;  %v7558_v54 = vld [vmem:[#allocation5 + $0x8] sm:$0xf]  ;;  %v10651_v23 = vcombine.low %v15414_v3, %v15414_v3 }
 0x5e3   : > { %v6825_v57 = vpop.f32.mrb[22].mxu0  ;;  %v15458_v52 = vcombine.low %v7557_v55, %v7558_v54  ;;  %v12746_v55 = vld [vmem:[%s16319_s7 + $0xa0] ss:$8 sps:$4 sm:$0xff]  }
 0x5e4   : > { %6829 = vst.msk [vmem:[#allocation5 + $0xc] sm:$0x7] %vm6332_vm10, %v6828_v0  ;;  %v12372_v13 = vpop.f32.mrb[23].mxu0 }
 0x5e5   : > { %v7270_v13 = vrot.slane %v10681_v37, 3  ;;  %v7580_v1 = vrot.slane %v15458_v52, 2  ;;  %v7681_v9 = vshll.u32 %v15458_v52, 16 }
 0x5eb   : > { %v6964_v50 = vld [vmem:[#allocation5 + $0xc] sm:$0x1] }
 0x5ec   : > { %v10644_v46 = vcombine.low %v15414_v3, %v6964_v50  ;;  %v7254_v14 = vld [vmem:[#allocation5 + $0xc] sm:$0x7] }
 0x5ed   : > { %v10682_v43 = vcombine.low %v15414_v3, %v7254_v14  ;;  %v12725_v14 = vld [vmem:[%s16317_s5 + $0xe8] sm:$0xff]  }
 0x5ee   : > { %v6992_v21 = vshll.u32 %v10644_v46, 16  ;;  %v7170_v15 = vrot.slane %v10644_v46, 1  ;;  %v6996_v28 = vshrl.u32 %v10644_v46, 16  ;;  %v12709_v46 = vld [vmem:[%s16317_s5 + $0x78] sm:$0xff]  }
 0x5ef   : > { %v7271_v61 = vrot.slane %v10682_v43, 3  ;;  %v12739_v43 = vld [vmem:[%s16319_s7 + $0x24] ss:$8 sps:$4 sm:$0xff]  }
 0x5f0   : > { %v6937_v2 = vpop.f32.mrb[24].mxu0  ;;  %v6994_v59 = vrot.slane %v6992_v21, 1  ;;  %v7171_v8 = vsel %vm4255_vm9, %v7169_v7, %v7170_v15  ;;  %v12712_v21 = vld [vmem:[%s16317_s5 + $0xd8] sm:$0xff]   ;;  %v12711_v7 = vld [vmem:[%s16317_s5 + $0xa0] sm:$0xff]  }
 0x5f1   : > { %v11282_v38 = vpack.c.bf16 %v6937_v2, %v6937_v2  ;;  %v12377_v45 = vpop.f32.mrb[25].mxu0  ;;  %12411 = vmatprep.mubr.msk.bf16.mxu1 %vm7023_vm3, %v7171_v8  ;;  %v7272_v10 = vsel %vm4545_vm5, %v7270_v13, %v7271_v61  ;;  %v12717_v2 = vld [vmem:[%s16317_s5 + $0x100] sm:$0xff]   ;;  %v10712_v8 = vcombine.low %v15409_v16, %v15414_v3 }
 0x5f2   : > { %v6940_v20 = vpop.f32.mrb[26].mxu0  ;;  %v6995_v40 = vsel %vm1851_vm4, %v6990_v4, %v6994_v59  ;;  %v6998_v34 = vor.u32 %v6996_v28, %v6994_v59  ;;  %12412 = vmatmul.mubr.msk.bf16.vlgmr.msra.gmra.mrb[44].mxu1 %vm7023_vm3, %v7170_v15  ;;  %vm16463_vm4 = vmmov %vm16461_vm2  ;;  %v7775_v4 = vld [vmem:[#allocation5 + $0x4] sm:$0x8]  ;;  %v12758_v13 = vld [vmem:[%s16319_s7 + $0xc0] ss:$8 sps:$4 sm:$0xff]  }
 0x5f3   : > { %v6947_v63 = vrot.slane %v11282_v38, 5  ;;  %v12378_v47 = vpop.f32.mrb[27].mxu0  ;;  %12387 = vmatprep.mubr.msk.bf16.mxu0 %vm7023_vm3, %v6995_v40  ;;  %12428 = vmatpush3.bf16.msra.mxu1 %v15403_v36  ;;  %v12698_v36 = vld [vmem:[%s16317_s5 + $0x10] sm:$0xff]   ;;  %v10759_v59 = vcombine.low %v7775_v4, %v7558_v54  ;;  %v12713_v28 = vld [vmem:[%s16317_s5 + $0xa8] sm:$0xff]  }
 0x5f4   : > { %12388 = vmatmul.mubr.msk.bf16.vlgmr.msra.gmra.mrb[28].mxu0 %vm7023_vm3, %v6998_v34  ;;  %12429 = vmatprep.subr.bf16.mxu1 %v12699_v30  ;;  %v12718_v20 = vld [vmem:[%s16317_s5 + $0xb0] sm:$0xff]   ;;  %v12737_v54 = vld [vmem:[%s16319_s7 + $0x20] ss:$8 sps:$4 sm:$0xff]   ;;  %v12786_v4 = vld [vmem:[%s16319_s7 + $0x104] ss:$8 sps:$4 sm:$0xff]  }
 0x5f5   : > { %v6948_v25 = vrot.slane %v6947_v63, 4  ;;  %6951 = vst.msk [vmem:[#allocation5 + $0xc] sm:$0x8] %vm6455_vm8, %v6947_v63  ;;  %12392 = vmatpush3.bf16.msra.mxu0 %v15394_v60  ;;  %12399 = vmatprep.mubr.msk.bf16.mxu0 %vm7023_vm3, %v10643_v6  ;;  %v7371_v60 = vshll.u32 %v10681_v37, 16  ;;  %v12708_v6 = vld [vmem:[%s16317_s5 + $0xc8] sm:$0xff]   ;;  %v7788_v45 = vrot.slane %v10759_v59, 3 }
 0x5f6   : > { %12393 = vmatprep.subr.bf16.mxu0 %v12696_v19  ;;  %v12720_v63 = vld [vmem:[%s16317_s5 + $0xb8] sm:$0xff]   ;;  %v12723_v37 = vld [vmem:[%s16317_s5 + $0xe0] sm:$0xff]  }
 0x5f7   : > { %6952 = vst.msk [vmem:[#allocation5 + $0x10] sm:$0x3] %vm6457_vm6, %v6948_v25  ;;  %12430 = vmatpush3.bf16.msra.mxu1 %v12699_v30  ;;  %v7373_v33 = vrot.slane %v7371_v60, 4  ;;  %v12719_v30 = vld [vmem:[%s16317_s5 + $0x108] sm:$0xff]  }
 0x5f8   : > { %12431 = vmatprep.subr.bf16.mxu1 %v12701_v49 }
 0x5f9   : > { %12394 = vmatpush3.bf16.msra.mxu0 %v12696_v19  ;;  %v7374_v32 = vor.u32 %v7373_v33, %v7370_v41  ;;  %v7678_v19 = vshrl.u32 %v15458_v52, 16  ;;  %v12730_v41 = vld [vmem:[%s16319_s7 + $0x4] ss:$8 sps:$4 sm:$0xff]   ;;  %v12733_v33 = vld [vmem:[%s16319_s7 + $0x14] ss:$8 sps:$4 sm:$0xff]  }
 0x5fa   : > { %12395 = vmatprep.subr.bf16.mxu0 %v12698_v36  ;;  %v12748_v52 = vld [vmem:[%s16319_s7 + $0xa4] ss:$8 sps:$4 sm:$0xff]  }
 0x5fb   : > { %12432 = vmatpush3.bf16.msra.mxu1 %v12701_v49  ;;  %v12724_v49 = vld [vmem:[%s16317_s5 + $0x118] sm:$0xff]  }
 0x5fc   : > { %v15447_v31 = vld [vmem:[#allocation5 + $0xc] sm:$0xf]  ;;  %12433 = vmatprep.subr.bf16.mxu1 %v12703_v18 }
 0x5fd   : > { %v10697_v22 = vcombine.low %v15414_v3, %v15447_v31  ;;  %12396 = vmatpush3.bf16.msra.mxu0 %v12698_v36  ;;  %v7559_v35 = vld [vmem:[#allocation5 + $0xc] sm:$0xf]  ;;  %v7680_v36 = vrot.slane %v7678_v19, 2  ;;  %v10713_v60 = vcombine.low %v15447_v31, %v15447_v31 }
 0x5fe   : > { %v7560_v51 = vld [vmem:[#allocation5 + $0x10] sm:$0x3]  ;;  %12397 = vmatprep.subr.bf16.mxu0 %v12700_v26  ;;  %v12722_v3 = vld [vmem:[%s16317_s5 + $0x110] sm:$0xff]  }
 0x5ff   : > { %v7376_v29 = vshrl.u32 %v10697_v22, 16  ;;  %v7379_v48 = vshll.u32 %v10697_v22, 16  ;;  %12434 = vmatpush3.bf16.msra.mxu1 %v12703_v18  ;;  %v10729_v17 = vcombine.low %v7559_v35, %v7560_v51  ;;  %v7664_v44 = vld [vmem:[#allocation5 + $0x10] sm:$0x7]  ;;  %v7683_v18 = vrot.slane %v7681_v9, 3  ;;  %v12726_v31 = vld [vmem:[%s16317_s5 + $0xf0] sm:$0xff]  }
 0x600   : > { %12451 = vmatprep.subr.bf16.mxu1 %v12706_v27  ;;  %v10744_v15 = vcombine.low %v7559_v35, %v7664_v44  ;;  %v12734_v51 = vld [vmem:[%s16319_s7 + $0x80] ss:$8 sps:$4 sm:$0xff]   ;;  %v12740_v35 = vld [vmem:[%s16319_s7 + $0x90] ss:$8 sps:$4 sm:$0xff]   ;;  %v12775_v44 = vld [vmem:[%s16319_s7 + $0x184] ss:$8 sps:$4 sm:$0xff]  }
 0x601   : > { %v7378_v24 = vrot.slane %v7376_v29, 3  ;;  %v7381_v58 = vrot.slane %v7379_v48, 4  ;;  %12398 = vmatpush3.bf16.msra.mxu0 %v12700_v26  ;;  %v7581_v56 = vrot.slane %v10729_v17, 2  ;;  %v7684_v26 = vor.u32 %v7683_v18, %v7680_v36  ;;  %v12736_v29 = vld [vmem:[%s16319_s7 + $0x84] ss:$8 sps:$4 sm:$0xff]  }
 0x602   : > { %12415 = vmatprep.subr.bf16.mxu0 %v12702_v5  ;;  %v7789_v38 = vrot.slane %v10744_v15, 3  ;;  %v7686_v40 = vshrl.u32 %v10744_v15, 16  ;;  %v7689_v34 = vshll.u32 %v10744_v15, 16  ;;  %v12731_v48 = vld [vmem:[%s16319_s7 + $0x10] ss:$8 sps:$4 sm:$0xff]  }
 0x603   : > { %v7382_v0 = vor.u32 %v7381_v58, %v7378_v24  ;;  %v7582_v50 = vsel %vm16463_vm4, %v7580_v1, %v7581_v56  ;;  %v12742_v17 = vld [vmem:[%s16319_s7 + $0x94] ss:$8 sps:$4 sm:$0xff]   ;;  %v12743_v24 = vld [vmem:[%s16319_s7 + $0x30] ss:$8 sps:$4 sm:$0xff]   ;;  %v12761_v1 = vld [vmem:[%s16319_s7 + $0x60] ss:$8 sps:$4 sm:$0xff]  }
 0x604   : > { %12400 = vmatmul.mubr.msk.bf16.vlgmr.msra.gmra.mrb[32].mxu0 %vm7023_vm3, %v10651_v23  ;;  %v7790_v16 = vsel %vm4545_vm5, %v7788_v45, %v7789_v38  ;;  %v7688_v47 = vrot.slane %v7686_v40, 2  ;;  %v7691_v25 = vrot.slane %v7689_v34, 3  ;;  %v12745_v58 = vld [vmem:[%s16319_s7 + $0x34] ss:$8 sps:$4 sm:$0xff]   ;;  %v12749_v23 = vld [vmem:[%s16319_s7 + $0x40] ss:$8 sps:$4 sm:$0xff]  }
 0x605   : > { %v7383_v57 = vsel %vm4762_vm14, %v7374_v32, %v7382_v0  ;;  %12416 = vmatpush3.bf16.msra.mxu0 %v12702_v5  ;;  %12423 = vmatprep.mubr.msk.bf16.mxu0 %vm7023_vm3, %v7272_v10  ;;  %v12728_v5 = vld [vmem:[%s16319_s7] ss:$8 sps:$4 sm:$0xff]   ;;  %v12754_v32 = vld [vmem:[%s16319_s7 + $0xb4] ss:$8 sps:$4 sm:$0xff]   ;;  %v12778_v15 = vld [vmem:[%s16319_s7 + $0xf0] ss:$8 sps:$4 sm:$0xff]  }
 0x606   : > { %12435 = vmatprep.mubr.msk.bf16.mxu1 %vm7023_vm3, %v7383_v57  ;;  %12417 = vmatprep.subr.bf16.mxu0 %v12704_v42  ;;  %v7692_v12 = vor.u32 %v7691_v25, %v7688_v47  ;;  %v12760_v57 = vld [vmem:[%s16319_s7 + $0xc4] ss:$8 sps:$4 sm:$0xff]   ;;  %v12769_v10 = vld [vmem:[%s16319_s7 + $0x74] ss:$8 sps:$4 sm:$0xff]  }
 0x607   : > { %12436 = vmatmul.mubr.msk.bf16.vlgmr.msra.gmra.mrb[48].mxu1 %vm7023_vm3, %v7382_v0  ;;  %v12757_v0 = vld [vmem:[%s16319_s7 + $0x54] ss:$8 sps:$4 sm:$0xff]  }
 0x608   : > { %12452 = vmatpush3.bf16.msra.mxu1 %v12706_v27  ;;  %12459 = vmatprep.mubr.msk.bf16.mxu1 %vm7023_vm3, %v7582_v50  ;;  %v7693_v22 = vsel %vm5547_vm11, %v7684_v26, %v7692_v12  ;;  %v12727_v27 = vld [vmem:[%s16317_s5 + $0xf8] sm:$0xff]  }
 0x609   : > { %12453 = vmatprep.subr.bf16.mxu1 %v12708_v6  ;;  %12418 = vmatpush3.bf16.msra.mxu0 %v12704_v42  ;;  %v12751_v42 = vld [vmem:[%s16319_s7 + $0x44] ss:$8 sps:$4 sm:$0xff]   ;;  %v12764_v50 = vld [vmem:[%s16319_s7 + $0xd0] ss:$8 sps:$4 sm:$0xff]  }
 0x60a   : > { %12419 = vmatprep.subr.bf16.mxu0 %v12707_v11 }
 0x60c   : > { %12454 = vmatpush3.bf16.msra.mxu1 %v12708_v6  ;;  %v12763_v6 = vld [vmem:[%s16319_s7 + $0x64] ss:$8 sps:$4 sm:$0xff]  }
 0x60d   : > { %12455 = vmatprep.subr.bf16.mxu1 %v12710_v62  ;;  %12420 = vmatpush3.bf16.msra.mxu0 %v12707_v11  ;;  %v12766_v11 = vld [vmem:[%s16319_s7 + $0xd4] ss:$8 sps:$4 sm:$0xff]  }
 0x60e   : > { %12421 = vmatprep.subr.bf16.mxu0 %v12709_v46 }
 0x610   : > { %12456 = vmatpush3.bf16.msra.mxu1 %v12710_v62  ;;  %v12767_v62 = vld [vmem:[%s16319_s7 + $0x70] ss:$8 sps:$4 sm:$0xff]  }
 0x611   : > { %12457 = vmatprep.subr.bf16.mxu1 %v12712_v21  ;;  %12422 = vmatpush3.bf16.msra.mxu0 %v12709_v46  ;;  %v12772_v46 = vld [vmem:[%s16319_s7 + $0xe4] ss:$8 sps:$4 sm:$0xff]  }
 0x612   : > { %12439 = vmatprep.subr.bf16.mxu0 %v12711_v7 }
 0x614   : > { %12458 = vmatpush3.bf16.msra.mxu1 %v12712_v21  ;;  %12424 = vmatmul.mubr.msk.bf16.vlgmr.msra.gmra.mrb[36].mxu0 %vm7023_vm3, %v7271_v61  ;;  %v12752_v61 = vld [vmem:[%s16319_s7 + $0xb0] ss:$8 sps:$4 sm:$0xff]   ;;  %v12770_v21 = vld [vmem:[%s16319_s7 + $0xe0] ss:$8 sps:$4 sm:$0xff]  }
 0x615   : > { %12475 = vmatprep.subr.bf16.mxu1 %v12717_v2  ;;  %12440 = vmatpush3.bf16.msra.mxu0 %v12711_v7  ;;  %v12780_v7 = vld [vmem:[%s16319_s7 + $0xf4] ss:$8 sps:$4 sm:$0xff]  }
 0x616   : > { %12447 = vmatprep.mubr.msk.bf16.mxu0 %vm7023_vm3, %v10712_v8  ;;  %12441 = vmatprep.subr.bf16.mxu0 %v12713_v28 }
 0x617   : > { %12460 = vmatmul.mubr.msk.bf16.vlgmr.msra.gmra.mrb[52].mxu1 %vm7023_vm3, %v7581_v56  ;;  %v12755_v56 = vld [vmem:[%s16319_s7 + $0x50] ss:$8 sps:$4 sm:$0xff]  }
 0x618   : > { %12476 = vmatpush3.bf16.msra.mxu1 %v12717_v2  ;;  %12483 = vmatprep.mubr.msk.bf16.mxu1 %vm7023_vm3, %v7790_v16 }
 0x619   : > { %12477 = vmatprep.subr.bf16.mxu1 %v12719_v30  ;;  %12442 = vmatpush3.bf16.msra.mxu0 %v12713_v28 }
 0x61a   : > { %12443 = vmatprep.subr.bf16.mxu0 %v12718_v20 }
 0x61c   : > { %12478 = vmatpush3.bf16.msra.mxu1 %v12719_v30 }
 0x61d   : > { %12479 = vmatprep.subr.bf16.mxu1 %v12722_v3  ;;  %12444 = vmatpush3.bf16.msra.mxu0 %v12718_v20 }
 0x61e   : > { %12445 = vmatprep.subr.bf16.mxu0 %v12720_v63 }
 0x620   : > { %12480 = vmatpush3.bf16.msra.mxu1 %v12722_v3 }
 0x621   : > { %12481 = vmatprep.subr.bf16.mxu1 %v12724_v49  ;;  %12446 = vmatpush3.bf16.msra.mxu0 %v12720_v63 }
 0x622   : > { %12463 = vmatprep.subr.bf16.mxu0 %v12723_v37 }
 0x624   : > { %12482 = vmatpush3.bf16.msra.mxu1 %v12724_v49  ;;  %12448 = vmatmul.mubr.msk.bf16.vlgmr.msra.gmra.mrb[40].mxu0 %vm7023_vm3, %v10713_v60 }
 0x625   : > { %12464 = vmatpush3.bf16.msra.mxu0 %v12723_v37  ;;  %12471 = vmatprep.mubr.msk.bf16.mxu0 %vm7023_vm3, %v7693_v22 }
 0x626   : > { %12465 = vmatprep.subr.bf16.mxu0 %v12725_v14  ;;  %8150 = vmatprep.subr.bf16.mxu1 %v12730_v41 }
 0x627   : > { %12484 = vmatmul.mubr.msk.bf16.vlgmr.msra.gmra.mrb[56].mxu1 %vm7023_vm3, %v7789_v38 }
 0x628   : > { %8182 = vmatprep.mubr.bf16.mxu1 %v16450_v39  ;;  %8151 = vmatpush1.bf16.msra.mxu1 %v12728_v5 }
 0x629   : > { %12466 = vmatpush3.bf16.msra.mxu0 %v12725_v14  ;;  %8152 = vmatprep.subr.bf16.mxu1 %v12733_v33 }
 0x62a   : > { %12467 = vmatprep.subr.bf16.mxu0 %v12726_v31 }
 0x62c   : > { %8153 = vmatpush1.bf16.msra.mxu1 %v12731_v48 }
 0x62d   : > { %12468 = vmatpush3.bf16.msra.mxu0 %v12726_v31  ;;  %8154 = vmatprep.subr.bf16.mxu1 %v12739_v43 }
 0x62e   : > { %12469 = vmatprep.subr.bf16.mxu0 %v12727_v27 }
 0x630   : > { %8155 = vmatpush1.bf16.msra.mxu1 %v12737_v54 }
 0x631   : > { %12470 = vmatpush3.bf16.msra.mxu0 %v12727_v27  ;;  %8156 = vmatprep.subr.bf16.mxu1 %v12745_v58 }
 0x632   : > { %8029 = vmatprep.subr.bf16.mxu0 %v12736_v29 }
 0x634   : > { %12472 = vmatmul.mubr.msk.bf16.vlgmr.msra.gmra.mrb[44].mxu0 %vm7023_vm3, %v7692_v12  ;;  %8157 = vmatpush1.bf16.msra.mxu1 %v12743_v24 }
 0x635   : > { %8061 = vmatprep.mubr.bf16.mxu0 %v16450_v39  ;;  %8030 = vmatpush1.bf16.msra.mxu0 %v12734_v51 }
 0x636   : > { %8031 = vmatprep.subr.bf16.mxu0 %v12742_v17  ;;  %8158 = vmatprep.subr.bf16.mxu1 %v12751_v42 }
 0x638   : > { %8159 = vmatpush1.bf16.msra.mxu1 %v12749_v23 }
 0x639   : > { %8032 = vmatpush1.bf16.msra.mxu0 %v12740_v35  ;;  %8160 = vmatprep.subr.bf16.mxu1 %v12757_v0 }
 0x63a   : > { %8033 = vmatprep.subr.bf16.mxu0 %v12748_v52 }
 0x63c   : > { %8161 = vmatpush1.bf16.msra.mxu1 %v12755_v56 }
 0x63d   : > { %8034 = vmatpush1.bf16.msra.mxu0 %v12746_v55  ;;  %8162 = vmatprep.subr.bf16.mxu1 %v12763_v6 }
 0x63e   : > { %8035 = vmatprep.subr.bf16.mxu0 %v12754_v32 }
 0x640   : > { %8163 = vmatpush1.bf16.msra.mxu1 %v12761_v1 }
 0x641   : > { %8036 = vmatpush1.bf16.msra.mxu0 %v12752_v61  ;;  %8164 = vmatprep.subr.bf16.mxu1 %v12769_v10  ;;  %v10766_v10 = vld [vmem:[%s16318_s6] ss:$0 sm:$0xff] }
 0x642   : > { %8037 = vmatprep.subr.bf16.mxu0 %v12760_v57 }
 0x644   : > { %8165 = vmatpush1.bf16.msra.mxu1 %v12767_v62 }
 0x645   : > { %8038 = vmatpush1.bf16.msra.mxu0 %v12758_v13  ;;  %8443 = vmatprep.subr.bf16.mxu1 %v12775_v44 }
 0x646   : > { %8039 = vmatprep.subr.bf16.mxu0 %v12766_v11 }
 0x649   : > { %8040 = vmatpush1.bf16.msra.mxu0 %v12764_v50 }
 0x64a   : > { %8041 = vmatprep.subr.bf16.mxu0 %v12772_v46 }
 0x64d   : > { %8042 = vmatpush1.bf16.msra.mxu0 %v12770_v21 }
 0x64e   : > { %8043 = vmatprep.subr.bf16.mxu0 %v12780_v7 }
 0x651   : > { %8044 = vmatpush1.bf16.msra.mxu0 %v12778_v15 }
 0x652   : > { %8294 = vmatprep.subr.bf16.mxu0 %v12786_v4 }
 0x6c5   : > { %v12413_v2 = vpop.f32.mrb[44].mxu1 }
 0x6c6   : > { %v7236_v59 = vpop.f32.mrb[45].mxu1 }
 0x6c7   : > { %v12389_v28 = vpop.f32.mrb[28].mxu0  ;;  %v12414_v38 = vpop.f32.mrb[46].mxu1 }
 0x6c8   : > { %v7064_v8 = vpop.f32.mrb[29].mxu0  ;;  %v7239_v30 = vpop.f32.mrb[47].mxu1 }
 0x6c9   : > { %v12390_v45 = vpop.f32.mrb[30].mxu0 }
 0x6ca   : > { %v7067_v20 = vpop.f32.mrb[31].mxu0 }
 0x6d7   : > { %v12401_v16 = vpop.f32.mrb[32].mxu0 }
 0x6d8   : > { %v7151_v3 = vadd.f32 %v12401_v16, %v12389_v28  ;;  %v7142_v40 = vpop.f32.mrb[33].mxu0  ;;  %v12783_v16 = vld [vmem:[%s16319_s7 + $0x194] ss:$8 sps:$4 sm:$0xff]  }
 0x6d9   : > { %v7143_v34 = vadd.f32 %v7142_v40, %v7064_v8  ;;  %v12402_v63 = vpop.f32.mrb[34].mxu0 }
 0x6da   : > { %v12437_v19 = vpop.f32.mrb[48].mxu1  ;;  %v7252_v9 = vadd.f32 %v12413_v2, %v7151_v3  ;;  %v7145_v47 = vpop.f32.mrb[35].mxu0  ;;  %v12781_v63 = vld [vmem:[%s16319_s7 + $0x190] ss:$8 sps:$4 sm:$0xff]  }
 0x6db   : > { %v7448_v25 = vpop.f32.mrb[49].mxu1  ;;  %v7146_v49 = vadd.f32 %v7145_v47, %v7067_v20  ;;  %v7250_v37 = vadd.f32 %v7236_v59, %v7143_v34  ;;  %v12773_v20 = vld [vmem:[%s16319_s7 + $0x180] ss:$8 sps:$4 sm:$0xff]  }
 0x6dc   : > { %v12438_v36 = vpop.f32.mrb[50].mxu1 }
 0x6dd   : > { %v7451_v18 = vpop.f32.mrb[51].mxu1  ;;  %v7251_v12 = vadd.f32 %v7239_v30, %v7146_v49  ;;  %v12784_v49 = vld [vmem:[%s16319_s7 + $0x100] ss:$8 sps:$4 sm:$0xff]  }
 0x6e7   : > { %v12425_v60 = vpop.f32.mrb[36].mxu0 }
 0x6e8   : > { %v7353_v26 = vadd.f32 %v12425_v60, %v7252_v9  ;;  %v7337_v14 = vpop.f32.mrb[37].mxu0  ;;  %v12789_v9 = vld [vmem:[%s16319_s7 + $0x1a4] ss:$8 sps:$4 sm:$0xff]   ;;  %v12790_v60 = vld [vmem:[%s16319_s7 + $0x110] ss:$8 sps:$4 sm:$0xff]  }
 0x6e9   : > { %v7351_v22 = vadd.f32 %v7337_v14, %v7250_v37  ;;  %v12426_v31 = vpop.f32.mrb[38].mxu0  ;;  %v12787_v37 = vld [vmem:[%s16319_s7 + $0x1a0] ss:$8 sps:$4 sm:$0xff]   ;;  %v12798_v14 = vld [vmem:[%s16319_s7 + $0x124] ss:$8 sps:$4 sm:$0xff]  }
 0x6ea   : > { %v12461_v27 = vpop.f32.mrb[52].mxu1  ;;  %v7464_v5 = vadd.f32 %v12437_v19, %v7353_v26  ;;  %v7340_v41 = vpop.f32.mrb[39].mxu0  ;;  %v12793_v26 = vld [vmem:[%s16319_s7 + $0x1b0] ss:$8 sps:$4 sm:$0xff]   ;;  %v12796_v31 = vld [vmem:[%s16319_s7 + $0x120] ss:$8 sps:$4 sm:$0xff]  }
 0x6eb   : > { %v7647_v33 = vpop.f32.mrb[53].mxu1  ;;  %v7352_v51 = vadd.f32 %v7340_v41, %v7251_v12  ;;  %v7462_v29 = vadd.f32 %v7448_v25, %v7351_v22  ;;  %v12795_v12 = vld [vmem:[%s16319_s7 + $0x1b4] ss:$8 sps:$4 sm:$0xff]   ;;  %v12801_v22 = vld [vmem:[%s16319_s7 + $0x1c4] ss:$8 sps:$4 sm:$0xff]  }
 0x6ec   : > { %v12462_v48 = vpop.f32.mrb[54].mxu1  ;;  %v12807_v41 = vld [vmem:[%s16319_s7 + $0x1d4] ss:$8 sps:$4 sm:$0xff]  }
 0x6ed   : > { %v7650_v43 = vpop.f32.mrb[55].mxu1  ;;  %v7463_v54 = vadd.f32 %v7451_v18, %v7352_v51  ;;  %v12792_v18 = vld [vmem:[%s16319_s7 + $0x114] ss:$8 sps:$4 sm:$0xff]   ;;  %v12805_v51 = vld [vmem:[%s16319_s7 + $0x1d0] ss:$8 sps:$4 sm:$0xff]  }
 0x6ee   : > { %v12813_v48 = vld [vmem:[%s16319_s7 + $0x1e4] ss:$8 sps:$4 sm:$0xff]  }
 0x6f7   : > { %v12449_v35 = vpop.f32.mrb[40].mxu0 }
 0x6f8   : > { %v7556_v17 = vadd.f32 %v12449_v35, %v7464_v5  ;;  %v7540_v24 = vpop.f32.mrb[41].mxu0  ;;  %v12804_v5 = vld [vmem:[%s16319_s7 + $0x134] ss:$8 sps:$4 sm:$0xff]  }
 0x6f9   : > { %v7554_v58 = vadd.f32 %v7540_v24, %v7462_v29  ;;  %v12450_v55 = vpop.f32.mrb[42].mxu0  ;;  %v12810_v29 = vld [vmem:[%s16319_s7 + $0x144] ss:$8 sps:$4 sm:$0xff]   ;;  %v12816_v35 = vld [vmem:[%s16319_s7 + $0x154] ss:$8 sps:$4 sm:$0xff]  }
 0x6fa   : > { %v12485_v52 = vpop.f32.mrb[56].mxu1  ;;  %v7663_v23 = vadd.f32 %v12461_v27, %v7556_v17  ;;  %v7543_v42 = vpop.f32.mrb[43].mxu0  ;;  %v12799_v27 = vld [vmem:[%s16319_s7 + $0x1c0] ss:$8 sps:$4 sm:$0xff]   ;;  %v12819_v17 = vld [vmem:[%s16319_s7 + $0x1f4] ss:$8 sps:$4 sm:$0xff]  }
 0x6fb   : > { %v7855_v32 = vpop.f32.mrb[57].mxu1  ;;  %v7555_v0 = vadd.f32 %v7543_v42, %v7463_v54  ;;  %v7661_v61 = vadd.f32 %v7647_v33, %v7554_v58  ;;  %v12802_v33 = vld [vmem:[%s16319_s7 + $0x130] ss:$8 sps:$4 sm:$0xff]   ;;  %v12811_v54 = vld [vmem:[%s16319_s7 + $0x1e0] ss:$8 sps:$4 sm:$0xff]  }
 0x6fc   : > { %v12486_v56 = vpop.f32.mrb[58].mxu1  ;;  %v12814_v55 = vld [vmem:[%s16319_s7 + $0x150] ss:$8 sps:$4 sm:$0xff]  }
 0x6fd   : > { %v7858_v57 = vpop.f32.mrb[59].mxu1  ;;  %v7662_v6 = vadd.f32 %v7650_v43, %v7555_v0  ;;  %v12808_v43 = vld [vmem:[%s16319_s7 + $0x140] ss:$8 sps:$4 sm:$0xff]  }
 0x6fe   : > { %v12820_v0 = vld [vmem:[%s16319_s7 + $0x160] ss:$8 sps:$4 sm:$0xff]  }
 0x707   : > { %v12473_v13 = vpop.f32.mrb[44].mxu0 }
 0x708   : > { %v7774_v1 = vadd.f32 %v12473_v13, %v7663_v23  ;;  %v7758_v11 = vpop.f32.mrb[45].mxu0  ;;  %v12822_v23 = vld [vmem:[%s16319_s7 + $0x164] ss:$8 sps:$4 sm:$0xff]  }
 0x709   : > { %v7772_v50 = vadd.f32 %v7758_v11, %v7661_v61  ;;  %v12474_v62 = vpop.f32.mrb[46].mxu0  ;;  %v12824_v61 = vld [vmem:[%s16319_s7 + $0x280] ss:$8 sps:$4 sm:$0xff]   ;;  %v12830_v11 = vld [vmem:[%s16319_s7 + $0x290] ss:$8 sps:$4 sm:$0xff]  }
 0x70a   : > { %v7871_v46 = vadd.f32 %v12485_v52, %v7774_v1  ;;  %v7761_v44 = vpop.f32.mrb[47].mxu0  ;;  %v12817_v52 = vld [vmem:[%s16319_s7 + $0x1f0] ss:$8 sps:$4 sm:$0xff]   ;;  %v12838_v62 = vld [vmem:[%s16319_s7 + $0x2a4] ss:$8 sps:$4 sm:$0xff]  }
 0x70b   : > { %v7869_v21 = vadd.f32 %v7855_v32, %v7772_v50  ;;  %v7773_v7 = vadd.f32 %v7761_v44, %v7662_v6  ;;  %v12826_v32 = vld [vmem:[%s16319_s7 + $0x284] ss:$8 sps:$4 sm:$0xff]   ;;  %v12832_v6 = vld [vmem:[%s16319_s7 + $0x294] ss:$8 sps:$4 sm:$0xff]   ;;  %v12827_v1 = vld [vmem:[%s16319_s7 + $0x170] ss:$8 sps:$4 sm:$0xff]  }
 0x70c   : > { %v7881_v15 = vadd.f32 %v10766_v10, %v7871_v46  ;;  %v12835_v50 = vld [vmem:[%s16319_s7 + $0x204] ss:$8 sps:$4 sm:$0xff]   ;;  %v12833_v46 = vld [vmem:[%s16319_s7 + $0x200] ss:$8 sps:$4 sm:$0xff]  }
 0x70d   : > { %v7879_v4 = vadd.f32 %v10766_v10, %v7869_v21  ;;  %v7870_v2 = vadd.f32 %v7858_v57, %v7773_v7  ;;  %v12829_v57 = vld [vmem:[%s16319_s7 + $0x174] ss:$8 sps:$4 sm:$0xff]   ;;  %v12836_v44 = vld [vmem:[%s16319_s7 + $0x2a0] ss:$8 sps:$4 sm:$0xff]  }
 0x70e   : > { %v7884_v59 = vmax.f32 %v7881_v15, 0.0  ;;  %v12841_v7 = vld [vmem:[%s16319_s7 + $0x214] ss:$8 sps:$4 sm:$0xff]  }
 0x70f   : > { %v7880_v28 = vadd.f32 %v10766_v10, %v7870_v2  ;;  %v7882_v8 = vmax.f32 %v7879_v4, 0.0  ;;  %v12844_v15 = vld [vmem:[%s16319_s7 + $0x2b4] ss:$8 sps:$4 sm:$0xff]   ;;  %v12839_v4 = vld [vmem:[%s16319_s7 + $0x210] ss:$8 sps:$4 sm:$0xff]  }
 0x710   : > { %v11285_v38 = vpack.c.bf16 %v7884_v59, %v7884_v59  ;;  %v12842_v2 = vld [vmem:[%s16319_s7 + $0x2b0] ss:$8 sps:$4 sm:$0xff]   ;;  %v12847_v59 = vld [vmem:[%s16319_s7 + $0x224] ss:$8 sps:$4 sm:$0xff]  }
 0x711   : > { %v7883_v30 = vmax.f32 %v7880_v28, 0.0  ;;  %v12850_v28 = vld [vmem:[%s16319_s7 + $0x2c4] ss:$8 sps:$4 sm:$0xff]  }
 0x712   : > { %7900 = vst [vmem:[#allocation6 + $0x8] sm:$0xf] %v11285_v38  ;;  %v12845_v38 = vld [vmem:[%s16319_s7 + $0x220] ss:$8 sps:$4 sm:$0xff]  }
 0x713   : > { %v11290_v45 = vpack.c.bf16 %v7883_v30, %v7882_v8  ;;  %v12848_v8 = vld [vmem:[%s16319_s7 + $0x2c0] ss:$8 sps:$4 sm:$0xff]   ;;  %v12853_v30 = vld [vmem:[%s16319_s7 + $0x234] ss:$8 sps:$4 sm:$0xff]  }
 0x715   : > { %11291 = vst [vmem:[#allocation6] sm:$0xff] %v11290_v45   ;;  %v12856_v45 = vld [vmem:[%s16319_s7 + $0x2d4] ss:$8 sps:$4 sm:$0xff]  }
 0x71c   : > { %v7901_v3 = vld [vmem:[#allocation6] sm:$0xf]  ;;  %v15654_v40 = vld [vmem:[#allocation6 + $0x4] sm:$0x1] }
 0x71d   : > { %v10786_v34 = vcombine.low %v7901_v3, %v15654_v40  ;;  %8183 = vmatmul.mubr.bf16.vlgmr.msra.gmra.mrb[60].mxu1 %v7901_v3  ;;  %v15725_v24 = vld [vmem:[#allocation6] sm:$0x8]  ;;  %v8338_v58 = vld [vmem:[#allocation6 + $0x4] sm:$0x7]  ;;  %v12859_v3 = vld [vmem:[%s16319_s7 + $0x244] ss:$8 sps:$4 sm:$0xff]  }
 0x71e   : > { %8444 = vmatpush1.bf16.msra.mxu1 %v12773_v20  ;;  %8475 = vmatprep.mubr.bf16.mxu1 %v16450_v39  ;;  %v10868_v42 = vcombine.low %v15725_v24, %v8338_v58  ;;  %v8191_v13 = vld [vmem:[#allocation6] sm:$0xe]  ;;  %v12851_v20 = vld [vmem:[%s16319_s7 + $0x230] ss:$8 sps:$4 sm:$0xff]  }
 0x71f   : > { %v7944_v19 = vshll.u32 %v10786_v34, 16  ;;  %8445 = vmatprep.subr.bf16.mxu1 %v12783_v16  ;;  %v7942_v47 = vshrl.u32 %v10786_v34, 16  ;;  %v10835_v10 = vcombine.low %v8191_v13, %v15654_v40  ;;  %v12854_v16 = vld [vmem:[%s16319_s7 + $0x2d0] ss:$8 sps:$4 sm:$0xff]   ;;  %v12862_v40 = vld [vmem:[%s16319_s7 + $0x2e4] ss:$8 sps:$4 sm:$0xff]  }
 0x720   : > { %v8361_v56 = vrot.slane %v10868_v42, 3  ;;  %v12857_v34 = vld [vmem:[%s16319_s7 + $0x240] ss:$8 sps:$4 sm:$0xff]   ;;  %v12891_v58 = vld [vmem:[%s16319_s7 + $0x3b0] ss:$8 sps:$4 sm:$0xff]  }
 0x721   : > { %v7946_v25 = vrot.slane %v7944_v19, 1  ;;  %v8212_v21 = vrot.slane %v10835_v10, 1  ;;  %v12865_v19 = vld [vmem:[%s16319_s7 + $0x254] ss:$8 sps:$4 sm:$0xff]   ;;  %v12897_v42 = vld [vmem:[%s16319_s7 + $0x3c0] ss:$8 sps:$4 sm:$0xff]  }
 0x722   : > { %8446 = vmatpush1.bf16.msra.mxu1 %v12781_v63  ;;  %v12860_v63 = vld [vmem:[%s16319_s7 + $0x2e0] ss:$8 sps:$4 sm:$0xff]   ;;  %v12908_v13 = vld [vmem:[%s16319_s7 + $0x344] ss:$8 sps:$4 sm:$0xff]  }
 0x723   : > { %v7947_v36 = vor.u32 %v7946_v25, %v7942_v47  ;;  %8447 = vmatprep.subr.bf16.mxu1 %v12789_v9  ;;  %v12868_v9 = vld [vmem:[%s16319_s7 + $0x2f4] ss:$8 sps:$4 sm:$0xff]   ;;  %v8486_v47 = vld [vmem:[#allocation6 + $0x4] sm:$0xf]  ;;  %v12863_v25 = vld [vmem:[%s16319_s7 + $0x250] ss:$8 sps:$4 sm:$0xff]  }
 0x724   : > { %v12906_v10 = vld [vmem:[%s16319_s7 + $0x340] ss:$8 sps:$4 sm:$0xff]  }
 0x725   : > { %8062 = vmatmul.mubr.bf16.vlgmr.msra.gmra.mrb[48].mxu0 %v7947_v36  ;;  %v10901_v36 = vcombine.low %v15725_v24, %v8486_v47  ;;  %v12888_v24 = vld [vmem:[%s16319_s7 + $0x310] ss:$8 sps:$4 sm:$0xff]  }
 0x726   : > { %8295 = vmatpush1.bf16.msra.mxu0 %v12784_v49  ;;  %8448 = vmatpush1.bf16.msra.mxu1 %v12787_v37  ;;  %v12866_v49 = vld [vmem:[%s16319_s7 + $0x2f0] ss:$8 sps:$4 sm:$0xff]   ;;  %v12871_v37 = vld [vmem:[%s16319_s7 + $0x264] ss:$8 sps:$4 sm:$0xff]  }
 0x727   : > { %8296 = vmatprep.subr.bf16.mxu0 %v12792_v18  ;;  %8449 = vmatprep.subr.bf16.mxu1 %v12795_v12  ;;  %v12875_v18 = vld [vmem:[%s16319_s7 + $0x384] ss:$8 sps:$4 sm:$0xff]   ;;  %v12869_v12 = vld [vmem:[%s16319_s7 + $0x260] ss:$8 sps:$4 sm:$0xff]  }
 0x728   : > { %8326 = vmatprep.mubr.bf16.mxu0 %v16450_v39 }
 0x72a   : > { %8297 = vmatpush1.bf16.msra.mxu0 %v12790_v60  ;;  %8450 = vmatpush1.bf16.msra.mxu1 %v12793_v26  ;;  %v12873_v60 = vld [vmem:[%s16319_s7 + $0x380] ss:$8 sps:$4 sm:$0xff]   ;;  %v8508_v26 = vshrl.u32 %v10901_v36, 16 }
 0x72b   : > { %8298 = vmatprep.subr.bf16.mxu0 %v12798_v14  ;;  %8451 = vmatprep.subr.bf16.mxu1 %v12801_v22  ;;  %v8511_v14 = vshll.u32 %v10901_v36, 16  ;;  %v12878_v22 = vld [vmem:[%s16319_s7 + $0x274] ss:$8 sps:$4 sm:$0xff]   ;;  %v12941_v36 = vld [vmem:[%s16319_s7 + $0x450] ss:$8 sps:$4 sm:$0xff]  }
 0x72e   : > { %8299 = vmatpush1.bf16.msra.mxu0 %v12796_v31  ;;  %8452 = vmatpush1.bf16.msra.mxu1 %v12799_v27  ;;  %v12881_v31 = vld [vmem:[%s16319_s7 + $0x394] ss:$8 sps:$4 sm:$0xff]   ;;  %v12876_v27 = vld [vmem:[%s16319_s7 + $0x270] ss:$8 sps:$4 sm:$0xff]  }
 0x72f   : > { %8300 = vmatprep.subr.bf16.mxu0 %v12804_v5  ;;  %8453 = vmatprep.subr.bf16.mxu1 %v12807_v41  ;;  %v12879_v5 = vld [vmem:[%s16319_s7 + $0x390] ss:$8 sps:$4 sm:$0xff]   ;;  %v8510_v41 = vrot.slane %v8508_v26, 3  ;;  %v9081_v26 = vld [vmem:[#allocation6 + $0x4] sm:$0x8] }
 0x732   : > { %8301 = vmatpush1.bf16.msra.mxu0 %v12802_v33  ;;  %8454 = vmatpush1.bf16.msra.mxu1 %v12805_v51  ;;  %v8513_v33 = vrot.slane %v8511_v14, 4  ;;  %v12884_v51 = vld [vmem:[%s16319_s7 + $0x304] ss:$8 sps:$4 sm:$0xff]   ;;  %v12947_v14 = vld [vmem:[%s16319_s7 + $0x470] ss:$8 sps:$4 sm:$0xff]  }
 0x733   : > { %8302 = vmatprep.subr.bf16.mxu0 %v12810_v29  ;;  %8455 = vmatprep.subr.bf16.mxu1 %v12813_v48  ;;  %v12887_v29 = vld [vmem:[%s16319_s7 + $0x3a4] ss:$8 sps:$4 sm:$0xff]   ;;  %v12882_v48 = vld [vmem:[%s16319_s7 + $0x300] ss:$8 sps:$4 sm:$0xff]  }
 0x736   : > { %8303 = vmatpush1.bf16.msra.mxu0 %v12808_v43  ;;  %8456 = vmatpush1.bf16.msra.mxu1 %v12811_v54  ;;  %v12885_v43 = vld [vmem:[%s16319_s7 + $0x3a0] ss:$8 sps:$4 sm:$0xff]   ;;  %v8514_v54 = vor.u32 %v8513_v33, %v8510_v41 }
 0x737   : > { %8304 = vmatprep.subr.bf16.mxu0 %v12816_v35  ;;  %8457 = vmatprep.subr.bf16.mxu1 %v12819_v17  ;;  %v12890_v35 = vld [vmem:[%s16319_s7 + $0x314] ss:$8 sps:$4 sm:$0xff]   ;;  %v12953_v41 = vld [vmem:[%s16321_s9 + $0xc0] sm:$0xff]  }
 0x738   : > { %v12893_v17 = vld [vmem:[%s16319_s7 + $0x3b4] ss:$8 sps:$4 sm:$0xff]   ;;  %v12954_v33 = vld [vmem:[%s16321_s9 + $0x80] sm:$0xff]  }
 0x73a   : > { %8305 = vmatpush1.bf16.msra.mxu0 %v12814_v55  ;;  %8458 = vmatpush1.bf16.msra.mxu1 %v12817_v52  ;;  %v12896_v55 = vld [vmem:[%s16319_s7 + $0x324] ss:$8 sps:$4 sm:$0xff]  }
 0x73b   : > { %8306 = vmatprep.subr.bf16.mxu0 %v12822_v23  ;;  %8736 = vmatprep.subr.bf16.mxu1 %v12826_v32  ;;  %v12899_v52 = vld [vmem:[%s16319_s7 + $0x3c4] ss:$8 sps:$4 sm:$0xff]   ;;  %v12894_v23 = vld [vmem:[%s16319_s7 + $0x320] ss:$8 sps:$4 sm:$0xff]   ;;  %v12902_v32 = vld [vmem:[%s16319_s7 + $0x334] ss:$8 sps:$4 sm:$0xff]  }
 0x73d   : > { %8476 = vmatmul.mubr.bf16.vlgmr.msra.gmra.mrb[64].mxu1 %v8361_v56  ;;  %v12900_v56 = vld [vmem:[%s16319_s7 + $0x330] ss:$8 sps:$4 sm:$0xff]  }
 0x73e   : > { %8307 = vmatpush1.bf16.msra.mxu0 %v12820_v0  ;;  %8737 = vmatpush1.bf16.msra.mxu1 %v12824_v61  ;;  %v12905_v0 = vld [vmem:[%s16319_s7 + $0x3d4] ss:$8 sps:$4 sm:$0xff]   ;;  %v8779_v61 = vld [vmem:[#allocation6 + $0x4] sm:$0xc] }
 0x73f   : > { %8308 = vmatprep.subr.bf16.mxu0 %v12829_v57  ;;  %8738 = vmatprep.subr.bf16.mxu1 %v12832_v6  ;;  %v12903_v57 = vld [vmem:[%s16319_s7 + $0x3d0] ss:$8 sps:$4 sm:$0xff]   ;;  %v15908_v6 = vld [vmem:[#allocation6 + $0x8] sm:$0x7] }
 0x740   : > { %8768 = vmatprep.mubr.bf16.mxu1 %v16450_v39 }
 0x742   : > { %8309 = vmatpush1.bf16.msra.mxu0 %v12827_v1  ;;  %8739 = vmatpush1.bf16.msra.mxu1 %v12830_v11  ;;  %v12911_v1 = vld [vmem:[%s16319_s7 + $0x3e4] ss:$8 sps:$4 sm:$0xff]   ;;  %v10999_v11 = vcombine.low %v8779_v61, %v15908_v6 }
 0x743   : > { %8596 = vmatprep.subr.bf16.mxu0 %v12835_v50  ;;  %8740 = vmatprep.subr.bf16.mxu1 %v12838_v62  ;;  %v12909_v50 = vld [vmem:[%s16319_s7 + $0x3e0] ss:$8 sps:$4 sm:$0xff]   ;;  %v12914_v62 = vld [vmem:[%s16319_s7 + $0x354] ss:$8 sps:$4 sm:$0xff]  }
 0x745   : > { %8327 = vmatmul.mubr.bf16.vlgmr.msra.gmra.mrb[52].mxu0 %v8212_v21  ;;  %v8953_v21 = vshll.u32 %v10999_v11, 16 }
 0x746   : > { %8597 = vmatpush1.bf16.msra.mxu0 %v12833_v46  ;;  %8741 = vmatpush1.bf16.msra.mxu1 %v12836_v44  ;;  %v12917_v46 = vld [vmem:[%s16319_s7 + $0x3f4] ss:$8 sps:$4 sm:$0xff]   ;;  %v8950_v44 = vshrl.u32 %v10999_v11, 16 }
 0x747   : > { %8598 = vmatprep.subr.bf16.mxu0 %v12841_v7  ;;  %8742 = vmatprep.subr.bf16.mxu1 %v12844_v15  ;;  %v12912_v7 = vld [vmem:[%s16319_s7 + $0x350] ss:$8 sps:$4 sm:$0xff]  }
 0x748   : > { %8628 = vmatprep.mubr.bf16.mxu0 %v16450_v39  ;;  %v12915_v15 = vld [vmem:[%s16319_s7 + $0x3f0] ss:$8 sps:$4 sm:$0xff]  }
 0x749   : > { %v12966_v11 = vld [vmem:[%s16321_s9 + $0x98] sm:$0xff]  }
 0x74a   : > { %8599 = vmatpush1.bf16.msra.mxu0 %v12839_v4  ;;  %8743 = vmatpush1.bf16.msra.mxu1 %v12842_v2  ;;  %v12920_v4 = vld [vmem:[%s16319_s7 + $0x364] ss:$8 sps:$4 sm:$0xff]   ;;  %v8952_v2 = vrot.slane %v8950_v44, 2 }
 0x74b   : > { %8600 = vmatprep.subr.bf16.mxu0 %v12847_v59  ;;  %8744 = vmatprep.subr.bf16.mxu1 %v12850_v28  ;;  %v8955_v59 = vrot.slane %v8953_v21, 3  ;;  %v12918_v28 = vld [vmem:[%s16319_s7 + $0x360] ss:$8 sps:$4 sm:$0xff]  }
 0x74c   : > { %v12971_v44 = vld [vmem:[%s16321_s9 + $0x68] sm:$0xff]  }
 0x74d   : > { %v12973_v21 = vld [vmem:[%s16321_s9 + $0xe8] sm:$0xff]  }
 0x74e   : > { %8601 = vmatpush1.bf16.msra.mxu0 %v12845_v38  ;;  %8745 = vmatpush1.bf16.msra.mxu1 %v12848_v8  ;;  %v8956_v38 = vor.u32 %v8955_v59, %v8952_v2  ;;  %v12924_v8 = vld [vmem:[%s16319_s7 + $0x374] ss:$8 sps:$4 sm:$0xff]  }
 0x74f   : > { %8602 = vmatprep.subr.bf16.mxu0 %v12853_v30  ;;  %8746 = vmatprep.subr.bf16.mxu1 %v12856_v45  ;;  %v12922_v30 = vld [vmem:[%s16319_s7 + $0x370] ss:$8 sps:$4 sm:$0xff]   ;;  %v8780_v45 = vld [vmem:[#allocation6 + $0x8] sm:$0x3] }
 0x750   : > { %v12977_v2 = vld [vmem:[%s16321_s9 + $0xf0] sm:$0xff]  }
 0x751   : > { %v12976_v59 = vld [vmem:[%s16321_s9 + $0x30] sm:$0xff]  }
 0x752   : > { %8603 = vmatpush1.bf16.msra.mxu0 %v12851_v20  ;;  %8747 = vmatpush1.bf16.msra.mxu1 %v12854_v16  ;;  %v10966_v20 = vcombine.low %v8779_v61, %v8780_v45  ;;  %v12928_v16 = vld [vmem:[%s16319_s7 + $0x404] ss:$8 sps:$4 sm:$0xff]   ;;  %v12980_v45 = vld [vmem:[%s16321_s9 + $0x38] sm:$0xff]  }
 0x753   : > { %8604 = vmatprep.subr.bf16.mxu0 %v12859_v3  ;;  %8748 = vmatprep.subr.bf16.mxu1 %v12862_v40  ;;  %v12926_v3 = vld [vmem:[%s16319_s7 + $0x400] ss:$8 sps:$4 sm:$0xff]  }
 0x754   : > { %v8803_v40 = vrot.slane %v10966_v20, 2 }
 0x756   : > { %8605 = vmatpush1.bf16.msra.mxu0 %v12857_v34  ;;  %8749 = vmatpush1.bf16.msra.mxu1 %v12860_v63  ;;  %v12931_v34 = vld [vmem:[%s16319_s7 + $0x414] ss:$8 sps:$4 sm:$0xff]   ;;  %v12929_v63 = vld [vmem:[%s16319_s7 + $0x410] ss:$8 sps:$4 sm:$0xff]  }
 0x757   : > { %8606 = vmatprep.subr.bf16.mxu0 %v12865_v19  ;;  %8750 = vmatprep.subr.bf16.mxu1 %v12868_v9  ;;  %v12934_v19 = vld [vmem:[%s16319_s7 + $0x424] ss:$8 sps:$4 sm:$0xff]   ;;  %v12932_v9 = vld [vmem:[%s16319_s7 + $0x420] ss:$8 sps:$4 sm:$0xff]  }
 0x75a   : > { %8607 = vmatpush1.bf16.msra.mxu0 %v12863_v25  ;;  %8751 = vmatpush1.bf16.msra.mxu1 %v12866_v49  ;;  %v12940_v25 = vld [vmem:[%s16319_s7 + $0x444] ss:$8 sps:$4 sm:$0xff]   ;;  %v12938_v49 = vld [vmem:[%s16319_s7 + $0x440] ss:$8 sps:$4 sm:$0xff]  }
 0x75b   : > { %8608 = vmatprep.subr.bf16.mxu0 %v12871_v37  ;;  %9038 = vmatprep.subr.bf16.mxu1 %v12875_v18  ;;  %v12943_v37 = vld [vmem:[%s16319_s7 + $0x454] ss:$8 sps:$4 sm:$0xff]   ;;  %v12946_v18 = vld [vmem:[%s16319_s7 + $0x464] ss:$8 sps:$4 sm:$0xff]  }
 0x75d   : > { %8769 = vmatmul.mubr.bf16.vlgmr.msra.gmra.mrb[68].mxu1 %v8486_v47  ;;  %v12937_v47 = vld [vmem:[%s16319_s7 + $0x434] ss:$8 sps:$4 sm:$0xff]  }
 0x75e   : > { %8609 = vmatpush1.bf16.msra.mxu0 %v12869_v12  ;;  %9039 = vmatpush1.bf16.msra.mxu1 %v12873_v60  ;;  %v12944_v12 = vld [vmem:[%s16319_s7 + $0x460] ss:$8 sps:$4 sm:$0xff]   ;;  %v12949_v60 = vld [vmem:[%s16319_s7 + $0x474] ss:$8 sps:$4 sm:$0xff]  }
 0x75f   : > { %8610 = vmatprep.subr.bf16.mxu0 %v12878_v22  ;;  %9040 = vmatprep.subr.bf16.mxu1 %v12881_v31  ;;  %v11032_v22 = vcombine.low %v9081_v26, %v15908_v6  ;;  %v12963_v6 = vld [vmem:[%s16321_s9 + $0x58] sm:$0xff]  }
 0x760   : > { %9070 = vmatprep.mubr.bf16.mxu1 %v16450_v39 }
 0x761   : > { %v9102_v31 = vrot.slane %v11032_v22, 3 }
 0x762   : > { %8611 = vmatpush1.bf16.msra.mxu0 %v12876_v27  ;;  %9041 = vmatpush1.bf16.msra.mxu1 %v12879_v5  ;;  %v12951_v27 = vld [vmem:[%s16321_s9 + $0x40] sm:$0xff]  }
 0x763   : > { %8885 = vmatprep.subr.bf16.mxu0 %v12884_v51  ;;  %9042 = vmatprep.subr.bf16.mxu1 %v12887_v29  ;;  %v12952_v5 = vld [vmem:[%s16321_s9] sm:$0xff]   ;;  %v12955_v51 = vld [vmem:[%s16321_s9 + $0x48] sm:$0xff]  }
 0x764   : > { %v12957_v29 = vld [vmem:[%s16321_s9 + $0xc8] sm:$0xff]  }
 0x765   : > { %8629 = vmatmul.mubr.bf16.vlgmr.msra.gmra.mrb[56].mxu0 %v8514_v54  ;;  %v12959_v54 = vld [vmem:[%s16321_s9 + $0x50] sm:$0xff]  }
 0x766   : > { %8886 = vmatpush1.bf16.msra.mxu0 %v12882_v48  ;;  %9043 = vmatpush1.bf16.msra.mxu1 %v12885_v43  ;;  %v12956_v48 = vld [vmem:[%s16321_s9 + $0x8] sm:$0xff]  }
 0x767   : > { %8887 = vmatprep.subr.bf16.mxu0 %v12890_v35  ;;  %9044 = vmatprep.subr.bf16.mxu1 %v12893_v17  ;;  %v12958_v43 = vld [vmem:[%s16321_s9 + $0x88] sm:$0xff]   ;;  %v12961_v35 = vld [vmem:[%s16321_s9 + $0xd0] sm:$0xff]  }
 0x768   : > { %8917 = vmatprep.mubr.bf16.mxu0 %v16450_v39  ;;  %v12960_v17 = vld [vmem:[%s16321_s9 + $0x10] sm:$0xff]  }
 0x76a   : > { %8888 = vmatpush1.bf16.msra.mxu0 %v12888_v24  ;;  %9045 = vmatpush1.bf16.msra.mxu1 %v12891_v58  ;;  %v12962_v24 = vld [vmem:[%s16321_s9 + $0x90] sm:$0xff]  }
 0x76b   : > { %8889 = vmatprep.subr.bf16.mxu0 %v12896_v55  ;;  %9046 = vmatprep.subr.bf16.mxu1 %v12899_v52 }
 0x76e   : > { %8890 = vmatpush1.bf16.msra.mxu0 %v12894_v23  ;;  %9047 = vmatpush1.bf16.msra.mxu1 %v12897_v42 }
 0x76f   : > { %8891 = vmatprep.subr.bf16.mxu0 %v12902_v32  ;;  %9048 = vmatprep.subr.bf16.mxu1 %v12905_v0 }
 0x772   : > { %8892 = vmatpush1.bf16.msra.mxu0 %v12900_v56  ;;  %9049 = vmatpush1.bf16.msra.mxu1 %v12903_v57 }
 0x773   : > { %8893 = vmatprep.subr.bf16.mxu0 %v12908_v13  ;;  %9050 = vmatprep.subr.bf16.mxu1 %v12911_v1  ;;  %v12964_v13 = vld [vmem:[%s16321_s9 + $0x18] sm:$0xff]  }
 0x774   : > { %v12965_v1 = vld [vmem:[%s16321_s9 + $0xd8] sm:$0xff]  }
 0x776   : > { %8894 = vmatpush1.bf16.msra.mxu0 %v12906_v10  ;;  %9051 = vmatpush1.bf16.msra.mxu1 %v12909_v50  ;;  %v12967_v10 = vld [vmem:[%s16321_s9 + $0x60] sm:$0xff]  }
 0x777   : > { %8895 = vmatprep.subr.bf16.mxu0 %v12914_v62  ;;  %9052 = vmatprep.subr.bf16.mxu1 %v12917_v46  ;;  %v12969_v50 = vld [vmem:[%s16321_s9 + $0xe0] sm:$0xff]  }
 0x778   : > { %v12968_v62 = vld [vmem:[%s16321_s9 + $0x20] sm:$0xff]  }
 0x779   : > { %v12970_v46 = vld [vmem:[%s16321_s9 + $0xa0] sm:$0xff]  }
 0x77a   : > { %8896 = vmatpush1.bf16.msra.mxu0 %v12912_v7  ;;  %9053 = vmatpush1.bf16.msra.mxu1 %v12915_v15  ;;  %v12972_v7 = vld [vmem:[%s16321_s9 + $0x28] sm:$0xff]  }
 0x77b   : > { %8897 = vmatprep.subr.bf16.mxu0 %v12920_v4  ;;  %11577 = vmatprep.subr.bf16.mxu1 %v12951_v27  ;;  %v12974_v15 = vld [vmem:[%s16321_s9 + $0xa8] sm:$0xff]   ;;  %v12975_v4 = vld [vmem:[%s16321_s9 + $0x70] sm:$0xff]  }
 0x77d   : > { %9071 = vmatmul.mubr.bf16.vlgmr.msra.gmra.mrb[72].mxu1 %v8956_v38  ;;  %v12979_v38 = vld [vmem:[%s16321_s9 + $0x78] sm:$0xff]  }
 0x77e   : > { %8898 = vmatpush1.bf16.msra.mxu0 %v12918_v28  ;;  %11578 = vmatpush3.bf16.msra.mxu1 %v12952_v5  ;;  %v12978_v28 = vld [vmem:[%s16321_s9 + $0xb0] sm:$0xff]  }
 0x77f   : > { %8899 = vmatprep.subr.bf16.mxu0 %v12924_v8  ;;  %11579 = vmatprep.subr.bf16.mxu1 %v12955_v51  ;;  %v12981_v8 = vld [vmem:[%s16321_s9 + $0xf8] sm:$0xff]  }
 0x782   : > { %8900 = vmatpush1.bf16.msra.mxu0 %v12922_v30  ;;  %11580 = vmatpush3.bf16.msra.mxu1 %v12956_v48 }
 0x783   : > { %9184 = vmatprep.subr.bf16.mxu0 %v12928_v16  ;;  %11581 = vmatprep.subr.bf16.mxu1 %v12959_v54  ;;  %v12982_v16 = vld [vmem:[%s16321_s9 + $0xb8] sm:$0xff]  }
 0x785   : > { %8918 = vmatmul.mubr.bf16.vlgmr.msra.gmra.mrb[60].mxu0 %v8803_v40 }
 0x786   : > { %9185 = vmatpush1.bf16.msra.mxu0 %v12926_v3  ;;  %9216 = vmatprep.mubr.bf16.mxu0 %v16450_v39  ;;  %v12935_v39 = vld [vmem:[%s16319_s7 + $0x430] ss:$8 sps:$4 sm:$0xff]   ;;  %v12985_v3 = vld [vmem:[%s16321_s9 + $0x140] sm:$0xff]  }
 0x787   : > { %9186 = vmatprep.subr.bf16.mxu0 %v12931_v34  ;;  %11582 = vmatpush3.bf16.msra.mxu1 %v12960_v17  ;;  %v12989_v34 = vld [vmem:[%s16321_s9 + $0x1c0] sm:$0xff]  }
 0x788   : > { %11583 = vmatprep.subr.bf16.mxu1 %v12963_v6 }
 0x78a   : > { %9187 = vmatpush1.bf16.msra.mxu0 %v12929_v63 }
 0x78b   : > { %9188 = vmatprep.subr.bf16.mxu0 %v12934_v19  ;;  %11584 = vmatpush3.bf16.msra.mxu1 %v12964_v13 }
 0x78c   : > { %11585 = vmatprep.subr.bf16.mxu1 %v12967_v10 }
 0x78e   : > { %9189 = vmatpush1.bf16.msra.mxu0 %v12932_v9 }
 0x78f   : > { %9190 = vmatprep.subr.bf16.mxu0 %v12937_v47  ;;  %11586 = vmatpush3.bf16.msra.mxu1 %v12968_v62 }
 0x790   : > { %11587 = vmatprep.subr.bf16.mxu1 %v12971_v44 }
 0x792   : > { %9191 = vmatpush1.bf16.msra.mxu0 %v12935_v39 }
 0x793   : > { %9192 = vmatprep.subr.bf16.mxu0 %v12940_v25  ;;  %11588 = vmatpush3.bf16.msra.mxu1 %v12972_v7 }
 0x794   : > { %11589 = vmatprep.subr.bf16.mxu1 %v12975_v4 }
 0x796   : > { %9193 = vmatpush1.bf16.msra.mxu0 %v12938_v49 }
 0x797   : > { %9194 = vmatprep.subr.bf16.mxu0 %v12943_v37  ;;  %11590 = vmatpush3.bf16.msra.mxu1 %v12976_v59 }
 0x798   : > { %11591 = vmatprep.subr.bf16.mxu1 %v12979_v38  ;;  %v12986_v38 = vld [vmem:[%s16321_s9 + $0x100] sm:$0xff]  }
 0x79a   : > { %9195 = vmatpush1.bf16.msra.mxu0 %v12941_v36 }
 0x79b   : > { %9196 = vmatprep.subr.bf16.mxu0 %v12946_v18  ;;  %11592 = vmatpush3.bf16.msra.mxu1 %v12980_v45 }
 0x79c   : > { %11621 = vmatprep.subr.bf16.mxu1 %v12985_v3  ;;  %v12991_v3 = vld [vmem:[%s16321_s9 + $0x148] sm:$0xff]  }
 0x79e   : > { %9197 = vmatpush1.bf16.msra.mxu0 %v12944_v12 }
 0x79f   : > { %9198 = vmatprep.subr.bf16.mxu0 %v12949_v60 }
 0x7a2   : > { %9199 = vmatpush1.bf16.msra.mxu0 %v12947_v14 }
 0x7a3   : > { %11599 = vmatprep.subr.bf16.mxu0 %v12953_v41 }
 0x7a5   : > { %9217 = vmatmul.mubr.bf16.vlgmr.msra.gmra.mrb[64].mxu0 %v9102_v31 }
 0x7a6   : > { %11600 = vmatpush3.bf16.msra.mxu0 %v12954_v33 }
 0x7a7   : > { %11601 = vmatprep.subr.bf16.mxu0 %v12957_v29 }
 0x7aa   : > { %11602 = vmatpush3.bf16.msra.mxu0 %v12958_v43 }
 0x7ab   : > { %11603 = vmatprep.subr.bf16.mxu0 %v12961_v35 }
 0x7ae   : > { %11604 = vmatpush3.bf16.msra.mxu0 %v12962_v24 }
 0x7af   : > { %11605 = vmatprep.subr.bf16.mxu0 %v12965_v1 }
 0x7b2   : > { %11606 = vmatpush3.bf16.msra.mxu0 %v12966_v11 }
 0x7b3   : > { %11607 = vmatprep.subr.bf16.mxu0 %v12969_v50 }
 0x7b6   : > { %11608 = vmatpush3.bf16.msra.mxu0 %v12970_v46 }
 0x7b7   : > { %11609 = vmatprep.subr.bf16.mxu0 %v12973_v21 }
 0x7ba   : > { %11610 = vmatpush3.bf16.msra.mxu0 %v12974_v15 }
 0x7bb   : > { %11611 = vmatprep.subr.bf16.mxu0 %v12977_v2 }
 0x7be   : > { %11612 = vmatpush3.bf16.msra.mxu0 %v12978_v28 }
 0x7bf   : > { %11613 = vmatprep.subr.bf16.mxu0 %v12981_v8 }
 0x7c2   : > { %11614 = vmatpush3.bf16.msra.mxu0 %v12982_v16  ;;  %v12990_v16 = vld [vmem:[%s16321_s9 + $0x180] sm:$0xff]  }
 0x7c3   : > { %11643 = vmatprep.subr.bf16.mxu0 %v12989_v34  ;;  %v12993_v34 = vld [vmem:[%s16321_s9 + $0x1c8] sm:$0xff]  }
 0x7f0   : > { %v8184_v58 = vpop.f32.mrb[60].mxu1 }
 0x7f1   : > { %v8186_v55 = vpop.f32.mrb[61].mxu1 }
 0x7f2   : > { %v8188_v52 = vpop.f32.mrb[62].mxu1 }
 0x7f3   : > { %v8189_v23 = vpop.f32.mrb[63].mxu1 }
 0x7f8   : > { %v8063_v42 = vpop.f32.mrb[48].mxu0 }
 0x7f9   : > { %v8185_v32 = vadd.f32 %v8184_v58, %v8063_v42  ;;  %v8065_v0 = vpop.f32.mrb[49].mxu0 }
 0x7fa   : > { %v8187_v61 = vadd.f32 %v8186_v55, %v8065_v0  ;;  %v8067_v56 = vpop.f32.mrb[50].mxu0 }
 0x7fb   : > { %v8068_v57 = vpop.f32.mrb[51].mxu0 }
 0x810   : > { %v8477_v30 = vpop.f32.mrb[64].mxu1 }
 0x811   : > { %v8479_v20 = vpop.f32.mrb[65].mxu1 }
 0x812   : > { %v8481_v40 = vpop.f32.mrb[66].mxu1 }
 0x813   : > { %v8482_v63 = vpop.f32.mrb[67].mxu1 }
 0x814   : > { %v12992_v63 = vld [vmem:[%s16321_s9 + $0x108] sm:$0xff]  }
 0x818   : > { %v8328_v19 = vpop.f32.mrb[52].mxu0 }
 0x819   : > { %v8335_v9 = vadd.f32 %v8328_v19, %v8185_v32  ;;  %v8330_v47 = vpop.f32.mrb[53].mxu0  ;;  %v16464_v32 = vld [vmem:[#allocation13_spill] sm:$0xff] }
 0x81a   : > { %v8336_v39 = vadd.f32 %v8330_v47, %v8187_v61  ;;  %v8332_v25 = vpop.f32.mrb[54].mxu0  ;;  %v9231_v0 = vsub.s32 0, %v16464_v32  ;;  %v9227_v61 = vld [vmem:[%s16320_s8] sm:$0x3]  ;;  %v9235_v56 = vsub.s32 1, %v16464_v32  ;;  %v12994_v47 = vld [vmem:[%s16321_s9 + $0x188] sm:$0xff]  }
 0x81b   : > { %v8333_v49 = vpop.f32.mrb[55].mxu0  ;;  %v8484_v37 = vadd.f32 %v8477_v30, %v8335_v9  ;;  %v12995_v9 = vld [vmem:[%s16321_s9 + $0x150] sm:$0xff]  }
 0x81c   : > { %v8485_v36 = vadd.f32 %v8479_v20, %v8336_v39  ;;  %v9232_v57 = vrot.slane %v9227_v61, %v9231_v0  ;;  %v9236_v13 = vrot.slane %v9227_v61, %v9235_v56  ;;  %v12997_v39 = vld [vmem:[%s16321_s9 + $0x1d0] sm:$0xff]   ;;  %v12999_v49 = vld [vmem:[%s16321_s9 + $0x158] sm:$0xff]   ;;  %v13023_v61 = vld [vmem:[%s16323_s11 + $0x20] sm:$0xff]  }
 0x81d   : > { %v12996_v25 = vld [vmem:[%s16321_s9 + $0x110] sm:$0xff]   ;;  %v13022_v0 = vld [vmem:[%s16323_s11 + $0x18] sm:$0xff]   ;;  %v13024_v56 = vld [vmem:[%s16323_s11 + $0x28] sm:$0xff]  }
 0x81e   : > { %v13021_v32 = vld [vmem:[%s16323_s11 + $0x10] sm:$0xff]  }
 0x830   : > { %v8770_v18 = vpop.f32.mrb[68].mxu1 }
 0x831   : > { %v8772_v12 = vpop.f32.mrb[69].mxu1 }
 0x832   : > { %v8774_v60 = vpop.f32.mrb[70].mxu1 }
 0x833   : > { %v8775_v26 = vpop.f32.mrb[71].mxu1  ;;  %v13002_v60 = vld [vmem:[%s16321_s9 + $0x198] sm:$0xff]  }
 0x834   : > { %v13005_v26 = vld [vmem:[%s16321_s9 + $0x1e0] sm:$0xff]  }
 0x838   : > { %v8630_v14 = vpop.f32.mrb[56].mxu0 }
 0x839   : > { %v8637_v22 = vadd.f32 %v8630_v14, %v8484_v37  ;;  %v8632_v31 = vpop.f32.mrb[57].mxu0  ;;  %v12998_v37 = vld [vmem:[%s16321_s9 + $0x190] sm:$0xff]   ;;  %v13004_v14 = vld [vmem:[%s16321_s9 + $0x120] sm:$0xff]  }
 0x83a   : > { %v8638_v27 = vadd.f32 %v8632_v31, %v8485_v36  ;;  %v8634_v5 = vpop.f32.mrb[58].mxu0  ;;  %v13001_v36 = vld [vmem:[%s16321_s9 + $0x1d8] sm:$0xff]   ;;  %v13006_v31 = vld [vmem:[%s16321_s9 + $0x1a0] sm:$0xff]  }
 0x83b   : > { %v8635_v41 = vpop.f32.mrb[59].mxu0  ;;  %v8777_v33 = vadd.f32 %v8770_v18, %v8637_v22  ;;  %v13000_v18 = vld [vmem:[%s16321_s9 + $0x118] sm:$0xff]   ;;  %v13007_v22 = vld [vmem:[%s16321_s9 + $0x168] sm:$0xff]  }
 0x83c   : > { %v8778_v51 = vadd.f32 %v8772_v12, %v8638_v27  ;;  %v13003_v12 = vld [vmem:[%s16321_s9 + $0x160] sm:$0xff]   ;;  %v13009_v27 = vld [vmem:[%s16321_s9 + $0x1e8] sm:$0xff]   ;;  %v13011_v41 = vld [vmem:[%s16321_s9 + $0x170] sm:$0xff]  }
 0x83d   : > { %v13008_v5 = vld [vmem:[%s16321_s9 + $0x128] sm:$0xff]  }
 0x850   : > { %v9072_v29 = vpop.f32.mrb[72].mxu1 }
 0x851   : > { %v9074_v48 = vpop.f32.mrb[73].mxu1 }
 0x852   : > { %v9076_v43 = vpop.f32.mrb[74].mxu1 }
 0x853   : > { %v9077_v54 = vpop.f32.mrb[75].mxu1  ;;  %v13014_v43 = vld [vmem:[%s16321_s9 + $0x1b0] sm:$0xff]  }
 0x858   : > { %v8919_v35 = vpop.f32.mrb[60].mxu0 }
 0x859   : > { %v8926_v17 = vadd.f32 %v8919_v35, %v8777_v33  ;;  %v8921_v24 = vpop.f32.mrb[61].mxu0  ;;  %v13010_v33 = vld [vmem:[%s16321_s9 + $0x1a8] sm:$0xff]   ;;  %v13017_v35 = vld [vmem:[%s16321_s9 + $0x1f8] sm:$0xff]  }
 0x85a   : > { %v8927_v58 = vadd.f32 %v8921_v24, %v8778_v51  ;;  %v8923_v55 = vpop.f32.mrb[62].mxu0  ;;  %v13013_v51 = vld [vmem:[%s16321_s9 + $0x1f0] sm:$0xff]   ;;  %v13018_v24 = vld [vmem:[%s16321_s9 + $0x1b8] sm:$0xff]  }
 0x85b   : > { %v8924_v52 = vpop.f32.mrb[63].mxu0  ;;  %v9079_v23 = vadd.f32 %v9072_v29, %v8926_v17  ;;  %v13012_v29 = vld [vmem:[%s16321_s9 + $0x130] sm:$0xff]   ;;  %v13016_v17 = vld [vmem:[%s16321_s9 + $0x138] sm:$0xff]  }
 0x85c   : > { %v9080_v42 = vadd.f32 %v9074_v48, %v8927_v58  ;;  %v13015_v48 = vld [vmem:[%s16321_s9 + $0x178] sm:$0xff]  }
 0x878   : > { %v9218_v6 = vpop.f32.mrb[64].mxu0 }
 0x879   : > { %v9225_v1 = vadd.f32 %v9218_v6, %v9079_v23  ;;  %v9220_v11 = vpop.f32.mrb[65].mxu0  ;;  %v13019_v23 = vld [vmem:[%s16323_s11] sm:$0xff]   ;;  %v13026_v6 = vld [vmem:[%s16323_s11 + $0x38] sm:$0xff]  }
 0x87a   : > { %v9226_v10 = vadd.f32 %v9220_v11, %v9080_v42  ;;  %v9222_v50 = vpop.f32.mrb[66].mxu0  ;;  %v13020_v42 = vld [vmem:[%s16323_s11 + $0x8] sm:$0xff]  }
 0x87b   : > { %v9239_v62 = vadd.f32 %v9232_v57, %v9225_v1  ;;  %v9223_v46 = vpop.f32.mrb[67].mxu0  ;;  %v13025_v57 = vld [vmem:[%s16323_s11 + $0x30] sm:$0xff]   ;;  %v13028_v1 = vld [vmem:[%s16325_s13 + $0x8] sm:$0xff]  }
 0x87c   : > { %v9240_v44 = vadd.f32 %v9236_v13, %v9226_v10  ;;  %v13027_v13 = vld [vmem:[%s16325_s13] sm:$0xff]  }
 0x87d   : > { %v9241_v21 = vmax.f32 %v9239_v62, 0.0  ;;  %v9252_v10 = vld [vmem:[%s16322_s10] sm:$0x1] }
 0x87e   : > { %v9242_v7 = vmax.f32 %v9240_v44, 0.0 }
 0x880   : > { %v11286_v15 = vpack.c.bf16 %v9242_v7, %v9241_v21 }
 0x882   : > { %9251 = vst [vmem:[#allocation7] sm:$0xff] %v11286_v15 }
 0x889   : > { %v9253_v4 = vld [vmem:[#allocation7] sm:$0x11]  ;;  %v16104_v2 = vld [vmem:[#allocation7] sm:$0x88] }
 0x88a   : > { %v11050_v59 = vcombine.low %v9253_v4, %v9253_v4  ;;  %v11051_v28 = vcombine.high %v9253_v4, %v9253_v4  ;;  %v11149_v8 = vcombine.high %v16104_v2, %v16104_v2  ;;  %v11148_v54 = vcombine.low %v16104_v2, %v16104_v2 }
 0x88c   : > { %9421 = vmatprep.mubr.bf16.mxu1 %v11051_v28  ;;  %v9464_v30 = vshrl.u32 %v11050_v59, 16  ;;  %v9467_v45 = vshrl.u32 %v11051_v28, 16  ;;  %v9648_v20 = vrot.slane %v11149_v8, 3  ;;  %v9826_v40 = vshrl.u32 %v11149_v8, 16 }
 0x88d   : > { %9422 = vmatmul.mubr.bf16.vlgmr.msra.gmra.mrb[76].mxu1 %v11050_v59  ;;  %v9822_v58 = vshrl.u32 %v11148_v54, 16  ;;  %v9647_v55 = vrot.slane %v11148_v54, 3 }
 0x88e   : > { %11622 = vmatpush3.bf16.msra.mxu1 %v12986_v38  ;;  %9599 = vmatprep.mubr.bf16.mxu0 %v9467_v45  ;;  %v9828_v19 = vrot.slane %v9826_v40, 3 }
 0x88f   : > { %9779 = vmatprep.mubr.bf16.mxu1 %v9648_v20  ;;  %9600 = vmatmul.mubr.bf16.vlgmr.msra.gmra.mrb[68].mxu0 %v9464_v30  ;;  %v9824_v52 = vrot.slane %v9822_v58, 3 }
 0x890   : > { %11644 = vmatpush3.bf16.msra.mxu0 %v12990_v16  ;;  %11623 = vmatprep.subr.bf16.mxu1 %v12991_v3 }
 0x891   : > { %9959 = vmatprep.mubr.bf16.mxu0 %v9828_v19  ;;  %11645 = vmatprep.subr.bf16.mxu0 %v12993_v34 }
 0x892   : > { %11624 = vmatpush3.bf16.msra.mxu1 %v12992_v63 }
 0x893   : > { %11625 = vmatprep.subr.bf16.mxu1 %v12995_v9 }
 0x894   : > { %11646 = vmatpush3.bf16.msra.mxu0 %v12994_v47 }
 0x895   : > { %11647 = vmatprep.subr.bf16.mxu0 %v12997_v39 }
 0x896   : > { %11626 = vmatpush3.bf16.msra.mxu1 %v12996_v25  ;;  %v13029_v25 = vld [vmem:[%s16325_s13 + $0x10] sm:$0xff]  }
 0x897   : > { %11627 = vmatprep.subr.bf16.mxu1 %v12999_v49  ;;  %v13030_v49 = vld [vmem:[%s16325_s13 + $0x18] sm:$0xff]  }
 0x898   : > { %11648 = vmatpush3.bf16.msra.mxu0 %v12998_v37  ;;  %v9986_v37 = vld [vmem:[%s16324_s12] sm:$0x1] }
 0x899   : > { %11649 = vmatprep.subr.bf16.mxu0 %v13001_v36 }
 0x89a   : > { %11628 = vmatpush3.bf16.msra.mxu1 %v13000_v18 }
 0x89b   : > { %11629 = vmatprep.subr.bf16.mxu1 %v13003_v12 }
 0x89c   : > { %11650 = vmatpush3.bf16.msra.mxu0 %v13002_v60 }
 0x89d   : > { %11651 = vmatprep.subr.bf16.mxu0 %v13005_v26 }
 0x89e   : > { %11630 = vmatpush3.bf16.msra.mxu1 %v13004_v14 }
 0x89f   : > { %11631 = vmatprep.subr.bf16.mxu1 %v13007_v22 }
 0x8a0   : > { %11652 = vmatpush3.bf16.msra.mxu0 %v13006_v31  ;;  %v10085_v31 = vld [vmem:[%s16326_s14] sm:$0x1] }
 0x8a1   : > { %11653 = vmatprep.subr.bf16.mxu0 %v13009_v27 }
 0x8a2   : > { %11632 = vmatpush3.bf16.msra.mxu1 %v13008_v5 }
 0x8a3   : > { %11633 = vmatprep.subr.bf16.mxu1 %v13011_v41 }
 0x8a4   : > { %11654 = vmatpush3.bf16.msra.mxu0 %v13010_v33 }
 0x8a5   : > { %11655 = vmatprep.subr.bf16.mxu0 %v13013_v51 }
 0x8a6   : > { %11634 = vmatpush3.bf16.msra.mxu1 %v13012_v29 }
 0x8a7   : > { %11635 = vmatprep.subr.bf16.mxu1 %v13015_v48 }
 0x8a8   : > { %11656 = vmatpush3.bf16.msra.mxu0 %v13014_v43 }
 0x8a9   : > { %11657 = vmatprep.subr.bf16.mxu0 %v13017_v35 }
 0x8aa   : > { %11636 = vmatpush3.bf16.msra.mxu1 %v13016_v17 }
 0x8ab   : > { %12487 = vmatprep.subr.bf16.mxu1 %v16402_v53 }
 0x8ac   : > { %11658 = vmatpush3.bf16.msra.mxu0 %v13018_v24 }
 0x8ad   : > { %9780 = vmatmul.mubr.bf16.vlgmr.msra.gmra.mrb[80].mxu1 %v9647_v55  ;;  %12507 = vmatprep.subr.bf16.mxu0 %v16402_v53 }
 0x8ae   : > { %12503 = vmatprep.mubr.msk.bf16.mxu1 %vm13106_vm1, %v16402_v53  ;;  %12488 = vmatpush3.bf16.msra.mxu1 %v13019_v23 }
 0x8af   : > { %9960 = vmatmul.mubr.bf16.vlgmr.msra.gmra.mrb[72].mxu0 %v9824_v52  ;;  %12489 = vmatprep.subr.bf16.mxu1 %v16402_v53 }
 0x8b0   : > { %12515 = vmatprep.mubr.msk.bf16.mxu0 %vm13106_vm1, %v16402_v53  ;;  %12508 = vmatpush3.bf16.msra.mxu0 %v13027_v13  ;;  %vm10153_vm1 = vcmask 73728  }
 0x8b1   : > { %12509 = vmatprep.subr.bf16.mxu0 %v16402_v53 }
 0x8b2   : > { %12490 = vmatpush3.bf16.msra.mxu1 %v13020_v42 }
 0x8b3   : > { %12491 = vmatprep.subr.bf16.mxu1 %v16402_v53 }
 0x8b4   : > { %12510 = vmatpush3.bf16.msra.mxu0 %v13028_v1 }
 0x8b5   : > { %12511 = vmatprep.subr.bf16.mxu0 %v16402_v53 }
 0x8b6   : > { %12492 = vmatpush3.bf16.msra.mxu1 %v13021_v32 }
 0x8b7   : > { %12493 = vmatprep.subr.bf16.mxu1 %v16402_v53 }
 0x8b8   : > { %12512 = vmatpush3.bf16.msra.mxu0 %v13029_v25 }
 0x8b9   : > { %12513 = vmatprep.subr.bf16.mxu0 %v16402_v53 }
 0x8ba   : > { %12494 = vmatpush3.bf16.msra.mxu1 %v13022_v0 }
 0x8bb   : > { %12495 = vmatprep.subr.bf16.mxu1 %v16402_v53 }
 0x8bc   : > { %12514 = vmatpush3.bf16.msra.mxu0 %v13030_v49 }
 0x8be   : > { %12496 = vmatpush3.bf16.msra.mxu1 %v13023_v61 }
 0x8bf   : > { %12497 = vmatprep.subr.bf16.mxu1 %v16402_v53 }
 0x8c2   : > { %12498 = vmatpush3.bf16.msra.mxu1 %v13024_v56 }
 0x8c3   : > { %12499 = vmatprep.subr.bf16.mxu1 %v16402_v53 }
 0x8c6   : > { %12500 = vmatpush3.bf16.msra.mxu1 %v13025_v57 }
 0x8c7   : > { %12501 = vmatprep.subr.bf16.mxu1 %v16402_v53 }
 0x8ca   : > { %12502 = vmatpush3.bf16.msra.mxu1 %v13026_v6 }
 0x960   : > { %v11593_v11 = vpop.f32.mrb[76].mxu1 }
 0x961   : > { %v11594_v50 = vpop.f32.mrb[77].mxu1 }
 0x962   : > { %v11595_v62 = vadd.f32 %v11594_v50, %v11593_v11  ;;  %v11596_v46 = vpop.f32.mrb[78].mxu1  ;;  %v11615_v44 = vpop.f32.mrb[68].mxu0 }
 0x963   : > { %v11597_v21 = vpop.f32.mrb[79].mxu1  ;;  %v11616_v7 = vpop.f32.mrb[69].mxu0 }
 0x964   : > { %v9429_v15 = vadd.f32 %v11595_v62, %v9252_v10  ;;  %v11617_v4 = vadd.f32 %v11616_v7, %v11615_v44  ;;  %v11618_v2 = vpop.f32.mrb[70].mxu0 }
 0x965   : > { %v11619_v59 = vpop.f32.mrb[71].mxu0 }
 0x966   : > { %v9607_v28 = vadd.f32 %v11617_v4, %v9429_v15 }
 0x980   : > { %v11637_v38 = vpop.f32.mrb[80].mxu1 }
 0x981   : > { %v11638_v8 = vpop.f32.mrb[81].mxu1 }
 0x982   : > { %v11639_v30 = vadd.f32 %v11638_v8, %v11637_v38  ;;  %v11640_v45 = vpop.f32.mrb[82].mxu1  ;;  %v11659_v20 = vpop.f32.mrb[72].mxu0 }
 0x983   : > { %v11641_v16 = vpop.f32.mrb[83].mxu1  ;;  %v11660_v3 = vpop.f32.mrb[73].mxu0 }
 0x984   : > { %v9787_v40 = vadd.f32 %v11639_v30, %v9607_v28  ;;  %v11661_v34 = vadd.f32 %v11660_v3, %v11659_v20  ;;  %v11662_v63 = vpop.f32.mrb[74].mxu0 }
 0x985   : > { %v11663_v19 = vpop.f32.mrb[75].mxu0 }
 0x986   : > { %v9967_v9 = vadd.f32 %v11661_v34, %v9787_v40 }
 0x988   : > { %v9968_v47 = vmax.f32 %v9967_v9, 0.0 }
 0x98a   : > { %v9969_v39 = vpack.c.bf16 %v9968_v47, %v9968_v47 }
 0x98c   : > { %12504 = vmatmul.mubr.bf16.vlgmr.msra.gmra.mrb[84].mxu1 %v9969_v39 }
 0xa5f   : > { %v10069_v36 = vpop.f32.mrb[84].mxu1 }
 0xa60   : > { %v10070_v18 = vadd.f32 %v10069_v36, %v9986_v37  ;;  %v12505_v12 = vpop.f32.mrb[85].mxu1 }
 0xa61   : > { %v10072_v60 = vpop.f32.mrb[86].mxu1 }
 0xa62   : > { %v10075_v26 = vmax.f32 %v10070_v18, 0.0  ;;  %v12506_v14 = vpop.f32.mrb[87].mxu1 }
 0xa64   : > { %v10076_v22 = vpack.c.bf16 %v10075_v26, %v10075_v26 }
 0xa66   : > { %12516 = vmatmul.mubr.msk.bf16.vlgmr.msra.gmra.mrb[76].mxu0 %vm7023_vm3, %v10076_v22 }
 0xb39   : > { %v10147_v27 = vpop.f32.mrb[76].mxu0 }
 0xb3a   : > { %v10148_v53 = vadd.f32 %v10147_v27, %v10085_v31  ;;  %v12517_v5 = vpop.f32.mrb[77].mxu0 }
 0xb3b   : > { %v10150_v41 = vpop.f32.mrb[78].mxu0 }
 0xb3c   : > { %v12518_v33 = vpop.f32.mrb[79].mxu0  ;;  %v10154_v51 = vsel %vm10153_vm1, %v10148_v53, -inf }
 0xb3d   : > { %10155 = vmax.xlane.f32.xlu0 %v10154_v51 }
 0xbca   : > { %v10156_v29 = vpop.xlane.xlu0 %10155 }
 0xbcb   : > { %v10157_v48 = vsub.f32 %v10148_v53, %v10156_v29 }
 0xbcd   : > { %v10158_v43 = vmul.f32 1.442695, %v10157_v48 }
 0xbcf   : > { %13031 = vpow2.f32 %v10158_v43 }
 0xbd9   : > { %v13032_v54 = vpop.eup %13031 }
 0xbda   : > { %v10160_v35 = vsel %vm10153_vm1, %v13032_v54, 0.0 }
 0xbdb   : > { %10161 = vadd.xlane.f32.xlu0 %v10160_v35 }
 0xc68   : > { %v10162_v17 = vpop.xlane.xlu0 %10161 }
 0xc69   : > { %13033 = vlog2.f32 %v10162_v17 }
 0xc73   : > { %v13034_v24 = vpop.eup %13033 }
 0xc74   : > { %v10164_v58 = vmul.f32 0.6931472, %v13034_v24 }
 0xc76   : > { %v10165_v55 = vsub.f32 %v10157_v48, %v10164_v58 }
 0xc78   : > { %10166 = vst.msk [vmem:[%s486_s23] sm:$0x1] %vm10153_vm1, %v10165_v55 }
 0xc79   : > { %13054 = shalt.err (!%p13051_p3)
}
 0xc7a   : > { %s13055_s16 = scalar_lea.hbm %s16269_s30, 16  ;;  %s13059_s2 = scalar_lea.hbm %s16327_s15, 32 }
 0xc7b   : > { %p13056_p4 = scmp.ne.s32.totalorder %s16269_s30, %s13055_s16  ;;  %p13060_p9 = scmp.lt.u32.totalorder %s16269_s30, %s16327_s15 }
 0xc7c   : > { %p13061_p10 = scmp.lt.u32.totalorder %s13059_s2, %s13055_s16  ;;  %p13063_p12 = scmp.lt.u32.totalorder %s13055_s16, %s16269_s30 }
 0xc7d   : > { %p13057_p7 = pnand %p13056_p4, %p13227_p5 }
 0xc7e   : > { %p13062_p11 = por %p13061_p10, %p13060_p9 }
 0xc7f   : > { %p13058_p8 = pneg %p13057_p7 }
 0xc80   : > { %p13064_p13 = por %p13063_p12, %p13062_p11 }
 0xc82   : > { %p13065_p0 = pnand %p13064_p13, %p13058_p8 }
 0xc84   : > { %13068 = shalt.err (!%p13065_p0)
}
 0xc85   : > { %12520 = dma.vmem_to_hbm [thread:$0]  (%p13227_p5), %s16271_s25, 16, %s16269_s30, %s10168_s20  }
 0xc86 PF: > { %p12526_p1 = scmp.ge.s32.totalorder %s13103_s21, 2  ;;  %s10192_s27 = sand.u32 1, %s13091_s18  }
 0xc87   : > { %s10193_s1 = scalar_lea.sflag [#allocation9], %s10192_s27 }
 0xc88   : > { %p12523_p2 = pnand %p12526_p1, %p13231_p6 }
 0xc8a   : > { %13086 = dma.done.wait (!%p12523_p2), %s10193_s1, 16  }
 0xc8b   : > { %13088 = vsyncadd (!%p12523_p2), %s10193_s1, 4294967280  ;;  %s16465_s0 = sld [smem:[#allocation11_spill]]  ;;  %s16466_s20 = sld [smem:[#allocation12_spill]] }
 0xc8c   : > { %p25_p3 = scmp.ge.s32.totalorder %s13214_s24, 4   ;;  %s16467_s18 = smov %s13095_s19 }
 0xc8d   : > { %s16469_s21 = smov %s13214_s24 }
 0xc8e   :  { %27 = sbr.rel (!%p25_p3) target bundleno = 7 (0x7), region = 142 }
 0xc91   : > { %s16468_s19 = smov %s16465_s0 }
 0xc95   :  { %10197 = vsyncpa [#allocation9], 1 }
 0xc96   :  { %10199 = vsyncpa [#allocation9 + $0x1], 1 }

</bundles_post_ra>
